<compile_context>
chip_gen: v7x
topology: tpu7x:2x2x1
jax: 0.10.0
libtpu: 0.0.40
codegen_flags: <defaults>
</compile_context>

<pallas_src>
import math
import numpy as np
import jax
import jax.numpy as jnp
from jax.experimental import pallas as pl
from jax.experimental.pallas import tpu as pltpu

# ----------------------------- configuration --------------------------------
EMBED_SIZE = 32
HEADS = 4
HEAD_DIM = EMBED_SIZE // HEADS
FF_HIDDEN = 64
NUM_LAYERS = 2
BATCH = 2
SEQ_LEN = 8
LN_EPS = 1e-5

TOK = BATCH * SEQ_LEN          # rows of the flattened activation tile
MROWS = HEADS * TOK            # rows of the merged (all-heads, all-batch) attention


# ----------------------------- parameter init -------------------------------
def init_params(key):
    """Deterministic synthetic init mirroring the PyTorch module's shapes."""
    E, FF, NL = EMBED_SIZE, FF_HIDDEN, NUM_LAYERS

    def uni(k, shape, fan_in):
        bound = 1.0 / math.sqrt(fan_in)
        return jax.random.uniform(k, shape, jnp.float32, -bound, bound)

    keys = jax.random.split(key, 2 + NL)
    k_emb, k_out, layer_keys = keys[0], keys[1], keys[2:]

    ke_w, ke_b = jax.random.split(k_emb)
    emb_w = uni(ke_w, (1, E), 1)          # Linear(1, E) weight (transposed)
    emb_b = uni(ke_b, (1, E), 1)

    ko_w, ko_b = jax.random.split(k_out)
    out_w = uni(ko_w, (E, 1), E)          # Linear(E, 1)
    out_b = uni(ko_b, (1, 1), E)

    P = {"emb_w": emb_w, "emb_b": emb_b, "out_w": out_w, "out_b": out_b}
    names_3d = ["wq", "wk", "wv", "wo", "f1w", "f2w", "f3w"]
    names_2d = ["bo", "f1b", "f2b", "f3b", "ln1_w", "ln1_b", "ln2_w", "ln2_b"]
    acc = {n: [] for n in names_3d + names_2d}

    for lk in layer_keys:
        ks = jax.random.split(lk, 16)
        acc["wq"].append(uni(ks[0], (E, E), E))           # no bias (PyTorch)
        acc["wk"].append(uni(ks[1], (E, E), E))
        acc["wv"].append(uni(ks[2], (E, E), E))
        acc["wo"].append(uni(ks[3], (E, E), E))
        acc["bo"].append(uni(ks[4], (1, E), E))
        acc["f1w"].append(uni(ks[5], (E, FF), E))
        acc["f1b"].append(uni(ks[6], (1, FF), E))
        acc["f2w"].append(uni(ks[7], (E, FF), E))
        acc["f2b"].append(uni(ks[8], (1, FF), E))
        acc["f3w"].append(uni(ks[9], (FF, E), FF))
        acc["f3b"].append(uni(ks[10], (1, E), FF))
        acc["ln1_w"].append(jnp.ones((1, E), jnp.float32))   # LayerNorm default
        acc["ln1_b"].append(jnp.zeros((1, E), jnp.float32))
        acc["ln2_w"].append(jnp.ones((1, E), jnp.float32))
        acc["ln2_b"].append(jnp.zeros((1, E), jnp.float32))

    for n in names_3d + names_2d:
        P[n] = jnp.stack(acc[n], axis=0)
    return P


def rope_tables(seq_len, head_dim):
    """cos/sin tables (L, Hd) using the interleaved (pairwise) RoPE convention."""
    pos = np.arange(seq_len, dtype=np.float32)[:, None]
    ids = np.arange(head_dim // 2, dtype=np.float32)
    theta = np.power(10000.0, -2.0 * ids / head_dim)
    ang = pos * theta                                    # (L, Hd/2)
    cos = np.repeat(np.cos(ang), 2, axis=-1)             # (L, Hd)
    sin = np.repeat(np.sin(ang), 2, axis=-1)
    return jnp.asarray(cos), jnp.asarray(sin)


def prepare_kernel_params(P, cos, sin):
    """One-time parameter transforms (RoPE fold, scale fold, per-head Wo layout)."""
    E, H, Hd, NL, B = EMBED_SIZE, HEADS, HEAD_DIM, NUM_LAYERS, BATCH
    scale = 1.0 / math.sqrt(Hd)

    # Interleaved RoPE rotation as an exact column permutation + sign flip:
    #   (x @ W) rotated  ==  x @ W_rot   with  W_rot[:, 2i]   = -W[:, 2i+1]
    #                                          W_rot[:, 2i+1] =  W[:, 2i]
    cols = np.arange(E)
    perm = np.where(cols % 2 == 0, cols + 1, cols - 1)
    sign = jnp.asarray(np.where(cols % 2 == 0, -1.0, 1.0).astype(np.float32))

    def rot(w):                      # w: (NL, E, E)
        return w[:, :, perm] * sign[None, None, :]

    cos_te = jnp.tile(jnp.tile(cos, (1, H)), (B, 1))     # (B*L, E)
    sin_te = jnp.tile(jnp.tile(sin, (1, H)), (B, 1))

    return dict(
        emb_w=P["emb_w"], emb_b=P["emb_b"],
        out_w=P["out_w"], out_b=P["out_b"],
        ln1_w=P["ln1_w"], ln1_b=P["ln1_b"],
        ln2_w=P["ln2_w"], ln2_b=P["ln2_b"],
        wq=P["wq"] * scale, wq_rot=rot(P["wq"]) * scale,   # 1/sqrt(Hd) folded into Q
        wk=P["wk"], wk_rot=rot(P["wk"]),
        wv=P["wv"],
        wo_h=P["wo"].reshape(NL, H, Hd, E).reshape(NL * H, Hd, E),
        bo=P["bo"],
        f1w=P["f1w"], f1b=P["f1b"], f2w=P["f2w"], f2b=P["f2b"],
        f3w=P["f3w"], f3b=P["f3b"],
        cos=cos_te, sin=sin_te,
    )


def build_merged_mask(mask):
    """Additive mask (MROWS, MROWS) for the merged all-heads/all-batch attention."""
    r = np.arange(MROWS)
    h_idx = r // TOK
    t_idx = r % TOK
    b_idx = t_idx // SEQ_LEN
    l_idx = t_idx % SEQ_LEN
    same = jnp.asarray((h_idx[:, None] == h_idx[None, :]) &
                       (b_idx[:, None] == b_idx[None, :]))
    blocked = mask[l_idx[:, None], l_idx[None, :]] > 0.5       # user (causal) mask
    allowed = jnp.logical_and(same, jnp.logical_not(blocked))
    return jnp.where(allowed, 0.0, -1e30).astype(jnp.float32)


# ------------------------------ Pallas kernel --------------------------------
def _decoder_kernel(x_ref, maskadd_ref, cos_ref, sin_ref,
                    embw_ref, embb_ref,
                    ln1w_ref, ln1b_ref, ln2w_ref, ln2b_ref,
                    wq_ref, wqr_ref, wk_ref, wkr_ref, wv_ref,
                    woh_ref, bo_ref,
                    f1w_ref, f1b_ref, f2w_ref, f2b_ref, f3w_ref, f3b_ref,
                    outw_ref, outb_ref,
                    out_ref,
                    qm_ref, km_ref, vm_ref):
    H, Hd, T = HEADS, HEAD_DIM, TOK
    prec = jax.lax.Precision.HIGHEST

    def mm(a, b):
        return jnp.dot(a, b, precision=prec, preferred_element_type=jnp.float32)

    # embedding: Linear(1, E) applied to x.unsqueeze(-1)
    h = x_ref[...] * embw_ref[...] + embb_ref[...]        # (T, E)

    mask_add = maskadd_ref[...]                           # (H*T, H*T), hoisted
    cos_v = cos_ref[...]                                  # (T, E), hoisted
    sin_v = sin_ref[...]

    def layer_norm(v, w, b):
        mu = jnp.mean(v, axis=-1, keepdims=True)
        var = jnp.mean((v - mu) ** 2, axis=-1, keepdims=True)
        return (v - mu) * jax.lax.rsqrt(var + LN_EPS) * w + b

    for l in range(NUM_LAYERS):
        # ---------------- attention block ----------------
        xn = layer_norm(h, ln1w_ref[l], ln1b_ref[l])
        # RoPE and 1/sqrt(Hd) are folded into the weights -> pure VPU mul/add here.
        q = mm(xn, wq_ref[l]) * cos_v + mm(xn, wqr_ref[l]) * sin_v
        k = mm(xn, wk_ref[l]) * cos_v + mm(xn, wkr_ref[l]) * sin_v
        v = mm(xn, wv_ref[l])

        # scatter heads into the merged (H*T, Hd) layout (static slice-stores only)
        for hh in range(H):
            rows = slice(hh * T, (hh + 1) * T)
            cols = slice(hh * Hd, (hh + 1) * Hd)
            qm_ref[rows, :] = q[:, cols]
            km_ref[rows, :] = k[:, cols]
            vm_ref[rows, :] = v[:, cols]

        qm = qm_ref[...]
        km = km_ref[...]
        vm = vm_ref[...]

        # all heads x both batch elements: one energy matmul, one softmax, one p@v
        e = jax.lax.dot_general(qm, km, (((1,), (1,)), ((), ())),
                                precision=prec,
                                preferred_element_type=jnp.float32)
        e = e + mask_add
        e = e - jnp.max(e, axis=-1, keepdims=True)
        p = jnp.exp(e)
        p = p * pl.reciprocal(jnp.sum(p, axis=-1, keepdims=True), approx=False)
        om = mm(p, vm)                                    # (H*T, Hd)

        # output projection: sum of per-head partial matmuls (sublane slices, no concat)
        attn = bo_ref[l]                                  # (1, E), broadcasts up
        for hh in range(H):
            attn = attn + mm(om[hh * T:(hh + 1) * T, :], woh_ref[l * H + hh])
        h = attn + h                                      # dropout(p=0.0) == identity

        # ---------------- feed-forward block ----------------
        xn2 = layer_norm(h, ln2w_ref[l], ln2b_ref[l])
        gate = jax.nn.sigmoid(mm(xn2, f1w_ref[l]) + f1b_ref[l])
        tr = jnp.maximum(mm(xn2, f2w_ref[l]) + f2b_ref[l], 0.0)
        h = mm(gate * tr, f3w_ref[l]) + f3b_ref[l] + h

    # final Linear(E, 1)
    out_ref[...] = mm(h, outw_ref[...]) + outb_ref[...]


def transformer_forward_pallas(x, mask, KP):
    B, L = x.shape
    assert (B, L) == (BATCH, SEQ_LEN)
    E, H, Hd, FF, NL = EMBED_SIZE, HEADS, HEAD_DIM, FF_HIDDEN, NUM_LAYERS
    T, RR = TOK, MROWS

    mask_add = build_merged_mask(mask)

    def full(shape):
        z = (0,) * len(shape)
        return pl.BlockSpec(shape, lambda i, z=z: z)

    in_specs = [
        full((T, 1)),                                    # x (flattened, column)
        full((RR, RR)),                                  # merged additive mask
        full((T, E)), full((T, E)),                      # cos, sin tables
        full((1, E)), full((1, E)),                      # emb_w, emb_b
        full((NL, 1, E)), full((NL, 1, E)),              # ln1_w, ln1_b
        full((NL, 1, E)), full((NL, 1, E)),              # ln2_w, ln2_b
        full((NL, E, E)), full((NL, E, E)),              # wq, wq_rot (scaled)
        full((NL, E, E)), full((NL, E, E)),              # wk, wk_rot
        full((NL, E, E)),                                # wv
        full((NL * H, Hd, E)),                           # wo per head
        full((NL, 1, E)),                                # bo
        full((NL, E, FF)), full((NL, 1, FF)),            # f1w, f1b
        full((NL, E, FF)), full((NL, 1, FF)),            # f2w, f2b
        full((NL, FF, E)), full((NL, 1, E)),             # f3w, f3b
        full((E, 1)), full((1, 1)),                      # out_w, out_b
    ]

    y = pl.pallas_call(
        _decoder_kernel,
        out_shape=jax.ShapeDtypeStruct((T, 1), jnp.float32),
        grid=(1,),
        in_specs=in_specs,
        out_specs=full((T, 1)),
        scratch_shapes=[pltpu.VMEM((RR, Hd), jnp.float32)] * 3,   # qm, km, vm
        compiler_params=pltpu.CompilerParams(dimension_semantics=("arbitrary",)),
    )(
        x.reshape(T, 1), mask_add, KP["cos"], KP["sin"],
        KP["emb_w"], KP["emb_b"],
        KP["ln1_w"], KP["ln1_b"], KP["ln2_w"], KP["ln2_b"],
        KP["wq"], KP["wq_rot"], KP["wk"], KP["wk_rot"], KP["wv"],
        KP["wo_h"], KP["bo"],
        KP["f1w"], KP["f1b"], KP["f2w"], KP["f2b"], KP["f3w"], KP["f3b"],
        KP["out_w"], KP["out_b"],
    )
    return y.reshape(B, L)


# --------------------------- pure-JAX reference ------------------------------
def reference_forward(x, mask, P, cos, sin):
    E, H, Hd, FF, NL = EMBED_SIZE, HEADS, HEAD_DIM, FF_HIDDEN, NUM_LAYERS
    B, L = x.shape
    h = x[..., None] * P["emb_w"] + P["emb_b"]                 # (B, L, E)

    def ln(v, w, b):
        mu = v.mean(-1, keepdims=True)
        var = ((v - mu) ** 2).mean(-1, keepdims=True)
        return (v - mu) / jnp.sqrt(var + LN_EPS) * w + b

    def rope(t):  # t: (B, H, L, Hd), interleaved convention
        te, to = t[..., 0::2], t[..., 1::2]
        t2 = jnp.stack([-to, te], axis=-1).reshape(t.shape)
        return t * cos + t2 * sin

    for l in range(NL):
        xn = ln(h, P["ln1_w"][l], P["ln1_b"][l])
        q = (xn @ P["wq"][l]).reshape(B, L, H, Hd).transpose(0, 2, 1, 3)
        k = (xn @ P["wk"][l]).reshape(B, L, H, Hd).transpose(0, 2, 1, 3)
        v = (xn @ P["wv"][l]).reshape(B, L, H, Hd).transpose(0, 2, 1, 3)
        q, k = rope(q), rope(k)
        e = jnp.einsum("bhqd,bhkd->bhqk", q, k)
        e = jnp.where(mask == 1.0, -1e20, e)
        a = jax.nn.softmax(e / math.sqrt(Hd), axis=-1)
        o = jnp.einsum("bhqk,bhkd->bhqd", a, v)
        o = o.transpose(0, 2, 1, 3).reshape(B, L, E)
        o = o @ P["wo"][l] + P["bo"][l]
        h = o + h
        xn2 = ln(h, P["ln2_w"][l], P["ln2_b"][l])
        gate = jax.nn.sigmoid(xn2 @ P["f1w"][l] + P["f1b"][l])
        tr = jnp.maximum(xn2 @ P["f2w"][l] + P["f2b"][l], 0.0)
        h = (gate * tr) @ P["f3w"][l] + P["f3b"][l] + h
    y = h @ P["out_w"] + P["out_b"]
    return y[..., 0]


# ---------------------------------- main --------------------------------------
if __name__ == "__main__":
    key = jax.random.PRNGKey(0)
    k_param, k_x = jax.random.split(key)

    params = init_params(k_param)
    cos, sin = rope_tables(SEQ_LEN, HEAD_DIM)
    kparams = prepare_kernel_params(params, cos, sin)     # one-time transforms

    x = jax.random.normal(k_x, (BATCH, SEQ_LEN), jnp.float32)
    mask = jnp.triu(jnp.ones((SEQ_LEN, SEQ_LEN), jnp.float32), k=1)  # causal

    out = jax.block_until_ready(transformer_forward_pallas(x, mask, kparams))

    with jax.default_matmul_precision("highest"):          # scoped, not global
        ref = jax.block_until_ready(reference_forward(x, mask, params, cos, sin))

    np.testing.assert_allclose(np.asarray(out), np.asarray(ref), rtol=2e-3, atol=2e-3)
    print("KERNEL_OK")
</pallas_src>

<mosaic_0001>
module attributes {stable_mosaic.version = 11 : i64} {
  func.func @_decoder_kernel(%arg0: i32, %arg1: memref<16x1xf32, #tpu.memory_space<vmem>>, %arg2: memref<64x64xf32, #tpu.memory_space<vmem>>, %arg3: memref<16x32xf32, #tpu.memory_space<vmem>>, %arg4: memref<16x32xf32, #tpu.memory_space<vmem>>, %arg5: memref<1x32xf32, #tpu.memory_space<vmem>>, %arg6: memref<1x32xf32, #tpu.memory_space<vmem>>, %arg7: memref<2x1x32xf32, #tpu.memory_space<vmem>>, %arg8: memref<2x1x32xf32, #tpu.memory_space<vmem>>, %arg9: memref<2x1x32xf32, #tpu.memory_space<vmem>>, %arg10: memref<2x1x32xf32, #tpu.memory_space<vmem>>, %arg11: memref<2x32x32xf32, #tpu.memory_space<vmem>>, %arg12: memref<2x32x32xf32, #tpu.memory_space<vmem>>, %arg13: memref<2x32x32xf32, #tpu.memory_space<vmem>>, %arg14: memref<2x32x32xf32, #tpu.memory_space<vmem>>, %arg15: memref<2x32x32xf32, #tpu.memory_space<vmem>>, %arg16: memref<8x8x32xf32, #tpu.memory_space<vmem>>, %arg17: memref<2x1x32xf32, #tpu.memory_space<vmem>>, %arg18: memref<2x32x64xf32, #tpu.memory_space<vmem>>, %arg19: memref<2x1x64xf32, #tpu.memory_space<vmem>>, %arg20: memref<2x32x64xf32, #tpu.memory_space<vmem>>, %arg21: memref<2x1x64xf32, #tpu.memory_space<vmem>>, %arg22: memref<2x64x32xf32, #tpu.memory_space<vmem>>, %arg23: memref<2x1x32xf32, #tpu.memory_space<vmem>>, %arg24: memref<32x1xf32, #tpu.memory_space<vmem>>, %arg25: memref<1x1xf32, #tpu.memory_space<vmem>>, %arg26: memref<16x1xf32, #tpu.memory_space<vmem>>, %arg27: memref<64x8xf32, #tpu.memory_space<vmem>>, %arg28: memref<64x8xf32, #tpu.memory_space<vmem>>, %arg29: memref<64x8xf32, #tpu.memory_space<vmem>>) attributes {dimension_semantics = [#tpu.dimension_semantics<arbitrary>], iteration_bounds = array<i64: 1>, scalar_prefetch = 0 : i64, scratch_operands = 3 : i64, tpu.core_type = #tpu.core_type<tc>, window_params = [{pipeline_mode = #tpu.pipeline_mode<synchronous>, transform_indices = @transform_0, window_bounds = array<i64: 16, 1>}, {pipeline_mode = #tpu.pipeline_mode<synchronous>, transform_indices = @transform_1, window_bounds = array<i64: 64, 64>}, {pipeline_mode = #tpu.pipeline_mode<synchronous>, transform_indices = @transform_2, window_bounds = array<i64: 16, 32>}, {pipeline_mode = #tpu.pipeline_mode<synchronous>, transform_indices = @transform_3, window_bounds = array<i64: 16, 32>}, {pipeline_mode = #tpu.pipeline_mode<synchronous>, transform_indices = @transform_4, window_bounds = array<i64: 1, 32>}, {pipeline_mode = #tpu.pipeline_mode<synchronous>, transform_indices = @transform_5, window_bounds = array<i64: 1, 32>}, {pipeline_mode = #tpu.pipeline_mode<synchronous>, transform_indices = @transform_6, window_bounds = array<i64: 2, 1, 32>}, {pipeline_mode = #tpu.pipeline_mode<synchronous>, transform_indices = @transform_7, window_bounds = array<i64: 2, 1, 32>}, {pipeline_mode = #tpu.pipeline_mode<synchronous>, transform_indices = @transform_8, window_bounds = array<i64: 2, 1, 32>}, {pipeline_mode = #tpu.pipeline_mode<synchronous>, transform_indices = @transform_9, window_bounds = array<i64: 2, 1, 32>}, {pipeline_mode = #tpu.pipeline_mode<synchronous>, transform_indices = @transform_10, window_bounds = array<i64: 2, 32, 32>}, {pipeline_mode = #tpu.pipeline_mode<synchronous>, transform_indices = @transform_11, window_bounds = array<i64: 2, 32, 32>}, {pipeline_mode = #tpu.pipeline_mode<synchronous>, transform_indices = @transform_12, window_bounds = array<i64: 2, 32, 32>}, {pipeline_mode = #tpu.pipeline_mode<synchronous>, transform_indices = @transform_13, window_bounds = array<i64: 2, 32, 32>}, {pipeline_mode = #tpu.pipeline_mode<synchronous>, transform_indices = @transform_14, window_bounds = array<i64: 2, 32, 32>}, {pipeline_mode = #tpu.pipeline_mode<synchronous>, transform_indices = @transform_15, window_bounds = array<i64: 8, 8, 32>}, {pipeline_mode = #tpu.pipeline_mode<synchronous>, transform_indices = @transform_16, window_bounds = array<i64: 2, 1, 32>}, {pipeline_mode = #tpu.pipeline_mode<synchronous>, transform_indices = @transform_17, window_bounds = array<i64: 2, 32, 64>}, {pipeline_mode = #tpu.pipeline_mode<synchronous>, transform_indices = @transform_18, window_bounds = array<i64: 2, 1, 64>}, {pipeline_mode = #tpu.pipeline_mode<synchronous>, transform_indices = @transform_19, window_bounds = array<i64: 2, 32, 64>}, {pipeline_mode = #tpu.pipeline_mode<synchronous>, transform_indices = @transform_20, window_bounds = array<i64: 2, 1, 64>}, {pipeline_mode = #tpu.pipeline_mode<synchronous>, transform_indices = @transform_21, window_bounds = array<i64: 2, 64, 32>}, {pipeline_mode = #tpu.pipeline_mode<synchronous>, transform_indices = @transform_22, window_bounds = array<i64: 2, 1, 32>}, {pipeline_mode = #tpu.pipeline_mode<synchronous>, transform_indices = @transform_23, window_bounds = array<i64: 32, 1>}, {pipeline_mode = #tpu.pipeline_mode<synchronous>, transform_indices = @transform_24, window_bounds = array<i64: 1, 1>}, {pipeline_mode = #tpu.pipeline_mode<synchronous>, transform_indices = @transform_25, window_bounds = array<i64: 16, 1>}]} {
    %c0 = arith.constant 0 : index
    %c0_0 = arith.constant 0 : index
    %0 = vector.load %arg1[%c0, %c0_0] : memref<16x1xf32, #tpu.memory_space<vmem>>, vector<16x1xf32>
    %c0_1 = arith.constant 0 : index
    %c0_2 = arith.constant 0 : index
    %1 = vector.load %arg5[%c0_1, %c0_2] : memref<1x32xf32, #tpu.memory_space<vmem>>, vector<1x32xf32>
    %2 = vector.broadcast %0 : vector<16x1xf32> to vector<16x32xf32>
    %3 = vector.broadcast %1 : vector<1x32xf32> to vector<16x32xf32>
    %4 = arith.mulf %2, %3 : vector<16x32xf32>
    %c0_3 = arith.constant 0 : index
    %c0_4 = arith.constant 0 : index
    %5 = vector.load %arg6[%c0_3, %c0_4] : memref<1x32xf32, #tpu.memory_space<vmem>>, vector<1x32xf32>
    %6 = vector.broadcast %5 : vector<1x32xf32> to vector<16x32xf32>
    %7 = arith.addf %4, %6 : vector<16x32xf32>
    %c0_5 = arith.constant 0 : index
    %c0_6 = arith.constant 0 : index
    %8 = vector.load %arg2[%c0_5, %c0_6] : memref<64x64xf32, #tpu.memory_space<vmem>>, vector<64x64xf32>
    %c0_7 = arith.constant 0 : index
    %c0_8 = arith.constant 0 : index
    %9 = vector.load %arg3[%c0_7, %c0_8] : memref<16x32xf32, #tpu.memory_space<vmem>>, vector<16x32xf32>
    %c0_9 = arith.constant 0 : index
    %c0_10 = arith.constant 0 : index
    %10 = vector.load %arg4[%c0_9, %c0_10] : memref<16x32xf32, #tpu.memory_space<vmem>>, vector<16x32xf32>
    %c0_11 = arith.constant 0 : index
    %c0_12 = arith.constant 0 : index
    %c0_13 = arith.constant 0 : index
    %11 = vector.load %arg7[%c0_11, %c0_12, %c0_13] : memref<2x1x32xf32, #tpu.memory_space<vmem>>, vector<1x1x32xf32>
    %12 = vector.shape_cast %11 : vector<1x1x32xf32> to vector<1x32xf32>
    %c0_14 = arith.constant 0 : index
    %c0_15 = arith.constant 0 : index
    %c0_16 = arith.constant 0 : index
    %13 = vector.load %arg8[%c0_14, %c0_15, %c0_16] : memref<2x1x32xf32, #tpu.memory_space<vmem>>, vector<1x1x32xf32>
    %14 = vector.shape_cast %13 : vector<1x1x32xf32> to vector<1x32xf32>
    %cst = arith.constant dense<0.000000e+00> : vector<16xf32>
    %15 = vector.multi_reduction <add>, %7, %cst [1] : vector<16x32xf32> to vector<16xf32>
    %16 = vector.shape_cast %15 : vector<16xf32> to vector<16x1xf32>
    %cst_17 = arith.constant 3.200000e+01 : f32
    %17 = vector.broadcast %cst_17 : f32 to vector<16x1xf32>
    %18 = arith.divf %16, %17 : vector<16x1xf32>
    %19 = vector.broadcast %18 : vector<16x1xf32> to vector<16x32xf32>
    %20 = arith.subf %7, %19 : vector<16x32xf32>
    %21 = arith.mulf %20, %20 : vector<16x32xf32>
    %cst_18 = arith.constant dense<0.000000e+00> : vector<16xf32>
    %22 = vector.multi_reduction <add>, %21, %cst_18 [1] : vector<16x32xf32> to vector<16xf32>
    %23 = vector.shape_cast %22 : vector<16xf32> to vector<16x1xf32>
    %cst_19 = arith.constant 3.200000e+01 : f32
    %24 = vector.broadcast %cst_19 : f32 to vector<16x1xf32>
    %25 = arith.divf %23, %24 : vector<16x1xf32>
    %26 = vector.broadcast %18 : vector<16x1xf32> to vector<16x32xf32>
    %27 = arith.subf %7, %26 : vector<16x32xf32>
    %cst_20 = arith.constant 9.99999974E-6 : f32
    %28 = vector.broadcast %cst_20 : f32 to vector<16x1xf32>
    %29 = arith.addf %25, %28 : vector<16x1xf32>
    %30 = math.rsqrt %29 : vector<16x1xf32>
    %31 = vector.broadcast %30 : vector<16x1xf32> to vector<16x32xf32>
    %32 = arith.mulf %27, %31 : vector<16x32xf32>
    %33 = vector.broadcast %12 : vector<1x32xf32> to vector<16x32xf32>
    %34 = arith.mulf %32, %33 : vector<16x32xf32>
    %35 = vector.broadcast %14 : vector<1x32xf32> to vector<16x32xf32>
    %36 = arith.addf %34, %35 : vector<16x32xf32>
    %c0_21 = arith.constant 0 : index
    %c0_22 = arith.constant 0 : index
    %c0_23 = arith.constant 0 : index
    %37 = vector.load %arg11[%c0_21, %c0_22, %c0_23] : memref<2x32x32xf32, #tpu.memory_space<vmem>>, vector<1x32x32xf32>
    %38 = vector.shape_cast %37 : vector<1x32x32xf32> to vector<32x32xf32>
    %cst_24 = arith.constant dense<0.000000e+00> : vector<16x32xf32>
    %39 = tpu.matmul %36, %38, %cst_24 {dimension_numbers = #tpu.dot_dimension_numbers<[1], [0], [0], [1], [0, 0, 1, 1], [], []>, precision = #tpu.contract_precision<fp32>} : vector<16x32xf32>, vector<32x32xf32>, vector<16x32xf32> -> vector<16x32xf32>
    %40 = arith.mulf %39, %9 : vector<16x32xf32>
    %c0_25 = arith.constant 0 : index
    %c0_26 = arith.constant 0 : index
    %c0_27 = arith.constant 0 : index
    %41 = vector.load %arg12[%c0_25, %c0_26, %c0_27] : memref<2x32x32xf32, #tpu.memory_space<vmem>>, vector<1x32x32xf32>
    %42 = vector.shape_cast %41 : vector<1x32x32xf32> to vector<32x32xf32>
    %cst_28 = arith.constant dense<0.000000e+00> : vector<16x32xf32>
    %43 = tpu.matmul %36, %42, %cst_28 {dimension_numbers = #tpu.dot_dimension_numbers<[1], [0], [0], [1], [0, 0, 1, 1], [], []>, precision = #tpu.contract_precision<fp32>} : vector<16x32xf32>, vector<32x32xf32>, vector<16x32xf32> -> vector<16x32xf32>
    %44 = arith.mulf %43, %10 : vector<16x32xf32>
    %45 = arith.addf %40, %44 : vector<16x32xf32>
    %c0_29 = arith.constant 0 : index
    %c0_30 = arith.constant 0 : index
    %c0_31 = arith.constant 0 : index
    %46 = vector.load %arg13[%c0_29, %c0_30, %c0_31] : memref<2x32x32xf32, #tpu.memory_space<vmem>>, vector<1x32x32xf32>
    %47 = vector.shape_cast %46 : vector<1x32x32xf32> to vector<32x32xf32>
    %cst_32 = arith.constant dense<0.000000e+00> : vector<16x32xf32>
    %48 = tpu.matmul %36, %47, %cst_32 {dimension_numbers = #tpu.dot_dimension_numbers<[1], [0], [0], [1], [0, 0, 1, 1], [], []>, precision = #tpu.contract_precision<fp32>} : vector<16x32xf32>, vector<32x32xf32>, vector<16x32xf32> -> vector<16x32xf32>
    %49 = arith.mulf %48, %9 : vector<16x32xf32>
    %c0_33 = arith.constant 0 : index
    %c0_34 = arith.constant 0 : index
    %c0_35 = arith.constant 0 : index
    %50 = vector.load %arg14[%c0_33, %c0_34, %c0_35] : memref<2x32x32xf32, #tpu.memory_space<vmem>>, vector<1x32x32xf32>
    %51 = vector.shape_cast %50 : vector<1x32x32xf32> to vector<32x32xf32>
    %cst_36 = arith.constant dense<0.000000e+00> : vector<16x32xf32>
    %52 = tpu.matmul %36, %51, %cst_36 {dimension_numbers = #tpu.dot_dimension_numbers<[1], [0], [0], [1], [0, 0, 1, 1], [], []>, precision = #tpu.contract_precision<fp32>} : vector<16x32xf32>, vector<32x32xf32>, vector<16x32xf32> -> vector<16x32xf32>
    %53 = arith.mulf %52, %10 : vector<16x32xf32>
    %54 = arith.addf %49, %53 : vector<16x32xf32>
    %c0_37 = arith.constant 0 : index
    %c0_38 = arith.constant 0 : index
    %c0_39 = arith.constant 0 : index
    %55 = vector.load %arg15[%c0_37, %c0_38, %c0_39] : memref<2x32x32xf32, #tpu.memory_space<vmem>>, vector<1x32x32xf32>
    %56 = vector.shape_cast %55 : vector<1x32x32xf32> to vector<32x32xf32>
    %cst_40 = arith.constant dense<0.000000e+00> : vector<16x32xf32>
    %57 = tpu.matmul %36, %56, %cst_40 {dimension_numbers = #tpu.dot_dimension_numbers<[1], [0], [0], [1], [0, 0, 1, 1], [], []>, precision = #tpu.contract_precision<fp32>} : vector<16x32xf32>, vector<32x32xf32>, vector<16x32xf32> -> vector<16x32xf32>
    %58 = vector.extract_strided_slice %45 {offsets = [0, 0], sizes = [16, 8], strides = [1, 1]} : vector<16x32xf32> to vector<16x8xf32>
    %c0_41 = arith.constant 0 : index
    %c0_42 = arith.constant 0 : index
    %59 = vector.load %arg27[%c0_41, %c0_42] : memref<64x8xf32, #tpu.memory_space<vmem>>, vector<16x8xf32>
    tpu.vector_store %arg27[%c0_41, %c0_42], %58 {strides = array<i32>} : memref<64x8xf32, #tpu.memory_space<vmem>>, vector<16x8xf32>,
    %60 = vector.extract_strided_slice %54 {offsets = [0, 0], sizes = [16, 8], strides = [1, 1]} : vector<16x32xf32> to vector<16x8xf32>
    %c0_43 = arith.constant 0 : index
    %c0_44 = arith.constant 0 : index
    %61 = vector.load %arg28[%c0_43, %c0_44] : memref<64x8xf32, #tpu.memory_space<vmem>>, vector<16x8xf32>
    tpu.vector_store %arg28[%c0_43, %c0_44], %60 {strides = array<i32>} : memref<64x8xf32, #tpu.memory_space<vmem>>, vector<16x8xf32>,
    %62 = vector.extract_strided_slice %57 {offsets = [0, 0], sizes = [16, 8], strides = [1, 1]} : vector<16x32xf32> to vector<16x8xf32>
    %c0_45 = arith.constant 0 : index
    %c0_46 = arith.constant 0 : index
    %63 = vector.load %arg29[%c0_45, %c0_46] : memref<64x8xf32, #tpu.memory_space<vmem>>, vector<16x8xf32>
    tpu.vector_store %arg29[%c0_45, %c0_46], %62 {strides = array<i32>} : memref<64x8xf32, #tpu.memory_space<vmem>>, vector<16x8xf32>,
    %64 = vector.extract_strided_slice %45 {offsets = [0, 8], sizes = [16, 8], strides = [1, 1]} : vector<16x32xf32> to vector<16x8xf32>
    %c16 = arith.constant 16 : index
    %c0_47 = arith.constant 0 : index
    %65 = vector.load %arg27[%c16, %c0_47] : memref<64x8xf32, #tpu.memory_space<vmem>>, vector<16x8xf32>
    tpu.vector_store %arg27[%c16, %c0_47], %64 {strides = array<i32>} : memref<64x8xf32, #tpu.memory_space<vmem>>, vector<16x8xf32>,
    %66 = vector.extract_strided_slice %54 {offsets = [0, 8], sizes = [16, 8], strides = [1, 1]} : vector<16x32xf32> to vector<16x8xf32>
    %c16_48 = arith.constant 16 : index
    %c0_49 = arith.constant 0 : index
    %67 = vector.load %arg28[%c16_48, %c0_49] : memref<64x8xf32, #tpu.memory_space<vmem>>, vector<16x8xf32>
    tpu.vector_store %arg28[%c16_48, %c0_49], %66 {strides = array<i32>} : memref<64x8xf32, #tpu.memory_space<vmem>>, vector<16x8xf32>,
    %68 = vector.extract_strided_slice %57 {offsets = [0, 8], sizes = [16, 8], strides = [1, 1]} : vector<16x32xf32> to vector<16x8xf32>
    %c16_50 = arith.constant 16 : index
    %c0_51 = arith.constant 0 : index
    %69 = vector.load %arg29[%c16_50, %c0_51] : memref<64x8xf32, #tpu.memory_space<vmem>>, vector<16x8xf32>
    tpu.vector_store %arg29[%c16_50, %c0_51], %68 {strides = array<i32>} : memref<64x8xf32, #tpu.memory_space<vmem>>, vector<16x8xf32>,
    %70 = vector.extract_strided_slice %45 {offsets = [0, 16], sizes = [16, 8], strides = [1, 1]} : vector<16x32xf32> to vector<16x8xf32>
    %c32 = arith.constant 32 : index
    %c0_52 = arith.constant 0 : index
    %71 = vector.load %arg27[%c32, %c0_52] : memref<64x8xf32, #tpu.memory_space<vmem>>, vector<16x8xf32>
    tpu.vector_store %arg27[%c32, %c0_52], %70 {strides = array<i32>} : memref<64x8xf32, #tpu.memory_space<vmem>>, vector<16x8xf32>,
    %72 = vector.extract_strided_slice %54 {offsets = [0, 16], sizes = [16, 8], strides = [1, 1]} : vector<16x32xf32> to vector<16x8xf32>
    %c32_53 = arith.constant 32 : index
    %c0_54 = arith.constant 0 : index
    %73 = vector.load %arg28[%c32_53, %c0_54] : memref<64x8xf32, #tpu.memory_space<vmem>>, vector<16x8xf32>
    tpu.vector_store %arg28[%c32_53, %c0_54], %72 {strides = array<i32>} : memref<64x8xf32, #tpu.memory_space<vmem>>, vector<16x8xf32>,
    %74 = vector.extract_strided_slice %57 {offsets = [0, 16], sizes = [16, 8], strides = [1, 1]} : vector<16x32xf32> to vector<16x8xf32>
    %c32_55 = arith.constant 32 : index
    %c0_56 = arith.constant 0 : index
    %75 = vector.load %arg29[%c32_55, %c0_56] : memref<64x8xf32, #tpu.memory_space<vmem>>, vector<16x8xf32>
    tpu.vector_store %arg29[%c32_55, %c0_56], %74 {strides = array<i32>} : memref<64x8xf32, #tpu.memory_space<vmem>>, vector<16x8xf32>,
    %76 = vector.extract_strided_slice %45 {offsets = [0, 24], sizes = [16, 8], strides = [1, 1]} : vector<16x32xf32> to vector<16x8xf32>
    %c48 = arith.constant 48 : index
    %c0_57 = arith.constant 0 : index
    %77 = vector.load %arg27[%c48, %c0_57] : memref<64x8xf32, #tpu.memory_space<vmem>>, vector<16x8xf32>
    tpu.vector_store %arg27[%c48, %c0_57], %76 {strides = array<i32>} : memref<64x8xf32, #tpu.memory_space<vmem>>, vector<16x8xf32>,
    %78 = vector.extract_strided_slice %54 {offsets = [0, 24], sizes = [16, 8], strides = [1, 1]} : vector<16x32xf32> to vector<16x8xf32>
    %c48_58 = arith.constant 48 : index
    %c0_59 = arith.constant 0 : index
    %79 = vector.load %arg28[%c48_58, %c0_59] : memref<64x8xf32, #tpu.memory_space<vmem>>, vector<16x8xf32>
    tpu.vector_store %arg28[%c48_58, %c0_59], %78 {strides = array<i32>} : memref<64x8xf32, #tpu.memory_space<vmem>>, vector<16x8xf32>,
    %80 = vector.extract_strided_slice %57 {offsets = [0, 24], sizes = [16, 8], strides = [1, 1]} : vector<16x32xf32> to vector<16x8xf32>
    %c48_60 = arith.constant 48 : index
    %c0_61 = arith.constant 0 : index
    %81 = vector.load %arg29[%c48_60, %c0_61] : memref<64x8xf32, #tpu.memory_space<vmem>>, vector<16x8xf32>
    tpu.vector_store %arg29[%c48_60, %c0_61], %80 {strides = array<i32>} : memref<64x8xf32, #tpu.memory_space<vmem>>, vector<16x8xf32>,
    %c0_62 = arith.constant 0 : index
    %c0_63 = arith.constant 0 : index
    %82 = vector.load %arg27[%c0_62, %c0_63] : memref<64x8xf32, #tpu.memory_space<vmem>>, vector<64x8xf32>
    %c0_64 = arith.constant 0 : index
    %c0_65 = arith.constant 0 : index
    %83 = vector.load %arg28[%c0_64, %c0_65] : memref<64x8xf32, #tpu.memory_space<vmem>>, vector<64x8xf32>
    %c0_66 = arith.constant 0 : index
    %c0_67 = arith.constant 0 : index
    %84 = vector.load %arg29[%c0_66, %c0_67] : memref<64x8xf32, #tpu.memory_space<vmem>>, vector<64x8xf32>
    %cst_68 = arith.constant dense<0.000000e+00> : vector<64x64xf32>
    %85 = tpu.matmul %82, %83, %cst_68 {dimension_numbers = #tpu.dot_dimension_numbers<[1], [1], [0], [0], [0, 0, 1, 0], [], []>, precision = #tpu.contract_precision<fp32>} : vector<64x8xf32>, vector<64x8xf32>, vector<64x64xf32> -> vector<64x64xf32>
    %86 = arith.addf %85, %8 : vector<64x64xf32>
    %cst_69 = arith.constant dense<0xFF800000> : vector<64xf32>
    %87 = vector.multi_reduction <maximumf>, %86, %cst_69 [1] : vector<64x64xf32> to vector<64xf32>
    %88 = vector.shape_cast %87 : vector<64xf32> to vector<64x1xf32>
    %89 = vector.broadcast %88 : vector<64x1xf32> to vector<64x64xf32>
    %90 = arith.subf %86, %89 : vector<64x64xf32>
    %91 = math.exp %90 : vector<64x64xf32>
    %cst_70 = arith.constant dense<0.000000e+00> : vector<64xf32>
    %92 = vector.multi_reduction <add>, %91, %cst_70 [1] : vector<64x64xf32> to vector<64xf32>
    %93 = vector.shape_cast %92 : vector<64xf32> to vector<64x1xf32>
    %94 = tpu.reciprocal %93 : vector<64x1xf32> -> vector<64x1xf32>
    %95 = vector.broadcast %94 : vector<64x1xf32> to vector<64x64xf32>
    %96 = arith.mulf %91, %95 : vector<64x64xf32>
    %cst_71 = arith.constant dense<0.000000e+00> : vector<64x8xf32>
    %97 = tpu.matmul %96, %84, %cst_71 {dimension_numbers = #tpu.dot_dimension_numbers<[1], [0], [0], [1], [0, 0, 1, 1], [], []>, precision = #tpu.contract_precision<fp32>} : vector<64x64xf32>, vector<64x8xf32>, vector<64x8xf32> -> vector<64x8xf32>
    %c0_72 = arith.constant 0 : index
    %c0_73 = arith.constant 0 : index
    %c0_74 = arith.constant 0 : index
    %98 = vector.load %arg17[%c0_72, %c0_73, %c0_74] : memref<2x1x32xf32, #tpu.memory_space<vmem>>, vector<1x1x32xf32>
    %99 = vector.shape_cast %98 : vector<1x1x32xf32> to vector<1x32xf32>
    %100 = vector.extract_strided_slice %97 {offsets = [0, 0], sizes = [16, 8], strides = [1, 1]} : vector<64x8xf32> to vector<16x8xf32>
    %c0_75 = arith.constant 0 : index
    %c0_76 = arith.constant 0 : index
    %c0_77 = arith.constant 0 : index
    %101 = vector.load %arg16[%c0_75, %c0_76, %c0_77] : memref<8x8x32xf32, #tpu.memory_space<vmem>>, vector<1x8x32xf32>
    %102 = vector.shape_cast %101 : vector<1x8x32xf32> to vector<8x32xf32>
    %cst_78 = arith.constant dense<0.000000e+00> : vector<16x32xf32>
    %103 = tpu.matmul %100, %102, %cst_78 {dimension_numbers = #tpu.dot_dimension_numbers<[1], [0], [0], [1], [0, 0, 1, 1], [], []>, precision = #tpu.contract_precision<fp32>} : vector<16x8xf32>, vector<8x32xf32>, vector<16x32xf32> -> vector<16x32xf32>
    %104 = vector.broadcast %99 : vector<1x32xf32> to vector<16x32xf32>
    %105 = arith.addf %104, %103 : vector<16x32xf32>
    %106 = vector.extract_strided_slice %97 {offsets = [16, 0], sizes = [16, 8], strides = [1, 1]} : vector<64x8xf32> to vector<16x8xf32>
    %c1 = arith.constant 1 : index
    %c0_79 = arith.constant 0 : index
    %c0_80 = arith.constant 0 : index
    %107 = vector.load %arg16[%c1, %c0_79, %c0_80] : memref<8x8x32xf32, #tpu.memory_space<vmem>>, vector<1x8x32xf32>
    %108 = vector.shape_cast %107 : vector<1x8x32xf32> to vector<8x32xf32>
    %cst_81 = arith.constant dense<0.000000e+00> : vector<16x32xf32>
    %109 = tpu.matmul %106, %108, %cst_81 {dimension_numbers = #tpu.dot_dimension_numbers<[1], [0], [0], [1], [0, 0, 1, 1], [], []>, precision = #tpu.contract_precision<fp32>} : vector<16x8xf32>, vector<8x32xf32>, vector<16x32xf32> -> vector<16x32xf32>
    %110 = arith.addf %105, %109 : vector<16x32xf32>
    %111 = vector.extract_strided_slice %97 {offsets = [32, 0], sizes = [16, 8], strides = [1, 1]} : vector<64x8xf32> to vector<16x8xf32>
    %c2 = arith.constant 2 : index
    %c0_82 = arith.constant 0 : index
    %c0_83 = arith.constant 0 : index
    %112 = vector.load %arg16[%c2, %c0_82, %c0_83] : memref<8x8x32xf32, #tpu.memory_space<vmem>>, vector<1x8x32xf32>
    %113 = vector.shape_cast %112 : vector<1x8x32xf32> to vector<8x32xf32>
    %cst_84 = arith.constant dense<0.000000e+00> : vector<16x32xf32>
    %114 = tpu.matmul %111, %113, %cst_84 {dimension_numbers = #tpu.dot_dimension_numbers<[1], [0], [0], [1], [0, 0, 1, 1], [], []>, precision = #tpu.contract_precision<fp32>} : vector<16x8xf32>, vector<8x32xf32>, vector<16x32xf32> -> vector<16x32xf32>
    %115 = arith.addf %110, %114 : vector<16x32xf32>
    %116 = vector.extract_strided_slice %97 {offsets = [48, 0], sizes = [16, 8], strides = [1, 1]} : vector<64x8xf32> to vector<16x8xf32>
    %c3 = arith.constant 3 : index
    %c0_85 = arith.constant 0 : index
    %c0_86 = arith.constant 0 : index
    %117 = vector.load %arg16[%c3, %c0_85, %c0_86] : memref<8x8x32xf32, #tpu.memory_space<vmem>>, vector<1x8x32xf32>
    %118 = vector.shape_cast %117 : vector<1x8x32xf32> to vector<8x32xf32>
    %cst_87 = arith.constant dense<0.000000e+00> : vector<16x32xf32>
    %119 = tpu.matmul %116, %118, %cst_87 {dimension_numbers = #tpu.dot_dimension_numbers<[1], [0], [0], [1], [0, 0, 1, 1], [], []>, precision = #tpu.contract_precision<fp32>} : vector<16x8xf32>, vector<8x32xf32>, vector<16x32xf32> -> vector<16x32xf32>
    %120 = arith.addf %115, %119 : vector<16x32xf32>
    %121 = arith.addf %120, %7 : vector<16x32xf32>
    %c0_88 = arith.constant 0 : index
    %c0_89 = arith.constant 0 : index
    %c0_90 = arith.constant 0 : index
    %122 = vector.load %arg9[%c0_88, %c0_89, %c0_90] : memref<2x1x32xf32, #tpu.memory_space<vmem>>, vector<1x1x32xf32>
    %123 = vector.shape_cast %122 : vector<1x1x32xf32> to vector<1x32xf32>
    %c0_91 = arith.constant 0 : index
    %c0_92 = arith.constant 0 : index
    %c0_93 = arith.constant 0 : index
    %124 = vector.load %arg10[%c0_91, %c0_92, %c0_93] : memref<2x1x32xf32, #tpu.memory_space<vmem>>, vector<1x1x32xf32>
    %125 = vector.shape_cast %124 : vector<1x1x32xf32> to vector<1x32xf32>
    %cst_94 = arith.constant dense<0.000000e+00> : vector<16xf32>
    %126 = vector.multi_reduction <add>, %121, %cst_94 [1] : vector<16x32xf32> to vector<16xf32>
    %127 = vector.shape_cast %126 : vector<16xf32> to vector<16x1xf32>
    %cst_95 = arith.constant 3.200000e+01 : f32
    %128 = vector.broadcast %cst_95 : f32 to vector<16x1xf32>
    %129 = arith.divf %127, %128 : vector<16x1xf32>
    %130 = vector.broadcast %129 : vector<16x1xf32> to vector<16x32xf32>
    %131 = arith.subf %121, %130 : vector<16x32xf32>
    %132 = arith.mulf %131, %131 : vector<16x32xf32>
    %cst_96 = arith.constant dense<0.000000e+00> : vector<16xf32>
    %133 = vector.multi_reduction <add>, %132, %cst_96 [1] : vector<16x32xf32> to vector<16xf32>
    %134 = vector.shape_cast %133 : vector<16xf32> to vector<16x1xf32>
    %cst_97 = arith.constant 3.200000e+01 : f32
    %135 = vector.broadcast %cst_97 : f32 to vector<16x1xf32>
    %136 = arith.divf %134, %135 : vector<16x1xf32>
    %137 = vector.broadcast %129 : vector<16x1xf32> to vector<16x32xf32>
    %138 = arith.subf %121, %137 : vector<16x32xf32>
    %cst_98 = arith.constant 9.99999974E-6 : f32
    %139 = vector.broadcast %cst_98 : f32 to vector<16x1xf32>
    %140 = arith.addf %136, %139 : vector<16x1xf32>
    %141 = math.rsqrt %140 : vector<16x1xf32>
    %142 = vector.broadcast %141 : vector<16x1xf32> to vector<16x32xf32>
    %143 = arith.mulf %138, %142 : vector<16x32xf32>
    %144 = vector.broadcast %123 : vector<1x32xf32> to vector<16x32xf32>
    %145 = arith.mulf %143, %144 : vector<16x32xf32>
    %146 = vector.broadcast %125 : vector<1x32xf32> to vector<16x32xf32>
    %147 = arith.addf %145, %146 : vector<16x32xf32>
    %c0_99 = arith.constant 0 : index
    %c0_100 = arith.constant 0 : index
    %c0_101 = arith.constant 0 : index
    %148 = vector.load %arg18[%c0_99, %c0_100, %c0_101] : memref<2x32x64xf32, #tpu.memory_space<vmem>>, vector<1x32x64xf32>
    %149 = vector.shape_cast %148 : vector<1x32x64xf32> to vector<32x64xf32>
    %cst_102 = arith.constant dense<0.000000e+00> : vector<16x64xf32>
    %150 = tpu.matmul %147, %149, %cst_102 {dimension_numbers = #tpu.dot_dimension_numbers<[1], [0], [0], [1], [0, 0, 1, 1], [], []>, precision = #tpu.contract_precision<fp32>} : vector<16x32xf32>, vector<32x64xf32>, vector<16x64xf32> -> vector<16x64xf32>
    %c0_103 = arith.constant 0 : index
    %c0_104 = arith.constant 0 : index
    %c0_105 = arith.constant 0 : index
    %151 = vector.load %arg19[%c0_103, %c0_104, %c0_105] : memref<2x1x64xf32, #tpu.memory_space<vmem>>, vector<1x1x64xf32>
    %152 = vector.shape_cast %151 : vector<1x1x64xf32> to vector<1x64xf32>
    %153 = vector.broadcast %152 : vector<1x64xf32> to vector<16x64xf32>
    %154 = arith.addf %150, %153 : vector<16x64xf32>
    %155 = arith.negf %154 : vector<16x64xf32>
    %156 = math.exp %155 : vector<16x64xf32>
    %cst_106 = arith.constant 1.000000e+00 : f32
    %157 = vector.broadcast %cst_106 : f32 to vector<16x64xf32>
    %158 = arith.addf %157, %156 : vector<16x64xf32>
    %159 = arith.divf %157, %158 : vector<16x64xf32>
    %c0_107 = arith.constant 0 : index
    %c0_108 = arith.constant 0 : index
    %c0_109 = arith.constant 0 : index
    %160 = vector.load %arg20[%c0_107, %c0_108, %c0_109] : memref<2x32x64xf32, #tpu.memory_space<vmem>>, vector<1x32x64xf32>
    %161 = vector.shape_cast %160 : vector<1x32x64xf32> to vector<32x64xf32>
    %cst_110 = arith.constant dense<0.000000e+00> : vector<16x64xf32>
    %162 = tpu.matmul %147, %161, %cst_110 {dimension_numbers = #tpu.dot_dimension_numbers<[1], [0], [0], [1], [0, 0, 1, 1], [], []>, precision = #tpu.contract_precision<fp32>} : vector<16x32xf32>, vector<32x64xf32>, vector<16x64xf32> -> vector<16x64xf32>
    %c0_111 = arith.constant 0 : index
    %c0_112 = arith.constant 0 : index
    %c0_113 = arith.constant 0 : index
    %163 = vector.load %arg21[%c0_111, %c0_112, %c0_113] : memref<2x1x64xf32, #tpu.memory_space<vmem>>, vector<1x1x64xf32>
    %164 = vector.shape_cast %163 : vector<1x1x64xf32> to vector<1x64xf32>
    %165 = vector.broadcast %164 : vector<1x64xf32> to vector<16x64xf32>
    %166 = arith.addf %162, %165 : vector<16x64xf32>
    %cst_114 = arith.constant 0.000000e+00 : f32
    %167 = vector.broadcast %cst_114 : f32 to vector<16x64xf32>
    %168 = arith.maximumf %166, %167 : vector<16x64xf32>
    %169 = arith.mulf %159, %168 : vector<16x64xf32>
    %c0_115 = arith.constant 0 : index
    %c0_116 = arith.constant 0 : index
    %c0_117 = arith.constant 0 : index
    %170 = vector.load %arg22[%c0_115, %c0_116, %c0_117] : memref<2x64x32xf32, #tpu.memory_space<vmem>>, vector<1x64x32xf32>
    %171 = vector.shape_cast %170 : vector<1x64x32xf32> to vector<64x32xf32>
    %cst_118 = arith.constant dense<0.000000e+00> : vector<16x32xf32>
    %172 = tpu.matmul %169, %171, %cst_118 {dimension_numbers = #tpu.dot_dimension_numbers<[1], [0], [0], [1], [0, 0, 1, 1], [], []>, precision = #tpu.contract_precision<fp32>} : vector<16x64xf32>, vector<64x32xf32>, vector<16x32xf32> -> vector<16x32xf32>
    %c0_119 = arith.constant 0 : index
    %c0_120 = arith.constant 0 : index
    %c0_121 = arith.constant 0 : index
    %173 = vector.load %arg23[%c0_119, %c0_120, %c0_121] : memref<2x1x32xf32, #tpu.memory_space<vmem>>, vector<1x1x32xf32>
    %174 = vector.shape_cast %173 : vector<1x1x32xf32> to vector<1x32xf32>
    %175 = vector.broadcast %174 : vector<1x32xf32> to vector<16x32xf32>
    %176 = arith.addf %172, %175 : vector<16x32xf32>
    %177 = arith.addf %176, %121 : vector<16x32xf32>
    %c1_122 = arith.constant 1 : index
    %c0_123 = arith.constant 0 : index
    %c0_124 = arith.constant 0 : index
    %178 = vector.load %arg7[%c1_122, %c0_123, %c0_124] : memref<2x1x32xf32, #tpu.memory_space<vmem>>, vector<1x1x32xf32>
    %179 = vector.shape_cast %178 : vector<1x1x32xf32> to vector<1x32xf32>
    %c1_125 = arith.constant 1 : index
    %c0_126 = arith.constant 0 : index
    %c0_127 = arith.constant 0 : index
    %180 = vector.load %arg8[%c1_125, %c0_126, %c0_127] : memref<2x1x32xf32, #tpu.memory_space<vmem>>, vector<1x1x32xf32>
    %181 = vector.shape_cast %180 : vector<1x1x32xf32> to vector<1x32xf32>
    %cst_128 = arith.constant dense<0.000000e+00> : vector<16xf32>
    %182 = vector.multi_reduction <add>, %177, %cst_128 [1] : vector<16x32xf32> to vector<16xf32>
    %183 = vector.shape_cast %182 : vector<16xf32> to vector<16x1xf32>
    %cst_129 = arith.constant 3.200000e+01 : f32
    %184 = vector.broadcast %cst_129 : f32 to vector<16x1xf32>
    %185 = arith.divf %183, %184 : vector<16x1xf32>
    %186 = vector.broadcast %185 : vector<16x1xf32> to vector<16x32xf32>
    %187 = arith.subf %177, %186 : vector<16x32xf32>
    %188 = arith.mulf %187, %187 : vector<16x32xf32>
    %cst_130 = arith.constant dense<0.000000e+00> : vector<16xf32>
    %189 = vector.multi_reduction <add>, %188, %cst_130 [1] : vector<16x32xf32> to vector<16xf32>
    %190 = vector.shape_cast %189 : vector<16xf32> to vector<16x1xf32>
    %cst_131 = arith.constant 3.200000e+01 : f32
    %191 = vector.broadcast %cst_131 : f32 to vector<16x1xf32>
    %192 = arith.divf %190, %191 : vector<16x1xf32>
    %193 = vector.broadcast %185 : vector<16x1xf32> to vector<16x32xf32>
    %194 = arith.subf %177, %193 : vector<16x32xf32>
    %cst_132 = arith.constant 9.99999974E-6 : f32
    %195 = vector.broadcast %cst_132 : f32 to vector<16x1xf32>
    %196 = arith.addf %192, %195 : vector<16x1xf32>
    %197 = math.rsqrt %196 : vector<16x1xf32>
    %198 = vector.broadcast %197 : vector<16x1xf32> to vector<16x32xf32>
    %199 = arith.mulf %194, %198 : vector<16x32xf32>
    %200 = vector.broadcast %179 : vector<1x32xf32> to vector<16x32xf32>
    %201 = arith.mulf %199, %200 : vector<16x32xf32>
    %202 = vector.broadcast %181 : vector<1x32xf32> to vector<16x32xf32>
    %203 = arith.addf %201, %202 : vector<16x32xf32>
    %c1_133 = arith.constant 1 : index
    %c0_134 = arith.constant 0 : index
    %c0_135 = arith.constant 0 : index
    %204 = vector.load %arg11[%c1_133, %c0_134, %c0_135] : memref<2x32x32xf32, #tpu.memory_space<vmem>>, vector<1x32x32xf32>
    %205 = vector.shape_cast %204 : vector<1x32x32xf32> to vector<32x32xf32>
    %cst_136 = arith.constant dense<0.000000e+00> : vector<16x32xf32>
    %206 = tpu.matmul %203, %205, %cst_136 {dimension_numbers = #tpu.dot_dimension_numbers<[1], [0], [0], [1], [0, 0, 1, 1], [], []>, precision = #tpu.contract_precision<fp32>} : vector<16x32xf32>, vector<32x32xf32>, vector<16x32xf32> -> vector<16x32xf32>
    %207 = arith.mulf %206, %9 : vector<16x32xf32>
    %c1_137 = arith.constant 1 : index
    %c0_138 = arith.constant 0 : index
    %c0_139 = arith.constant 0 : index
    %208 = vector.load %arg12[%c1_137, %c0_138, %c0_139] : memref<2x32x32xf32, #tpu.memory_space<vmem>>, vector<1x32x32xf32>
    %209 = vector.shape_cast %208 : vector<1x32x32xf32> to vector<32x32xf32>
    %cst_140 = arith.constant dense<0.000000e+00> : vector<16x32xf32>
    %210 = tpu.matmul %203, %209, %cst_140 {dimension_numbers = #tpu.dot_dimension_numbers<[1], [0], [0], [1], [0, 0, 1, 1], [], []>, precision = #tpu.contract_precision<fp32>} : vector<16x32xf32>, vector<32x32xf32>, vector<16x32xf32> -> vector<16x32xf32>
    %211 = arith.mulf %210, %10 : vector<16x32xf32>
    %212 = arith.addf %207, %211 : vector<16x32xf32>
    %c1_141 = arith.constant 1 : index
    %c0_142 = arith.constant 0 : index
    %c0_143 = arith.constant 0 : index
    %213 = vector.load %arg13[%c1_141, %c0_142, %c0_143] : memref<2x32x32xf32, #tpu.memory_space<vmem>>, vector<1x32x32xf32>
    %214 = vector.shape_cast %213 : vector<1x32x32xf32> to vector<32x32xf32>
    %cst_144 = arith.constant dense<0.000000e+00> : vector<16x32xf32>
    %215 = tpu.matmul %203, %214, %cst_144 {dimension_numbers = #tpu.dot_dimension_numbers<[1], [0], [0], [1], [0, 0, 1, 1], [], []>, precision = #tpu.contract_precision<fp32>} : vector<16x32xf32>, vector<32x32xf32>, vector<16x32xf32> -> vector<16x32xf32>
    %216 = arith.mulf %215, %9 : vector<16x32xf32>
    %c1_145 = arith.constant 1 : index
    %c0_146 = arith.constant 0 : index
    %c0_147 = arith.constant 0 : index
    %217 = vector.load %arg14[%c1_145, %c0_146, %c0_147] : memref<2x32x32xf32, #tpu.memory_space<vmem>>, vector<1x32x32xf32>
    %218 = vector.shape_cast %217 : vector<1x32x32xf32> to vector<32x32xf32>
    %cst_148 = arith.constant dense<0.000000e+00> : vector<16x32xf32>
    %219 = tpu.matmul %203, %218, %cst_148 {dimension_numbers = #tpu.dot_dimension_numbers<[1], [0], [0], [1], [0, 0, 1, 1], [], []>, precision = #tpu.contract_precision<fp32>} : vector<16x32xf32>, vector<32x32xf32>, vector<16x32xf32> -> vector<16x32xf32>
    %220 = arith.mulf %219, %10 : vector<16x32xf32>
    %221 = arith.addf %216, %220 : vector<16x32xf32>
    %c1_149 = arith.constant 1 : index
    %c0_150 = arith.constant 0 : index
    %c0_151 = arith.constant 0 : index
    %222 = vector.load %arg15[%c1_149, %c0_150, %c0_151] : memref<2x32x32xf32, #tpu.memory_space<vmem>>, vector<1x32x32xf32>
    %223 = vector.shape_cast %222 : vector<1x32x32xf32> to vector<32x32xf32>
    %cst_152 = arith.constant dense<0.000000e+00> : vector<16x32xf32>
    %224 = tpu.matmul %203, %223, %cst_152 {dimension_numbers = #tpu.dot_dimension_numbers<[1], [0], [0], [1], [0, 0, 1, 1], [], []>, precision = #tpu.contract_precision<fp32>} : vector<16x32xf32>, vector<32x32xf32>, vector<16x32xf32> -> vector<16x32xf32>
    %225 = vector.extract_strided_slice %212 {offsets = [0, 0], sizes = [16, 8], strides = [1, 1]} : vector<16x32xf32> to vector<16x8xf32>
    %c0_153 = arith.constant 0 : index
    %c0_154 = arith.constant 0 : index
    %226 = vector.load %arg27[%c0_153, %c0_154] : memref<64x8xf32, #tpu.memory_space<vmem>>, vector<16x8xf32>
    tpu.vector_store %arg27[%c0_153, %c0_154], %225 {strides = array<i32>} : memref<64x8xf32, #tpu.memory_space<vmem>>, vector<16x8xf32>,
    %227 = vector.extract_strided_slice %221 {offsets = [0, 0], sizes = [16, 8], strides = [1, 1]} : vector<16x32xf32> to vector<16x8xf32>
    %c0_155 = arith.constant 0 : index
    %c0_156 = arith.constant 0 : index
    %228 = vector.load %arg28[%c0_155, %c0_156] : memref<64x8xf32, #tpu.memory_space<vmem>>, vector<16x8xf32>
    tpu.vector_store %arg28[%c0_155, %c0_156], %227 {strides = array<i32>} : memref<64x8xf32, #tpu.memory_space<vmem>>, vector<16x8xf32>,
    %229 = vector.extract_strided_slice %224 {offsets = [0, 0], sizes = [16, 8], strides = [1, 1]} : vector<16x32xf32> to vector<16x8xf32>
    %c0_157 = arith.constant 0 : index
    %c0_158 = arith.constant 0 : index
    %230 = vector.load %arg29[%c0_157, %c0_158] : memref<64x8xf32, #tpu.memory_space<vmem>>, vector<16x8xf32>
    tpu.vector_store %arg29[%c0_157, %c0_158], %229 {strides = array<i32>} : memref<64x8xf32, #tpu.memory_space<vmem>>, vector<16x8xf32>,
    %231 = vector.extract_strided_slice %212 {offsets = [0, 8], sizes = [16, 8], strides = [1, 1]} : vector<16x32xf32> to vector<16x8xf32>
    %c16_159 = arith.constant 16 : index
    %c0_160 = arith.constant 0 : index
    %232 = vector.load %arg27[%c16_159, %c0_160] : memref<64x8xf32, #tpu.memory_space<vmem>>, vector<16x8xf32>
    tpu.vector_store %arg27[%c16_159, %c0_160], %231 {strides = array<i32>} : memref<64x8xf32, #tpu.memory_space<vmem>>, vector<16x8xf32>,
    %233 = vector.extract_strided_slice %221 {offsets = [0, 8], sizes = [16, 8], strides = [1, 1]} : vector<16x32xf32> to vector<16x8xf32>
    %c16_161 = arith.constant 16 : index
    %c0_162 = arith.constant 0 : index
    %234 = vector.load %arg28[%c16_161, %c0_162] : memref<64x8xf32, #tpu.memory_space<vmem>>, vector<16x8xf32>
    tpu.vector_store %arg28[%c16_161, %c0_162], %233 {strides = array<i32>} : memref<64x8xf32, #tpu.memory_space<vmem>>, vector<16x8xf32>,
    %235 = vector.extract_strided_slice %224 {offsets = [0, 8], sizes = [16, 8], strides = [1, 1]} : vector<16x32xf32> to vector<16x8xf32>
    %c16_163 = arith.constant 16 : index
    %c0_164 = arith.constant 0 : index
    %236 = vector.load %arg29[%c16_163, %c0_164] : memref<64x8xf32, #tpu.memory_space<vmem>>, vector<16x8xf32>
    tpu.vector_store %arg29[%c16_163, %c0_164], %235 {strides = array<i32>} : memref<64x8xf32, #tpu.memory_space<vmem>>, vector<16x8xf32>,
    %237 = vector.extract_strided_slice %212 {offsets = [0, 16], sizes = [16, 8], strides = [1, 1]} : vector<16x32xf32> to vector<16x8xf32>
    %c32_165 = arith.constant 32 : index
    %c0_166 = arith.constant 0 : index
    %238 = vector.load %arg27[%c32_165, %c0_166] : memref<64x8xf32, #tpu.memory_space<vmem>>, vector<16x8xf32>
    tpu.vector_store %arg27[%c32_165, %c0_166], %237 {strides = array<i32>} : memref<64x8xf32, #tpu.memory_space<vmem>>, vector<16x8xf32>,
    %239 = vector.extract_strided_slice %221 {offsets = [0, 16], sizes = [16, 8], strides = [1, 1]} : vector<16x32xf32> to vector<16x8xf32>
    %c32_167 = arith.constant 32 : index
    %c0_168 = arith.constant 0 : index
    %240 = vector.load %arg28[%c32_167, %c0_168] : memref<64x8xf32, #tpu.memory_space<vmem>>, vector<16x8xf32>
    tpu.vector_store %arg28[%c32_167, %c0_168], %239 {strides = array<i32>} : memref<64x8xf32, #tpu.memory_space<vmem>>, vector<16x8xf32>,
    %241 = vector.extract_strided_slice %224 {offsets = [0, 16], sizes = [16, 8], strides = [1, 1]} : vector<16x32xf32> to vector<16x8xf32>
    %c32_169 = arith.constant 32 : index
    %c0_170 = arith.constant 0 : index
    %242 = vector.load %arg29[%c32_169, %c0_170] : memref<64x8xf32, #tpu.memory_space<vmem>>, vector<16x8xf32>
    tpu.vector_store %arg29[%c32_169, %c0_170], %241 {strides = array<i32>} : memref<64x8xf32, #tpu.memory_space<vmem>>, vector<16x8xf32>,
    %243 = vector.extract_strided_slice %212 {offsets = [0, 24], sizes = [16, 8], strides = [1, 1]} : vector<16x32xf32> to vector<16x8xf32>
    %c48_171 = arith.constant 48 : index
    %c0_172 = arith.constant 0 : index
    %244 = vector.load %arg27[%c48_171, %c0_172] : memref<64x8xf32, #tpu.memory_space<vmem>>, vector<16x8xf32>
    tpu.vector_store %arg27[%c48_171, %c0_172], %243 {strides = array<i32>} : memref<64x8xf32, #tpu.memory_space<vmem>>, vector<16x8xf32>,
    %245 = vector.extract_strided_slice %221 {offsets = [0, 24], sizes = [16, 8], strides = [1, 1]} : vector<16x32xf32> to vector<16x8xf32>
    %c48_173 = arith.constant 48 : index
    %c0_174 = arith.constant 0 : index
    %246 = vector.load %arg28[%c48_173, %c0_174] : memref<64x8xf32, #tpu.memory_space<vmem>>, vector<16x8xf32>
    tpu.vector_store %arg28[%c48_173, %c0_174], %245 {strides = array<i32>} : memref<64x8xf32, #tpu.memory_space<vmem>>, vector<16x8xf32>,
    %247 = vector.extract_strided_slice %224 {offsets = [0, 24], sizes = [16, 8], strides = [1, 1]} : vector<16x32xf32> to vector<16x8xf32>
    %c48_175 = arith.constant 48 : index
    %c0_176 = arith.constant 0 : index
    %248 = vector.load %arg29[%c48_175, %c0_176] : memref<64x8xf32, #tpu.memory_space<vmem>>, vector<16x8xf32>
    tpu.vector_store %arg29[%c48_175, %c0_176], %247 {strides = array<i32>} : memref<64x8xf32, #tpu.memory_space<vmem>>, vector<16x8xf32>,
    %c0_177 = arith.constant 0 : index
    %c0_178 = arith.constant 0 : index
    %249 = vector.load %arg27[%c0_177, %c0_178] : memref<64x8xf32, #tpu.memory_space<vmem>>, vector<64x8xf32>
    %c0_179 = arith.constant 0 : index
    %c0_180 = arith.constant 0 : index
    %250 = vector.load %arg28[%c0_179, %c0_180] : memref<64x8xf32, #tpu.memory_space<vmem>>, vector<64x8xf32>
    %c0_181 = arith.constant 0 : index
    %c0_182 = arith.constant 0 : index
    %251 = vector.load %arg29[%c0_181, %c0_182] : memref<64x8xf32, #tpu.memory_space<vmem>>, vector<64x8xf32>
    %cst_183 = arith.constant dense<0.000000e+00> : vector<64x64xf32>
    %252 = tpu.matmul %249, %250, %cst_183 {dimension_numbers = #tpu.dot_dimension_numbers<[1], [1], [0], [0], [0, 0, 1, 0], [], []>, precision = #tpu.contract_precision<fp32>} : vector<64x8xf32>, vector<64x8xf32>, vector<64x64xf32> -> vector<64x64xf32>
    %253 = arith.addf %252, %8 : vector<64x64xf32>
    %cst_184 = arith.constant dense<0xFF800000> : vector<64xf32>
    %254 = vector.multi_reduction <maximumf>, %253, %cst_184 [1] : vector<64x64xf32> to vector<64xf32>
    %255 = vector.shape_cast %254 : vector<64xf32> to vector<64x1xf32>
    %256 = vector.broadcast %255 : vector<64x1xf32> to vector<64x64xf32>
    %257 = arith.subf %253, %256 : vector<64x64xf32>
    %258 = math.exp %257 : vector<64x64xf32>
    %cst_185 = arith.constant dense<0.000000e+00> : vector<64xf32>
    %259 = vector.multi_reduction <add>, %258, %cst_185 [1] : vector<64x64xf32> to vector<64xf32>
    %260 = vector.shape_cast %259 : vector<64xf32> to vector<64x1xf32>
    %261 = tpu.reciprocal %260 : vector<64x1xf32> -> vector<64x1xf32>
    %262 = vector.broadcast %261 : vector<64x1xf32> to vector<64x64xf32>
    %263 = arith.mulf %258, %262 : vector<64x64xf32>
    %cst_186 = arith.constant dense<0.000000e+00> : vector<64x8xf32>
    %264 = tpu.matmul %263, %251, %cst_186 {dimension_numbers = #tpu.dot_dimension_numbers<[1], [0], [0], [1], [0, 0, 1, 1], [], []>, precision = #tpu.contract_precision<fp32>} : vector<64x64xf32>, vector<64x8xf32>, vector<64x8xf32> -> vector<64x8xf32>
    %c1_187 = arith.constant 1 : index
    %c0_188 = arith.constant 0 : index
    %c0_189 = arith.constant 0 : index
    %265 = vector.load %arg17[%c1_187, %c0_188, %c0_189] : memref<2x1x32xf32, #tpu.memory_space<vmem>>, vector<1x1x32xf32>
    %266 = vector.shape_cast %265 : vector<1x1x32xf32> to vector<1x32xf32>
    %267 = vector.extract_strided_slice %264 {offsets = [0, 0], sizes = [16, 8], strides = [1, 1]} : vector<64x8xf32> to vector<16x8xf32>
    %c4 = arith.constant 4 : index
    %c0_190 = arith.constant 0 : index
    %c0_191 = arith.constant 0 : index
    %268 = vector.load %arg16[%c4, %c0_190, %c0_191] : memref<8x8x32xf32, #tpu.memory_space<vmem>>, vector<1x8x32xf32>
    %269 = vector.shape_cast %268 : vector<1x8x32xf32> to vector<8x32xf32>
    %cst_192 = arith.constant dense<0.000000e+00> : vector<16x32xf32>
    %270 = tpu.matmul %267, %269, %cst_192 {dimension_numbers = #tpu.dot_dimension_numbers<[1], [0], [0], [1], [0, 0, 1, 1], [], []>, precision = #tpu.contract_precision<fp32>} : vector<16x8xf32>, vector<8x32xf32>, vector<16x32xf32> -> vector<16x32xf32>
    %271 = vector.broadcast %266 : vector<1x32xf32> to vector<16x32xf32>
    %272 = arith.addf %271, %270 : vector<16x32xf32>
    %273 = vector.extract_strided_slice %264 {offsets = [16, 0], sizes = [16, 8], strides = [1, 1]} : vector<64x8xf32> to vector<16x8xf32>
    %c5 = arith.constant 5 : index
    %c0_193 = arith.constant 0 : index
    %c0_194 = arith.constant 0 : index
    %274 = vector.load %arg16[%c5, %c0_193, %c0_194] : memref<8x8x32xf32, #tpu.memory_space<vmem>>, vector<1x8x32xf32>
    %275 = vector.shape_cast %274 : vector<1x8x32xf32> to vector<8x32xf32>
    %cst_195 = arith.constant dense<0.000000e+00> : vector<16x32xf32>
    %276 = tpu.matmul %273, %275, %cst_195 {dimension_numbers = #tpu.dot_dimension_numbers<[1], [0], [0], [1], [0, 0, 1, 1], [], []>, precision = #tpu.contract_precision<fp32>} : vector<16x8xf32>, vector<8x32xf32>, vector<16x32xf32> -> vector<16x32xf32>
    %277 = arith.addf %272, %276 : vector<16x32xf32>
    %278 = vector.extract_strided_slice %264 {offsets = [32, 0], sizes = [16, 8], strides = [1, 1]} : vector<64x8xf32> to vector<16x8xf32>
    %c6 = arith.constant 6 : index
    %c0_196 = arith.constant 0 : index
    %c0_197 = arith.constant 0 : index
    %279 = vector.load %arg16[%c6, %c0_196, %c0_197] : memref<8x8x32xf32, #tpu.memory_space<vmem>>, vector<1x8x32xf32>
    %280 = vector.shape_cast %279 : vector<1x8x32xf32> to vector<8x32xf32>
    %cst_198 = arith.constant dense<0.000000e+00> : vector<16x32xf32>
    %281 = tpu.matmul %278, %280, %cst_198 {dimension_numbers = #tpu.dot_dimension_numbers<[1], [0], [0], [1], [0, 0, 1, 1], [], []>, precision = #tpu.contract_precision<fp32>} : vector<16x8xf32>, vector<8x32xf32>, vector<16x32xf32> -> vector<16x32xf32>
    %282 = arith.addf %277, %281 : vector<16x32xf32>
    %283 = vector.extract_strided_slice %264 {offsets = [48, 0], sizes = [16, 8], strides = [1, 1]} : vector<64x8xf32> to vector<16x8xf32>
    %c7 = arith.constant 7 : index
    %c0_199 = arith.constant 0 : index
    %c0_200 = arith.constant 0 : index
    %284 = vector.load %arg16[%c7, %c0_199, %c0_200] : memref<8x8x32xf32, #tpu.memory_space<vmem>>, vector<1x8x32xf32>
    %285 = vector.shape_cast %284 : vector<1x8x32xf32> to vector<8x32xf32>
    %cst_201 = arith.constant dense<0.000000e+00> : vector<16x32xf32>
    %286 = tpu.matmul %283, %285, %cst_201 {dimension_numbers = #tpu.dot_dimension_numbers<[1], [0], [0], [1], [0, 0, 1, 1], [], []>, precision = #tpu.contract_precision<fp32>} : vector<16x8xf32>, vector<8x32xf32>, vector<16x32xf32> -> vector<16x32xf32>
    %287 = arith.addf %282, %286 : vector<16x32xf32>
    %288 = arith.addf %287, %177 : vector<16x32xf32>
    %c1_202 = arith.constant 1 : index
    %c0_203 = arith.constant 0 : index
    %c0_204 = arith.constant 0 : index
    %289 = vector.load %arg9[%c1_202, %c0_203, %c0_204] : memref<2x1x32xf32, #tpu.memory_space<vmem>>, vector<1x1x32xf32>
    %290 = vector.shape_cast %289 : vector<1x1x32xf32> to vector<1x32xf32>
    %c1_205 = arith.constant 1 : index
    %c0_206 = arith.constant 0 : index
    %c0_207 = arith.constant 0 : index
    %291 = vector.load %arg10[%c1_205, %c0_206, %c0_207] : memref<2x1x32xf32, #tpu.memory_space<vmem>>, vector<1x1x32xf32>
    %292 = vector.shape_cast %291 : vector<1x1x32xf32> to vector<1x32xf32>
    %cst_208 = arith.constant dense<0.000000e+00> : vector<16xf32>
    %293 = vector.multi_reduction <add>, %288, %cst_208 [1] : vector<16x32xf32> to vector<16xf32>
    %294 = vector.shape_cast %293 : vector<16xf32> to vector<16x1xf32>
    %cst_209 = arith.constant 3.200000e+01 : f32
    %295 = vector.broadcast %cst_209 : f32 to vector<16x1xf32>
    %296 = arith.divf %294, %295 : vector<16x1xf32>
    %297 = vector.broadcast %296 : vector<16x1xf32> to vector<16x32xf32>
    %298 = arith.subf %288, %297 : vector<16x32xf32>
    %299 = arith.mulf %298, %298 : vector<16x32xf32>
    %cst_210 = arith.constant dense<0.000000e+00> : vector<16xf32>
    %300 = vector.multi_reduction <add>, %299, %cst_210 [1] : vector<16x32xf32> to vector<16xf32>
    %301 = vector.shape_cast %300 : vector<16xf32> to vector<16x1xf32>
    %cst_211 = arith.constant 3.200000e+01 : f32
    %302 = vector.broadcast %cst_211 : f32 to vector<16x1xf32>
    %303 = arith.divf %301, %302 : vector<16x1xf32>
    %304 = vector.broadcast %296 : vector<16x1xf32> to vector<16x32xf32>
    %305 = arith.subf %288, %304 : vector<16x32xf32>
    %cst_212 = arith.constant 9.99999974E-6 : f32
    %306 = vector.broadcast %cst_212 : f32 to vector<16x1xf32>
    %307 = arith.addf %303, %306 : vector<16x1xf32>
    %308 = math.rsqrt %307 : vector<16x1xf32>
    %309 = vector.broadcast %308 : vector<16x1xf32> to vector<16x32xf32>
    %310 = arith.mulf %305, %309 : vector<16x32xf32>
    %311 = vector.broadcast %290 : vector<1x32xf32> to vector<16x32xf32>
    %312 = arith.mulf %310, %311 : vector<16x32xf32>
    %313 = vector.broadcast %292 : vector<1x32xf32> to vector<16x32xf32>
    %314 = arith.addf %312, %313 : vector<16x32xf32>
    %c1_213 = arith.constant 1 : index
    %c0_214 = arith.constant 0 : index
    %c0_215 = arith.constant 0 : index
    %315 = vector.load %arg18[%c1_213, %c0_214, %c0_215] : memref<2x32x64xf32, #tpu.memory_space<vmem>>, vector<1x32x64xf32>
    %316 = vector.shape_cast %315 : vector<1x32x64xf32> to vector<32x64xf32>
    %cst_216 = arith.constant dense<0.000000e+00> : vector<16x64xf32>
    %317 = tpu.matmul %314, %316, %cst_216 {dimension_numbers = #tpu.dot_dimension_numbers<[1], [0], [0], [1], [0, 0, 1, 1], [], []>, precision = #tpu.contract_precision<fp32>} : vector<16x32xf32>, vector<32x64xf32>, vector<16x64xf32> -> vector<16x64xf32>
    %c1_217 = arith.constant 1 : index
    %c0_218 = arith.constant 0 : index
    %c0_219 = arith.constant 0 : index
    %318 = vector.load %arg19[%c1_217, %c0_218, %c0_219] : memref<2x1x64xf32, #tpu.memory_space<vmem>>, vector<1x1x64xf32>
    %319 = vector.shape_cast %318 : vector<1x1x64xf32> to vector<1x64xf32>
    %320 = vector.broadcast %319 : vector<1x64xf32> to vector<16x64xf32>
    %321 = arith.addf %317, %320 : vector<16x64xf32>
    %322 = arith.negf %321 : vector<16x64xf32>
    %323 = math.exp %322 : vector<16x64xf32>
    %cst_220 = arith.constant 1.000000e+00 : f32
    %324 = vector.broadcast %cst_220 : f32 to vector<16x64xf32>
    %325 = arith.addf %324, %323 : vector<16x64xf32>
    %326 = arith.divf %324, %325 : vector<16x64xf32>
    %c1_221 = arith.constant 1 : index
    %c0_222 = arith.constant 0 : index
    %c0_223 = arith.constant 0 : index
    %327 = vector.load %arg20[%c1_221, %c0_222, %c0_223] : memref<2x32x64xf32, #tpu.memory_space<vmem>>, vector<1x32x64xf32>
    %328 = vector.shape_cast %327 : vector<1x32x64xf32> to vector<32x64xf32>
    %cst_224 = arith.constant dense<0.000000e+00> : vector<16x64xf32>
    %329 = tpu.matmul %314, %328, %cst_224 {dimension_numbers = #tpu.dot_dimension_numbers<[1], [0], [0], [1], [0, 0, 1, 1], [], []>, precision = #tpu.contract_precision<fp32>} : vector<16x32xf32>, vector<32x64xf32>, vector<16x64xf32> -> vector<16x64xf32>
    %c1_225 = arith.constant 1 : index
    %c0_226 = arith.constant 0 : index
    %c0_227 = arith.constant 0 : index
    %330 = vector.load %arg21[%c1_225, %c0_226, %c0_227] : memref<2x1x64xf32, #tpu.memory_space<vmem>>, vector<1x1x64xf32>
    %331 = vector.shape_cast %330 : vector<1x1x64xf32> to vector<1x64xf32>
    %332 = vector.broadcast %331 : vector<1x64xf32> to vector<16x64xf32>
    %333 = arith.addf %329, %332 : vector<16x64xf32>
    %cst_228 = arith.constant 0.000000e+00 : f32
    %334 = vector.broadcast %cst_228 : f32 to vector<16x64xf32>
    %335 = arith.maximumf %333, %334 : vector<16x64xf32>
    %336 = arith.mulf %326, %335 : vector<16x64xf32>
    %c1_229 = arith.constant 1 : index
    %c0_230 = arith.constant 0 : index
    %c0_231 = arith.constant 0 : index
    %337 = vector.load %arg22[%c1_229, %c0_230, %c0_231] : memref<2x64x32xf32, #tpu.memory_space<vmem>>, vector<1x64x32xf32>
    %338 = vector.shape_cast %337 : vector<1x64x32xf32> to vector<64x32xf32>
    %cst_232 = arith.constant dense<0.000000e+00> : vector<16x32xf32>
    %339 = tpu.matmul %336, %338, %cst_232 {dimension_numbers = #tpu.dot_dimension_numbers<[1], [0], [0], [1], [0, 0, 1, 1], [], []>, precision = #tpu.contract_precision<fp32>} : vector<16x64xf32>, vector<64x32xf32>, vector<16x32xf32> -> vector<16x32xf32>
    %c1_233 = arith.constant 1 : index
    %c0_234 = arith.constant 0 : index
    %c0_235 = arith.constant 0 : index
    %340 = vector.load %arg23[%c1_233, %c0_234, %c0_235] : memref<2x1x32xf32, #tpu.memory_space<vmem>>, vector<1x1x32xf32>
    %341 = vector.shape_cast %340 : vector<1x1x32xf32> to vector<1x32xf32>
    %342 = vector.broadcast %341 : vector<1x32xf32> to vector<16x32xf32>
    %343 = arith.addf %339, %342 : vector<16x32xf32>
    %344 = arith.addf %343, %288 : vector<16x32xf32>
    %c0_236 = arith.constant 0 : index
    %c0_237 = arith.constant 0 : index
    %345 = vector.load %arg24[%c0_236, %c0_237] : memref<32x1xf32, #tpu.memory_space<vmem>>, vector<32x1xf32>
    %cst_238 = arith.constant dense<0.000000e+00> : vector<16x1xf32>
    %346 = tpu.matmul %344, %345, %cst_238 {dimension_numbers = #tpu.dot_dimension_numbers<[1], [0], [0], [1], [0, 0, 1, 1], [], []>, precision = #tpu.contract_precision<fp32>} : vector<16x32xf32>, vector<32x1xf32>, vector<16x1xf32> -> vector<16x1xf32>
    %c0_239 = arith.constant 0 : index
    %c0_240 = arith.constant 0 : index
    %347 = vector.load %arg25[%c0_239, %c0_240] : memref<1x1xf32, #tpu.memory_space<vmem>>, vector<1x1xf32>
    %348 = vector.broadcast %347 : vector<1x1xf32> to vector<16x1xf32>
    %349 = arith.addf %346, %348 : vector<16x1xf32>
    %c0_241 = arith.constant 0 : index
    %c0_242 = arith.constant 0 : index
    %350 = vector.load %arg26[%c0_241, %c0_242] : memref<16x1xf32, #tpu.memory_space<vmem>>, vector<16x1xf32>
    tpu.vector_store %arg26[%c0_241, %c0_242], %349 {strides = array<i32>} : memref<16x1xf32, #tpu.memory_space<vmem>>, vector<16x1xf32>,
    return
  }
  func.func @transform_0(%arg0: i32) -> (i32, i32) {
    %c0_i32 = arith.constant 0 : i32
    %c0_i32_0 = arith.constant 0 : i32
    %c0_i32_1 = arith.constant 0 : i32
    return %c0_i32, %c0_i32_0 : i32, i32
  }
  func.func @transform_1(%arg0: i32) -> (i32, i32) {
    %c0_i32 = arith.constant 0 : i32
    %c0_i32_0 = arith.constant 0 : i32
    %c0_i32_1 = arith.constant 0 : i32
    return %c0_i32, %c0_i32_0 : i32, i32
  }
  func.func @transform_2(%arg0: i32) -> (i32, i32) {
    %c0_i32 = arith.constant 0 : i32
    %c0_i32_0 = arith.constant 0 : i32
    %c0_i32_1 = arith.constant 0 : i32
    return %c0_i32, %c0_i32_0 : i32, i32
  }
  func.func @transform_3(%arg0: i32) -> (i32, i32) {
    %c0_i32 = arith.constant 0 : i32
    %c0_i32_0 = arith.constant 0 : i32
    %c0_i32_1 = arith.constant 0 : i32
    return %c0_i32, %c0_i32_0 : i32, i32
  }
  func.func @transform_4(%arg0: i32) -> (i32, i32) {
    %c0_i32 = arith.constant 0 : i32
    %c0_i32_0 = arith.constant 0 : i32
    %c0_i32_1 = arith.constant 0 : i32
    return %c0_i32, %c0_i32_0 : i32, i32
  }
  func.func @transform_5(%arg0: i32) -> (i32, i32) {
    %c0_i32 = arith.constant 0 : i32
    %c0_i32_0 = arith.constant 0 : i32
    %c0_i32_1 = arith.constant 0 : i32
    return %c0_i32, %c0_i32_0 : i32, i32
  }
  func.func @transform_6(%arg0: i32) -> (i32, i32, i32) {
    %c0_i32 = arith.constant 0 : i32
    %c0_i32_0 = arith.constant 0 : i32
    %c0_i32_1 = arith.constant 0 : i32
    %c0_i32_2 = arith.constant 0 : i32
    return %c0_i32, %c0_i32_0, %c0_i32_1 : i32, i32, i32
  }
  func.func @transform_7(%arg0: i32) -> (i32, i32, i32) {
    %c0_i32 = arith.constant 0 : i32
    %c0_i32_0 = arith.constant 0 : i32
    %c0_i32_1 = arith.constant 0 : i32
    %c0_i32_2 = arith.constant 0 : i32
    return %c0_i32, %c0_i32_0, %c0_i32_1 : i32, i32, i32
  }
  func.func @transform_8(%arg0: i32) -> (i32, i32, i32) {
    %c0_i32 = arith.constant 0 : i32
    %c0_i32_0 = arith.constant 0 : i32
    %c0_i32_1 = arith.constant 0 : i32
    %c0_i32_2 = arith.constant 0 : i32
    return %c0_i32, %c0_i32_0, %c0_i32_1 : i32, i32, i32
  }
  func.func @transform_9(%arg0: i32) -> (i32, i32, i32) {
    %c0_i32 = arith.constant 0 : i32
    %c0_i32_0 = arith.constant 0 : i32
    %c0_i32_1 = arith.constant 0 : i32
    %c0_i32_2 = arith.constant 0 : i32
    return %c0_i32, %c0_i32_0, %c0_i32_1 : i32, i32, i32
  }
  func.func @transform_10(%arg0: i32) -> (i32, i32, i32) {
    %c0_i32 = arith.constant 0 : i32
    %c0_i32_0 = arith.constant 0 : i32
    %c0_i32_1 = arith.constant 0 : i32
    %c0_i32_2 = arith.constant 0 : i32
    return %c0_i32, %c0_i32_0, %c0_i32_1 : i32, i32, i32
  }
  func.func @transform_11(%arg0: i32) -> (i32, i32, i32) {
    %c0_i32 = arith.constant 0 : i32
    %c0_i32_0 = arith.constant 0 : i32
    %c0_i32_1 = arith.constant 0 : i32
    %c0_i32_2 = arith.constant 0 : i32
    return %c0_i32, %c0_i32_0, %c0_i32_1 : i32, i32, i32
  }
  func.func @transform_12(%arg0: i32) -> (i32, i32, i32) {
    %c0_i32 = arith.constant 0 : i32
    %c0_i32_0 = arith.constant 0 : i32
    %c0_i32_1 = arith.constant 0 : i32
    %c0_i32_2 = arith.constant 0 : i32
    return %c0_i32, %c0_i32_0, %c0_i32_1 : i32, i32, i32
  }
  func.func @transform_13(%arg0: i32) -> (i32, i32, i32) {
    %c0_i32 = arith.constant 0 : i32
    %c0_i32_0 = arith.constant 0 : i32
    %c0_i32_1 = arith.constant 0 : i32
    %c0_i32_2 = arith.constant 0 : i32
    return %c0_i32, %c0_i32_0, %c0_i32_1 : i32, i32, i32
  }
  func.func @transform_14(%arg0: i32) -> (i32, i32, i32) {
    %c0_i32 = arith.constant 0 : i32
    %c0_i32_0 = arith.constant 0 : i32
    %c0_i32_1 = arith.constant 0 : i32
    %c0_i32_2 = arith.constant 0 : i32
    return %c0_i32, %c0_i32_0, %c0_i32_1 : i32, i32, i32
  }
  func.func @transform_15(%arg0: i32) -> (i32, i32, i32) {
    %c0_i32 = arith.constant 0 : i32
    %c0_i32_0 = arith.constant 0 : i32
    %c0_i32_1 = arith.constant 0 : i32
    %c0_i32_2 = arith.constant 0 : i32
    return %c0_i32, %c0_i32_0, %c0_i32_1 : i32, i32, i32
  }
  func.func @transform_16(%arg0: i32) -> (i32, i32, i32) {
    %c0_i32 = arith.constant 0 : i32
    %c0_i32_0 = arith.constant 0 : i32
    %c0_i32_1 = arith.constant 0 : i32
    %c0_i32_2 = arith.constant 0 : i32
    return %c0_i32, %c0_i32_0, %c0_i32_1 : i32, i32, i32
  }
  func.func @transform_17(%arg0: i32) -> (i32, i32, i32) {
    %c0_i32 = arith.constant 0 : i32
    %c0_i32_0 = arith.constant 0 : i32
    %c0_i32_1 = arith.constant 0 : i32
    %c0_i32_2 = arith.constant 0 : i32
    return %c0_i32, %c0_i32_0, %c0_i32_1 : i32, i32, i32
  }
  func.func @transform_18(%arg0: i32) -> (i32, i32, i32) {
    %c0_i32 = arith.constant 0 : i32
    %c0_i32_0 = arith.constant 0 : i32
    %c0_i32_1 = arith.constant 0 : i32
    %c0_i32_2 = arith.constant 0 : i32
    return %c0_i32, %c0_i32_0, %c0_i32_1 : i32, i32, i32
  }
  func.func @transform_19(%arg0: i32) -> (i32, i32, i32) {
    %c0_i32 = arith.constant 0 : i32
    %c0_i32_0 = arith.constant 0 : i32
    %c0_i32_1 = arith.constant 0 : i32
    %c0_i32_2 = arith.constant 0 : i32
    return %c0_i32, %c0_i32_0, %c0_i32_1 : i32, i32, i32
  }
  func.func @transform_20(%arg0: i32) -> (i32, i32, i32) {
    %c0_i32 = arith.constant 0 : i32
    %c0_i32_0 = arith.constant 0 : i32
    %c0_i32_1 = arith.constant 0 : i32
    %c0_i32_2 = arith.constant 0 : i32
    return %c0_i32, %c0_i32_0, %c0_i32_1 : i32, i32, i32
  }
  func.func @transform_21(%arg0: i32) -> (i32, i32, i32) {
    %c0_i32 = arith.constant 0 : i32
    %c0_i32_0 = arith.constant 0 : i32
    %c0_i32_1 = arith.constant 0 : i32
    %c0_i32_2 = arith.constant 0 : i32
    return %c0_i32, %c0_i32_0, %c0_i32_1 : i32, i32, i32
  }
  func.func @transform_22(%arg0: i32) -> (i32, i32, i32) {
    %c0_i32 = arith.constant 0 : i32
    %c0_i32_0 = arith.constant 0 : i32
    %c0_i32_1 = arith.constant 0 : i32
    %c0_i32_2 = arith.constant 0 : i32
    return %c0_i32, %c0_i32_0, %c0_i32_1 : i32, i32, i32
  }
  func.func @transform_23(%arg0: i32) -> (i32, i32) {
    %c0_i32 = arith.constant 0 : i32
    %c0_i32_0 = arith.constant 0 : i32
    %c0_i32_1 = arith.constant 0 : i32
    return %c0_i32, %c0_i32_0 : i32, i32
  }
  func.func @transform_24(%arg0: i32) -> (i32, i32) {
    %c0_i32 = arith.constant 0 : i32
    %c0_i32_0 = arith.constant 0 : i32
    %c0_i32_1 = arith.constant 0 : i32
    return %c0_i32, %c0_i32_0 : i32, i32
  }
  func.func @transform_25(%arg0: i32) -> (i32, i32) {
    %c0_i32 = arith.constant 0 : i32
    %c0_i32_0 = arith.constant 0 : i32
    %c0_i32_1 = arith.constant 0 : i32
    return %c0_i32, %c0_i32_0 : i32, i32
  }
}

</mosaic_0001>

<bundles_post_ra>
// kernel: tpu_custom_call.1
= control target key start
LH: loop header
LB: loop body
LE: loop exit
PB: predicated region body
PF: predicated region fallthrough
CT: control target
= control target key end

     0   :  { %s25976_s0 = inlined_call_operand.vmem [shape: f32[16,1], index: 0, kind: input, shape index: {}]   ;;  %s25977_s1 = inlined_call_operand.vmem [shape: f32[64,64], index: 1, kind: input, shape index: {}]   ;;  %s25978_s2 = inlined_call_operand.hbm [shape: f32[16,32], index: 2, kind: input, shape index: {}]   ;;  %s25979_s3 = inlined_call_operand.hbm [shape: f32[16,32], index: 3, kind: input, shape index: {}]   ;;  %s25980_s4 = inlined_call_operand.vmem [shape: f32[1,32], index: 4, kind: input, shape index: {}]   ;;  %s25981_s5 = inlined_call_operand.hbm [shape: f32[1,32], index: 5, kind: input, shape index: {}]   ;;  %s25982_s6 = inlined_call_operand.hbm [shape: f32[2,1,32], index: 6, kind: input, shape index: {}]   ;;  %s25983_s7 = inlined_call_operand.hbm [shape: f32[2,1,32], index: 7, kind: input, shape index: {}]   ;;  %s25984_s8 = inlined_call_operand.hbm [shape: f32[2,1,32], index: 8, kind: input, shape index: {}]   ;;  %s25985_s9 = inlined_call_operand.hbm [shape: f32[2,1,32], index: 9, kind: input, shape index: {}]   ;;  %s25986_s10 = inlined_call_operand.vmem [shape: f32[2,32,32], index: 10, kind: input, shape index: {}]   ;;  %s25987_s11 = inlined_call_operand.vmem [shape: f32[2,32,32], index: 11, kind: input, shape index: {}]   ;;  %s25988_s12 = inlined_call_operand.vmem [shape: f32[2,32,32], index: 12, kind: input, shape index: {}]   ;;  %s25989_s13 = inlined_call_operand.hbm [shape: f32[2,32,32], index: 13, kind: input, shape index: {}]   ;;  %s25990_s14 = inlined_call_operand.hbm [shape: f32[2,32,32], index: 14, kind: input, shape index: {}]   ;;  %s25991_s15 = inlined_call_operand.hbm [shape: f32[8,8,32], index: 15, kind: input, shape index: {}]   ;;  %s25992_s16 = inlined_call_operand.hbm [shape: f32[2,1,32], index: 16, kind: input, shape index: {}]   ;;  %s25993_s17 = inlined_call_operand.hbm [shape: f32[2,32,64], index: 17, kind: input, shape index: {}]   ;;  %s25994_s18 = inlined_call_operand.hbm [shape: f32[2,1,64], index: 18, kind: input, shape index: {}]   ;;  %s25995_s19 = inlined_call_operand.hbm [shape: f32[2,32,64], index: 19, kind: input, shape index: {}]   ;;  %s25996_s20 = inlined_call_operand.hbm [shape: f32[2,1,64], index: 20, kind: input, shape index: {}]   ;;  %s25997_s21 = inlined_call_operand.vmem [shape: f32[2,64,32], index: 21, kind: input, shape index: {}]   ;;  %s25998_s22 = inlined_call_operand.vmem [shape: f32[2,1,32], index: 22, kind: input, shape index: {}]   ;;  %s25999_s23 = inlined_call_operand.vmem [shape: f32[32,1], index: 23, kind: input, shape index: {}]   ;;  %s26000_s24 = inlined_call_operand.<no memory space> [shape: f32[1,1], index: 24, kind: input, shape index: {}]   ;;  %s26001_s25 = inlined_call_operand.vmem [shape: f32[16,1], index: 25, kind: output, shape index: {}]  }
   0x1   :  { %26018 = sst [smem:[#allocation37_spill]] %s25976_s0  ;;  %v30_v0 = vstv %s26000_s24 }
   0x2   :  { %26019 = sst [smem:[#allocation38_spill]] %s25977_s1  ;;  %31 = vst [vmem:[#allocation5] sm:$0x1] %v30_v0 }
   0x3   :  { %26020 = sst [smem:[#allocation39_spill]] %s25978_s2 }
   0x4   :  { %26021 = sst [smem:[#allocation40_spill]] %s25979_s3 }
   0x5   :  { %26022 = sst [smem:[#allocation41_spill]] %s25980_s4 }
   0x6   :  { %26023 = sst [smem:[#allocation42_spill]] %s25981_s5 }
   0x7   :  { %26024 = sst [smem:[#allocation43_spill]] %s25982_s6 }
   0x8   :  { %26025 = sst [smem:[#allocation44_spill]] %s25983_s7 }
   0x9   :  { %26026 = sst [smem:[#allocation45_spill]] %s25984_s8 }
   0xa   :  { %26027 = sst [smem:[#allocation46_spill]] %s25985_s9 }
   0xb   :  { %26028 = sst [smem:[#allocation47_spill]] %s25999_s23 }
   0xc   :  { %26029 = sst [smem:[#allocation48_spill]] %s26001_s25 }
   0xd   :  { %32 = vsyncpa [#allocation7], 0 }
   0xe   :  { %33 = vsyncpa [#allocation9], 0 }
   0xf   :  { %34 = vsyncpa [#allocation12], 0 }
  0x10   :  { %35 = vsyncpa [#allocation15], 0 }
  0x11   :  { %36 = vsyncpa [#allocation18], 0 }
  0x12   :  { %37 = vsyncpa [#allocation21], 0 }
  0x13   :  { %38 = vsyncpa [#allocation24], 0 }
  0x14   :  { %39 = vsyncpa [#allocation27], 0  ;;  %s23332_s6 = smov [#allocation8]   ;;  %s23333_s7 = smov [#allocation11]  }
  0x15   :  { %s61_s30 = sshll.u32 %s23332_s6, 4  ;;  %s85_s3 = sshll.u32 %s23333_s7, 4  ;;  %s62_s30 = int_to_ptr.vmem [resolvable:$true] %s61_s30  ;;  %s23488_s3 = int_to_ptr.vmem [resolvable:$true] %s85_s3 }
  0x16   :  { %s26030_s8 = sld [smem:[#allocation40_spill]] }
  0x1c   :  { %s22986_s24 = scalar_lea.hbm %s26030_s8, 256 }
  0x1d   :  { %p22987_p0 = scmp.ne.s32.totalorder %s26030_s8, %s22986_s24  ;;  %p22990_p1 = scmp.lt.u32.totalorder %s22986_s24, %s26030_s8 }
  0x1f   :  { %p22992_p2 = pnand %p22990_p1, %p22987_p0 }
  0x21   :  { %22995 = shalt.err (!%p22992_p2)
}
  0x22   :  { %s22996_s5 = scalar_lea.vmem %s62_s30, 256  ;;  %p23001_p4 = scmp.lt.s32.totalorder %s62_s30, %s62_s30 }
  0x23   :  { %p22997_p3 = scmp.ne.s32.totalorder %s62_s30, %s22996_s5  ;;  %p23002_p5 = scmp.lt.s32.totalorder %s22996_s5, %s22996_s5 }
  0x25   :  { %p23003_p6 = por %p23002_p5, %p23001_p4 }
  0x27   :  { %p23004_p7 = pnand %p23003_p6, %p22997_p3 }
  0x29   :  { %23007 = shalt.err (!%p23004_p7)
}
  0x2a   :  { %s26011_s0 = smov 128   ;;  %s26013_s29 = smov 8  }
  0x2b   :  { %67 = dma.hbm_to_vmem [thread:$0]  %s26030_s8, 256, %s62_s30, [#allocation9], %s26011_s0, %s26011_s0, %s26013_s29  }
  0x2c   :  { %s26031_s1 = sld [smem:[#allocation43_spill]] }
  0x32   :  { %s23008_s24 = scalar_lea.hbm %s26031_s1, 32 }
  0x33   :  { %p23009_p8 = scmp.ne.s32.totalorder %s26031_s1, %s23008_s24  ;;  %p23012_p9 = scmp.lt.u32.totalorder %s23008_s24, %s26031_s1 }
  0x35   :  { %p23014_p10 = pnand %p23012_p9, %p23009_p8 }
  0x37   :  { %23017 = shalt.err (!%p23014_p10)
}
  0x38   :  { %s23018_s5 = scalar_lea.vmem %s23488_s3, 32  ;;  %p23023_p12 = scmp.lt.s32.totalorder %s23488_s3, %s23488_s3 }
  0x39   :  { %p23019_p11 = scmp.ne.s32.totalorder %s23488_s3, %s23018_s5  ;;  %p23024_p13 = scmp.lt.s32.totalorder %s23018_s5, %s23018_s5 }
  0x3b   :  { %p23025_p0 = por %p23024_p13, %p23023_p12 }
  0x3d   :  { %p23026_p1 = pnand %p23025_p0, %p23019_p11 }
  0x3f   :  { %23029 = shalt.err (!%p23026_p1)
}
  0x40   :  { %s23336_s30 = smov 16   ;;  %s23337_s8 = smov 1  }
  0x41   :  { %91 = dma.hbm_to_vmem [thread:$0]  %s26031_s1, 32, %s23488_s3, [#allocation12], %s23336_s30, %s23336_s30, %s23337_s8  }
  0x42   :  { %s23338_s7 = smov [#allocation14]   ;;  %s23339_s24 = smov [#allocation17]  }
  0x43   :  { %s109_s26 = sshll.u32 %s23338_s7, 4  ;;  %s139_s27 = sshll.u32 %s23339_s24, 4  ;;  %s110_s26 = int_to_ptr.vmem [resolvable:$true] %s109_s26  ;;  %s23525_s27 = int_to_ptr.vmem [resolvable:$true] %s139_s27 }
  0x44   :  { %s26032_s9 = sld [smem:[#allocation45_spill]] }
  0x4a   :  { %s23030_s5 = scalar_lea.hbm %s26032_s9, 32 }
  0x4b   :  { %p23031_p2 = scmp.ne.s32.totalorder %s26032_s9, %s23030_s5  ;;  %p23034_p3 = scmp.lt.u32.totalorder %s23030_s5, %s26032_s9 }
  0x4d   :  { %p23036_p4 = pnand %p23034_p3, %p23031_p2 }
  0x4f   :  { %23039 = shalt.err (!%p23036_p4)
}
  0x50   :  { %s23040_s3 = scalar_lea.vmem %s110_s26, 32  ;;  %p23045_p6 = scmp.lt.s32.totalorder %s110_s26, %s110_s26 }
  0x51   :  { %p23041_p5 = scmp.ne.s32.totalorder %s110_s26, %s23040_s3  ;;  %p23046_p7 = scmp.lt.s32.totalorder %s23040_s3, %s23040_s3 }
  0x53   :  { %p23047_p8 = por %p23046_p7, %p23045_p6 }
  0x55   :  { %p23048_p9 = pnand %p23047_p8, %p23041_p5 }
  0x57   :  { %23051 = shalt.err (!%p23048_p9)
}
  0x58   :  { %115 = dma.hbm_to_vmem [thread:$0]  %s26032_s9, 32, %s110_s26, [#allocation15], %s23336_s30, %s23336_s30, %s23337_s8  }
  0x59   :  { %s23052_s23 = scalar_lea.hbm %s25989_s13, 1024 }
  0x5a   :  { %p23053_p10 = scmp.ne.s32.totalorder %s25989_s13, %s23052_s23  ;;  %p23056_p11 = scmp.lt.u32.totalorder %s23052_s23, %s25989_s13 }
  0x5c   :  { %p23058_p12 = pnand %p23056_p11, %p23053_p10 }
  0x5e   :  { %23061 = shalt.err (!%p23058_p12)
}
  0x5f   :  { %s23062_s4 = scalar_lea.vmem %s23525_s27, 1024  ;;  %p23067_p0 = scmp.lt.s32.totalorder %s23525_s27, %s23525_s27 }
  0x60   :  { %p23063_p13 = scmp.ne.s32.totalorder %s23525_s27, %s23062_s4  ;;  %p23068_p1 = scmp.lt.s32.totalorder %s23062_s4, %s23062_s4 }
  0x62   :  { %p23069_p2 = por %p23068_p1, %p23067_p0 }
  0x64   :  { %p23070_p3 = pnand %p23069_p2, %p23063_p13 }
  0x66   :  { %23073 = shalt.err (!%p23070_p3)
}
  0x67   :  { %s26033_s26 = smov 8   ;;  %s26034_s28 = smov 128  }
  0x68   :  { %145 = dma.hbm_to_vmem [thread:$0]  %s25989_s13, 1024, %s23525_s27, [#allocation18], %s26034_s28, %s26034_s28, %s26033_s26  }
  0x69   :  { %s23340_s3 = smov [#allocation20]   ;;  %s23341_s2 = smov [#allocation23]  }
  0x6a   :  { %s163_s1 = sshll.u32 %s23340_s3, 4  ;;  %s187_s0 = sshll.u32 %s23341_s2, 4  ;;  %s164_s1 = int_to_ptr.vmem [resolvable:$true] %s163_s1  ;;  %s23562_s0 = int_to_ptr.vmem [resolvable:$true] %s187_s0 }
  0x6b   :  { %s23074_s25 = scalar_lea.hbm %s25991_s15, 1024 }
  0x6c   :  { %p23075_p4 = scmp.ne.s32.totalorder %s25991_s15, %s23074_s25  ;;  %p23078_p5 = scmp.lt.u32.totalorder %s23074_s25, %s25991_s15 }
  0x6e   :  { %p23080_p6 = pnand %p23078_p5, %p23075_p4 }
  0x70   :  { %23083 = shalt.err (!%p23080_p6)
}
  0x71   :  { %s23084_s13 = scalar_lea.vmem %s164_s1, 1024  ;;  %p23089_p8 = scmp.lt.s32.totalorder %s164_s1, %s164_s1 }
  0x72   :  { %p23085_p7 = scmp.ne.s32.totalorder %s164_s1, %s23084_s13  ;;  %p23090_p9 = scmp.lt.s32.totalorder %s23084_s13, %s23084_s13 }
  0x74   :  { %p23091_p10 = por %p23090_p9, %p23089_p8 }
  0x76   :  { %p23092_p11 = pnand %p23091_p10, %p23085_p7 }
  0x78   :  { %23095 = shalt.err (!%p23092_p11)
}
  0x79   :  { %169 = dma.hbm_to_vmem [thread:$0]  %s25991_s15, 1024, %s164_s1, [#allocation21], %s26034_s28, %s26034_s28, %s26033_s26  }
  0x7a   :  { %s23096_s2 = scalar_lea.hbm %s25993_s17, 1024 }
  0x7b   :  { %p23097_p12 = scmp.ne.s32.totalorder %s25993_s17, %s23096_s2  ;;  %p23100_p13 = scmp.lt.u32.totalorder %s23096_s2, %s25993_s17 }
  0x7d   :  { %p23102_p0 = pnand %p23100_p13, %p23097_p12 }
  0x7f   :  { %23105 = shalt.err (!%p23102_p0)
}
  0x80   :  { %s23106_s7 = scalar_lea.vmem %s23562_s0, 1024  ;;  %p23111_p2 = scmp.lt.s32.totalorder %s23562_s0, %s23562_s0 }
  0x81   :  { %p23107_p1 = scmp.ne.s32.totalorder %s23562_s0, %s23106_s7  ;;  %p23112_p3 = scmp.lt.s32.totalorder %s23106_s7, %s23106_s7 }
  0x83   :  { %p23113_p4 = por %p23112_p3, %p23111_p2 }
  0x85   :  { %p23114_p5 = pnand %p23113_p4, %p23107_p1 }
  0x87   :  { %23117 = shalt.err (!%p23114_p5)
}
  0x88   :  { %193 = dma.hbm_to_vmem [thread:$0]  %s25993_s17, 1024, %s23562_s0, [#allocation24], %s26034_s28, %s26034_s28, %s26033_s26  }
  0x89   :  { %s23342_s24 = smov [#allocation26]   ;;  %s23343_s13 = smov [#allocation6]  }
  0x8a   :  { %s211_s4 = sshll.u32 %s23342_s24, 4  ;;  %s49_s27 = sshll.u32 %s23343_s13, 4  ;;  %s212_s4 = int_to_ptr.vmem [resolvable:$true] %s211_s4  ;;  %s23599_s27 = int_to_ptr.vmem [resolvable:$true] %s49_s27 }
  0x8b   :  { %s23118_s3 = scalar_lea.hbm %s25995_s19, 1024 }
  0x8c   :  { %p23119_p6 = scmp.ne.s32.totalorder %s25995_s19, %s23118_s3  ;;  %p23122_p7 = scmp.lt.u32.totalorder %s23118_s3, %s25995_s19 }
  0x8e   :  { %p23124_p8 = pnand %p23122_p7, %p23119_p6 }
  0x90   :  { %23127 = shalt.err (!%p23124_p8)
}
  0x91   :  { %s23128_s17 = scalar_lea.vmem %s212_s4, 1024  ;;  %p23133_p10 = scmp.lt.s32.totalorder %s212_s4, %s212_s4 }
  0x92   :  { %p23129_p9 = scmp.ne.s32.totalorder %s212_s4, %s23128_s17  ;;  %p23134_p11 = scmp.lt.s32.totalorder %s23128_s17, %s23128_s17 }
  0x94   :  { %p23135_p12 = por %p23134_p11, %p23133_p10 }
  0x96   :  { %p23136_p13 = pnand %p23135_p12, %p23129_p9 }
  0x98   :  { %23139 = shalt.err (!%p23136_p13)
}
  0x99   :  { %217 = dma.hbm_to_vmem [thread:$0]  %s25995_s19, 1024, %s212_s4, [#allocation27], %s26034_s28, %s26034_s28, %s26033_s26  }
  0x9a   :  { %s26035_s1 = sld [smem:[#allocation39_spill]] }
  0xa0   :  { %s23140_s24 = scalar_lea.hbm %s26035_s1, 256 }
  0xa1   :  { %p23141_p0 = scmp.ne.s32.totalorder %s26035_s1, %s23140_s24  ;;  %p23144_p1 = scmp.lt.u32.totalorder %s23140_s24, %s26035_s1 }
  0xa3   :  { %p23146_p2 = pnand %p23144_p1, %p23141_p0 }
  0xa5   :  { %23149 = shalt.err (!%p23146_p2)
}
  0xa6   :  { %s23150_s2 = scalar_lea.vmem %s23599_s27, 256  ;;  %p23155_p4 = scmp.lt.s32.totalorder %s23599_s27, %s23599_s27 }
  0xa7   :  { %p23151_p3 = scmp.ne.s32.totalorder %s23599_s27, %s23150_s2  ;;  %p23156_p5 = scmp.lt.s32.totalorder %s23150_s2, %s23150_s2 }
  0xa9   :  { %p23157_p6 = por %p23156_p5, %p23155_p4 }
  0xab   :  { %p23158_p7 = pnand %p23157_p6, %p23151_p3 }
  0xad   :  { %23161 = shalt.err (!%p23158_p7)
}
  0xae   :  { %55 = dma.hbm_to_vmem [thread:$0]  %s26035_s1, 256, %s23599_s27, [#allocation7], %s26034_s28, %s26034_s28, %s26033_s26  }
  0xaf   :  { %s23344_s29 = smov [#allocation10]   ;;  %s23345_s25 = smov [#allocation13]  }
  0xb0   :  { %s76_s23 = sshll.u32 %s23344_s29, 4  ;;  %s97_s17 = sshll.u32 %s23345_s25, 4  ;;  %s77_s23 = int_to_ptr.vmem [resolvable:$true] %s76_s23  ;;  %s23636_s17 = int_to_ptr.vmem [resolvable:$true] %s97_s17 }
  0xb1   :  { %s26036_s7 = sld [smem:[#allocation42_spill]] }
  0xb7   :  { %s23162_s15 = scalar_lea.hbm %s26036_s7, 16 }
  0xb8   :  { %p23163_p8 = scmp.ne.s32.totalorder %s26036_s7, %s23162_s15  ;;  %p23166_p9 = scmp.lt.u32.totalorder %s23162_s15, %s26036_s7 }
  0xba   :  { %p23168_p10 = pnand %p23166_p9, %p23163_p8 }
  0xbc   :  { %23171 = shalt.err (!%p23168_p10)
}
  0xbd   :  { %s23172_s27 = scalar_lea.vmem %s77_s23, 16  ;;  %s23176_s1 = scalar_lea.vmem %s77_s23, 32 }
  0xbe   :  { %p23173_p11 = scmp.ne.s32.totalorder %s77_s23, %s23172_s27  ;;  %p23177_p12 = scmp.lt.s32.totalorder %s77_s23, %s77_s23 }
  0xbf   :  { %p23178_p13 = scmp.lt.s32.totalorder %s23176_s1, %s23172_s27 }
  0xc1   :  { %p23179_p0 = por %p23178_p13, %p23177_p12 }
  0xc3   :  { %p23180_p1 = pnand %p23179_p0, %p23173_p11 }
  0xc5   :  { %23183 = shalt.err (!%p23180_p1)
}
  0xc6   :  { %79 = dma.hbm_to_vmem [thread:$0]  %s26036_s7, 16, %s77_s23, [#allocation9]  }
  0xc7   :  { %s26037_s29 = sld [smem:[#allocation44_spill]] }
  0xcd   :  { %s23184_s25 = scalar_lea.hbm %s26037_s29, 32 }
  0xce   :  { %p23185_p2 = scmp.ne.s32.totalorder %s26037_s29, %s23184_s25  ;;  %p23188_p3 = scmp.lt.u32.totalorder %s23184_s25, %s26037_s29 }
  0xd0   :  { %p23190_p4 = pnand %p23188_p3, %p23185_p2 }
  0xd2   :  { %23193 = shalt.err (!%p23190_p4)
}
  0xd3   :  { %s23194_s13 = scalar_lea.vmem %s23636_s17, 32  ;;  %p23199_p6 = scmp.lt.s32.totalorder %s23636_s17, %s23636_s17 }
  0xd4   :  { %p23195_p5 = scmp.ne.s32.totalorder %s23636_s17, %s23194_s13  ;;  %p23200_p7 = scmp.lt.s32.totalorder %s23194_s13, %s23194_s13 }
  0xd6   :  { %p23201_p8 = por %p23200_p7, %p23199_p6 }
  0xd8   :  { %p23202_p9 = pnand %p23201_p8, %p23195_p5 }
  0xda   :  { %23205 = shalt.err (!%p23202_p9)
}
  0xdb   :  { %103 = dma.hbm_to_vmem [thread:$0]  %s26037_s29, 32, %s23636_s17, [#allocation12], %s23336_s30, %s23336_s30, %s23337_s8  }
  0xdc   :  { %s23346_s9 = smov [#allocation16]   ;;  %s23347_s27 = smov [#allocation19]  }
  0xdd   :  { %s121_s5 = sshll.u32 %s23346_s9, 4  ;;  %s151_s1 = sshll.u32 %s23347_s27, 4  ;;  %s122_s5 = int_to_ptr.vmem [resolvable:$true] %s121_s5  ;;  %s23670_s1 = int_to_ptr.vmem [resolvable:$true] %s151_s1 }
  0xde   :  { %s26038_s19 = sld [smem:[#allocation46_spill]] }
  0xe4   :  { %s23206_s4 = scalar_lea.hbm %s26038_s19, 32 }
  0xe5   :  { %p23207_p10 = scmp.ne.s32.totalorder %s26038_s19, %s23206_s4  ;;  %p23210_p11 = scmp.lt.u32.totalorder %s23206_s4, %s26038_s19 }
  0xe7   :  { %p23212_p12 = pnand %p23210_p11, %p23207_p10 }
  0xe9   :  { %23215 = shalt.err (!%p23212_p12)
}
  0xea   :  { %s23216_s17 = scalar_lea.vmem %s122_s5, 32  ;;  %p23221_p0 = scmp.lt.s32.totalorder %s122_s5, %s122_s5 }
  0xeb   :  { %p23217_p13 = scmp.ne.s32.totalorder %s122_s5, %s23216_s17  ;;  %p23222_p1 = scmp.lt.s32.totalorder %s23216_s17, %s23216_s17 }
  0xed   :  { %p23223_p2 = por %p23222_p1, %p23221_p0 }
  0xef   :  { %p23224_p3 = pnand %p23223_p2, %p23217_p13 }
  0xf1   :  { %23227 = shalt.err (!%p23224_p3)
}
  0xf2   :  { %127 = dma.hbm_to_vmem [thread:$0]  %s26038_s19, 32, %s122_s5, [#allocation15], %s23336_s30, %s23336_s30, %s23337_s8  }
  0xf3   :  { %s23228_s7 = scalar_lea.hbm %s25990_s14, 1024 }
  0xf4   :  { %p23229_p4 = scmp.ne.s32.totalorder %s25990_s14, %s23228_s7  ;;  %p23232_p5 = scmp.lt.u32.totalorder %s23228_s7, %s25990_s14 }
  0xf6   :  { %p23234_p6 = pnand %p23232_p5, %p23229_p4 }
  0xf8   :  { %23237 = shalt.err (!%p23234_p6)
}
  0xf9   :  { %s23238_s4 = scalar_lea.vmem %s23670_s1, 1024  ;;  %p23243_p8 = scmp.lt.s32.totalorder %s23670_s1, %s23670_s1 }
  0xfa   :  { %p23239_p7 = scmp.ne.s32.totalorder %s23670_s1, %s23238_s4  ;;  %p23244_p9 = scmp.lt.s32.totalorder %s23238_s4, %s23238_s4 }
  0xfc   :  { %p23245_p10 = por %p23244_p9, %p23243_p8 }
  0xfe   :  { %p23246_p11 = pnand %p23245_p10, %p23239_p7 }
 0x100   :  { %23249 = shalt.err (!%p23246_p11)
}
 0x101   :  { %157 = dma.hbm_to_vmem [thread:$0]  %s25990_s14, 1024, %s23670_s1, [#allocation18], %s26034_s28, %s26034_s28, %s26033_s26  }
 0x102   :  { %s23348_s25 = smov [#allocation22]   ;;  %s23349_s6 = smov [#allocation25]  }
 0x103   :  { %s175_s0 = sshll.u32 %s23348_s25, 4  ;;  %s199_s15 = sshll.u32 %s23349_s6, 4  ;;  %s176_s0 = int_to_ptr.vmem [resolvable:$true] %s175_s0  ;;  %s23707_s15 = int_to_ptr.vmem [resolvable:$true] %s199_s15 }
 0x104   :  { %s23250_s24 = scalar_lea.hbm %s25992_s16, 32 }
 0x105   :  { %p23251_p12 = scmp.ne.s32.totalorder %s25992_s16, %s23250_s24  ;;  %p23254_p13 = scmp.lt.u32.totalorder %s23250_s24, %s25992_s16 }
 0x107   :  { %p23256_p0 = pnand %p23254_p13, %p23251_p12 }
 0x109   :  { %23259 = shalt.err (!%p23256_p0)
}
 0x10a   :  { %s23260_s14 = scalar_lea.vmem %s176_s0, 32  ;;  %p23265_p2 = scmp.lt.s32.totalorder %s176_s0, %s176_s0 }
 0x10b   :  { %p23261_p1 = scmp.ne.s32.totalorder %s176_s0, %s23260_s14  ;;  %p23266_p3 = scmp.lt.s32.totalorder %s23260_s14, %s23260_s14 }
 0x10d   :  { %p23267_p4 = por %p23266_p3, %p23265_p2 }
 0x10f   :  { %p23268_p5 = pnand %p23267_p4, %p23261_p1 }
 0x111   :  { %23271 = shalt.err (!%p23268_p5)
}
 0x112   :  { %181 = dma.hbm_to_vmem [thread:$0]  %s25992_s16, 32, %s176_s0, [#allocation21], %s23336_s30, %s23336_s30, %s23337_s8  }
 0x113   :  { %s23272_s3 = scalar_lea.hbm %s25994_s18, 32 }
 0x114   :  { %p23273_p6 = scmp.ne.s32.totalorder %s25994_s18, %s23272_s3  ;;  %p23276_p7 = scmp.lt.u32.totalorder %s23272_s3, %s25994_s18 }
 0x116   :  { %p23278_p8 = pnand %p23276_p7, %p23273_p6 }
 0x118   :  { %23281 = shalt.err (!%p23278_p8)
}
 0x119   :  { %s23282_s25 = scalar_lea.vmem %s23707_s15, 32  ;;  %p23287_p10 = scmp.lt.s32.totalorder %s23707_s15, %s23707_s15 }
 0x11a   :  { %p23283_p9 = scmp.ne.s32.totalorder %s23707_s15, %s23282_s25  ;;  %p23288_p11 = scmp.lt.s32.totalorder %s23282_s25, %s23282_s25 }
 0x11c   :  { %p23289_p12 = por %p23288_p11, %p23287_p10 }
 0x11e   :  { %p23290_p13 = pnand %p23289_p12, %p23283_p9 }
 0x120   :  { %23293 = shalt.err (!%p23290_p13)
}
 0x121   :  { %205 = dma.hbm_to_vmem [thread:$0]  %s25994_s18, 32, %s23707_s15, [#allocation24], %s23336_s30, %s23336_s30, %s23337_s8  }
 0x122   :  { %s23350_s6 = smov [#allocation28]   ;;  %s23294_s13 = scalar_lea.hbm %s25996_s20, 32 }
 0x123   :  { %s223_s17 = sshll.u32 %s23350_s6, 4  ;;  %p23295_p0 = scmp.ne.s32.totalorder %s25996_s20, %s23294_s13  ;;  %s224_s17 = int_to_ptr.vmem [resolvable:$true] %s223_s17 }
 0x124   :  { %p23298_p1 = scmp.lt.u32.totalorder %s23294_s13, %s25996_s20 }
 0x126   :  { %p23300_p2 = pnand %p23298_p1, %p23295_p0 }
 0x128   :  { %23303 = shalt.err (!%p23300_p2)
}
 0x129   :  { %s23304_s26 = scalar_lea.vmem %s224_s17, 32  ;;  %p23309_p4 = scmp.lt.s32.totalorder %s224_s17, %s224_s17 }
 0x12a   :  { %p23305_p3 = scmp.ne.s32.totalorder %s224_s17, %s23304_s26  ;;  %p23310_p5 = scmp.lt.s32.totalorder %s23304_s26, %s23304_s26 }
 0x12c   :  { %p23311_p6 = por %p23310_p5, %p23309_p4 }
 0x12e   :  { %p23312_p7 = pnand %p23311_p6, %p23305_p3 }
 0x130   :  { %23315 = shalt.err (!%p23312_p7)
}
 0x131   :  { %229 = dma.hbm_to_vmem [thread:$0]  %s25996_s20, 32, %s224_s17, [#allocation27], %s23336_s30, %s23336_s30, %s23337_s8  }
 0x132   :  { %23316 = dma.done.wait [#allocation7], 256  }
 0x133   :  { %23317 = vsyncadd [#allocation7], 4294967040 }
 0x134   :  { %23318 = dma.done.wait [#allocation9], 272  }
 0x135   :  { %23319 = vsyncadd [#allocation9], 4294967024 }
 0x136   :  { %23320 = dma.done.wait [#allocation12], 64  }
 0x137   :  { %23321 = vsyncadd [#allocation12], 4294967232 }
 0x138   :  { %23322 = dma.done.wait [#allocation15], 64  }
 0x139   :  { %23323 = vsyncadd [#allocation15], 4294967232 }
 0x13a   :  { %23324 = dma.done.wait [#allocation18], 2048  }
 0x13b   :  { %23325 = vsyncadd [#allocation18], 4294965248 }
 0x13c   :  { %23326 = dma.done.wait [#allocation21], 1056  }
 0x13d   :  { %23327 = vsyncadd [#allocation21], 4294966240 }
 0x13e   :  { %23328 = dma.done.wait [#allocation24], 1056  }
 0x13f   :  { %23329 = vsyncadd [#allocation24], 4294966240 }
 0x140   :  { %23330 = dma.done.wait [#allocation27], 1056  }
 0x141   :  { %23331 = vsyncadd [#allocation27], 4294966240  ;;  %v23351_v1 = vmov 0   ;;  %s26039_s30 = sld [smem:[#allocation37_spill]]  ;;  %s26040_s2 = sld [smem:[#allocation41_spill]]  ;;  %vm327_vm0 = vcmask 261120  }
 0x142   :  { %22877 = vset.pattern.permute.xlu0 %v23351_v1  ;;  %v17741_v5 = vld [vmem:[#allocation10] ss:$0 sm:$0xff]  ;;  %v372_v25 = vld [vmem:[%s25986_s10 + $0x8] sm:$0xff]  ;;  %v373_v37 = vld [vmem:[%s25986_s10 + $0x10] sm:$0xff]  ;;  %vm3049_vm1 = vcmask 64512   ;;  %s23352_s3 = smov 120  }
 0x143   :  { %v371_v24 = vld [vmem:[%s25986_s10] sm:$0xff]  ;;  %v385_v28 = vand.u32 4294901760, %v372_v25  ;;  %v912_v29 = vld [vmem:[%s25987_s11 + $0x8] sm:$0xff]  ;;  %v374_v38 = vld [vmem:[%s25986_s10 + $0x18] sm:$0xff]  ;;  %v388_v41 = vand.u32 4294901760, %v373_v37  ;;  %s23354_s4 = smov 112  }
 0x144   :  { %v911_v26 = vld [vmem:[%s25987_s11] sm:$0xff]  ;;  %v382_v27 = vand.u32 4294901760, %v371_v24  ;;  %v919_v31 = vand.u32 4294901760, %v912_v29  ;;  %v913_v39 = vld [vmem:[%s25987_s11 + $0x10] sm:$0xff]  ;;  %v391_v42 = vand.u32 4294901760, %v374_v38  ;;  %v914_v43 = vld [vmem:[%s25987_s11 + $0x18] sm:$0xff] }
 0x145   :  { %v916_v30 = vand.u32 4294901760, %v911_v26  ;;  %v479_v34 = vsub.f32 %v372_v25, %v385_v28  ;;  %v922_v44 = vand.u32 4294901760, %v913_v39  ;;  %v925_v46 = vand.u32 4294901760, %v914_v43  ;;  %s26041_s25 = sld [smem:[#allocation38_spill]]  ;;  %s26043_s15 = sld [smem:[#allocation47_spill]] }
 0x146   :  { %v23800_v32 = vpack.c.bf16 %v385_v28, %v382_v27  ;;  %v472_v33 = vsub.f32 %v371_v24, %v382_v27  ;;  %v1013_v40 = vsub.f32 %v912_v29, %v919_v31  ;;  %v23820_v50 = vpack.c.bf16 %v391_v42, %v388_v41  ;;  %s26044_s0 = sld [smem:[#allocation48_spill]] }
 0x147   :  { %v283_v2 = vld [vmem:[%s26039_s30] sm:$0xff]  ;;  %v284_v3 = vld [vmem:[%s26039_s30 + $0x8] sm:$0xff]  ;;  %v1006_v35 = vsub.f32 %v911_v26, %v916_v30  ;;  %v23802_v36 = vpack.c.bf16 %v919_v31, %v916_v30  ;;  %v480_v47 = vand.u32 4294901760, %v479_v34  ;;  %v23822_v52 = vpack.c.bf16 %v925_v46, %v922_v44 }
 0x148   :  { %288 = vperm.xlu0 %22877, %v283_v2   ;;  %v17740_v4 = vld [vmem:[%s26040_s2] ss:$0 sm:$0xff]  ;;  %21103 = vmatprep.subr.bf16.mxu0 %v23800_v32  ;;  %v473_v45 = vand.u32 4294901760, %v472_v33  ;;  %v1014_v49 = vand.u32 4294901760, %v1013_v40  ;;  %v486_v57 = vsub.f32 %v373_v37, %v388_v41  ;;  %v493_v58 = vsub.f32 %v374_v38, %v391_v42  ;;  %s23353_s2 = smov 104  }
 0x149   :  { %21151 = vmatprep.subr.bf16.mxu1 %v23802_v36  ;;  %21105 = vmatpush3.bf16.msra.mxu0 %v23800_v32  ;;  %v1007_v48 = vand.u32 4294901760, %v1006_v35  ;;  %v481_v53 = vsub.f32 %v479_v34, %v480_v47  ;;  %v1020_v59 = vsub.f32 %v913_v39, %v922_v44  ;;  %v1027_v63 = vsub.f32 %v914_v43, %v925_v46  ;;  %v17743_v39 = vld [vmem:[#allocation13] ss:$0 sm:$0xff] }
 0x14a   :  { %21153 = vmatpush3.bf16.msra.mxu1 %v23802_v36  ;;  %v474_v51 = vsub.f32 %v472_v33, %v473_v45  ;;  %v1015_v55 = vsub.f32 %v1013_v40, %v1014_v49  ;;  %21107 = vmatprep.subr.bf16.mxu0 %v23820_v50  ;;  %v487_v0 = vand.u32 4294901760, %v486_v57  ;;  %v494_v1 = vand.u32 4294901760, %v493_v58 }
 0x14b   :  { %v1008_v54 = vsub.f32 %v1006_v35, %v1007_v48  ;;  %21155 = vmatprep.subr.bf16.mxu1 %v23822_v52  ;;  %v482_v60 = vand.u32 4294901760, %v481_v53  ;;  %v1021_v2 = vand.u32 4294901760, %v1020_v59  ;;  %v23828_v24 = vpack.c.bf16 %v480_v47, %v473_v45 }
 0x14c   :  { %293 = vperm.xlu0 %22877, %v284_v3   ;;  %v475_v56 = vand.u32 4294901760, %v474_v51  ;;  %v1016_v62 = vand.u32 4294901760, %v1015_v55  ;;  %v23830_v25 = vpack.c.bf16 %v1014_v49, %v1007_v48  ;;  %v23832_v26 = vpack.c.bf16 %v494_v1, %v487_v0 }
 0x14d   :  { %21109 = vmatpush3.bf16.msra.mxu0 %v23820_v50  ;;  %v1009_v61 = vand.u32 4294901760, %v1008_v54  ;;  %vm4044_vm2 = vcmask 523264   ;;  %vm17725_vm3 = vcmask 7168  }
 0x14e   :  { %21157 = vmatpush3.bf16.msra.mxu1 %v23822_v52  ;;  %v21110_v3 = vpack.c.bf16 %v482_v60, %v475_v56  ;;  %v1981_v60 = vld [vmem:[#allocation17] sm:$0xff] }
 0x150   :  { %21111 = vmatprep.subr.bf16.mxu0 %v21110_v3 }
 0x1c7   :  { %v289_v6 = vpop.permute.xlu0 %288 }
 0x1c8   :  { %v302_v7 = vmul.f32 %v17740_v4, %v289_v6  ;;  %v488_v6 = vsub.f32 %v486_v57, %v487_v0  ;;  %v1986_v0 = vand.u32 4294901760, %v1981_v60 }
 0x1ca   :  { %v23768_v8 = vadd.f32 %v17741_v5, %v302_v7  ;;  %v495_v7 = vsub.f32 %v493_v58, %v494_v1 }
 0x1cb   :  { %v294_v9 = vpop.permute.xlu0 %293 }
 0x1cc   :  { %v303_v10 = vmul.f32 %v17740_v4, %v294_v9  ;;  %v328_v11 = vsel %vm327_vm0, %v23768_v8, 0.0  ;;  %v21158_v4 = vpack.c.bf16 %v1016_v62, %v1009_v61  ;;  %v1022_v9 = vsub.f32 %v1020_v59, %v1021_v2  ;;  %v1982_v61 = vld [vmem:[#allocation17 + $0x8] sm:$0xff] }
 0x1cd   :  { %329 = vadd.xlane.f32.xlu1 %v328_v11  ;;  %v489_v11 = vand.u32 4294901760, %v488_v6  ;;  %v1989_v1 = vand.u32 4294901760, %v1982_v61 }
 0x1ce   :  { %v23772_v12 = vadd.f32 %v17741_v5, %v303_v10  ;;  %v1028_v5 = vand.u32 4294901760, %v1027_v63  ;;  %21159 = vmatprep.subr.bf16.mxu1 %v21158_v4 }
 0x1d0   :  { %v331_v13 = vsel %vm327_vm0, %v23772_v12, 0.0  ;;  %v1029_v10 = vsub.f32 %v1027_v63, %v1028_v5  ;;  %v23834_v27 = vpack.c.bf16 %v1028_v5, %v1021_v2  ;;  %v1449_v2 = vld [vmem:[%s25988_s12 + $0x10] sm:$0xff]  ;;  %v1984_v5 = vld [vmem:[#allocation17 + $0x18] sm:$0xff] }
 0x1d1   :  { %332 = vadd.xlane.f32.xlu1 %v331_v13  ;;  %v496_v13 = vand.u32 4294901760, %v495_v7 }
 0x25a   :  { %v330_v14 = vpop.xlane.xlu1 %329 }
 0x25b   :  { %v335_v15 = vmul.f32 0.03125, %v330_v14  ;;  %v1023_v14 = vand.u32 4294901760, %v1022_v9  ;;  %v23910_v9 = vsub.f32 %v1981_v60, %v1986_v0 }
 0x25d   :  { %v23777_v16 = vsub.f32 %v23768_v8, %v335_v15  ;;  %v1030_v15 = vand.u32 4294901760, %v1029_v10  ;;  %v23912_v10 = vsub.f32 %v1982_v61, %v1989_v1 }
 0x25e   :  { %v333_v17 = vpop.xlane.xlu1 %332 }
 0x25f   :  { %v336_v18 = vmul.f32 0.03125, %v333_v17  ;;  %v339_v19 = vmul.f32 %v23777_v16, %v23777_v16  ;;  %v21114_v17 = vpack.c.bf16 %v496_v13, %v489_v11  ;;  %v1458_v11 = vand.u32 4294901760, %v1449_v2 }
 0x260   :  { %v21262_v61 = vpack.c.bf16 %v23912_v10, %v23910_v9 }
 0x261   :  { %v23782_v20 = vsub.f32 %v23772_v12, %v336_v18  ;;  %v341_v21 = vsel %vm327_vm0, %v339_v19, 0.0  ;;  %v21162_v18 = vpack.c.bf16 %v1030_v15, %v1023_v14  ;;  %v21118_v19 = vpack.c.bf16 %v479_v34, %v472_v33  ;;  %v17742_v34 = vld [vmem:[#allocation11] ss:$0 sm:$0xff] }
 0x262   :  { %342 = vadd.xlane.f32.xlu0 %v341_v21  ;;  %v21166_v21 = vpack.c.bf16 %v1013_v40, %v1006_v35  ;;  %v1995_v15 = vand.u32 4294901760, %v1984_v5 }
 0x263   :  { %v340_v22 = vmul.f32 %v23782_v20, %v23782_v20 }
 0x265   :  { %v344_v23 = vsel %vm327_vm0, %v340_v22, 0.0  ;;  %v21122_v22 = vpack.c.bf16 %v493_v58, %v486_v57  ;;  %v1447_v58 = vld [vmem:[%s25988_s12] sm:$0xff] }
 0x266   :  { %345 = vadd.xlane.f32.xlu1 %v344_v23  ;;  %v21170_v23 = vpack.c.bf16 %v1027_v63, %v1020_v59  ;;  %v1448_v59 = vld [vmem:[%s25988_s12 + $0x8] sm:$0xff]  ;;  %v1452_v62 = vand.u32 4294901760, %v1447_v58 }
 0x267   :  { %v1455_v63 = vand.u32 4294901760, %v1448_v59 }
 0x268   :  { %v23904_v6 = vsub.f32 %v1447_v58, %v1452_v62 }
 0x269   :  { %v23908_v7 = vsub.f32 %v1448_v59, %v1455_v63 }
 0x26b   :  { %v21214_v60 = vpack.c.bf16 %v23908_v7, %v23904_v6 }
 0x2ef   :  { %v343_v28 = vpop.xlane.xlu0 %342 }
 0x2f0   :  { %v347_v29 = vmul.f32 0.03125, %v343_v28 }
 0x2f2   :  { %v349_v30 = vadd.f32 1e-05, %v347_v29 }
 0x2f3   :  { %v346_v31 = vpop.xlane.xlu1 %345 }
 0x2f4   :  { %22878 = vrsqrt.f32 %v349_v30  ;;  %v348_v37 = vmul.f32 0.03125, %v346_v31 }
 0x2f6   :  { %v350_v38 = vadd.f32 1e-05, %v348_v37 }
 0x2f8   :  { %22880 = vrsqrt.f32 %v350_v38 }
 0x2fe   :  { %v22879_v33 = vpop.eup %22878 }
 0x2ff   :  { %v353_v35 = vmul.f32 %v22879_v33, %v23777_v16 }
 0x301   :  { %v361_v40 = vmul.f32 %v17742_v34, %v353_v35 }
 0x302   :  { %v22881_v41 = vpop.eup %22880 }
 0x303   :  { %v369_v42 = vadd.f32 %v17743_v39, %v361_v40  ;;  %v354_v43 = vmul.f32 %v22881_v41, %v23782_v20 }
 0x305   :  { %v376_v44 = vsel %vm327_vm0, %v369_v42, 0  ;;  %v362_v45 = vmul.f32 %v17742_v34, %v354_v43 }
 0x306   :  { %v23839_v46 = vand.u32 4294901760, %v376_v44 }
 0x307   :  { %v370_v47 = vadd.f32 %v17743_v39, %v362_v45 }
 0x308   :  { %v23842_v48 = vsub.f32 %v376_v44, %v23839_v46 }
 0x309   :  { %v379_v49 = vsel %vm327_vm0, %v370_v47, 0 }
 0x30a   :  { %v23845_v51 = vand.u32 4294901760, %v379_v49  ;;  %v23848_v16 = vand.u32 4294901760, %v23842_v48 }
 0x30c   :  { %v23851_v53 = vsub.f32 %v379_v49, %v23845_v51  ;;  %v453_v20 = vsub.f32 %v23842_v48, %v23848_v16 }
 0x30e   :  { %v23855_v54 = vand.u32 4294901760, %v453_v20  ;;  %v23858_v55 = vand.u32 4294901760, %v23851_v53 }
 0x310   :  { %18980 = vmatprep.mubr.f32.mxu0 %v23855_v54  ;;  %19046 = vmatprep.mubr.f32.mxu1 %v23855_v54  ;;  %v463_v56 = vsub.f32 %v23851_v53, %v23858_v55 }
 0x312   :  { %v23864_v57 = vand.u32 4294901760, %v463_v56 }
 0x314   :  { %18981 = vmatmul.mubr.f32.vlgmr.msra.gmra.mrb[0].mxu0 %v23864_v57  ;;  %19047 = vmatmul.mubr.f32.vlgmr.msra.gmra.mrb[0].mxu1 %v23864_v57 }
 0x315   :  { %21113 = vmatpush3.bf16.msra.mxu0 %v21110_v3  ;;  %21161 = vmatpush3.bf16.msra.mxu1 %v21158_v4  ;;  %v1450_v3 = vld [vmem:[%s25988_s12 + $0x18] sm:$0xff] }
 0x316   :  { %18991 = vmatprep.mubr.f32.mxu0 %v23839_v46  ;;  %19057 = vmatprep.mubr.f32.mxu1 %v23839_v46  ;;  %v1983_v4 = vld [vmem:[#allocation17 + $0x10] sm:$0xff]  ;;  %v1461_v13 = vand.u32 4294901760, %v1450_v3 }
 0x317   :  { %21115 = vmatprep.subr.bf16.mxu0 %v21114_v17  ;;  %21163 = vmatprep.subr.bf16.mxu1 %v21162_v18  ;;  %v1992_v14 = vand.u32 4294901760, %v1983_v4 }
 0x318   :  { %v23962_v33 = vpack.c.bf16 %v1461_v13, %v1458_v11 }
 0x319   :  { %21117 = vmatpush3.bf16.msra.mxu0 %v21114_v17  ;;  %21165 = vmatpush3.bf16.msra.mxu1 %v21162_v18  ;;  %v1543_v17 = vand.u32 4294901760, %v23904_v6  ;;  %v1550_v18 = vand.u32 4294901760, %v23908_v7  ;;  %v23964_v34 = vpack.c.bf16 %v1995_v15, %v1992_v14 }
 0x31a   :  { %21119 = vmatprep.subr.bf16.mxu0 %v21118_v19  ;;  %21167 = vmatprep.subr.bf16.mxu1 %v21166_v21 }
 0x31b   :  { %v1544_v28 = vsub.f32 %v23904_v6, %v1543_v17  ;;  %v1551_v29 = vsub.f32 %v23908_v7, %v1550_v18  ;;  %v2519_v7 = vld [vmem:[#allocation19 + $0x10] sm:$0xff] }
 0x31c   :  { %18992 = vmatmul.mubr.f32.vlgmr.msra.gmra.mrb[0].mxu0 %v23845_v51  ;;  %19058 = vmatmul.mubr.f32.vlgmr.msra.gmra.mrb[0].mxu1 %v23845_v51 }
 0x31d   :  { %21121 = vmatpush3.bf16.msra.mxu0 %v21118_v19  ;;  %21169 = vmatpush3.bf16.msra.mxu1 %v21166_v21  ;;  %v2077_v19 = vand.u32 4294901760, %v23910_v9  ;;  %v2084_v21 = vand.u32 4294901760, %v23912_v10  ;;  %v1545_v35 = vand.u32 4294901760, %v1544_v28  ;;  %v1552_v39 = vand.u32 4294901760, %v1551_v29 }
 0x31e   :  { %19002 = vmatprep.mubr.f32.mxu0 %v23842_v48  ;;  %19068 = vmatprep.mubr.f32.mxu1 %v23842_v48 }
 0x31f   :  { %21123 = vmatprep.subr.bf16.mxu0 %v21122_v22  ;;  %21171 = vmatprep.subr.bf16.mxu1 %v21170_v23  ;;  %v21206_v44 = vpack.c.bf16 %v1552_v39, %v1545_v35  ;;  %v323_v35 = vld [vmem:[#allocation8] sm:$0xff] }
 0x321   :  { %21125 = vmatpush3.bf16.msra.mxu0 %v21122_v22  ;;  %21173 = vmatpush3.bf16.msra.mxu1 %v21170_v23  ;;  %v23924_v22 = vsub.f32 %v1449_v2, %v1458_v11  ;;  %v23926_v23 = vsub.f32 %v1450_v3, %v1461_v13  ;;  %v2517_v2 = vld [vmem:[#allocation19] sm:$0xff]  ;;  %v2518_v3 = vld [vmem:[#allocation19 + $0x8] sm:$0xff]  ;;  %v2528_v11 = vand.u32 4294901760, %v2519_v7 }
 0x322   :  { %21127 = vmatprep.subr.bf16.mxu0 %v23800_v32  ;;  %21175 = vmatprep.subr.bf16.mxu1 %v23802_v36 }
 0x323   :  { %v1557_v30 = vand.u32 4294901760, %v23924_v22  ;;  %v1564_v31 = vand.u32 4294901760, %v23926_v23 }
 0x324   :  { %19003 = vmatmul.mubr.f32.vlgmr.msra.gmra.mrb[0].mxu0 %v23851_v53  ;;  %19069 = vmatmul.mubr.f32.vlgmr.msra.gmra.mrb[0].mxu1 %v23851_v53 }
 0x325   :  { %21129 = vmatpush3.bf16.msra.mxu0 %v23800_v32  ;;  %21177 = vmatpush3.bf16.msra.mxu1 %v23802_v36  ;;  %v1558_v42 = vsub.f32 %v23924_v22, %v1557_v30  ;;  %v21234_v6 = vpack.c.bf16 %v1564_v31, %v1557_v30 }
 0x326   :  { %19013 = vmatprep.mubr.f32.mxu0 %v23848_v16  ;;  %19079 = vmatprep.mubr.f32.mxu1 %v23848_v16 }
 0x327   :  { %21131 = vmatprep.subr.bf16.mxu0 %v23820_v50  ;;  %21179 = vmatprep.subr.bf16.mxu1 %v23822_v52  ;;  %v1559_v47 = vand.u32 4294901760, %v1558_v42 }
 0x329   :  { %21133 = vmatpush3.bf16.msra.mxu0 %v23820_v50  ;;  %21181 = vmatpush3.bf16.msra.mxu1 %v23822_v52 }
 0x32a   :  { %21135 = vmatprep.subr.bf16.mxu0 %v23828_v24  ;;  %21183 = vmatprep.subr.bf16.mxu1 %v23830_v25 }
 0x32c   :  { %19014 = vmatmul.mubr.f32.vlgmr.msra.gmra.mrb[0].mxu0 %v23858_v55  ;;  %19080 = vmatmul.mubr.f32.vlgmr.msra.gmra.mrb[0].mxu1 %v23858_v55 }
 0x32d   :  { %21137 = vmatpush3.bf16.msra.mxu0 %v23828_v24  ;;  %21185 = vmatpush3.bf16.msra.mxu1 %v23830_v25  ;;  %v23928_v24 = vsub.f32 %v1983_v4, %v1992_v14  ;;  %v23930_v25 = vsub.f32 %v1984_v5, %v1995_v15  ;;  %v2522_v4 = vand.u32 4294901760, %v2517_v2  ;;  %v2525_v5 = vand.u32 4294901760, %v2518_v3 }
 0x32e   :  { %19024 = vmatprep.mubr.f32.mxu0 %v23839_v46  ;;  %19090 = vmatprep.mubr.f32.mxu1 %v23839_v46 }
 0x32f   :  { %21139 = vmatprep.subr.bf16.mxu0 %v23832_v26  ;;  %21187 = vmatprep.subr.bf16.mxu1 %v23834_v27  ;;  %v2091_v37 = vand.u32 4294901760, %v23928_v24  ;;  %v2098_v38 = vand.u32 4294901760, %v23930_v25  ;;  %v24037_v14 = vsub.f32 %v2517_v2, %v2522_v4  ;;  %v24039_v15 = vsub.f32 %v2518_v3, %v2525_v5 }
 0x331   :  { %21141 = vmatpush3.bf16.msra.mxu0 %v23832_v26  ;;  %21189 = vmatpush3.bf16.msra.mxu1 %v23834_v27  ;;  %v23936_v26 = vpack.c.bf16 %v1455_v63, %v1452_v62  ;;  %v23938_v27 = vpack.c.bf16 %v1989_v1, %v1986_v0  ;;  %v2099_v43 = vsub.f32 %v23930_v25, %v2098_v38 }
 0x332   :  { %21143 = vmatprep.subr.bf16.mxu0 %v23800_v32  ;;  %21191 = vmatprep.subr.bf16.mxu1 %v23802_v36  ;;  %v21218_v62 = vpack.c.bf16 %v23926_v23, %v23924_v22  ;;  %v21266_v63 = vpack.c.bf16 %v23930_v25, %v23928_v24  ;;  %v21230_v0 = vpack.c.bf16 %v1550_v18, %v1543_v17  ;;  %v2613_v17 = vand.u32 4294901760, %v24037_v14 }
 0x333   :  { %v2100_v56 = vand.u32 4294901760, %v2099_v43  ;;  %v21278_v1 = vpack.c.bf16 %v2084_v21, %v2077_v19  ;;  %v2620_v18 = vand.u32 4294901760, %v24039_v15  ;;  %v21294_v22 = vpack.c.bf16 %v2525_v5, %v2522_v4 }
 0x334   :  { %19025 = vmatmul.mubr.f32.vlgmr.msra.gmra.mrb[0].mxu0 %v23845_v51  ;;  %19091 = vmatmul.mubr.f32.vlgmr.msra.gmra.mrb[0].mxu1 %v23845_v51 }
 0x335   :  { %21145 = vmatpush3.bf16.msra.mxu0 %v23800_v32  ;;  %21193 = vmatpush3.bf16.msra.mxu1 %v23802_v36  ;;  %v2078_v32 = vsub.f32 %v23910_v9, %v2077_v19  ;;  %v2085_v36 = vsub.f32 %v23912_v10, %v2084_v21  ;;  %v2520_v9 = vld [vmem:[#allocation19 + $0x18] sm:$0xff]  ;;  %v21282_v10 = vpack.c.bf16 %v2098_v38, %v2091_v37 }
 0x336   :  { %19035 = vmatprep.mubr.f32.mxu0 %v23839_v46  ;;  %19101 = vmatprep.mubr.f32.mxu1 %v23839_v46  ;;  %v2531_v13 = vand.u32 4294901760, %v2520_v9  ;;  %v2626_v19 = vsub.f32 %v2519_v7, %v2528_v11 }
 0x337   :  { %21147 = vmatprep.subr.bf16.mxu0 %v23820_v50  ;;  %21195 = vmatprep.subr.bf16.mxu1 %v23822_v52  ;;  %v2079_v40 = vand.u32 4294901760, %v2078_v32  ;;  %v2086_v41 = vand.u32 4294901760, %v2085_v36 }
 0x338   :  { %v2633_v21 = vsub.f32 %v2520_v9, %v2531_v13  ;;  %v2627_v25 = vand.u32 4294901760, %v2626_v19 }
 0x339   :  { %21149 = vmatpush3.bf16.msra.mxu0 %v23820_v50  ;;  %21197 = vmatpush3.bf16.msra.mxu1 %v23822_v52  ;;  %v1565_v50 = vsub.f32 %v23926_v23, %v1564_v31  ;;  %v2092_v52 = vsub.f32 %v23928_v24, %v2091_v37  ;;  %v21254_v45 = vpack.c.bf16 %v2086_v41, %v2079_v40 }
 0x33a   :  { %21199 = vmatprep.subr.bf16.mxu0 %v23936_v26  ;;  %21247 = vmatprep.subr.bf16.mxu1 %v23938_v27  ;;  %v2614_v23 = vsub.f32 %v24037_v14, %v2613_v17  ;;  %v2621_v24 = vsub.f32 %v24039_v15, %v2620_v18  ;;  %v2634_v28 = vand.u32 4294901760, %v2633_v21  ;;  %v2628_v32 = vsub.f32 %v2626_v19, %v2627_v25 }
 0x33b   :  { %v1566_v49 = vand.u32 4294901760, %v1565_v50  ;;  %v2093_v20 = vand.u32 4294901760, %v2092_v52 }
 0x33c   :  { %19036 = vmatmul.mubr.f32.vlgmr.msra.gmra.mrb[0].mxu0 %v23845_v51  ;;  %19102 = vmatmul.mubr.f32.vlgmr.msra.gmra.mrb[0].mxu1 %v23845_v51  ;;  %v2615_v29 = vand.u32 4294901760, %v2614_v23  ;;  %v2635_v36 = vsub.f32 %v2633_v21, %v2634_v28  ;;  %v2629_v31 = vand.u32 4294901760, %v2628_v32 }
 0x33d   :  { %21201 = vmatpush3.bf16.msra.mxu0 %v23936_v26  ;;  %21249 = vmatpush3.bf16.msra.mxu1 %v23938_v27  ;;  %v21210_v58 = vpack.c.bf16 %v1566_v49, %v1559_v47  ;;  %v21258_v59 = vpack.c.bf16 %v2100_v56, %v2093_v20 }
 0x33e   :  { %19112 = vmatprep.mubr.f32.mxu0 %v23855_v54  ;;  %19178 = vmatprep.mubr.f32.mxu1 %v23855_v54  ;;  %v2636_v37 = vand.u32 4294901760, %v2635_v36 }
 0x33f   :  { %21203 = vmatprep.subr.bf16.mxu0 %v23962_v33  ;;  %21251 = vmatprep.subr.bf16.mxu1 %v23964_v34 }
 0x340   :  { %v21306_v38 = vpack.c.bf16 %v2636_v37, %v2629_v31 }
 0x341   :  { %21205 = vmatpush3.bf16.msra.mxu0 %v23962_v33  ;;  %21253 = vmatpush3.bf16.msra.mxu1 %v23964_v34 }
 0x342   :  { %21207 = vmatprep.subr.bf16.mxu0 %v21206_v44  ;;  %21255 = vmatprep.subr.bf16.mxu1 %v21254_v45 }
 0x344   :  { %19113 = vmatmul.mubr.f32.vlgmr.msra.gmra.mrb[2].mxu0 %v23864_v57  ;;  %19179 = vmatmul.mubr.f32.vlgmr.msra.gmra.mrb[2].mxu1 %v23864_v57 }
 0x345   :  { %21209 = vmatpush3.bf16.msra.mxu0 %v21206_v44  ;;  %19123 = vmatprep.mubr.f32.mxu0 %v23839_v46 }
 0x346   :  { %21257 = vmatpush3.bf16.msra.mxu1 %v21254_v45  ;;  %19189 = vmatprep.mubr.f32.mxu1 %v23839_v46 }
 0x347   :  { %21211 = vmatprep.subr.bf16.mxu0 %v21210_v58  ;;  %21259 = vmatprep.subr.bf16.mxu1 %v21258_v59 }
 0x349   :  { %21213 = vmatpush3.bf16.msra.mxu0 %v21210_v58 }
 0x34a   :  { %21261 = vmatpush3.bf16.msra.mxu1 %v21258_v59  ;;  %21215 = vmatprep.subr.bf16.mxu0 %v21214_v60 }
 0x34b   :  { %21263 = vmatprep.subr.bf16.mxu1 %v21262_v61 }
 0x34c   :  { %19124 = vmatmul.mubr.f32.vlgmr.msra.gmra.mrb[2].mxu0 %v23845_v51 }
 0x34d   :  { %19190 = vmatmul.mubr.f32.vlgmr.msra.gmra.mrb[2].mxu1 %v23845_v51  ;;  %21217 = vmatpush3.bf16.msra.mxu0 %v21214_v60 }
 0x34e   :  { %19134 = vmatprep.mubr.f32.mxu0 %v23842_v48  ;;  %21265 = vmatpush3.bf16.msra.mxu1 %v21262_v61 }
 0x34f   :  { %19200 = vmatprep.mubr.f32.mxu1 %v23842_v48  ;;  %21219 = vmatprep.subr.bf16.mxu0 %v21218_v62 }
 0x350   :  { %21267 = vmatprep.subr.bf16.mxu1 %v21266_v63 }
 0x351   :  { %21221 = vmatpush3.bf16.msra.mxu0 %v21218_v62 }
 0x352   :  { %21269 = vmatpush3.bf16.msra.mxu1 %v21266_v63  ;;  %21223 = vmatprep.subr.bf16.mxu0 %v23936_v26 }
 0x353   :  { %21271 = vmatprep.subr.bf16.mxu1 %v23938_v27 }
 0x354   :  { %19135 = vmatmul.mubr.f32.vlgmr.msra.gmra.mrb[2].mxu0 %v23851_v53 }
 0x355   :  { %19201 = vmatmul.mubr.f32.vlgmr.msra.gmra.mrb[2].mxu1 %v23851_v53  ;;  %21225 = vmatpush3.bf16.msra.mxu0 %v23936_v26 }
 0x356   :  { %19145 = vmatprep.mubr.f32.mxu0 %v23848_v16  ;;  %21273 = vmatpush3.bf16.msra.mxu1 %v23938_v27 }
 0x357   :  { %19211 = vmatprep.mubr.f32.mxu1 %v23848_v16  ;;  %21227 = vmatprep.subr.bf16.mxu0 %v23962_v33 }
 0x358   :  { %21275 = vmatprep.subr.bf16.mxu1 %v23964_v34 }
 0x359   :  { %21229 = vmatpush3.bf16.msra.mxu0 %v23962_v33 }
 0x35a   :  { %21277 = vmatpush3.bf16.msra.mxu1 %v23964_v34  ;;  %21231 = vmatprep.subr.bf16.mxu0 %v21230_v0 }
 0x35b   :  { %21279 = vmatprep.subr.bf16.mxu1 %v21278_v1 }
 0x35c   :  { %19146 = vmatmul.mubr.f32.vlgmr.msra.gmra.mrb[2].mxu0 %v23858_v55 }
 0x35d   :  { %19212 = vmatmul.mubr.f32.vlgmr.msra.gmra.mrb[2].mxu1 %v23858_v55  ;;  %21233 = vmatpush3.bf16.msra.mxu0 %v21230_v0 }
 0x35e   :  { %19156 = vmatprep.mubr.f32.mxu0 %v23839_v46  ;;  %21281 = vmatpush3.bf16.msra.mxu1 %v21278_v1 }
 0x35f   :  { %19222 = vmatprep.mubr.f32.mxu1 %v23839_v46  ;;  %21235 = vmatprep.subr.bf16.mxu0 %v21234_v6 }
 0x360   :  { %21283 = vmatprep.subr.bf16.mxu1 %v21282_v10 }
 0x361   :  { %21237 = vmatpush3.bf16.msra.mxu0 %v21234_v6 }
 0x362   :  { %21285 = vmatpush3.bf16.msra.mxu1 %v21282_v10  ;;  %21239 = vmatprep.subr.bf16.mxu0 %v23936_v26 }
 0x363   :  { %21287 = vmatprep.subr.bf16.mxu1 %v23938_v27 }
 0x364   :  { %19157 = vmatmul.mubr.f32.vlgmr.msra.gmra.mrb[2].mxu0 %v23845_v51 }
 0x365   :  { %19223 = vmatmul.mubr.f32.vlgmr.msra.gmra.mrb[2].mxu1 %v23845_v51  ;;  %21241 = vmatpush3.bf16.msra.mxu0 %v23936_v26  ;;  %v21298_v26 = vpack.c.bf16 %v2531_v13, %v2528_v11 }
 0x366   :  { %19167 = vmatprep.mubr.f32.mxu0 %v23839_v46  ;;  %21289 = vmatpush3.bf16.msra.mxu1 %v23938_v27  ;;  %v2622_v27 = vand.u32 4294901760, %v2621_v24 }
 0x367   :  { %19233 = vmatprep.mubr.f32.mxu1 %v23839_v46  ;;  %21243 = vmatprep.subr.bf16.mxu0 %v23962_v33 }
 0x368   :  { %21291 = vmatprep.subr.bf16.mxu1 %v23964_v34  ;;  %v21302_v30 = vpack.c.bf16 %v2622_v27, %v2615_v29 }
 0x369   :  { %21245 = vmatpush3.bf16.msra.mxu0 %v23962_v33  ;;  %v21310_v33 = vpack.c.bf16 %v24039_v15, %v24037_v14 }
 0x36a   :  { %21293 = vmatpush3.bf16.msra.mxu1 %v23964_v34  ;;  %21295 = vmatprep.subr.bf16.mxu0 %v21294_v22  ;;  %v21314_v34 = vpack.c.bf16 %v2633_v21, %v2626_v19 }
 0x36c   :  { %19168 = vmatmul.mubr.f32.vlgmr.msra.gmra.mrb[2].mxu0 %v23845_v51 }
 0x36d   :  { %19234 = vmatmul.mubr.f32.vlgmr.msra.gmra.mrb[2].mxu1 %v23845_v51  ;;  %21297 = vmatpush3.bf16.msra.mxu0 %v21294_v22 }
 0x36e   :  { %19244 = vmatprep.mubr.f32.mxu0 %v23855_v54  ;;  %21299 = vmatprep.subr.bf16.mxu0 %v21298_v26  ;;  %v21326_v54 = vpack.c.bf16 %v2620_v18, %v2613_v17 }
 0x371   :  { %21301 = vmatpush3.bf16.msra.mxu0 %v21298_v26 }
 0x372   :  { %21303 = vmatprep.subr.bf16.mxu0 %v21302_v30 }
 0x374   :  { %19245 = vmatmul.mubr.f32.vlgmr.msra.gmra.mrb[4].mxu0 %v23864_v57  ;;  %v21330_v57 = vpack.c.bf16 %v2634_v28, %v2627_v25 }
 0x375   :  { %21305 = vmatpush3.bf16.msra.mxu0 %v21302_v30  ;;  %19255 = vmatprep.mubr.f32.mxu0 %v23839_v46 }
 0x376   :  { %21307 = vmatprep.subr.bf16.mxu0 %v21306_v38 }
 0x379   :  { %21309 = vmatpush3.bf16.msra.mxu0 %v21306_v38 }
 0x37a   :  { %21311 = vmatprep.subr.bf16.mxu0 %v21310_v33 }
 0x37c   :  { %19256 = vmatmul.mubr.f32.vlgmr.msra.gmra.mrb[4].mxu0 %v23845_v51 }
 0x37d   :  { %21313 = vmatpush3.bf16.msra.mxu0 %v21310_v33  ;;  %19266 = vmatprep.mubr.f32.mxu0 %v23842_v48  ;;  %v322_v48 = vld [vmem:[#allocation6 + $0x8] sm:$0xff] }
 0x37e   :  { %21315 = vmatprep.subr.bf16.mxu0 %v21314_v34 }
 0x381   :  { %21317 = vmatpush3.bf16.msra.mxu0 %v21314_v34 }
 0x382   :  { %21319 = vmatprep.subr.bf16.mxu0 %v21294_v22 }
 0x384   :  { %19267 = vmatmul.mubr.f32.vlgmr.msra.gmra.mrb[4].mxu0 %v23851_v53  ;;  %v321_v53 = vld [vmem:[#allocation6] sm:$0xff] }
 0x385   :  { %21321 = vmatpush3.bf16.msra.mxu0 %v21294_v22  ;;  %19277 = vmatprep.mubr.f32.mxu0 %v23848_v16  ;;  %v324_v16 = vld [vmem:[#allocation8 + $0x8] sm:$0xff] }
 0x386   :  { %21323 = vmatprep.subr.bf16.mxu0 %v21298_v26 }
 0x389   :  { %21325 = vmatpush3.bf16.msra.mxu0 %v21298_v26 }
 0x38a   :  { %21327 = vmatprep.subr.bf16.mxu0 %v21326_v54 }
 0x38c   :  { %19278 = vmatmul.mubr.f32.vlgmr.msra.gmra.mrb[4].mxu0 %v23858_v55 }
 0x38d   :  { %21329 = vmatpush3.bf16.msra.mxu0 %v21326_v54  ;;  %19288 = vmatprep.mubr.f32.mxu0 %v23839_v46 }
 0x38e   :  { %21331 = vmatprep.subr.bf16.mxu0 %v21330_v57 }
 0x391   :  { %21333 = vmatpush3.bf16.msra.mxu0 %v21330_v57 }
 0x392   :  { %21335 = vmatprep.subr.bf16.mxu0 %v21294_v22 }
 0x394   :  { %19289 = vmatmul.mubr.f32.vlgmr.msra.gmra.mrb[4].mxu0 %v23845_v51 }
 0x395   :  { %21337 = vmatpush3.bf16.msra.mxu0 %v21294_v22  ;;  %19299 = vmatprep.mubr.f32.mxu0 %v23839_v46 }
 0x396   :  { %21339 = vmatprep.subr.bf16.mxu0 %v21298_v26 }
 0x399   :  { %21341 = vmatpush3.bf16.msra.mxu0 %v21298_v26 }
 0x39c   :  { %19300 = vmatmul.mubr.f32.vlgmr.msra.gmra.mrb[4].mxu0 %v23845_v51 }
 0x40f   :  { %v19037_v55 = vpop.f32.mrb[0].mxu0  ;;  %v19103_v39 = vpop.f32.mrb[0].mxu1 }
 0x410   :  { %v910_v40 = vmul.f32 %v19037_v55, %v322_v48  ;;  %v1444_v41 = vmul.f32 %v19103_v39, %v324_v16  ;;  %v899_v42 = vpop.f32.mrb[1].mxu0  ;;  %v1433_v50 = vpop.f32.mrb[1].mxu1 }
 0x411   :  { %v909_v52 = vmul.f32 %v899_v42, %v321_v53  ;;  %v1443_v43 = vmul.f32 %v1433_v50, %v323_v35 }
 0x412   :  { %v1446_v44 = vadd.f32 %v1444_v41, %v910_v40 }
 0x413   :  { %v1445_v45 = vadd.f32 %v1443_v43, %v909_v52 }
 0x414   :  { %3051 = vst.msk [vmem:[#allocation2 + $0x8] sm:$0xff] %vm3049_vm1, %v1446_v44 }
 0x415   :  { %3050 = vst.msk [vmem:[#allocation2] sm:$0xff] %vm3049_vm1, %v1445_v45 }
 0x41c   :  { %v3134_v46 = vld [vmem:[#allocation2] sm:$0xff] }
 0x41d   :  { %v3159_v51 = vsel %vm3049_vm1, %v3134_v46, 0 }
 0x41e   :  { %v24077_v47 = vand.u32 4294901760, %v3159_v51 }
 0x420   :  { %v24080_v49 = vsub.f32 %v3159_v51, %v24077_v47 }
 0x422   :  { %v3281_v20 = vand.u32 4294901760, %v24080_v49 }
 0x424   :  { %v3282_v56 = vsub.f32 %v24080_v49, %v3281_v20 }
 0x426   :  { %v3283_v58 = vand.u32 4294901760, %v3282_v56 }
 0x428   :  { %19318 = vmatprep.mubr.f32.mxu1 %v3283_v58 }
 0x43f   :  { %v19169_v59 = vpop.f32.mrb[2].mxu0 }
 0x440   :  { %v1980_v60 = vmul.f32 %v19169_v59, %v322_v48  ;;  %v19235_v61 = vpop.f32.mrb[2].mxu1  ;;  %v1969_v62 = vpop.f32.mrb[3].mxu0 }
 0x441   :  { %v2514_v63 = vmul.f32 %v19235_v61, %v324_v16  ;;  %v1979_v0 = vmul.f32 %v1969_v62, %v321_v53  ;;  %v2503_v1 = vpop.f32.mrb[3].mxu1 }
 0x442   :  { %v2513_v2 = vmul.f32 %v2503_v1, %v323_v35 }
 0x443   :  { %v2516_v3 = vadd.f32 %v2514_v63, %v1980_v60 }
 0x444   :  { %v2515_v4 = vadd.f32 %v2513_v2, %v1979_v0  ;;  %v3135_v2 = vld [vmem:[#allocation2 + $0x8] sm:$0xff] }
 0x445   :  { %3053 = vst.msk [vmem:[#allocation3 + $0x8] sm:$0xff] %vm3049_vm1, %v2516_v3  ;;  %3070 = vrot.lane.b32.xlu1 %v2516_v3, %s23352_s3 }
 0x446   :  { %3052 = vst.msk [vmem:[#allocation3] sm:$0xff] %vm3049_vm1, %v2515_v4  ;;  %3118 = vrot.lane.b32.xlu0 %v2515_v4, %s23353_s2 }
 0x449   :  { %3068 = vrot.lane.b32.xlu1 %v2515_v4, %s23352_s3 }
 0x44a   :  { %3110 = vrot.lane.b32.xlu0 %v1445_v45, %s23353_s2 }
 0x44c   :  { %v3143_v5 = vld [vmem:[#allocation3 + $0x8] sm:$0xff] }
 0x44d   :  { %3094 = vrot.lane.b32.xlu1 %v2515_v4, %s23354_s4  ;;  %v3142_v6 = vld [vmem:[#allocation3] sm:$0xff]  ;;  %v3186_v7 = vsel %vm3049_vm1, %v3143_v5, 0 }
 0x44e   :  { %v3183_v9 = vsel %vm3049_vm1, %v3142_v6, 0  ;;  %v3210_v10 = vand.u32 4294901760, %v3186_v7 }
 0x44f   :  { %v3207_v11 = vand.u32 4294901760, %v3183_v9 }
 0x450   :  { %v3368_v13 = vsub.f32 %v3186_v7, %v3210_v10 }
 0x451   :  { %3096 = vrot.lane.b32.xlu1 %v2516_v3, %s23354_s4  ;;  %v24096_v14 = vpack.c.bf16 %v3210_v10, %v3207_v11  ;;  %v3361_v15 = vsub.f32 %v3183_v9, %v3207_v11  ;;  %v3162_v11 = vsel %vm3049_vm1, %v3135_v2, 0 }
 0x452   :  { %v3369_v17 = vand.u32 4294901760, %v3368_v13 }
 0x453   :  { %21343 = vmatprep.subr.bf16.mxu1 %v24096_v14  ;;  %v3362_v18 = vand.u32 4294901760, %v3361_v15  ;;  %v24099_v19 = vpack.c.bf16 %v3368_v13, %v3361_v15 }
 0x454   :  { %21345 = vmatpush3.bf16.xpose.msra.mxu1 %v24096_v14  ;;  %v3370_v21 = vsub.f32 %v3368_v13, %v3369_v17 }
 0x455   :  { %3120 = vrot.lane.b32.xlu1 %v2516_v3, %s23353_s2  ;;  %v3363_v22 = vsub.f32 %v3361_v15, %v3362_v18  ;;  %v24103_v23 = vpack.c.bf16 %v3369_v17, %v3362_v18 }
 0x456   :  { %v3371_v24 = vand.u32 4294901760, %v3370_v21 }
 0x457   :  { %v3364_v25 = vand.u32 4294901760, %v3363_v22 }
 0x459   :  { %3058 = vrot.lane.b32.xlu1 %v1445_v45, %s23352_s3  ;;  %v24106_v28 = vpack.c.bf16 %v3371_v24, %v3364_v25  ;;  %v24160_v24 = vand.u32 4294901760, %v3162_v11 }
 0x45d   :  { %3060 = vrot.lane.b32.xlu1 %v1446_v44, %s23352_s3 }
 0x461   :  { %3086 = vrot.lane.b32.xlu1 %v1445_v45, %s23354_s4 }
 0x465   :  { %3088 = vrot.lane.b32.xlu1 %v1446_v44, %s23354_s4 }
 0x469   :  { %3112 = vrot.lane.b32.xlu1 %v1446_v44, %s23353_s2 }
 0x46f   :  { %v24112_v26 = vpop.f32.mrb[4].mxu0 }
 0x470   :  { %3055 = vst.msk [vmem:[#allocation4 + $0x8] sm:$0xff] %vm3049_vm1, %v24112_v26  ;;  %v24116_v29 = vpop.f32.mrb[5].mxu0 }
 0x471   :  { %3054 = vst.msk [vmem:[#allocation4] sm:$0xff] %vm3049_vm1, %v24116_v29 }
 0x477   :  { %v3151_v27 = vld [vmem:[#allocation4 + $0x8] sm:$0xff] }
 0x478   :  { %v3150_v32 = vld [vmem:[#allocation4] sm:$0xff]  ;;  %v4161_v36 = vand.u32 4294901760, %v3151_v27 }
 0x479   :  { %v4158_v30 = vand.u32 4294901760, %v3150_v32 }
 0x47a   :  { %v4319_v31 = vsub.f32 %v3151_v27, %v4161_v36 }
 0x47b   :  { %v24120_v37 = vpack.c.bf16 %v4161_v36, %v4158_v30  ;;  %v4312_v38 = vsub.f32 %v3150_v32, %v4158_v30 }
 0x47c   :  { %v4320_v33 = vand.u32 4294901760, %v4319_v31 }
 0x47d   :  { %21439 = vmatprep.subr.bf16.mxu0 %v24120_v37  ;;  %v4313_v34 = vand.u32 4294901760, %v4312_v38  ;;  %v24123_v54 = vpack.c.bf16 %v4319_v31, %v4312_v38 }
 0x47e   :  { %21441 = vmatpush3.bf16.msra.mxu0 %v24120_v37  ;;  %v4321_v57 = vsub.f32 %v4319_v31, %v4320_v33 }
 0x47f   :  { %v4314_v48 = vsub.f32 %v4312_v38, %v4313_v34  ;;  %v24126_v16 = vpack.c.bf16 %v4320_v33, %v4313_v34  ;;  %v24175_v34 = vsub.f32 %v3162_v11, %v24160_v24 }
 0x480   :  { %v4322_v53 = vand.u32 4294901760, %v4321_v57 }
 0x481   :  { %v4315_v35 = vand.u32 4294901760, %v4314_v48 }
 0x483   :  { %v24128_v55 = vpack.c.bf16 %v4322_v53, %v4315_v35 }
 0x4b7   :  { %v3071_v39 = vpop.permute.xlu1 %3070 }
 0x4b8   :  { %3075 = vst.msk [vmem:[#allocation3 + $0x18] sm:$0xff] %vm3049_vm1, %v3071_v39  ;;  %v3119_v40 = vpop.permute.xlu0 %3118 }
 0x4b9   :  { %3124 = vst.msk [vmem:[#allocation3 + $0x30] sm:$0xff] %vm3049_vm1, %v3119_v40 }
 0x4bb   :  { %v3069_v41 = vpop.permute.xlu1 %3068 }
 0x4bc   :  { %3074 = vst.msk [vmem:[#allocation3 + $0x10] sm:$0xff] %vm3049_vm1, %v3069_v41  ;;  %v3111_v42 = vpop.permute.xlu0 %3110 }
 0x4bd   :  { %3116 = vst.msk [vmem:[#allocation2 + $0x30] sm:$0xff] %vm3049_vm1, %v3111_v42 }
 0x4bf   :  { %v3095_v50 = vpop.permute.xlu1 %3094  ;;  %v3145_v52 = vld [vmem:[#allocation3 + $0x18] sm:$0xff] }
 0x4c0   :  { %3100 = vst.msk [vmem:[#allocation3 + $0x20] sm:$0xff] %vm3049_vm1, %v3095_v50  ;;  %v3192_v43 = vsel %vm3049_vm1, %v3145_v52, 0  ;;  %v3148_v62 = vld [vmem:[#allocation3 + $0x30] sm:$0xff]  ;;  %v3291_v52 = vand.u32 4294901760, %v24175_v34 }
 0x4c1   :  { %v3216_v44 = vand.u32 4294901760, %v3192_v43  ;;  %v3201_v5 = vsel %vm3049_vm1, %v3148_v62, 0 }
 0x4c2   :  { %v3225_v15 = vand.u32 4294901760, %v3201_v5 }
 0x4c3   :  { %v3097_v45 = vpop.permute.xlu1 %3096  ;;  %v3144_v46 = vld [vmem:[#allocation3 + $0x10] sm:$0xff]  ;;  %v24138_v58 = vsub.f32 %v3192_v43, %v3216_v44 }
 0x4c4   :  { %3101 = vst.msk [vmem:[#allocation3 + $0x28] sm:$0xff] %vm3049_vm1, %v3097_v45  ;;  %v3189_v51 = vsel %vm3049_vm1, %v3144_v46, 0  ;;  %v24169_v31 = vsub.f32 %v3201_v5, %v3225_v15  ;;  %v3140_v39 = vld [vmem:[#allocation2 + $0x30] sm:$0xff] }
 0x4c5   :  { %v3213_v56 = vand.u32 4294901760, %v3189_v51  ;;  %v3383_v4 = vand.u32 4294901760, %v24138_v58  ;;  %v3177_v45 = vsel %vm3049_vm1, %v3140_v39, 0 }
 0x4c6   :  { %v3404_v41 = vand.u32 4294901760, %v24169_v31  ;;  %v24204_v62 = vand.u32 4294901760, %v3177_v45 }
 0x4c7   :  { %v3121_v59 = vpop.permute.xlu1 %3120  ;;  %v24140_v60 = vpack.c.bf16 %v3216_v44, %v3213_v56  ;;  %v3146_v61 = vld [vmem:[#allocation3 + $0x20] sm:$0xff]  ;;  %v24142_v63 = vsub.f32 %v3189_v51, %v3213_v56  ;;  %v3384_v2 = vsub.f32 %v24138_v58, %v3383_v4 }
 0x4c8   :  { %3125 = vst.msk [vmem:[#allocation3 + $0x38] sm:$0xff] %vm3049_vm1, %v3121_v59  ;;  %v3195_v0 = vsel %vm3049_vm1, %v3146_v61, 0 }
 0x4c9   :  { %21347 = vmatprep.subr.bf16.mxu1 %v24140_v60  ;;  %v3219_v1 = vand.u32 4294901760, %v3195_v0  ;;  %v3376_v3 = vand.u32 4294901760, %v24142_v63 }
 0x4ca   :  { %21349 = vmatpush3.bf16.xpose.msra.mxu1 %v24140_v60 }
 0x4cb   :  { %v3059_v6 = vpop.permute.xlu1 %3058  ;;  %v3147_v7 = vld [vmem:[#allocation3 + $0x28] sm:$0xff]  ;;  %v24151_v9 = vpack.c.bf16 %v3383_v4, %v3376_v3  ;;  %v24156_v17 = vsub.f32 %v3195_v0, %v3219_v1  ;;  %v3377_v59 = vsub.f32 %v24142_v63, %v3376_v3 }
 0x4cc   :  { %3064 = vst.msk [vmem:[#allocation2 + $0x10] sm:$0xff] %vm3049_vm1, %v3059_v6  ;;  %v3198_v10 = vsel %vm3049_vm1, %v3147_v7, 0 }
 0x4cd   :  { %v3222_v13 = vand.u32 4294901760, %v3198_v10  ;;  %v3390_v36 = vand.u32 4294901760, %v24156_v17 }
 0x4cf   :  { %v3061_v18 = vpop.permute.xlu1 %3060  ;;  %v24158_v21 = vpack.c.bf16 %v3222_v13, %v3219_v1  ;;  %v3149_v22 = vld [vmem:[#allocation3 + $0x38] sm:$0xff]  ;;  %v24162_v25 = vsub.f32 %v3198_v10, %v3222_v13  ;;  %v3292_v1 = vsub.f32 %v24175_v34, %v3291_v52  ;;  %v3378_v10 = vand.u32 4294901760, %v3377_v59 }
 0x4d0   :  { %3065 = vst.msk [vmem:[#allocation2 + $0x18] sm:$0xff] %vm3049_vm1, %v3061_v18  ;;  %v3204_v27 = vsel %vm3049_vm1, %v3149_v22, 0  ;;  %v3385_v18 = vand.u32 4294901760, %v3384_v2 }
 0x4d1   :  { %21351 = vmatprep.subr.bf16.mxu1 %v24158_v21  ;;  %v3228_v32 = vand.u32 4294901760, %v3204_v27  ;;  %v3397_v30 = vand.u32 4294901760, %v24162_v25  ;;  %v3293_v4 = vand.u32 4294901760, %v3292_v1  ;;  %v3391_v1 = vsub.f32 %v24156_v17, %v3390_v36 }
 0x4d2   :  { %21353 = vmatpush3.bf16.xpose.msra.mxu1 %v24158_v21 }
 0x4d3   :  { %v3087_v38 = vpop.permute.xlu1 %3086  ;;  %v24172_v33 = vpack.c.bf16 %v3228_v32, %v3225_v15  ;;  %v3136_v57 = vld [vmem:[#allocation2 + $0x10] sm:$0xff]  ;;  %v24177_v48 = vsub.f32 %v3204_v27, %v3228_v32  ;;  %v24179_v53 = vpack.c.bf16 %v3397_v30, %v3390_v36  ;;  %v24223_v15 = vsub.f32 %v3177_v45, %v24204_v62 }
 0x4d4   :  { %3092 = vst.msk [vmem:[#allocation2 + $0x20] sm:$0xff] %vm3049_vm1, %v3087_v38  ;;  %v3165_v35 = vsel %vm3049_vm1, %v3136_v57, 0  ;;  %v3392_v36 = vand.u32 4294901760, %v3391_v1 }
 0x4d5   :  { %21355 = vmatprep.subr.bf16.mxu1 %v24172_v33  ;;  %v24184_v40 = vand.u32 4294901760, %v3165_v35  ;;  %v3411_v42 = vand.u32 4294901760, %v24177_v48  ;;  %v3341_v45 = vand.u32 4294901760, %v24223_v15 }
 0x4d7   :  { %v3089_v50 = vpop.permute.xlu1 %3088  ;;  %v24190_v43 = vsub.f32 %v3165_v35, %v24184_v40  ;;  %v3137_v44 = vld [vmem:[#allocation2 + $0x18] sm:$0xff]  ;;  %v24195_v46 = vpack.c.bf16 %v3411_v42, %v3404_v41  ;;  %v21362_v35 = vpack.c.bf16 %v3385_v18, %v3378_v10  ;;  %v3342_v10 = vsub.f32 %v24223_v15, %v3341_v45 }
 0x4d8   :  { %3093 = vst.msk [vmem:[#allocation2 + $0x28] sm:$0xff] %vm3049_vm1, %v3089_v50  ;;  %v3168_v51 = vsel %vm3049_vm1, %v3137_v44, 0  ;;  %v3398_v44 = vsub.f32 %v24162_v25, %v3397_v30 }
 0x4d9   :  { %v3301_v56 = vand.u32 4294901760, %v24190_v43  ;;  %v24201_v61 = vand.u32 4294901760, %v3168_v51 }
 0x4da   :  { %21357 = vmatpush3.bf16.xpose.msra.mxu1 %v24172_v33 }
 0x4db   :  { %21359 = vmatprep.subr.bf16.mxu1 %v24106_v28  ;;  %v3113_v0 = vpop.permute.xlu1 %3112  ;;  %v24212_v5 = vsub.f32 %v3168_v51, %v24201_v61  ;;  %v3138_v6 = vld [vmem:[#allocation2 + $0x20] sm:$0xff]  ;;  %v3302_v3 = vsub.f32 %v24190_v43, %v3301_v56 }
 0x4dc   :  { %3117 = vst.msk [vmem:[#allocation2 + $0x38] sm:$0xff] %vm3049_vm1, %v3113_v0  ;;  %v3171_v7 = vsel %vm3049_vm1, %v3138_v6, 0 }
 0x4dd   :  { %v3311_v11 = vand.u32 4294901760, %v24212_v5  ;;  %v24220_v13 = vand.u32 4294901760, %v3171_v7  ;;  %v3303_v38 = vand.u32 4294901760, %v3302_v3  ;;  %v3399_v3 = vand.u32 4294901760, %v3398_v44 }
 0x4de   :  { %v3343_v44 = vand.u32 4294901760, %v3342_v10 }
 0x4df   :  { %v3312_v22 = vsub.f32 %v24212_v5, %v3311_v11  ;;  %v24229_v27 = vsub.f32 %v3171_v7, %v24220_v13  ;;  %v3139_v32 = vld [vmem:[#allocation2 + $0x28] sm:$0xff] }
 0x4e0   :  { %v3174_v57 = vsel %vm3049_vm1, %v3139_v32, 0  ;;  %v21366_v32 = vpack.c.bf16 %v3399_v3, %v3392_v36 }
 0x4e1   :  { %19319 = vmatmul.mubr.f32.vlgmr.msra.gmra.mrb[4].mxu1 %v3293_v4  ;;  %v3321_v39 = vand.u32 4294901760, %v24229_v27  ;;  %v24233_v50 = vand.u32 4294901760, %v3174_v57  ;;  %v3313_v51 = vand.u32 4294901760, %v3312_v22 }
 0x4e2   :  { %19321 = vmatprep.mubr.f32.mxu1 %v3303_v38  ;;  %21361 = vmatpush3.bf16.xpose.msra.mxu1 %v24106_v28 }
 0x4e3   :  { %21363 = vmatprep.subr.bf16.mxu1 %v21362_v35  ;;  %v3322_v59 = vsub.f32 %v24229_v27, %v3321_v39  ;;  %v24242_v0 = vsub.f32 %v3174_v57, %v24233_v50  ;;  %v3141_v2 = vld [vmem:[#allocation2 + $0x38] sm:$0xff]  ;;  %v3412_v57 = vsub.f32 %v24177_v48, %v3411_v42 }
 0x4e4   :  { %v3180_v6 = vsel %vm3049_vm1, %v3141_v2, 0 }
 0x4e5   :  { %19322 = vmatmul.mubr.f32.gmra.mrb[6].mxu1 %v3313_v51  ;;  %v3323_v30 = vand.u32 4294901760, %v3322_v59  ;;  %v3331_v28 = vand.u32 4294901760, %v24242_v0  ;;  %v24247_v7 = vand.u32 4294901760, %v3180_v6  ;;  %v3405_v59 = vsub.f32 %v24169_v31, %v3404_v41 }
 0x4e6   :  { %v3413_v2 = vand.u32 4294901760, %v3412_v57  ;;  %v21382_v41 = vpack.c.bf16 %v24162_v25, %v24156_v17 }
 0x4e7   :  { %19324 = vmatprep.mubr.f32.mxu1 %v3323_v30  ;;  %v3332_v4 = vsub.f32 %v24242_v0, %v3331_v28  ;;  %v24256_v18 = vsub.f32 %v3180_v6, %v24247_v7  ;;  %v3406_v6 = vand.u32 4294901760, %v3405_v59 }
 0x4e9   :  { %v3333_v22 = vand.u32 4294901760, %v3332_v4  ;;  %v3351_v38 = vand.u32 4294901760, %v24256_v18  ;;  %v21370_v42 = vpack.c.bf16 %v3413_v2, %v3406_v6 }
 0x4ea   :  { %21365 = vmatpush3.bf16.xpose.msra.mxu1 %v21362_v35  ;;  %v21378_v35 = vpack.c.bf16 %v24138_v58, %v24142_v63  ;;  %v315_v63 = vld [vmem:[%s26041_s25 + $0x10] sm:$0xff] }
 0x4eb   :  { %19325 = vmatmul.mubr.f32.gmra.mrb[8].mxu1 %v3333_v22  ;;  %21367 = vmatprep.subr.bf16.mxu1 %v21366_v32  ;;  %v3352_v51 = vsub.f32 %v24256_v18, %v3351_v38 }
 0x4ec   :  { %19327 = vmatprep.mubr.f32.mxu1 %v3343_v44 }
 0x4ed   :  { %v3353_v1 = vand.u32 4294901760, %v3352_v51 }
 0x4ef   :  { %19328 = vmatmul.mubr.f32.gmra.mrb[10].mxu1 %v3353_v1 }
 0x4f0   :  { %19346 = vmatprep.mubr.f32.mxu1 %v24077_v47 }
 0x4f2   :  { %21369 = vmatpush3.bf16.xpose.msra.mxu1 %v21366_v32 }
 0x4f3   :  { %21371 = vmatprep.subr.bf16.mxu1 %v21370_v42 }
 0x4fa   :  { %21373 = vmatpush3.bf16.xpose.msra.mxu1 %v21370_v42 }
 0x4fb   :  { %21375 = vmatprep.subr.bf16.mxu1 %v24099_v19 }
 0x501   :  { %19347 = vmatmul.mubr.f32.vlgmr.msra.gmra.mrb[4].mxu1 %v24160_v24 }
 0x502   :  { %19349 = vmatprep.mubr.f32.mxu1 %v24184_v40  ;;  %21377 = vmatpush3.bf16.xpose.msra.mxu1 %v24099_v19  ;;  %v21386_v19 = vpack.c.bf16 %v24177_v48, %v24169_v31  ;;  %v317_v31 = vld [vmem:[%s26041_s25 + $0x20] sm:$0xff] }
 0x503   :  { %21379 = vmatprep.subr.bf16.mxu1 %v21378_v35 }
 0x505   :  { %19350 = vmatmul.mubr.f32.gmra.mrb[6].mxu1 %v24201_v61 }
 0x506   :  { %19352 = vmatprep.mubr.f32.mxu1 %v24220_v13 }
 0x509   :  { %19353 = vmatmul.mubr.f32.gmra.mrb[8].mxu1 %v24233_v50 }
 0x50a   :  { %19355 = vmatprep.mubr.f32.mxu1 %v24204_v62  ;;  %21381 = vmatpush3.bf16.xpose.msra.mxu1 %v21378_v35 }
 0x50b   :  { %21383 = vmatprep.subr.bf16.mxu1 %v21382_v41 }
 0x50d   :  { %19356 = vmatmul.mubr.f32.gmra.mrb[10].mxu1 %v24247_v7 }
 0x50e   :  { %19374 = vmatprep.mubr.f32.mxu1 %v24080_v49  ;;  %v313_v49 = vld [vmem:[%s26041_s25] sm:$0xff] }
 0x512   :  { %21385 = vmatpush3.bf16.xpose.msra.mxu1 %v21382_v41 }
 0x513   :  { %21387 = vmatprep.subr.bf16.mxu1 %v21386_v19 }
 0x51a   :  { %21389 = vmatpush3.bf16.xpose.msra.mxu1 %v21386_v19 }
 0x51b   :  { %21391 = vmatprep.subr.bf16.mxu1 %v24096_v14 }
 0x521   :  { %19375 = vmatmul.mubr.f32.vlgmr.msra.gmra.mrb[4].mxu1 %v24175_v34 }
 0x522   :  { %19377 = vmatprep.mubr.f32.mxu1 %v24190_v43  ;;  %21393 = vmatpush3.bf16.xpose.msra.mxu1 %v24096_v14 }
 0x523   :  { %21395 = vmatprep.subr.bf16.mxu1 %v24140_v60 }
 0x525   :  { %19378 = vmatmul.mubr.f32.gmra.mrb[6].mxu1 %v24212_v5 }
 0x526   :  { %19380 = vmatprep.mubr.f32.mxu1 %v24229_v27  ;;  %v319_v27 = vld [vmem:[%s26041_s25 + $0x30] sm:$0xff] }
 0x529   :  { %19381 = vmatmul.mubr.f32.gmra.mrb[8].mxu1 %v24242_v0 }
 0x52a   :  { %19383 = vmatprep.mubr.f32.mxu1 %v24223_v15  ;;  %21397 = vmatpush3.bf16.xpose.msra.mxu1 %v24140_v60 }
 0x52b   :  { %21399 = vmatprep.subr.bf16.mxu1 %v24158_v21 }
 0x52d   :  { %19384 = vmatmul.mubr.f32.gmra.mrb[10].mxu1 %v24256_v18 }
 0x52e   :  { %19402 = vmatprep.mubr.f32.mxu1 %v3281_v20 }
 0x532   :  { %21401 = vmatpush3.bf16.xpose.msra.mxu1 %v24158_v21 }
 0x533   :  { %21403 = vmatprep.subr.bf16.mxu1 %v24172_v33 }
 0x53a   :  { %21405 = vmatpush3.bf16.xpose.msra.mxu1 %v24172_v33 }
 0x53b   :  { %21407 = vmatprep.subr.bf16.mxu1 %v24103_v23 }
 0x541   :  { %19403 = vmatmul.mubr.f32.vlgmr.msra.gmra.mrb[4].mxu1 %v3291_v52 }
 0x542   :  { %19405 = vmatprep.mubr.f32.mxu1 %v3301_v56  ;;  %21409 = vmatpush3.bf16.xpose.msra.mxu1 %v24103_v23 }
 0x543   :  { %21411 = vmatprep.subr.bf16.mxu1 %v24151_v9 }
 0x545   :  { %19406 = vmatmul.mubr.f32.gmra.mrb[6].mxu1 %v3311_v11 }
 0x546   :  { %19408 = vmatprep.mubr.f32.mxu1 %v3321_v39 }
 0x549   :  { %19409 = vmatmul.mubr.f32.gmra.mrb[8].mxu1 %v3331_v28 }
 0x54a   :  { %19411 = vmatprep.mubr.f32.mxu1 %v3341_v45  ;;  %21413 = vmatpush3.bf16.xpose.msra.mxu1 %v24151_v9 }
 0x54b   :  { %21415 = vmatprep.subr.bf16.mxu1 %v24179_v53 }
 0x54d   :  { %19412 = vmatmul.mubr.f32.gmra.mrb[10].mxu1 %v3351_v38 }
 0x54e   :  { %19430 = vmatprep.mubr.f32.mxu1 %v24077_v47 }
 0x552   :  { %21417 = vmatpush3.bf16.xpose.msra.mxu1 %v24179_v53  ;;  %v318_v53 = vld [vmem:[%s26041_s25 + $0x28] sm:$0xff] }
 0x553   :  { %21419 = vmatprep.subr.bf16.mxu1 %v24195_v46 }
 0x55a   :  { %21421 = vmatpush3.bf16.xpose.msra.mxu1 %v24195_v46 }
 0x55b   :  { %21423 = vmatprep.subr.bf16.mxu1 %v24096_v14 }
 0x561   :  { %19431 = vmatmul.mubr.f32.vlgmr.msra.gmra.mrb[4].mxu1 %v24160_v24 }
 0x562   :  { %19433 = vmatprep.mubr.f32.mxu1 %v24184_v40  ;;  %21425 = vmatpush3.bf16.xpose.msra.mxu1 %v24096_v14 }
 0x563   :  { %21427 = vmatprep.subr.bf16.mxu1 %v24140_v60 }
 0x565   :  { %19434 = vmatmul.mubr.f32.gmra.mrb[6].mxu1 %v24201_v61 }
 0x566   :  { %19436 = vmatprep.mubr.f32.mxu1 %v24220_v13 }
 0x569   :  { %19437 = vmatmul.mubr.f32.gmra.mrb[8].mxu1 %v24233_v50 }
 0x56a   :  { %19439 = vmatprep.mubr.f32.mxu1 %v24204_v62  ;;  %21429 = vmatpush3.bf16.xpose.msra.mxu1 %v24140_v60 }
 0x56b   :  { %21431 = vmatprep.subr.bf16.mxu1 %v24158_v21 }
 0x56d   :  { %19440 = vmatmul.mubr.f32.gmra.mrb[10].mxu1 %v24247_v7 }
 0x56e   :  { %19458 = vmatprep.mubr.f32.mxu1 %v24077_v47  ;;  %v314_v47 = vld [vmem:[%s26041_s25 + $0x8] sm:$0xff] }
 0x572   :  { %21433 = vmatpush3.bf16.xpose.msra.mxu1 %v24158_v21  ;;  %v316_v21 = vld [vmem:[%s26041_s25 + $0x18] sm:$0xff] }
 0x573   :  { %21435 = vmatprep.subr.bf16.mxu1 %v24172_v33 }
 0x57a   :  { %21437 = vmatpush3.bf16.xpose.msra.mxu1 %v24172_v33 }
 0x581   :  { %19459 = vmatmul.mubr.f32.vlgmr.msra.gmra.mrb[4].mxu1 %v24160_v24 }
 0x582   :  { %19461 = vmatprep.mubr.f32.mxu1 %v24184_v40 }
 0x585   :  { %19462 = vmatmul.mubr.f32.gmra.mrb[6].mxu1 %v24201_v61 }
 0x586   :  { %19464 = vmatprep.mubr.f32.mxu1 %v24220_v13 }
 0x589   :  { %19465 = vmatmul.mubr.f32.gmra.mrb[8].mxu1 %v24233_v50 }
 0x58a   :  { %19467 = vmatprep.mubr.f32.mxu1 %v24204_v62  ;;  %v320_v62 = vld [vmem:[%s26041_s25 + $0x38] sm:$0xff] }
 0x58d   :  { %19468 = vmatmul.mubr.f32.gmra.mrb[10].mxu1 %v24247_v7 }
 0x654   :  { %v19460_v20 = vpop.f32.mrb[4].mxu1 }
 0x655   :  { %v22398_v14 = vadd.f32 %v19460_v20, %v314_v47  ;;  %v3998_v23 = vpop.f32.mrb[5].mxu1 }
 0x656   :  { %v22399_v58 = vadd.f32 %v3998_v23, %v313_v49 }
 0x657   :  { %v4048_v60 = vsel %vm4044_vm2, %v22398_v14, -inf }
 0x658   :  { %4049 = vmax.xlane.f32.xlu1 %v4048_v60  ;;  %v19463_v9 = vpop.f32.mrb[6].mxu1  ;;  %v4045_v17 = vsel %vm4044_vm2, %v22399_v58, -inf }
 0x659   :  { %v4010_v24 = vpop.f32.mrb[7].mxu1  ;;  %4046 = vmax.xlane.f32.xlu0 %v4045_v17  ;;  %v22400_v33 = vadd.f32 %v19463_v9, %v316_v21 }
 0x65a   :  { %v22401_v25 = vadd.f32 %v4010_v24, %v315_v63 }
 0x65b   :  { %v4054_v61 = vsel %vm4044_vm2, %v22400_v33, -inf }
 0x65c   :  { %v19466_v34 = vpop.f32.mrb[8].mxu1  ;;  %v4051_v48 = vsel %vm4044_vm2, %v22401_v25, -inf }
 0x65d   :  { %v4022_v40 = vpop.f32.mrb[9].mxu1  ;;  %4052 = vmax.xlane.f32.xlu0 %v4051_v48  ;;  %v22402_v43 = vadd.f32 %v19466_v34, %v318_v53 }
 0x65e   :  { %v22403_v52 = vadd.f32 %v4022_v40, %v317_v31 }
 0x65f   :  { %v4060_v13 = vsel %vm4044_vm2, %v22402_v43, -inf }
 0x660   :  { %v19469_v46 = vpop.f32.mrb[10].mxu1  ;;  %v4057_v56 = vsel %vm4044_vm2, %v22403_v52, -inf }
 0x661   :  { %v4034_v5 = vpop.f32.mrb[11].mxu1  ;;  %4058 = vmax.xlane.f32.xlu1 %v4057_v56  ;;  %4055 = vmax.xlane.f32.xlu0 %v4054_v61  ;;  %v22404_v11 = vadd.f32 %v19469_v46, %v320_v62 }
 0x662   :  { %v24383_v39 = vadd.f32 %v4034_v5, %v319_v27 }
 0x663   :  { %v4066_v15 = vsel %vm4044_vm2, %v22404_v11, -inf }
 0x664   :  { %v4063_v50 = vsel %vm4044_vm2, %v24383_v39, -inf }
 0x665   :  { %4061 = vmax.xlane.f32.xlu0 %v4060_v13 }
 0x669   :  { %4067 = vmax.xlane.f32.xlu0 %v4066_v15 }
 0x672   :  { %3078 = vrot.lane.b32.xlu1 %v24116_v29, %s23352_s3 }
 0x676   :  { %3102 = vrot.lane.b32.xlu1 %v24116_v29, %s23354_s4 }
 0x67f   :  { %3080 = vrot.lane.b32.xlu0 %v24112_v26, %s23352_s3 }
 0x69a   :  { %4064 = vmax.xlane.f32.xlu1 %v4063_v50 }
 0x6ab   :  { %3104 = vrot.lane.b32.xlu1 %v24112_v26, %s23354_s4 }
 0x6e5   :  { %v4050_v45 = vpop.xlane.xlu1 %4049 }
 0x6e6   :  { %v4070_v0 = vsub.f32 %v22398_v14, %v4050_v45  ;;  %v4047_v30 = vpop.xlane.xlu0 %4046 }
 0x6e7   :  { %v4069_v28 = vsub.f32 %v22399_v58, %v4047_v30 }
 0x6e8   :  { %v4079_v3 = vmul.f32 1.442695, %v4070_v0 }
 0x6e9   :  { %v4077_v7 = vmul.f32 1.442695, %v4069_v28 }
 0x6ea   :  { %22882 = vpow2.f32 %v4079_v3  ;;  %v4053_v10 = vpop.xlane.xlu0 %4052 }
 0x6eb   :  { %22884 = vpow2.f32 %v4077_v7  ;;  %v4071_v4 = vsub.f32 %v22401_v25, %v4053_v10 }
 0x6ed   :  { %v4081_v36 = vmul.f32 1.442695, %v4071_v4 }
 0x6ee   :  { %v4059_v18 = vpop.xlane.xlu1 %4058  ;;  %v4056_v22 = vpop.xlane.xlu0 %4055 }
 0x6ef   :  { %22886 = vpow2.f32 %v4081_v36  ;;  %v4073_v32 = vsub.f32 %v22403_v52, %v4059_v18  ;;  %v4072_v38 = vsub.f32 %v22400_v33, %v4056_v22 }
 0x6f1   :  { %v4085_v57 = vmul.f32 1.442695, %v4073_v32  ;;  %v4083_v44 = vmul.f32 1.442695, %v4072_v38 }
 0x6f2   :  { %v3079_v51 = vpop.permute.xlu1 %3078  ;;  %v4062_v59 = vpop.xlane.xlu0 %4061 }
 0x6f3   :  { %22888 = vpow2.f32 %v4085_v57  ;;  %3084 = vst.msk [vmem:[#allocation4 + $0x10] sm:$0xff] %vm3049_vm1, %v3079_v51  ;;  %v4074_v1 = vsub.f32 %v22402_v43, %v4062_v59 }
 0x6f4   :  { %v24390_v2 = vpop.eup %22882  ;;  %22890 = vpow2.f32 %v4083_v44 }
 0x6f5   :  { %v24392_v6 = vpop.eup %22884  ;;  %v4087_v42 = vmul.f32 1.442695, %v4074_v1  ;;  %v4096_v35 = vsel %vm4044_vm2, %v24390_v2, 0.0 }
 0x6f6   :  { %v3103_v41 = vpop.permute.xlu1 %3102  ;;  %4097 = vadd.xlane.f32.xlu0 %v4096_v35  ;;  %v4068_v19 = vpop.xlane.xlu0 %4067  ;;  %v4093_v47 = vsel %vm4044_vm2, %v24392_v6, 0.0 }
 0x6f7   :  { %22892 = vpow2.f32 %v4087_v42  ;;  %3108 = vst.msk [vmem:[#allocation4 + $0x20] sm:$0xff] %vm3049_vm1, %v3103_v41  ;;  %v4076_v49 = vsub.f32 %v22404_v11, %v4068_v19  ;;  %4094 = vadd.xlane.f32.xlu1 %v4093_v47 }
 0x6f9   :  { %v24399_v20 = vpop.eup %22886  ;;  %v4091_v14 = vmul.f32 1.442695, %v4076_v49 }
 0x6fa   :  { %v3081_v23 = vpop.permute.xlu0 %3080  ;;  %v4099_v58 = vsel %vm4044_vm2, %v24399_v20, 0.0  ;;  %v3152_v60 = vld [vmem:[#allocation4 + $0x10] sm:$0xff] }
 0x6fb   :  { %22894 = vpow2.f32 %v4091_v14  ;;  %3085 = vst.msk [vmem:[#allocation4 + $0x18] sm:$0xff] %vm3049_vm1, %v3081_v23  ;;  %4100 = vadd.xlane.f32.xlu1 %v4099_v58  ;;  %v4164_v63 = vand.u32 4294901760, %v3152_v60 }
 0x6fd   :  { %v24404_v9 = vpop.eup %22888  ;;  %v4326_v25 = vsub.f32 %v3152_v60, %v4164_v63 }
 0x6fe   :  { %v24406_v17 = vpop.eup %22890  ;;  %v4105_v21 = vsel %vm4044_vm2, %v24404_v9, 0.0  ;;  %v3154_v0 = vld [vmem:[#allocation4 + $0x20] sm:$0xff] }
 0x6ff   :  { %4106 = vadd.xlane.f32.xlu1 %v4105_v21  ;;  %v4102_v24 = vsel %vm4044_vm2, %v24406_v17, 0.0  ;;  %v4327_v53 = vand.u32 4294901760, %v4326_v25  ;;  %v4170_v3 = vand.u32 4294901760, %v3154_v0 }
 0x700   :  { %4103 = vadd.xlane.f32.xlu0 %v4102_v24 }
 0x701   :  { %v24412_v31 = vpop.eup %22892  ;;  %v4328_v56 = vsub.f32 %v4326_v25, %v4327_v53  ;;  %v4340_v7 = vsub.f32 %v3154_v0, %v4170_v3 }
 0x702   :  { %v4108_v33 = vsel %vm4044_vm2, %v24412_v31, 0.0  ;;  %v3153_v34 = vld [vmem:[#allocation4 + $0x18] sm:$0xff] }
 0x703   :  { %v4167_v48 = vand.u32 4294901760, %v3153_v34  ;;  %v4329_v13 = vand.u32 4294901760, %v4328_v56  ;;  %v4341_v36 = vand.u32 4294901760, %v4340_v7 }
 0x704   :  { %4109 = vadd.xlane.f32.xlu0 %v4108_v33 }
 0x705   :  { %v24416_v40 = vpop.eup %22894  ;;  %v24418_v52 = vpack.c.bf16 %v4167_v48, %v4164_v63  ;;  %v4333_v43 = vsub.f32 %v3153_v34, %v4167_v48 }
 0x706   :  { %v4114_v46 = vsel %vm4044_vm2, %v24416_v40, 0.0 }
 0x707   :  { %21443 = vmatprep.subr.bf16.mxu0 %v24418_v52  ;;  %v4334_v61 = vand.u32 4294901760, %v4333_v43  ;;  %v24423_v62 = vpack.c.bf16 %v4333_v43, %v4326_v25 }
 0x708   :  { %4115 = vadd.xlane.f32.xlu0 %v4114_v46  ;;  %21445 = vmatpush3.bf16.msra.mxu0 %v24418_v52 }
 0x709   :  { %v4335_v5 = vsub.f32 %v4333_v43, %v4334_v61  ;;  %v24426_v11 = vpack.c.bf16 %v4334_v61, %v4327_v53 }
 0x70b   :  { %v4336_v15 = vand.u32 4294901760, %v4335_v5 }
 0x70d   :  { %v24428_v27 = vpack.c.bf16 %v4336_v15, %v4329_v13 }
 0x71e   :  { %3126 = vrot.lane.b32.xlu0 %v24116_v29, %s23353_s2 }
 0x727   :  { %v4065_v50 = vpop.xlane.xlu1 %4064 }
 0x728   :  { %v4075_v45 = vsub.f32 %v24383_v39, %v4065_v50  ;;  %v4342_v39 = vsub.f32 %v4340_v7, %v4341_v36 }
 0x72a   :  { %v4089_v30 = vmul.f32 1.442695, %v4075_v45  ;;  %v4343_v59 = vand.u32 4294901760, %v4342_v39 }
 0x72b   :  { %v3105_v28 = vpop.permute.xlu1 %3104 }
 0x72c   :  { %22896 = vpow2.f32 %v4089_v30  ;;  %3109 = vst.msk [vmem:[#allocation4 + $0x28] sm:$0xff] %vm3049_vm1, %v3105_v28 }
 0x733   :  { %v3155_v10 = vld [vmem:[#allocation4 + $0x28] sm:$0xff] }
 0x734   :  { %v4173_v4 = vand.u32 4294901760, %v3155_v10 }
 0x736   :  { %v24434_v18 = vpop.eup %22896  ;;  %v24436_v22 = vpack.c.bf16 %v4173_v4, %v4170_v3  ;;  %v4347_v32 = vsub.f32 %v3155_v10, %v4173_v4 }
 0x737   :  { %v4111_v29 = vsel %vm4044_vm2, %v24434_v18, 0.0 }
 0x738   :  { %4112 = vadd.xlane.f32.xlu1 %v4111_v29  ;;  %21447 = vmatprep.subr.bf16.mxu0 %v24436_v22  ;;  %v4348_v38 = vand.u32 4294901760, %v4347_v32  ;;  %v24441_v57 = vpack.c.bf16 %v4347_v32, %v4340_v7 }
 0x739   :  { %21449 = vmatpush3.bf16.msra.mxu0 %v24436_v22 }
 0x73a   :  { %v4349_v44 = vsub.f32 %v4347_v32, %v4348_v38  ;;  %v24444_v51 = vpack.c.bf16 %v4348_v38, %v4341_v36 }
 0x73c   :  { %v4350_v1 = vand.u32 4294901760, %v4349_v44 }
 0x73e   :  { %v24446_v42 = vpack.c.bf16 %v4350_v1, %v4343_v59 }
 0x749   :  { %3128 = vrot.lane.b32.xlu1 %v24112_v26, %s23353_s2 }
 0x783   :  { %v4098_v41 = vpop.xlane.xlu0 %4097 }
 0x784   :  { %v4095_v35 = vpop.xlane.xlu1 %4094 }
 0x785   :  { %22898 = vrcp.f32 %v4095_v35 }
 0x786   :  { %22900 = vrcp.f32 %v4098_v41 }
 0x78d   :  { %v4104_v19 = vpop.xlane.xlu0 %4103 }
 0x78f   :  { %v22899_v47 = vpop.eup %22898 }
 0x790   :  { %v4125_v49 = vmul.f32 %v22899_v47, %v24392_v6  ;;  %v4101_v6 = vpop.xlane.xlu1 %4100  ;;  %v22901_v34 = vpop.eup %22900 }
 0x791   :  { %v4110_v14 = vpop.xlane.xlu0 %4109  ;;  %22902 = vrcp.f32 %v4101_v6  ;;  %v4126_v53 = vmul.f32 %v22901_v34, %v24390_v2 }
 0x792   :  { %v4134_v23 = vsel %vm4044_vm2, %v4125_v49, 0  ;;  %22904 = vrcp.f32 %v4104_v19 }
 0x793   :  { %v24452_v58 = vand.u32 4294901760, %v4134_v23  ;;  %v4137_v61 = vsel %vm4044_vm2, %v4126_v53, 0 }
 0x794   :  { %v4107_v33 = vpop.xlane.xlu1 %4106  ;;  %v24467_v45 = vand.u32 4294901760, %v4137_v61 }
 0x795   :  { %v4116_v60 = vpop.xlane.xlu0 %4115  ;;  %v24455_v63 = vsub.f32 %v4134_v23, %v24452_v58  ;;  %22906 = vrcp.f32 %v4107_v33 }
 0x796   :  { %22908 = vrcp.f32 %v4110_v14 }
 0x797   :  { %v4232_v21 = vand.u32 4294901760, %v24455_v63  ;;  %22910 = vrcp.f32 %v4116_v60 }
 0x799   :  { %v3127_v24 = vpop.permute.xlu0 %3126  ;;  %v4233_v26 = vsub.f32 %v24455_v63, %v4232_v21 }
 0x79a   :  { %3132 = vst.msk [vmem:[#allocation4 + $0x30] sm:$0xff] %vm3049_vm1, %v3127_v24 }
 0x79b   :  { %v4234_v25 = vand.u32 4294901760, %v4233_v26  ;;  %v22903_v48 = vpop.eup %22902 }
 0x79c   :  { %v22905_v43 = vpop.eup %22904  ;;  %v4127_v46 = vmul.f32 %v22903_v48, %v24399_v20 }
 0x79d   :  { %19486 = vmatprep.mubr.f32.mxu0 %v4234_v25  ;;  %v4128_v5 = vmul.f32 %v22905_v43, %v24406_v17  ;;  %v24476_v17 = vsub.f32 %v4137_v61, %v24467_v45 }
 0x79e   :  { %v4140_v0 = vsel %vm4044_vm2, %v4127_v46, 0 }
 0x79f   :  { %v22907_v56 = vpop.eup %22906  ;;  %v4143_v30 = vsel %vm4044_vm2, %v4128_v5, 0  ;;  %v24472_v20 = vand.u32 4294901760, %v4140_v0  ;;  %v4242_v29 = vand.u32 4294901760, %v24476_v17 }
 0x7a0   :  { %v22909_v13 = vpop.eup %22908  ;;  %v4129_v50 = vmul.f32 %v22907_v56, %v24404_v9  ;;  %v24479_v7 = vand.u32 4294901760, %v4143_v30 }
 0x7a1   :  { %v4130_v2 = vmul.f32 %v22909_v13, %v24412_v31  ;;  %v22911_v3 = vpop.eup %22910  ;;  %v3156_v10 = vld [vmem:[#allocation4 + $0x30] sm:$0xff]  ;;  %v24484_v36 = vsub.f32 %v4140_v0, %v24472_v20  ;;  %v4243_v49 = vsub.f32 %v24476_v17, %v4242_v29 }
 0x7a2   :  { %v4146_v9 = vsel %vm4044_vm2, %v4129_v50, 0  ;;  %v4132_v31 = vmul.f32 %v22911_v3, %v24416_v40  ;;  %v4176_v39 = vand.u32 4294901760, %v3156_v10  ;;  %v24490_v38 = vsub.f32 %v4143_v30, %v24479_v7 }
 0x7a3   :  { %v4149_v4 = vsel %vm4044_vm2, %v4130_v2, 0  ;;  %v24486_v32 = vand.u32 4294901760, %v4146_v9  ;;  %v4252_v41 = vand.u32 4294901760, %v24484_v36  ;;  %v4244_v43 = vand.u32 4294901760, %v4243_v49 }
 0x7a4   :  { %v24492_v44 = vand.u32 4294901760, %v4149_v4  ;;  %v4155_v19 = vsel %vm4044_vm2, %v4132_v31, 0  ;;  %v4262_v14 = vand.u32 4294901760, %v24490_v38  ;;  %v24508_v60 = vsub.f32 %v3156_v10, %v4176_v39 }
 0x7a5   :  { %v24497_v40 = vsub.f32 %v4146_v9, %v24486_v32  ;;  %v24516_v6 = vand.u32 4294901760, %v4155_v19  ;;  %v4253_v33 = vsub.f32 %v24484_v36, %v4252_v41 }
 0x7a6   :  { %v24505_v23 = vsub.f32 %v4149_v4, %v24492_v44  ;;  %v4263_v46 = vsub.f32 %v24490_v38, %v4262_v14  ;;  %v4355_v61 = vand.u32 4294901760, %v24508_v60 }
 0x7a7   :  { %v4272_v34 = vand.u32 4294901760, %v24497_v40  ;;  %v24535_v5 = vsub.f32 %v4155_v19, %v24516_v6  ;;  %v4254_v13 = vand.u32 4294901760, %v4253_v33 }
 0x7a8   :  { %v4282_v56 = vand.u32 4294901760, %v24505_v23  ;;  %v4264_v2 = vand.u32 4294901760, %v4263_v46 }
 0x7a9   :  { %v4302_v3 = vand.u32 4294901760, %v24535_v5 }
 0x7aa   :  { %v4283_v30 = vsub.f32 %v24505_v23, %v4282_v56 }
 0x7ac   :  { %v4284_v4 = vand.u32 4294901760, %v4283_v30 }
 0x7c5   :  { %v4113_v15 = vpop.xlane.xlu1 %4112 }
 0x7c6   :  { %22912 = vrcp.f32 %v4113_v15  ;;  %v4273_v15 = vsub.f32 %v24497_v40, %v4272_v34 }
 0x7c8   :  { %v4274_v9 = vand.u32 4294901760, %v4273_v15  ;;  %v6000_v15 = vld [vmem:[#allocation20 + $0x10] sm:$0xff] }
 0x7c9   :  { %v3129_v28 = vpop.permute.xlu1 %3128 }
 0x7ca   :  { %3133 = vst.msk [vmem:[#allocation4 + $0x38] sm:$0xff] %vm3049_vm1, %v3129_v28  ;;  %v4356_v28 = vsub.f32 %v24508_v60, %v4355_v61 }
 0x7cc   :  { %v4357_v31 = vand.u32 4294901760, %v4356_v28 }
 0x7d0   :  { %v22913_v59 = vpop.eup %22912 }
 0x7d1   :  { %v4131_v1 = vmul.f32 %v22913_v59, %v24434_v18  ;;  %v3157_v35 = vld [vmem:[#allocation4 + $0x38] sm:$0xff] }
 0x7d2   :  { %v4179_v47 = vand.u32 4294901760, %v3157_v35 }
 0x7d3   :  { %v4152_v18 = vsel %vm4044_vm2, %v4131_v1, 0 }
 0x7d4   :  { %v24510_v24 = vpack.c.bf16 %v4179_v47, %v4176_v39  ;;  %v24512_v26 = vand.u32 4294901760, %v4152_v18  ;;  %v24514_v25 = vsub.f32 %v3157_v35, %v4179_v47  ;;  %v4303_v39 = vsub.f32 %v24535_v5, %v4302_v3 }
 0x7d6   :  { %21451 = vmatprep.subr.bf16.mxu0 %v24510_v24  ;;  %v24524_v48 = vsub.f32 %v4152_v18, %v24512_v26  ;;  %v4362_v53 = vand.u32 4294901760, %v24514_v25  ;;  %v4304_v35 = vand.u32 4294901760, %v4303_v39 }
 0x7d7   :  { %21453 = vmatpush3.bf16.msra.mxu0 %v24510_v24 }
 0x7d8   :  { %21455 = vmatprep.subr.bf16.mxu0 %v24128_v55  ;;  %v4292_v50 = vand.u32 4294901760, %v24524_v48  ;;  %v4363_v0 = vsub.f32 %v24514_v25, %v4362_v53 }
 0x7da   :  { %19487 = vmatmul.mubr.f32.vlgmr.msra.gmra.mrb[6].mxu0 %v4244_v43  ;;  %v4293_v10 = vsub.f32 %v24524_v48, %v4292_v50 }
 0x7db   :  { %19489 = vmatprep.mubr.f32.mxu0 %v4254_v13  ;;  %21457 = vmatpush3.bf16.msra.mxu0 %v24128_v55  ;;  %v4364_v55 = vand.u32 4294901760, %v4363_v0  ;;  %v6008_v0 = vand.u32 4294901760, %v6000_v15 }
 0x7dc   :  { %21459 = vmatprep.subr.bf16.mxu0 %v24428_v27  ;;  %v4294_v59 = vand.u32 4294901760, %v4293_v10 }
 0x7dd   :  { %v21466_v1 = vpack.c.bf16 %v4364_v55, %v4357_v31  ;;  %v6095_v30 = vsub.f32 %v6000_v15, %v6008_v0 }
 0x7de   :  { %19490 = vmatmul.mubr.f32.gmra.mrb[8].mxu0 %v4264_v2 }
 0x7df   :  { %19492 = vmatprep.mubr.f32.mxu0 %v4274_v9  ;;  %21461 = vmatpush3.bf16.msra.mxu0 %v24428_v27  ;;  %v21482_v27 = vpack.c.bf16 %v24514_v25, %v24508_v60  ;;  %v6096_v10 = vand.u32 4294901760, %v6095_v30 }
 0x7e0   :  { %21463 = vmatprep.subr.bf16.mxu0 %v24446_v42 }
 0x7e1   :  { %v6097_v31 = vsub.f32 %v6095_v30, %v6096_v10 }
 0x7e2   :  { %19493 = vmatmul.mubr.f32.gmra.mrb[10].mxu0 %v4284_v4 }
 0x7e3   :  { %19495 = vmatprep.mubr.f32.mxu0 %v4294_v59  ;;  %21465 = vmatpush3.bf16.msra.mxu0 %v24446_v42 }
 0x7e4   :  { %21467 = vmatprep.subr.bf16.mxu0 %v21466_v1 }
 0x7e6   :  { %19496 = vmatmul.mubr.f32.gmra.mrb[12].mxu0 %v4304_v35 }
 0x7e7   :  { %21469 = vmatpush3.bf16.msra.mxu0 %v21466_v1  ;;  %19514 = vmatprep.mubr.f32.mxu0 %v24452_v58  ;;  %v6098_v1 = vand.u32 4294901760, %v6097_v31 }
 0x7e8   :  { %21471 = vmatprep.subr.bf16.mxu0 %v24123_v54 }
 0x7ea   :  { %19515 = vmatmul.mubr.f32.vlgmr.msra.gmra.mrb[6].mxu0 %v24467_v45 }
 0x7eb   :  { %19517 = vmatprep.mubr.f32.mxu0 %v24472_v20  ;;  %21473 = vmatpush3.bf16.msra.mxu0 %v24123_v54  ;;  %v21514_v54 = vpack.c.bf16 %v4362_v53, %v4355_v61 }
 0x7ec   :  { %21475 = vmatprep.subr.bf16.mxu0 %v24423_v62 }
 0x7ee   :  { %19518 = vmatmul.mubr.f32.gmra.mrb[8].mxu0 %v24479_v7 }
 0x7ef   :  { %19520 = vmatprep.mubr.f32.mxu0 %v24486_v32  ;;  %21477 = vmatpush3.bf16.msra.mxu0 %v24423_v62 }
 0x7f0   :  { %21479 = vmatprep.subr.bf16.mxu0 %v24441_v57 }
 0x7f2   :  { %19521 = vmatmul.mubr.f32.gmra.mrb[10].mxu0 %v24492_v44 }
 0x7f3   :  { %19523 = vmatprep.mubr.f32.mxu0 %v24512_v26  ;;  %21481 = vmatpush3.bf16.msra.mxu0 %v24441_v57 }
 0x7f4   :  { %21483 = vmatprep.subr.bf16.mxu0 %v21482_v27 }
 0x7f6   :  { %19524 = vmatmul.mubr.f32.gmra.mrb[12].mxu0 %v24516_v6 }
 0x7f7   :  { %21485 = vmatpush3.bf16.msra.mxu0 %v21482_v27  ;;  %19542 = vmatprep.mubr.f32.mxu0 %v24455_v63 }
 0x7f8   :  { %21487 = vmatprep.subr.bf16.mxu0 %v24120_v37 }
 0x7fa   :  { %19543 = vmatmul.mubr.f32.vlgmr.msra.gmra.mrb[6].mxu0 %v24476_v17 }
 0x7fb   :  { %19545 = vmatprep.mubr.f32.mxu0 %v24484_v36  ;;  %21489 = vmatpush3.bf16.msra.mxu0 %v24120_v37 }
 0x7fc   :  { %21491 = vmatprep.subr.bf16.mxu0 %v24418_v52 }
 0x7fe   :  { %19546 = vmatmul.mubr.f32.gmra.mrb[8].mxu0 %v24490_v38 }
 0x7ff   :  { %19548 = vmatprep.mubr.f32.mxu0 %v24497_v40  ;;  %21493 = vmatpush3.bf16.msra.mxu0 %v24418_v52 }
 0x800   :  { %21495 = vmatprep.subr.bf16.mxu0 %v24436_v22 }
 0x802   :  { %19549 = vmatmul.mubr.f32.gmra.mrb[10].mxu0 %v24505_v23 }
 0x803   :  { %19551 = vmatprep.mubr.f32.mxu0 %v24524_v48  ;;  %21497 = vmatpush3.bf16.msra.mxu0 %v24436_v22 }
 0x804   :  { %21499 = vmatprep.subr.bf16.mxu0 %v24510_v24 }
 0x806   :  { %19552 = vmatmul.mubr.f32.gmra.mrb[12].mxu0 %v24535_v5 }
 0x807   :  { %21501 = vmatpush3.bf16.msra.mxu0 %v24510_v24  ;;  %19570 = vmatprep.mubr.f32.mxu0 %v4232_v21 }
 0x808   :  { %21503 = vmatprep.subr.bf16.mxu0 %v24126_v16 }
 0x80a   :  { %19571 = vmatmul.mubr.f32.vlgmr.msra.gmra.mrb[6].mxu0 %v4242_v29 }
 0x80b   :  { %19573 = vmatprep.mubr.f32.mxu0 %v4252_v41  ;;  %21505 = vmatpush3.bf16.msra.mxu0 %v24126_v16  ;;  %v4996_v16 = vld [vmem:[#allocation20] sm:$0xff] }
 0x80c   :  { %21507 = vmatprep.subr.bf16.mxu0 %v24426_v11 }
 0x80e   :  { %19574 = vmatmul.mubr.f32.gmra.mrb[8].mxu0 %v4262_v14  ;;  %v5501_v14 = vld [vmem:[#allocation20 + $0x8] sm:$0xff] }
 0x80f   :  { %19576 = vmatprep.mubr.f32.mxu0 %v4272_v34  ;;  %21509 = vmatpush3.bf16.msra.mxu0 %v24426_v11  ;;  %v5509_v18 = vand.u32 4294901760, %v5501_v14 }
 0x810   :  { %21511 = vmatprep.subr.bf16.mxu0 %v24444_v51 }
 0x812   :  { %19577 = vmatmul.mubr.f32.gmra.mrb[10].mxu0 %v4282_v56 }
 0x813   :  { %19579 = vmatprep.mubr.f32.mxu0 %v4292_v50  ;;  %21513 = vmatpush3.bf16.msra.mxu0 %v24444_v51 }
 0x814   :  { %21515 = vmatprep.subr.bf16.mxu0 %v21514_v54 }
 0x816   :  { %19580 = vmatmul.mubr.f32.gmra.mrb[12].mxu0 %v4302_v3 }
 0x817   :  { %21517 = vmatpush3.bf16.msra.mxu0 %v21514_v54  ;;  %19598 = vmatprep.mubr.f32.mxu0 %v24452_v58 }
 0x818   :  { %21519 = vmatprep.subr.bf16.mxu0 %v24120_v37 }
 0x81a   :  { %19599 = vmatmul.mubr.f32.vlgmr.msra.gmra.mrb[6].mxu0 %v24467_v45 }
 0x81b   :  { %19601 = vmatprep.mubr.f32.mxu0 %v24472_v20  ;;  %21521 = vmatpush3.bf16.msra.mxu0 %v24120_v37  ;;  %v24634_v37 = vand.u32 4294901760, %v4996_v16 }
 0x81c   :  { %21523 = vmatprep.subr.bf16.mxu0 %v24418_v52 }
 0x81e   :  { %19602 = vmatmul.mubr.f32.gmra.mrb[8].mxu0 %v24479_v7 }
 0x81f   :  { %19604 = vmatprep.mubr.f32.mxu0 %v24486_v32  ;;  %21525 = vmatpush3.bf16.msra.mxu0 %v24418_v52  ;;  %v5091_v52 = vsub.f32 %v4996_v16, %v24634_v37  ;;  %v6499_v16 = vld [vmem:[#allocation20 + $0x18] sm:$0xff] }
 0x820   :  { %21527 = vmatprep.subr.bf16.mxu0 %v24436_v22 }
 0x821   :  { %v5092_v62 = vand.u32 4294901760, %v5091_v52 }
 0x822   :  { %19605 = vmatmul.mubr.f32.gmra.mrb[10].mxu0 %v24492_v44 }
 0x823   :  { %19607 = vmatprep.mubr.f32.mxu0 %v24512_v26  ;;  %21529 = vmatpush3.bf16.msra.mxu0 %v24436_v22  ;;  %v5093_v11 = vsub.f32 %v5091_v52, %v5092_v62 }
 0x824   :  { %21531 = vmatprep.subr.bf16.mxu0 %v24510_v24 }
 0x825   :  { %v5094_v22 = vand.u32 4294901760, %v5093_v11 }
 0x826   :  { %19608 = vmatmul.mubr.f32.gmra.mrb[12].mxu0 %v24516_v6 }
 0x827   :  { %21533 = vmatpush3.bf16.msra.mxu0 %v24510_v24  ;;  %19626 = vmatprep.mubr.f32.mxu0 %v24452_v58  ;;  %v5596_v24 = vsub.f32 %v5501_v14, %v5509_v18 }
 0x828   :  { %19638 = vmatprep.subr.mxu0 %v24634_v37 }
 0x829   :  { %v5597_v33 = vand.u32 4294901760, %v5596_v24 }
 0x82a   :  { %19627 = vmatmul.mubr.f32.vlgmr.msra.gmra.mrb[6].mxu0 %v24467_v45 }
 0x82b   :  { %19629 = vmatprep.mubr.f32.mxu0 %v24472_v20  ;;  %19639 = vmatpush3.msra.mxu0 %v24634_v37  ;;  %v5598_v53 = vsub.f32 %v5596_v24, %v5597_v33 }
 0x82c   :  { %19643 = vmatprep.subr.mxu0 %v5094_v22 }
 0x82d   :  { %v5599_v56 = vand.u32 4294901760, %v5598_v53 }
 0x82e   :  { %19630 = vmatmul.mubr.f32.gmra.mrb[8].mxu0 %v24479_v7 }
 0x82f   :  { %19632 = vmatprep.mubr.f32.mxu0 %v24486_v32 }
 0x832   :  { %19633 = vmatmul.mubr.f32.gmra.mrb[10].mxu0 %v24492_v44 }
 0x833   :  { %19635 = vmatprep.mubr.f32.mxu0 %v24512_v26 }
 0x836   :  { %19636 = vmatmul.mubr.f32.gmra.mrb[12].mxu0 %v24516_v6 }
 0x8fd   :  { %v19628_v57 = vpop.f32.mrb[6].mxu0 }
 0x8fe   :  { %v5001_v51 = vsel %vm3049_vm1, %v19628_v57, 0  ;;  %v4949_v42 = vpop.f32.mrb[7].mxu0 }
 0x8ff   :  { %v5079_v58 = vand.u32 4294901760, %v5001_v51  ;;  %v4998_v63 = vsel %vm3049_vm1, %v4949_v42, 0 }
 0x900   :  { %v5069_v21 = vand.u32 4294901760, %v4998_v63 }
 0x901   :  { %v5080_v45 = vsub.f32 %v5001_v51, %v5079_v58  ;;  %v19631_v20 = vpop.f32.mrb[8].mxu0 }
 0x902   :  { %v5070_v17 = vsub.f32 %v4998_v63, %v5069_v21  ;;  %v4961_v7 = vpop.f32.mrb[9].mxu0  ;;  %v5506_v26 = vsel %vm3049_vm1, %v19631_v20, 0 }
 0x903   :  { %v5081_v36 = vand.u32 4294901760, %v5080_v45  ;;  %v5503_v23 = vsel %vm3049_vm1, %v4961_v7, 0  ;;  %v5584_v6 = vand.u32 4294901760, %v5506_v26 }
 0x904   :  { %v5071_v32 = vand.u32 4294901760, %v5070_v17  ;;  %v5574_v60 = vand.u32 4294901760, %v5503_v23 }
 0x905   :  { %v5082_v29 = vsub.f32 %v5080_v45, %v5081_v36  ;;  %v24651_v38 = vpop.f32.mrb[10].mxu0  ;;  %v5585_v48 = vsub.f32 %v5506_v26, %v5584_v6 }
 0x906   :  { %v4973_v44 = vpop.f32.mrb[11].mxu0  ;;  %v5072_v41 = vsub.f32 %v5070_v17, %v5071_v32  ;;  %v5575_v25 = vsub.f32 %v5503_v23, %v5574_v60  ;;  %v6005_v28 = vsel %vm3049_vm1, %v24651_v38, 0 }
 0x907   :  { %v5083_v19 = vand.u32 4294901760, %v5082_v29  ;;  %v5586_v46 = vand.u32 4294901760, %v5585_v48  ;;  %v6002_v50 = vsel %vm3049_vm1, %v4973_v44, 0  ;;  %v6083_v9 = vand.u32 4294901760, %v6005_v28  ;;  %v17744_v29 = vld [vmem:[#allocation22] ss:$0 sm:$0xff] }
 0x908   :  { %v5073_v40 = vand.u32 4294901760, %v5072_v41  ;;  %v5576_v34 = vand.u32 4294901760, %v5575_v25  ;;  %v6073_v2 = vand.u32 4294901760, %v6002_v50 }
 0x909   :  { %v24653_v47 = vpop.f32.mrb[12].mxu0  ;;  %v5587_v5 = vsub.f32 %v5585_v48, %v5586_v46  ;;  %v6084_v4 = vsub.f32 %v6005_v28, %v6083_v9 }
 0x90a   :  { %v24655_v49 = vpop.f32.mrb[13].mxu0  ;;  %19640 = vmatprep.mubr.f32.mxu0 %v5073_v40  ;;  %v5577_v43 = vsub.f32 %v5575_v25, %v5576_v34  ;;  %v6074_v3 = vsub.f32 %v6002_v50, %v6073_v2 }
 0x90b   :  { %19641 = vmatmul.mubr.f32.vlgmr.msra.gmra.mrb[14].mxu0 %v5083_v19  ;;  %v5588_v13 = vand.u32 4294901760, %v5587_v5  ;;  %v6085_v59 = vand.u32 4294901760, %v6084_v4  ;;  %v7045_v5 = vld [vmem:[#allocation23 + $0x10] sm:$0xff] }
 0x90c   :  { %19644 = vmatpush3.msra.mxu0 %v5094_v22  ;;  %19645 = vmatprep.mubr.f32.mxu0 %v5069_v21  ;;  %v5578_v61 = vand.u32 4294901760, %v5577_v43  ;;  %v6075_v55 = vand.u32 4294901760, %v6074_v3  ;;  %v6504_v22 = vsel %vm3049_vm1, %v24653_v47, 0  ;;  %v7067_v15 = vand.u32 4294901760, %v7045_v5 }
 0x90d   :  { %19648 = vmatprep.subr.mxu0 %v5091_v52  ;;  %v6086_v27 = vsub.f32 %v6084_v4, %v6085_v59  ;;  %v6582_v51 = vand.u32 4294901760, %v6504_v22 }
 0x90e   :  { %v6076_v39 = vsub.f32 %v6074_v3, %v6075_v55 }
 0x90f   :  { %v6087_v54 = vand.u32 4294901760, %v6086_v27  ;;  %v6583_v63 = vsub.f32 %v6504_v22, %v6582_v51 }
 0x910   :  { %v6077_v35 = vand.u32 4294901760, %v6076_v39 }
 0x911   :  { %v6584_v20 = vand.u32 4294901760, %v6583_v63 }
 0x913   :  { %19646 = vmatmul.mubr.f32.vlgmr.msra.gmra.mrb[14].mxu0 %v5079_v58 }
 0x914   :  { %19649 = vmatpush3.msra.mxu0 %v5091_v52  ;;  %19650 = vmatprep.mubr.f32.mxu0 %v5070_v17  ;;  %v6507_v52 = vand.u32 4294901760, %v6499_v16 }
 0x915   :  { %19653 = vmatprep.subr.mxu0 %v24634_v37 }
 0x916   :  { %v6594_v11 = vsub.f32 %v6499_v16, %v6507_v52 }
 0x918   :  { %v6595_v42 = vand.u32 4294901760, %v6594_v11 }
 0x91b   :  { %19651 = vmatmul.mubr.f32.vlgmr.msra.gmra.mrb[14].mxu0 %v5080_v45 }
 0x91c   :  { %19654 = vmatpush3.msra.mxu0 %v24634_v37  ;;  %19655 = vmatprep.mubr.f32.mxu0 %v5071_v32 }
 0x91d   :  { %19658 = vmatprep.subr.mxu0 %v5092_v62 }
 0x923   :  { %19656 = vmatmul.mubr.f32.vlgmr.msra.gmra.mrb[14].mxu0 %v5081_v36  ;;  %v6585_v36 = vsub.f32 %v6583_v63, %v6584_v20 }
 0x924   :  { %19659 = vmatpush3.msra.mxu0 %v5092_v62  ;;  %19660 = vmatprep.mubr.f32.mxu0 %v5069_v21 }
 0x925   :  { %19663 = vmatprep.subr.mxu0 %v24634_v37  ;;  %v6586_v32 = vand.u32 4294901760, %v6585_v36 }
 0x92b   :  { %19661 = vmatmul.mubr.f32.vlgmr.msra.gmra.mrb[14].mxu0 %v5079_v58 }
 0x92c   :  { %19664 = vmatpush3.msra.mxu0 %v24634_v37  ;;  %19665 = vmatprep.mubr.f32.mxu0 %v5069_v21  ;;  %v6501_v37 = vsel %vm3049_vm1, %v24655_v49, 0  ;;  %v6596_v21 = vsub.f32 %v6594_v11, %v6595_v42 }
 0x92d   :  { %19668 = vmatprep.subr.mxu0 %v5509_v18  ;;  %v6572_v62 = vand.u32 4294901760, %v6501_v37 }
 0x92e   :  { %v6597_v17 = vand.u32 4294901760, %v6596_v21 }
 0x92f   :  { %v6573_v57 = vsub.f32 %v6501_v37, %v6572_v62 }
 0x933   :  { %19666 = vmatmul.mubr.f32.vlgmr.msra.gmra.mrb[14].mxu0 %v5079_v58  ;;  %v6574_v58 = vand.u32 4294901760, %v6573_v57 }
 0x934   :  { %19669 = vmatpush3.msra.mxu0 %v5509_v18  ;;  %19670 = vmatprep.mubr.f32.mxu0 %v5578_v61 }
 0x935   :  { %19673 = vmatprep.subr.mxu0 %v5599_v56  ;;  %v6575_v45 = vsub.f32 %v6573_v57, %v6574_v58 }
 0x937   :  { %v6576_v7 = vand.u32 4294901760, %v6575_v45  ;;  %v17745_v45 = vld [vmem:[#allocation14] ss:$0 sm:$0xff] }
 0x93b   :  { %19671 = vmatmul.mubr.f32.vlgmr.msra.gmra.mrb[14].mxu0 %v5588_v13  ;;  %v7046_v13 = vld [vmem:[#allocation23 + $0x18] sm:$0xff] }
 0x93c   :  { %19674 = vmatpush3.msra.mxu0 %v5599_v56  ;;  %19675 = vmatprep.mubr.f32.mxu0 %v5574_v60  ;;  %v7070_v50 = vand.u32 4294901760, %v7046_v13 }
 0x93d   :  { %19678 = vmatprep.subr.mxu0 %v5596_v24 }
 0x943   :  { %19676 = vmatmul.mubr.f32.vlgmr.msra.gmra.mrb[14].mxu0 %v5584_v6 }
 0x944   :  { %19679 = vmatpush3.msra.mxu0 %v5596_v24  ;;  %19680 = vmatprep.mubr.f32.mxu0 %v5575_v25 }
 0x945   :  { %19683 = vmatprep.subr.mxu0 %v5509_v18 }
 0x94b   :  { %19681 = vmatmul.mubr.f32.vlgmr.msra.gmra.mrb[14].mxu0 %v5585_v48  ;;  %v7044_v48 = vld [vmem:[#allocation23 + $0x8] sm:$0xff] }
 0x94c   :  { %19684 = vmatpush3.msra.mxu0 %v5509_v18  ;;  %19685 = vmatprep.mubr.f32.mxu0 %v5576_v34  ;;  %v7043_v34 = vld [vmem:[#allocation23] sm:$0xff]  ;;  %v7064_v43 = vand.u32 4294901760, %v7044_v48 }
 0x94d   :  { %19688 = vmatprep.subr.mxu0 %v5597_v33  ;;  %v7061_v53 = vand.u32 4294901760, %v7043_v34 }
 0x94e   :  { %v7158_v61 = vsub.f32 %v7044_v48, %v7064_v43 }
 0x94f   :  { %v7151_v56 = vsub.f32 %v7043_v34, %v7061_v53 }
 0x951   :  { %v21550_v37 = vpack.c.bf16 %v7158_v61, %v7151_v56 }
 0x953   :  { %19686 = vmatmul.mubr.f32.vlgmr.msra.gmra.mrb[14].mxu0 %v5586_v46  ;;  %v24684_v46 = vpack.c.bf16 %v7064_v43, %v7061_v53  ;;  %v7602_v53 = vld [vmem:[#allocation26 + $0x10] sm:$0xff]  ;;  %v7603_v43 = vld [vmem:[#allocation26 + $0x18] sm:$0xff] }
 0x954   :  { %19689 = vmatpush3.msra.mxu0 %v5597_v33  ;;  %19690 = vmatprep.mubr.f32.mxu0 %v5574_v60 }
 0x955   :  { %19693 = vmatprep.subr.mxu0 %v5509_v18  ;;  %21535 = vmatprep.subr.bf16.mxu1 %v24684_v46 }
 0x956   :  { %21537 = vmatpush3.bf16.msra.mxu1 %v24684_v46 }
 0x95b   :  { %19691 = vmatmul.mubr.f32.vlgmr.msra.gmra.mrb[14].mxu0 %v5584_v6 }
 0x95c   :  { %19694 = vmatpush3.msra.mxu0 %v5509_v18  ;;  %19695 = vmatprep.mubr.f32.mxu0 %v5574_v60 }
 0x95d   :  { %19698 = vmatprep.subr.mxu0 %v6008_v0 }
 0x963   :  { %19696 = vmatmul.mubr.f32.vlgmr.msra.gmra.mrb[14].mxu0 %v5584_v6 }
 0x964   :  { %19699 = vmatpush3.msra.mxu0 %v6008_v0  ;;  %19700 = vmatprep.mubr.f32.mxu0 %v6077_v35 }
 0x965   :  { %19703 = vmatprep.subr.mxu0 %v6098_v1 }
 0x96b   :  { %19701 = vmatmul.mubr.f32.vlgmr.msra.gmra.mrb[14].mxu0 %v6087_v54 }
 0x96c   :  { %19704 = vmatpush3.msra.mxu0 %v6098_v1  ;;  %19705 = vmatprep.mubr.f32.mxu0 %v6073_v2 }
 0x96d   :  { %19708 = vmatprep.subr.mxu0 %v6095_v30 }
 0x973   :  { %19706 = vmatmul.mubr.f32.vlgmr.msra.gmra.mrb[14].mxu0 %v6083_v9 }
 0x974   :  { %19709 = vmatpush3.msra.mxu0 %v6095_v30  ;;  %19710 = vmatprep.mubr.f32.mxu0 %v6074_v3  ;;  %v24688_v30 = vpack.c.bf16 %v7070_v50, %v7067_v15 }
 0x975   :  { %19713 = vmatprep.subr.mxu0 %v6008_v0 }
 0x976   :  { %21539 = vmatprep.subr.bf16.mxu1 %v24688_v30 }
 0x977   :  { %21541 = vmatpush3.bf16.msra.mxu1 %v24688_v30 }
 0x97b   :  { %19711 = vmatmul.mubr.f32.vlgmr.msra.gmra.mrb[14].mxu0 %v6084_v4 }
 0x97c   :  { %19714 = vmatpush3.msra.mxu0 %v6008_v0  ;;  %19715 = vmatprep.mubr.f32.mxu0 %v6075_v55 }
 0x97d   :  { %19718 = vmatprep.subr.mxu0 %v6096_v10 }
 0x983   :  { %19716 = vmatmul.mubr.f32.vlgmr.msra.gmra.mrb[14].mxu0 %v6085_v59 }
 0x984   :  { %19719 = vmatpush3.msra.mxu0 %v6096_v10  ;;  %19720 = vmatprep.mubr.f32.mxu0 %v6073_v2  ;;  %v7172_v10 = vsub.f32 %v7046_v13, %v7070_v50 }
 0x985   :  { %19723 = vmatprep.subr.mxu0 %v6008_v0 }
 0x986   :  { %v7173_v39 = vand.u32 4294901760, %v7172_v10 }
 0x988   :  { %v7174_v35 = vsub.f32 %v7172_v10, %v7173_v39 }
 0x98a   :  { %v7175_v54 = vand.u32 4294901760, %v7174_v35 }
 0x98b   :  { %19721 = vmatmul.mubr.f32.vlgmr.msra.gmra.mrb[14].mxu0 %v6083_v9 }
 0x98c   :  { %19724 = vmatpush3.msra.mxu0 %v6008_v0  ;;  %19725 = vmatprep.mubr.f32.mxu0 %v6073_v2  ;;  %v7152_v0 = vand.u32 4294901760, %v7151_v56  ;;  %v7159_v2 = vand.u32 4294901760, %v7158_v61 }
 0x98d   :  { %19728 = vmatprep.subr.mxu0 %v6507_v52 }
 0x98e   :  { %v7153_v28 = vsub.f32 %v7151_v56, %v7152_v0  ;;  %v7160_v3 = vsub.f32 %v7158_v61, %v7159_v2  ;;  %v7618_v56 = vand.u32 4294901760, %v7602_v53  ;;  %v7621_v61 = vand.u32 4294901760, %v7603_v43 }
 0x990   :  { %v7154_v55 = vand.u32 4294901760, %v7153_v28  ;;  %v7161_v4 = vand.u32 4294901760, %v7160_v3 }
 0x992   :  { %v21542_v59 = vpack.c.bf16 %v7161_v4, %v7154_v55  ;;  %v21586_v4 = vpack.c.bf16 %v7621_v61, %v7618_v56 }
 0x993   :  { %19726 = vmatmul.mubr.f32.vlgmr.msra.gmra.mrb[14].mxu0 %v6083_v9  ;;  %v7165_v9 = vsub.f32 %v7045_v5, %v7067_v15 }
 0x994   :  { %19729 = vmatpush3.msra.mxu0 %v6507_v52  ;;  %19730 = vmatprep.mubr.f32.mxu0 %v6576_v7 }
 0x995   :  { %19733 = vmatprep.subr.mxu0 %v6597_v17  ;;  %v7166_v31 = vand.u32 4294901760, %v7165_v9  ;;  %21543 = vmatprep.subr.bf16.mxu1 %v21542_v59 }
 0x997   :  { %v7167_v1 = vsub.f32 %v7165_v9, %v7166_v31 }
 0x999   :  { %v7168_v27 = vand.u32 4294901760, %v7167_v1 }
 0x99b   :  { %19731 = vmatmul.mubr.f32.vlgmr.msra.gmra.mrb[14].mxu0 %v6586_v32  ;;  %v21546_v16 = vpack.c.bf16 %v7175_v54, %v7168_v27 }
 0x99c   :  { %19734 = vmatpush3.msra.mxu0 %v6597_v17  ;;  %19735 = vmatprep.mubr.f32.mxu0 %v6572_v62  ;;  %v17746_v17 = vld [vmem:[#allocation16] ss:$0 sm:$0xff] }
 0x99d   :  { %19738 = vmatprep.subr.mxu0 %v6594_v11 }
 0x9a3   :  { %19736 = vmatmul.mubr.f32.vlgmr.msra.gmra.mrb[14].mxu0 %v6582_v51 }
 0x9a4   :  { %19739 = vmatpush3.msra.mxu0 %v6594_v11  ;;  %19740 = vmatprep.mubr.f32.mxu0 %v6573_v57  ;;  %v24692_v11 = vpack.c.bf16 %v7173_v39, %v7166_v31 }
 0x9a5   :  { %19743 = vmatprep.subr.mxu0 %v6507_v52 }
 0x9ab   :  { %19741 = vmatmul.mubr.f32.vlgmr.msra.gmra.mrb[14].mxu0 %v6583_v63 }
 0x9ac   :  { %19744 = vmatpush3.msra.mxu0 %v6507_v52  ;;  %19745 = vmatprep.mubr.f32.mxu0 %v6574_v58 }
 0x9ad   :  { %19748 = vmatprep.subr.mxu0 %v6595_v42 }
 0x9b3   :  { %19746 = vmatmul.mubr.f32.vlgmr.msra.gmra.mrb[14].mxu0 %v6584_v20 }
 0x9b4   :  { %19749 = vmatpush3.msra.mxu0 %v6595_v42  ;;  %19750 = vmatprep.mubr.f32.mxu0 %v6572_v62 }
 0x9b5   :  { %19753 = vmatprep.subr.mxu0 %v6507_v52 }
 0x9bb   :  { %19751 = vmatmul.mubr.f32.vlgmr.msra.gmra.mrb[14].mxu0 %v6582_v51 }
 0x9bc   :  { %19754 = vmatpush3.msra.mxu0 %v6507_v52  ;;  %19755 = vmatprep.mubr.f32.mxu0 %v6572_v62  ;;  %v21554_v52 = vpack.c.bf16 %v7172_v10, %v7165_v9  ;;  %v21566_v62 = vpack.c.bf16 %v7159_v2, %v7152_v0  ;;  %v7716_v0 = vsub.f32 %v7602_v53, %v7618_v56 }
 0x9bd   :  { %v7723_v2 = vsub.f32 %v7603_v43, %v7621_v61 }
 0x9be   :  { %v7717_v10 = vand.u32 4294901760, %v7716_v0 }
 0x9bf   :  { %v7724_v55 = vand.u32 4294901760, %v7723_v2 }
 0x9c1   :  { %v7725_v1 = vsub.f32 %v7723_v2, %v7724_v55 }
 0x9c3   :  { %19756 = vmatmul.mubr.f32.vlgmr.msra.gmra.mrb[14].mxu0 %v6582_v51  ;;  %v7726_v27 = vand.u32 4294901760, %v7725_v1 }
 0xa96   :  { %v19757_v38 = vpop.f32.mrb[14].mxu0 }
 0xa97   :  { %v22406_v44 = vadd.f32 %v19757_v38, %v17744_v29  ;;  %v6985_v41 = vpop.f32.mrb[15].mxu0 }
 0xa98   :  { %v22407_v40 = vadd.f32 %v17744_v29, %v6985_v41 }
 0xa99   :  { %v24671_v19 = vadd.f32 %v22406_v44, %v23772_v12 }
 0xa9a   :  { %v24674_v47 = vadd.f32 %v22407_v40, %v23768_v8 }
 0xa9b   :  { %v7004_v49 = vsel %vm327_vm0, %v24671_v19, 0.0 }
 0xa9c   :  { %7005 = vadd.xlane.f32.xlu1 %v7004_v49  ;;  %v7001_v14 = vsel %vm327_vm0, %v24674_v47, 0.0 }
 0xa9d   :  { %7002 = vadd.xlane.f32.xlu0 %v7001_v14 }
 0xb29   :  { %v7006_v23 = vpop.xlane.xlu1 %7005 }
 0xb2a   :  { %v7008_v18 = vmul.f32 0.03125, %v7006_v23  ;;  %v7003_v60 = vpop.xlane.xlu0 %7002 }
 0xb2b   :  { %v7007_v24 = vmul.f32 0.03125, %v7003_v60 }
 0xb2c   :  { %v7010_v26 = vsub.f32 %v24671_v19, %v7008_v18 }
 0xb2d   :  { %v7009_v12 = vsub.f32 %v24674_v47, %v7007_v24 }
 0xb2e   :  { %v7012_v6 = vmul.f32 %v7010_v26, %v7010_v26 }
 0xb2f   :  { %v7011_v25 = vmul.f32 %v7009_v12, %v7009_v12 }
 0xb30   :  { %v7016_v33 = vsel %vm327_vm0, %v7012_v6, 0.0  ;;  %v7600_v6 = vld [vmem:[#allocation26] sm:$0xff] }
 0xb31   :  { %v7013_v8 = vsel %vm327_vm0, %v7011_v25, 0.0  ;;  %v7612_v34 = vand.u32 4294901760, %v7600_v6 }
 0xb32   :  { %7014 = vadd.xlane.f32.xlu0 %v7013_v8 }
 0xb33   :  { %v7702_v5 = vsub.f32 %v7600_v6, %v7612_v34 }
 0xb35   :  { %v7703_v15 = vand.u32 4294901760, %v7702_v5 }
 0xb36   :  { %7017 = vadd.xlane.f32.xlu0 %v7016_v33  ;;  %v7601_v33 = vld [vmem:[#allocation26 + $0x8] sm:$0xff] }
 0xb37   :  { %v7615_v48 = vand.u32 4294901760, %v7601_v33  ;;  %v7704_v3 = vsub.f32 %v7702_v5, %v7703_v15 }
 0xb39   :  { %v7709_v13 = vsub.f32 %v7601_v33, %v7615_v48  ;;  %v21582_v28 = vpack.c.bf16 %v7615_v48, %v7612_v34  ;;  %v7705_v31 = vand.u32 4294901760, %v7704_v3 }
 0xb3b   :  { %v7710_v50 = vand.u32 4294901760, %v7709_v13 }
 0xb3d   :  { %v7711_v9 = vsub.f32 %v7709_v13, %v7710_v50 }
 0xb3f   :  { %v7712_v39 = vand.u32 4294901760, %v7711_v9 }
 0xbbf   :  { %v7015_v22 = vpop.xlane.xlu0 %7014 }
 0xbc0   :  { %v7019_v57 = vmul.f32 0.03125, %v7015_v22 }
 0xbc2   :  { %v7021_v51 = vadd.f32 1e-05, %v7019_v57 }
 0xbc3   :  { %v7018_v42 = vpop.xlane.xlu0 %7017 }
 0xbc4   :  { %22914 = vrsqrt.f32 %v7021_v51  ;;  %v7020_v58 = vmul.f32 0.03125, %v7018_v42  ;;  %v8145_v42 = vld [vmem:[%s25997_s21 + $0x10] sm:$0xff] }
 0xbc6   :  { %v7022_v63 = vadd.f32 1e-05, %v7020_v58  ;;  %v8146_v58 = vld [vmem:[%s25997_s21 + $0x18] sm:$0xff] }
 0xbc8   :  { %22916 = vrsqrt.f32 %v7022_v63  ;;  %v8171_v63 = vand.u32 4294901760, %v8145_v42 }
 0xbce   :  { %v22915_v21 = vpop.eup %22914 }
 0xbcf   :  { %v7025_v20 = vmul.f32 %v22915_v21, %v7009_v12  ;;  %v8174_v21 = vand.u32 4294901760, %v8146_v58 }
 0xbd1   :  { %v7033_v7 = vmul.f32 %v17745_v45, %v7025_v20  ;;  %v8147_v20 = vld [vmem:[%s25997_s21 + $0x20] sm:$0xff] }
 0xbd2   :  { %v22917_v36 = vpop.eup %22916 }
 0xbd3   :  { %v7026_v32 = vmul.f32 %v22917_v36, %v7010_v26  ;;  %v7041_v29 = vadd.f32 %v17746_v17, %v7033_v7  ;;  %v8177_v7 = vand.u32 4294901760, %v8147_v20 }
 0xbd5   :  { %v7034_v38 = vmul.f32 %v17745_v45, %v7026_v32  ;;  %v7055_v44 = vsel %vm327_vm0, %v7041_v29, 0  ;;  %v24766_v45 = vpack.c.bf16 %v8174_v21, %v8171_v63  ;;  %v8287_v43 = vsub.f32 %v8147_v20, %v8177_v7 }
 0xbd6   :  { %v24695_v41 = vand.u32 4294901760, %v7055_v44 }
 0xbd7   :  { %v7042_v40 = vadd.f32 %v17746_v17, %v7034_v38  ;;  %v8148_v17 = vld [vmem:[%s25997_s21 + $0x28] sm:$0xff] }
 0xbd8   :  { %v24698_v49 = vsub.f32 %v7055_v44, %v24695_v41  ;;  %v8180_v36 = vand.u32 4294901760, %v8148_v17  ;;  %v8149_v44 = vld [vmem:[%s25997_s21 + $0x30] sm:$0xff] }
 0xbd9   :  { %v7058_v14 = vsel %vm327_vm0, %v7042_v40, 0  ;;  %v8183_v40 = vand.u32 4294901760, %v8149_v44 }
 0xbda   :  { %v24701_v23 = vand.u32 4294901760, %v7058_v14  ;;  %v24704_v18 = vand.u32 4294901760, %v24698_v49  ;;  %v24776_v32 = vpack.c.bf16 %v8180_v36, %v8177_v7  ;;  %v8294_v56 = vsub.f32 %v8148_v17, %v8180_v36 }
 0xbdc   :  { %v24707_v60 = vsub.f32 %v7058_v14, %v24701_v23  ;;  %v7132_v24 = vsub.f32 %v24698_v49, %v24704_v18 }
 0xbde   :  { %v7133_v26 = vand.u32 4294901760, %v7132_v24  ;;  %v24712_v12 = vand.u32 4294901760, %v24707_v60 }
 0xbe0   :  { %19766 = vmatprep.mubr.f32.mxu1 %v7133_v26  ;;  %v7142_v25 = vsub.f32 %v24707_v60, %v24712_v12 }
 0xbe2   :  { %v24716_v8 = vand.u32 4294901760, %v7142_v25 }
 0xbe4   :  { %19767 = vmatmul.mubr.f32.vlgmr.msra.gmra.mrb[12].mxu1 %v24716_v8 }
 0xbe5   :  { %21545 = vmatpush3.bf16.msra.mxu1 %v21542_v59  ;;  %19777 = vmatprep.mubr.f32.mxu1 %v24695_v41  ;;  %v7718_v59 = vsub.f32 %v7716_v0, %v7717_v10 }
 0xbe6   :  { %21547 = vmatprep.subr.bf16.mxu1 %v21546_v16 }
 0xbe7   :  { %v7719_v35 = vand.u32 4294901760, %v7718_v59 }
 0xbe9   :  { %21549 = vmatpush3.bf16.msra.mxu1 %v21546_v16  ;;  %v21594_v54 = vpack.c.bf16 %v7726_v27, %v7719_v35  ;;  %v21602_v16 = vpack.c.bf16 %v7723_v2, %v7716_v0 }
 0xbea   :  { %21551 = vmatprep.subr.bf16.mxu1 %v21550_v37 }
 0xbec   :  { %19778 = vmatmul.mubr.f32.vlgmr.msra.gmra.mrb[12].mxu1 %v24701_v23 }
 0xbed   :  { %21553 = vmatpush3.bf16.msra.mxu1 %v21550_v37  ;;  %19788 = vmatprep.mubr.f32.mxu1 %v24698_v49  ;;  %v21614_v37 = vpack.c.bf16 %v7710_v50, %v7703_v15  ;;  %v8295_v15 = vand.u32 4294901760, %v8294_v56 }
 0xbee   :  { %21555 = vmatprep.subr.bf16.mxu1 %v21554_v52 }
 0xbef   :  { %v8296_v2 = vsub.f32 %v8294_v56, %v8295_v15 }
 0xbf1   :  { %21557 = vmatpush3.bf16.msra.mxu1 %v21554_v52  ;;  %v21618_v52 = vpack.c.bf16 %v7724_v55, %v7717_v10  ;;  %v8297_v10 = vand.u32 4294901760, %v8296_v2 }
 0xbf2   :  { %21559 = vmatprep.subr.bf16.mxu1 %v24684_v46 }
 0xbf4   :  { %19789 = vmatmul.mubr.f32.vlgmr.msra.gmra.mrb[12].mxu1 %v24707_v60 }
 0xbf5   :  { %21561 = vmatpush3.bf16.msra.mxu1 %v24684_v46  ;;  %19799 = vmatprep.mubr.f32.mxu1 %v24704_v18 }
 0xbf6   :  { %21563 = vmatprep.subr.bf16.mxu1 %v24688_v30 }
 0xbf9   :  { %21565 = vmatpush3.bf16.msra.mxu1 %v24688_v30 }
 0xbfa   :  { %21567 = vmatprep.subr.bf16.mxu1 %v21566_v62 }
 0xbfc   :  { %19800 = vmatmul.mubr.f32.vlgmr.msra.gmra.mrb[12].mxu1 %v24712_v12 }
 0xbfd   :  { %21569 = vmatpush3.bf16.msra.mxu1 %v21566_v62  ;;  %19810 = vmatprep.mubr.f32.mxu1 %v24695_v41  ;;  %v8143_v62 = vld [vmem:[%s25997_s21] sm:$0xff] }
 0xbfe   :  { %21571 = vmatprep.subr.bf16.mxu1 %v24692_v11  ;;  %v8165_v22 = vand.u32 4294901760, %v8143_v62 }
 0xc00   :  { %v8259_v29 = vsub.f32 %v8143_v62, %v8165_v22 }
 0xc01   :  { %21573 = vmatpush3.bf16.msra.mxu1 %v24692_v11  ;;  %v8144_v11 = vld [vmem:[%s25997_s21 + $0x8] sm:$0xff] }
 0xc02   :  { %21575 = vmatprep.subr.bf16.mxu1 %v24684_v46  ;;  %v8168_v57 = vand.u32 4294901760, %v8144_v11  ;;  %v8260_v14 = vand.u32 4294901760, %v8259_v29 }
 0xc04   :  { %19811 = vmatmul.mubr.f32.vlgmr.msra.gmra.mrb[12].mxu1 %v24701_v23  ;;  %v24756_v51 = vpack.c.bf16 %v8168_v57, %v8165_v22  ;;  %v8266_v38 = vsub.f32 %v8144_v11, %v8168_v57 }
 0xc05   :  { %21577 = vmatpush3.bf16.msra.mxu1 %v24684_v46  ;;  %19821 = vmatprep.mubr.f32.mxu1 %v24695_v41  ;;  %v21590_v46 = vpack.c.bf16 %v7712_v39, %v7705_v31 }
 0xc06   :  { %21579 = vmatprep.subr.bf16.mxu1 %v24688_v30  ;;  %21631 = vmatprep.subr.bf16.mxu0 %v24756_v51  ;;  %v21662_v27 = vpack.c.bf16 %v8266_v38, %v8259_v29 }
 0xc07   :  { %21633 = vmatpush3.bf16.msra.mxu0 %v24756_v51 }
 0xc08   :  { %21635 = vmatprep.subr.bf16.mxu0 %v24766_v45 }
 0xc09   :  { %21581 = vmatpush3.bf16.msra.mxu1 %v24688_v30  ;;  %v21598_v30 = vpack.c.bf16 %v7709_v13, %v7702_v5  ;;  %v8288_v13 = vand.u32 4294901760, %v8287_v43 }
 0xc0a   :  { %21583 = vmatprep.subr.bf16.mxu1 %v21582_v28 }
 0xc0b   :  { %21637 = vmatpush3.bf16.msra.mxu0 %v24766_v45  ;;  %v8289_v0 = vsub.f32 %v8287_v43, %v8288_v13  ;;  %v24799_v62 = vpack.c.bf16 %v8295_v15, %v8288_v13 }
 0xc0c   :  { %19822 = vmatmul.mubr.f32.vlgmr.msra.gmra.mrb[12].mxu1 %v24701_v23  ;;  %21639 = vmatprep.subr.bf16.mxu0 %v24776_v32 }
 0xc0d   :  { %21585 = vmatpush3.bf16.msra.mxu1 %v21582_v28  ;;  %19832 = vmatprep.mubr.f32.mxu1 %v7133_v26  ;;  %v8273_v26 = vsub.f32 %v8145_v42, %v8171_v63  ;;  %v8290_v9 = vand.u32 4294901760, %v8289_v0  ;;  %v17747_v42 = vld [vmem:[#allocation25] ss:$0 sm:$0xff] }
 0xc0e   :  { %21587 = vmatprep.subr.bf16.mxu1 %v21586_v4 }
 0xc0f   :  { %21641 = vmatpush3.bf16.msra.mxu0 %v24776_v32  ;;  %v8274_v6 = vand.u32 4294901760, %v8273_v26  ;;  %v21654_v31 = vpack.c.bf16 %v8297_v10, %v8290_v9 }
 0xc11   :  { %21589 = vmatpush3.bf16.msra.mxu1 %v21586_v4  ;;  %v8275_v48 = vsub.f32 %v8273_v26, %v8274_v6 }
 0xc12   :  { %21591 = vmatprep.subr.bf16.mxu1 %v21590_v46 }
 0xc13   :  { %v8276_v61 = vand.u32 4294901760, %v8275_v48 }
 0xc14   :  { %19833 = vmatmul.mubr.f32.vlgmr.msra.gmra.mrb[14].mxu1 %v24716_v8 }
 0xc15   :  { %21593 = vmatpush3.bf16.msra.mxu1 %v21590_v46  ;;  %19843 = vmatprep.mubr.f32.mxu1 %v24695_v41 }
 0xc16   :  { %21595 = vmatprep.subr.bf16.mxu1 %v21594_v54 }
 0xc19   :  { %21597 = vmatpush3.bf16.msra.mxu1 %v21594_v54 }
 0xc1a   :  { %21599 = vmatprep.subr.bf16.mxu1 %v21598_v30 }
 0xc1c   :  { %19844 = vmatmul.mubr.f32.vlgmr.msra.gmra.mrb[14].mxu1 %v24701_v23 }
 0xc1d   :  { %21601 = vmatpush3.bf16.msra.mxu1 %v21598_v30  ;;  %19854 = vmatprep.mubr.f32.mxu1 %v24698_v49  ;;  %v21670_v30 = vpack.c.bf16 %v8294_v56, %v8287_v43 }
 0xc1e   :  { %21603 = vmatprep.subr.bf16.mxu1 %v21602_v16 }
 0xc21   :  { %21605 = vmatpush3.bf16.msra.mxu1 %v21602_v16 }
 0xc22   :  { %21607 = vmatprep.subr.bf16.mxu1 %v21582_v28 }
 0xc24   :  { %19855 = vmatmul.mubr.f32.vlgmr.msra.gmra.mrb[14].mxu1 %v24707_v60  ;;  %v8261_v60 = vsub.f32 %v8259_v29, %v8260_v14 }
 0xc25   :  { %21609 = vmatpush3.bf16.msra.mxu1 %v21582_v28  ;;  %19865 = vmatprep.mubr.f32.mxu1 %v24704_v18 }
 0xc26   :  { %21611 = vmatprep.subr.bf16.mxu1 %v21586_v4  ;;  %v8262_v25 = vand.u32 4294901760, %v8261_v60 }
 0xc29   :  { %21613 = vmatpush3.bf16.msra.mxu1 %v21586_v4 }
 0xc2a   :  { %21615 = vmatprep.subr.bf16.mxu1 %v21614_v37 }
 0xc2c   :  { %19866 = vmatmul.mubr.f32.vlgmr.msra.gmra.mrb[14].mxu1 %v24712_v12  ;;  %v8280_v12 = vsub.f32 %v8146_v58, %v8174_v21 }
 0xc2d   :  { %21617 = vmatpush3.bf16.msra.mxu1 %v21614_v37  ;;  %19876 = vmatprep.mubr.f32.mxu1 %v24695_v41 }
 0xc2e   :  { %21619 = vmatprep.subr.bf16.mxu1 %v21618_v52  ;;  %v8281_v33 = vand.u32 4294901760, %v8280_v12  ;;  %v21666_v54 = vpack.c.bf16 %v8280_v12, %v8273_v26 }
 0xc30   :  { %v8282_v53 = vsub.f32 %v8280_v12, %v8281_v33 }
 0xc31   :  { %21621 = vmatpush3.bf16.msra.mxu1 %v21618_v52  ;;  %v24797_v52 = vpack.c.bf16 %v8281_v33, %v8274_v6 }
 0xc32   :  { %21623 = vmatprep.subr.bf16.mxu1 %v21582_v28  ;;  %v8283_v5 = vand.u32 4294901760, %v8282_v53 }
 0xc34   :  { %19877 = vmatmul.mubr.f32.vlgmr.msra.gmra.mrb[14].mxu1 %v24701_v23  ;;  %v24793_v50 = vpack.c.bf16 %v8283_v5, %v8276_v61 }
 0xc35   :  { %21625 = vmatpush3.bf16.msra.mxu1 %v21582_v28  ;;  %19887 = vmatprep.mubr.f32.mxu1 %v24695_v41  ;;  %v8150_v41 = vld [vmem:[%s25997_s21 + $0x38] sm:$0xff]  ;;  %v8301_v28 = vsub.f32 %v8149_v44, %v8183_v40 }
 0xc36   :  { %21627 = vmatprep.subr.bf16.mxu1 %v21586_v4  ;;  %v8186_v49 = vand.u32 4294901760, %v8150_v41 }
 0xc37   :  { %v8302_v55 = vand.u32 4294901760, %v8301_v28 }
 0xc38   :  { %v24786_v18 = vpack.c.bf16 %v8186_v49, %v8183_v40  ;;  %v8308_v3 = vsub.f32 %v8150_v41, %v8186_v49 }
 0xc39   :  { %21629 = vmatpush3.bf16.msra.mxu1 %v21586_v4  ;;  %v8303_v39 = vsub.f32 %v8301_v28, %v8302_v55 }
 0xc3a   :  { %21643 = vmatprep.subr.bf16.mxu0 %v24786_v18  ;;  %v8309_v4 = vand.u32 4294901760, %v8308_v3  ;;  %v21674_v16 = vpack.c.bf16 %v8308_v3, %v8301_v28 }
 0xc3b   :  { %21645 = vmatpush3.bf16.msra.mxu0 %v24786_v18  ;;  %v8304_v1 = vand.u32 4294901760, %v8303_v39 }
 0xc3c   :  { %19888 = vmatmul.mubr.f32.vlgmr.msra.gmra.mrb[14].mxu1 %v24701_v23  ;;  %v8267_v23 = vand.u32 4294901760, %v8266_v38  ;;  %v8310_v59 = vsub.f32 %v8308_v3, %v8309_v4  ;;  %v24801_v11 = vpack.c.bf16 %v8309_v4, %v8302_v55 }
 0xc3e   :  { %v8268_v24 = vsub.f32 %v8266_v38, %v8267_v23  ;;  %v8311_v46 = vand.u32 4294901760, %v8310_v59  ;;  %v24795_v37 = vpack.c.bf16 %v8267_v23, %v8260_v14  ;;  %v17750_v38 = vld [vmem:[#allocation28] ss:$0 sm:$0xff] }
 0xc40   :  { %v8269_v8 = vand.u32 4294901760, %v8268_v24  ;;  %v21658_v35 = vpack.c.bf16 %v8311_v46, %v8304_v1  ;;  %v17754_v1 = vld [vmem:[%s25986_s10 + $0x20] sm:$0xff]  ;;  %v17755_v46 = vld [vmem:[%s25986_s10 + $0x28] sm:$0xff] }
 0xc42   :  { %v24790_v34 = vpack.c.bf16 %v8269_v8, %v8262_v25 }
 0xc44   :  { %21647 = vmatprep.subr.bf16.mxu0 %v24790_v34 }
 0xcdf   :  { %v19823_v22 = vpop.f32.mrb[12].mxu1 }
 0xce0   :  { %v7578_v57 = vpop.f32.mrb[13].mxu1  ;;  %v22408_v58 = vadd.f32 %v19823_v22, %v17747_v42 }
 0xce1   :  { %v22409_v63 = vadd.f32 %v17747_v42, %v7578_v57  ;;  %v17756_v42 = vld [vmem:[%s25986_s10 + $0x30] sm:$0xff] }
 0xce2   :  { %v17749_v21 = vmul.f32 -1.442695, %v22408_v58  ;;  %v17757_v58 = vld [vmem:[%s25986_s10 + $0x38] sm:$0xff] }
 0xce3   :  { %v17748_v20 = vmul.f32 -1.442695, %v22409_v63  ;;  %v17764_v63 = vld [vmem:[%s25988_s12 + $0x30] sm:$0xff] }
 0xce4   :  { %22918 = vpow2.f32 %v17749_v21 }
 0xce5   :  { %22920 = vpow2.f32 %v17748_v20  ;;  %v8810_v20 = vand.u32 4294901760, %v17756_v42 }
 0xcee   :  { %v22919_v17 = vpop.eup %22918 }
 0xcef   :  { %v22921_v7 = vpop.eup %22920  ;;  %v7595_v36 = vadd.f32 1.0, %v22919_v17  ;;  %v8813_v17 = vand.u32 4294901760, %v17757_v58 }
 0xcf0   :  { %v7594_v29 = vadd.f32 1.0, %v22921_v7  ;;  %v17765_v7 = vld [vmem:[%s25988_s12 + $0x38] sm:$0xff] }
 0xcf1   :  { %22922 = vrcp.f32 %v7595_v36  ;;  %v9882_v36 = vand.u32 4294901760, %v17764_v63 }
 0xcf2   :  { %22924 = vrcp.f32 %v7594_v29 }
 0xcfb   :  { %v22923_v23 = vpop.eup %22922 }
 0xcfc   :  { %v22925_v24 = vpop.eup %22924 }
 0xd0f   :  { %v19889_v44 = vpop.f32.mrb[14].mxu1 }
 0xd10   :  { %v22410_v41 = vadd.f32 %v19889_v44, %v17750_v38  ;;  %v8129_v40 = vpop.f32.mrb[15].mxu1 }
 0xd11   :  { %v22411_v49 = vadd.f32 %v17750_v38, %v8129_v40  ;;  %v9885_v38 = vand.u32 4294901760, %v17765_v7 }
 0xd12   :  { %v8140_v14 = vmax.f32 %v22410_v41, 0.0 }
 0xd13   :  { %v8139_v60 = vmax.f32 %v22411_v49, 0.0  ;;  %v24889_v49 = vpack.c.bf16 %v8813_v17, %v8810_v20 }
 0xd14   :  { %v8142_v26 = vmul.f32 %v22923_v23, %v8140_v14  ;;  %v24891_v23 = vpack.c.bf16 %v9885_v38, %v9882_v36 }
 0xd15   :  { %v8141_v12 = vmul.f32 %v22925_v24, %v8139_v60 }
 0xd16   :  { %v8162_v25 = vsel %vm4044_vm2, %v8142_v26, 0 }
 0xd17   :  { %v8247_v8 = vand.u32 4294901760, %v8162_v25  ;;  %v8159_v6 = vsel %vm4044_vm2, %v8141_v12, 0 }
 0xd18   :  { %v8237_v33 = vand.u32 4294901760, %v8159_v6 }
 0xd19   :  { %v8248_v48 = vsub.f32 %v8162_v25, %v8247_v8  ;;  %v8908_v25 = vsub.f32 %v17756_v42, %v8810_v20 }
 0xd1a   :  { %v8238_v53 = vsub.f32 %v8159_v6, %v8237_v33  ;;  %v9980_v6 = vsub.f32 %v17764_v63, %v9882_v36 }
 0xd1b   :  { %v8249_v43 = vand.u32 4294901760, %v8248_v48 }
 0xd1c   :  { %v8239_v56 = vand.u32 4294901760, %v8238_v53 }
 0xd1d   :  { %v8250_v61 = vsub.f32 %v8248_v48, %v8249_v43 }
 0xd1e   :  { %v8240_v5 = vsub.f32 %v8238_v53, %v8239_v56 }
 0xd1f   :  { %v8251_v15 = vand.u32 4294901760, %v8250_v61 }
 0xd20   :  { %v8241_v13 = vand.u32 4294901760, %v8240_v5  ;;  %v9981_v5 = vand.u32 4294901760, %v9980_v6 }
 0xd22   :  { %19906 = vmatprep.mubr.f32.mxu0 %v8241_v13 }
 0xd23   :  { %19907 = vmatmul.mubr.f32.vlgmr.msra.gmra.mrb[16].mxu0 %v8251_v15 }
 0xd24   :  { %21649 = vmatpush3.bf16.msra.mxu0 %v24790_v34  ;;  %19925 = vmatprep.mubr.f32.mxu0 %v8237_v33  ;;  %v17751_v34 = vld [vmem:[%s25998_s22] ss:$0 sm:$0xff] }
 0xd25   :  { %21651 = vmatprep.subr.bf16.mxu0 %v24793_v50 }
 0xd28   :  { %21653 = vmatpush3.bf16.msra.mxu0 %v24793_v50 }
 0xd29   :  { %21655 = vmatprep.subr.bf16.mxu0 %v21654_v31 }
 0xd2c   :  { %21657 = vmatpush3.bf16.msra.mxu0 %v21654_v31 }
 0xd2d   :  { %21659 = vmatprep.subr.bf16.mxu0 %v21658_v35 }
 0xd30   :  { %21661 = vmatpush3.bf16.msra.mxu0 %v21658_v35  ;;  %v17762_v35 = vld [vmem:[%s25988_s12 + $0x20] sm:$0xff] }
 0xd31   :  { %21663 = vmatprep.subr.bf16.mxu0 %v21662_v27 }
 0xd33   :  { %19926 = vmatmul.mubr.f32.vlgmr.msra.gmra.mrb[16].mxu0 %v8247_v8 }
 0xd34   :  { %21665 = vmatpush3.bf16.msra.mxu0 %v21662_v27  ;;  %19944 = vmatprep.mubr.f32.mxu0 %v8238_v53  ;;  %v8804_v27 = vand.u32 4294901760, %v17754_v1 }
 0xd35   :  { %21667 = vmatprep.subr.bf16.mxu0 %v21666_v54 }
 0xd38   :  { %21669 = vmatpush3.bf16.msra.mxu0 %v21666_v54  ;;  %v8807_v54 = vand.u32 4294901760, %v17755_v46 }
 0xd39   :  { %21671 = vmatprep.subr.bf16.mxu0 %v21670_v30 }
 0xd3c   :  { %21673 = vmatpush3.bf16.msra.mxu0 %v21670_v30  ;;  %v17763_v30 = vld [vmem:[%s25988_s12 + $0x28] sm:$0xff] }
 0xd3d   :  { %21675 = vmatprep.subr.bf16.mxu0 %v21674_v16 }
 0xd40   :  { %21677 = vmatpush3.bf16.msra.mxu0 %v21674_v16  ;;  %v9876_v16 = vand.u32 4294901760, %v17762_v35 }
 0xd41   :  { %21679 = vmatprep.subr.bf16.mxu0 %v24756_v51 }
 0xd42   :  { %v9966_v22 = vsub.f32 %v17762_v35, %v9876_v16 }
 0xd43   :  { %19945 = vmatmul.mubr.f32.vlgmr.msra.gmra.mrb[16].mxu0 %v8248_v48 }
 0xd44   :  { %21681 = vmatpush3.bf16.msra.mxu0 %v24756_v51  ;;  %19963 = vmatprep.mubr.f32.mxu0 %v8239_v56  ;;  %v9967_v41 = vand.u32 4294901760, %v9966_v22  ;;  %v8909_v56 = vand.u32 4294901760, %v8908_v25 }
 0xd45   :  { %21683 = vmatprep.subr.bf16.mxu0 %v24766_v45 }
 0xd46   :  { %v9968_v24 = vsub.f32 %v9966_v22, %v9967_v41 }
 0xd48   :  { %21685 = vmatpush3.bf16.msra.mxu0 %v24766_v45  ;;  %v9969_v48 = vand.u32 4294901760, %v9968_v24 }
 0xd49   :  { %21687 = vmatprep.subr.bf16.mxu0 %v24776_v32 }
 0xd4c   :  { %21689 = vmatpush3.bf16.msra.mxu0 %v24776_v32 }
 0xd4d   :  { %21691 = vmatprep.subr.bf16.mxu0 %v24786_v18 }
 0xd50   :  { %21693 = vmatpush3.bf16.msra.mxu0 %v24786_v18 }
 0xd51   :  { %21695 = vmatprep.subr.bf16.mxu0 %v24795_v37 }
 0xd53   :  { %19964 = vmatmul.mubr.f32.vlgmr.msra.gmra.mrb[16].mxu0 %v8249_v43  ;;  %v9987_v43 = vsub.f32 %v17765_v7, %v9885_v38 }
 0xd54   :  { %21697 = vmatpush3.bf16.msra.mxu0 %v24795_v37  ;;  %19982 = vmatprep.mubr.f32.mxu0 %v8237_v33  ;;  %v9879_v37 = vand.u32 4294901760, %v17763_v30 }
 0xd55   :  { %21699 = vmatprep.subr.bf16.mxu0 %v24797_v52 }
 0xd56   :  { %v24871_v57 = vpack.c.bf16 %v9879_v37, %v9876_v16  ;;  %v9973_v21 = vsub.f32 %v17763_v30, %v9879_v37 }
 0xd58   :  { %21701 = vmatpush3.bf16.msra.mxu0 %v24797_v52  ;;  %v24869_v52 = vpack.c.bf16 %v8807_v54, %v8804_v27  ;;  %v9974_v40 = vand.u32 4294901760, %v9973_v21 }
 0xd59   :  { %21703 = vmatprep.subr.bf16.mxu0 %v24799_v62 }
 0xd5a   :  { %21727 = vmatprep.subr.bf16.mxu1 %v24869_v52  ;;  %v9975_v26 = vsub.f32 %v9973_v21, %v9974_v40 }
 0xd5b   :  { %21729 = vmatpush3.bf16.msra.mxu1 %v24869_v52 }
 0xd5c   :  { %21705 = vmatpush3.bf16.msra.mxu0 %v24799_v62  ;;  %v8894_v62 = vsub.f32 %v17754_v1, %v8804_v27  ;;  %21731 = vmatprep.subr.bf16.mxu1 %v24889_v49  ;;  %v9976_v53 = vand.u32 4294901760, %v9975_v26 }
 0xd5d   :  { %21707 = vmatprep.subr.bf16.mxu0 %v24801_v11 }
 0xd5e   :  { %v8895_v29 = vand.u32 4294901760, %v8894_v62  ;;  %v21830_v15 = vpack.c.bf16 %v9976_v53, %v9969_v48  ;;  %v10944_v48 = vld [vmem:[#allocation19 + $0x28] sm:$0xff] }
 0xd5f   :  { %21733 = vmatpush3.bf16.msra.mxu1 %v24889_v49 }
 0xd60   :  { %21709 = vmatpush3.bf16.msra.mxu0 %v24801_v11  ;;  %v8901_v11 = vsub.f32 %v17755_v46, %v8807_v54  ;;  %v8896_v14 = vsub.f32 %v8894_v62, %v8895_v29  ;;  %v24899_v46 = vpack.c.bf16 %v9974_v40, %v9967_v41 }
 0xd61   :  { %21711 = vmatprep.subr.bf16.mxu0 %v24756_v51 }
 0xd62   :  { %v8902_v44 = vand.u32 4294901760, %v8901_v11  ;;  %v8897_v12 = vand.u32 4294901760, %v8896_v14 }
 0xd63   :  { %19983 = vmatmul.mubr.f32.vlgmr.msra.gmra.mrb[16].mxu0 %v8247_v8 }
 0xd64   :  { %21713 = vmatpush3.bf16.msra.mxu0 %v24756_v51  ;;  %20001 = vmatprep.mubr.f32.mxu0 %v8237_v33  ;;  %v8903_v60 = vsub.f32 %v8901_v11, %v8902_v44  ;;  %v24897_v1 = vpack.c.bf16 %v8902_v44, %v8895_v29 }
 0xd65   :  { %21715 = vmatprep.subr.bf16.mxu0 %v24766_v45 }
 0xd66   :  { %v8904_v33 = vand.u32 4294901760, %v8903_v60 }
 0xd68   :  { %21717 = vmatpush3.bf16.msra.mxu0 %v24766_v45  ;;  %v21734_v13 = vpack.c.bf16 %v8904_v33, %v8897_v12  ;;  %v10943_v33 = vld [vmem:[#allocation19 + $0x20] sm:$0xff] }
 0xd69   :  { %21719 = vmatprep.subr.bf16.mxu0 %v24776_v32 }
 0xd6a   :  { %21735 = vmatprep.subr.bf16.mxu1 %v21734_v13 }
 0xd6c   :  { %21721 = vmatpush3.bf16.msra.mxu0 %v24776_v32 }
 0xd6d   :  { %21723 = vmatprep.subr.bf16.mxu0 %v24786_v18 }
 0xd70   :  { %21725 = vmatpush3.bf16.msra.mxu0 %v24786_v18 }
 0xd71   :  { %21823 = vmatprep.subr.bf16.mxu0 %v24871_v57 }
 0xd73   :  { %20002 = vmatmul.mubr.f32.vlgmr.msra.gmra.mrb[16].mxu0 %v8247_v8  ;;  %v8915_v8 = vsub.f32 %v17757_v58, %v8813_v17 }
 0xd74   :  { %21825 = vmatpush3.bf16.msra.mxu0 %v24871_v57 }
 0xd75   :  { %21827 = vmatprep.subr.bf16.mxu0 %v24891_v23  ;;  %v8916_v61 = vand.u32 4294901760, %v8915_v8 }
 0xd77   :  { %v24901_v35 = vpack.c.bf16 %v8916_v61, %v8909_v56 }
 0xd78   :  { %21829 = vmatpush3.bf16.msra.mxu0 %v24891_v23 }
 0xd79   :  { %21831 = vmatprep.subr.bf16.mxu0 %v21830_v15 }
 0xe46   :  { %v20003_v50 = vpop.f32.mrb[16].mxu0 }
 0xe47   :  { %v22412_v51 = vadd.f32 %v20003_v50, %v17751_v34  ;;  %v8734_v0 = vpop.f32.mrb[17].mxu0  ;;  %v8910_v50 = vsub.f32 %v8908_v25, %v8909_v56  ;;  %v10948_v56 = vand.u32 4294901760, %v10943_v33 }
 0xe48   :  { %v22413_v2 = vadd.f32 %v17751_v34, %v8734_v0  ;;  %v9988_v34 = vand.u32 4294901760, %v9987_v43  ;;  %v9982_v0 = vsub.f32 %v9980_v6, %v9981_v5 }
 0xe49   :  { %v24836_v28 = vadd.f32 %v22412_v51, %v24671_v19  ;;  %v8917_v51 = vsub.f32 %v8915_v8, %v8916_v61  ;;  %v10951_v61 = vand.u32 4294901760, %v10944_v48 }
 0xe4a   :  { %v24839_v45 = vadd.f32 %v22413_v2, %v24674_v47  ;;  %v9989_v2 = vsub.f32 %v9987_v43, %v9988_v34  ;;  %v24903_v27 = vpack.c.bf16 %v9988_v34, %v9981_v5  ;;  %v17760_v5 = vld [vmem:[%s25987_s11 + $0x30] sm:$0xff]  ;;  %v10946_v34 = vld [vmem:[#allocation19 + $0x38] sm:$0xff] }
 0xe4b   :  { %v8753_v32 = vsel %vm327_vm0, %v24836_v28, 0.0 }
 0xe4c   :  { %8754 = vadd.xlane.f32.xlu0 %v8753_v32  ;;  %v8750_v18 = vsel %vm327_vm0, %v24839_v45, 0.0  ;;  %v8911_v32 = vand.u32 4294901760, %v8910_v50 }
 0xe4d   :  { %8751 = vadd.xlane.f32.xlu1 %v8750_v18  ;;  %v8918_v18 = vand.u32 4294901760, %v8917_v51 }
 0xed9   :  { %v8755_v3 = vpop.xlane.xlu0 %8754 }
 0xeda   :  { %v8757_v9 = vmul.f32 0.03125, %v8755_v3  ;;  %v8752_v10 = vpop.xlane.xlu1 %8751  ;;  %v9983_v3 = vand.u32 4294901760, %v9982_v0  ;;  %v24979_v0 = vsub.f32 %v10943_v33, %v10948_v56 }
 0xedb   :  { %v8756_v55 = vmul.f32 0.03125, %v8752_v10  ;;  %v21738_v10 = vpack.c.bf16 %v8918_v18, %v8911_v32  ;;  %v9345_v32 = vand.u32 4294901760, %v17760_v5 }
 0xedc   :  { %v24846_v4 = vsub.f32 %v24836_v28, %v8757_v9  ;;  %v9990_v9 = vand.u32 4294901760, %v9989_v2  ;;  %v24981_v2 = vsub.f32 %v10944_v48, %v10951_v61 }
 0xedd   :  { %v24849_v19 = vsub.f32 %v24839_v45, %v8756_v55 }
 0xede   :  { %v8761_v47 = vmul.f32 %v24846_v4, %v24846_v4  ;;  %v21834_v55 = vpack.c.bf16 %v9990_v9, %v9983_v3  ;;  %v10957_v9 = vand.u32 4294901760, %v10946_v34  ;;  %v21934_v48 = vpack.c.bf16 %v24981_v2, %v24979_v0 }
 0xedf   :  { %v8760_v31 = vmul.f32 %v24849_v19, %v24849_v19 }
 0xee0   :  { %v8765_v39 = vsel %vm327_vm0, %v8761_v47, 0.0  ;;  %v21742_v47 = vpack.c.bf16 %v8901_v11, %v8894_v62  ;;  %v17752_v11 = vld [vmem:[#allocation11 + $0x1] ss:$0 sm:$0xff] }
 0xee1   :  { %8766 = vadd.xlane.f32.xlu0 %v8765_v39  ;;  %v8762_v59 = vsel %vm327_vm0, %v8760_v31, 0.0  ;;  %v21838_v31 = vpack.c.bf16 %v9973_v21, %v9966_v22  ;;  %v21746_v39 = vpack.c.bf16 %v8915_v8, %v8908_v25  ;;  %v17753_v21 = vld [vmem:[#allocation13 + $0x1] ss:$0 sm:$0xff] }
 0xee2   :  { %8763 = vadd.xlane.f32.xlu1 %v8762_v59  ;;  %v21842_v59 = vpack.c.bf16 %v9987_v43, %v9980_v6  ;;  %v17758_v8 = vld [vmem:[%s25987_s11 + $0x20] sm:$0xff]  ;;  %v17759_v6 = vld [vmem:[%s25987_s11 + $0x28] sm:$0xff] }
 0xee3   :  { %v9339_v53 = vand.u32 4294901760, %v17758_v8  ;;  %v9342_v43 = vand.u32 4294901760, %v17759_v6 }
 0xee5   :  { %v24973_v50 = vsub.f32 %v17758_v8, %v9339_v53  ;;  %v24977_v51 = vsub.f32 %v17759_v6, %v9342_v43 }
 0xee7   :  { %v21790_v33 = vpack.c.bf16 %v24977_v51, %v24973_v50 }
 0xf6e   :  { %v8767_v54 = vpop.xlane.xlu0 %8766 }
 0xf6f   :  { %v8769_v30 = vmul.f32 0.03125, %v8767_v54  ;;  %v8764_v16 = vpop.xlane.xlu1 %8763 }
 0xf70   :  { %v8768_v37 = vmul.f32 0.03125, %v8764_v16 }
 0xf71   :  { %v8771_v42 = vadd.f32 1e-05, %v8769_v30 }
 0xf72   :  { %v8770_v58 = vadd.f32 1e-05, %v8768_v37 }
 0xf73   :  { %22926 = vrsqrt.f32 %v8771_v42 }
 0xf74   :  { %22928 = vrsqrt.f32 %v8770_v58 }
 0xf7d   :  { %v22927_v62 = vpop.eup %22926 }
 0xf7e   :  { %v22929_v22 = vpop.eup %22928  ;;  %v8775_v63 = vmul.f32 %v22927_v62, %v24846_v4 }
 0xf7f   :  { %v8774_v20 = vmul.f32 %v22929_v22, %v24849_v19 }
 0xf80   :  { %v8783_v17 = vmul.f32 %v17752_v11, %v8775_v63 }
 0xf81   :  { %v8782_v7 = vmul.f32 %v17752_v11, %v8774_v20 }
 0xf82   :  { %v8791_v36 = vadd.f32 %v17753_v21, %v8783_v17 }
 0xf83   :  { %v8790_v29 = vadd.f32 %v17753_v21, %v8782_v7 }
 0xf84   :  { %v8801_v38 = vsel %vm327_vm0, %v8791_v36, 0 }
 0xf85   :  { %v24908_v44 = vand.u32 4294901760, %v8801_v38  ;;  %v8798_v41 = vsel %vm327_vm0, %v8790_v29, 0 }
 0xf86   :  { %v24911_v40 = vand.u32 4294901760, %v8798_v41 }
 0xf87   :  { %v24914_v14 = vsub.f32 %v8801_v38, %v24908_v44 }
 0xf88   :  { %v24917_v4 = vsub.f32 %v8798_v41, %v24911_v40 }
 0xf89   :  { %v24920_v19 = vand.u32 4294901760, %v24914_v14 }
 0xf8a   :  { %v24923_v60 = vand.u32 4294901760, %v24917_v4 }
 0xf8b   :  { %v8885_v24 = vsub.f32 %v24914_v14, %v24920_v19 }
 0xf8c   :  { %v8875_v26 = vsub.f32 %v24917_v4, %v24923_v60 }
 0xf8d   :  { %v24931_v25 = vand.u32 4294901760, %v8885_v24 }
 0xf8e   :  { %v24929_v12 = vand.u32 4294901760, %v8875_v26 }
 0xf90   :  { %20012 = vmatprep.mubr.f32.mxu1 %v24929_v12  ;;  %20144 = vmatprep.mubr.f32.mxu0 %v24929_v12 }
 0xf91   :  { %20013 = vmatmul.mubr.f32.vlgmr.msra.gmra.mrb[16].mxu1 %v24931_v25  ;;  %20145 = vmatmul.mubr.f32.vlgmr.msra.gmra.mrb[18].mxu0 %v24931_v25 }
 0xf92   :  { %21737 = vmatpush3.bf16.msra.mxu1 %v21734_v13  ;;  %21833 = vmatpush3.bf16.msra.mxu0 %v21830_v15  ;;  %v17761_v13 = vld [vmem:[%s25987_s11 + $0x38] sm:$0xff] }
 0xf93   :  { %20023 = vmatprep.mubr.f32.mxu1 %v24911_v40  ;;  %20155 = vmatprep.mubr.f32.mxu0 %v24911_v40  ;;  %v10945_v15 = vld [vmem:[#allocation19 + $0x30] sm:$0xff]  ;;  %v9348_v18 = vand.u32 4294901760, %v17761_v13 }
 0xf94   :  { %21739 = vmatprep.subr.bf16.mxu1 %v21738_v10  ;;  %21835 = vmatprep.subr.bf16.mxu0 %v21834_v55  ;;  %v10954_v3 = vand.u32 4294901760, %v10945_v15 }
 0xf95   :  { %v25031_v62 = vpack.c.bf16 %v9348_v18, %v9345_v32 }
 0xf96   :  { %21741 = vmatpush3.bf16.msra.mxu1 %v21738_v10  ;;  %21837 = vmatpush3.bf16.msra.mxu0 %v21834_v55  ;;  %v9430_v10 = vand.u32 4294901760, %v24973_v50  ;;  %v9437_v55 = vand.u32 4294901760, %v24977_v51  ;;  %v25033_v11 = vpack.c.bf16 %v10957_v9, %v10954_v3 }
 0xf97   :  { %21743 = vmatprep.subr.bf16.mxu1 %v21742_v47  ;;  %21839 = vmatprep.subr.bf16.mxu0 %v21838_v31 }
 0xf98   :  { %v9431_v54 = vsub.f32 %v24973_v50, %v9430_v10  ;;  %v9438_v30 = vsub.f32 %v24977_v51, %v9437_v55  ;;  %v10408_v51 = vld [vmem:[#allocation17 + $0x30] sm:$0xff] }
 0xf99   :  { %20024 = vmatmul.mubr.f32.vlgmr.msra.gmra.mrb[16].mxu1 %v24908_v44  ;;  %20156 = vmatmul.mubr.f32.vlgmr.msra.gmra.mrb[18].mxu0 %v24908_v44 }
 0xf9a   :  { %21745 = vmatpush3.bf16.msra.mxu1 %v21742_v47  ;;  %21841 = vmatpush3.bf16.msra.mxu0 %v21838_v31  ;;  %v11039_v47 = vand.u32 4294901760, %v24979_v0  ;;  %v11046_v31 = vand.u32 4294901760, %v24981_v2  ;;  %v9432_v22 = vand.u32 4294901760, %v9431_v54  ;;  %v9439_v63 = vand.u32 4294901760, %v9438_v30 }
 0xf9b   :  { %20034 = vmatprep.mubr.f32.mxu1 %v24917_v4  ;;  %20166 = vmatprep.mubr.f32.mxu0 %v24917_v4 }
 0xf9c   :  { %21747 = vmatprep.subr.bf16.mxu1 %v21746_v39  ;;  %21843 = vmatprep.subr.bf16.mxu0 %v21842_v59  ;;  %v21782_v36 = vpack.c.bf16 %v9439_v63, %v9432_v22  ;;  %v22974_v63 = vld [vmem:[#allocation6 + $0x8] sm:$0xff] }
 0xf9e   :  { %21749 = vmatpush3.bf16.msra.mxu1 %v21746_v39  ;;  %21845 = vmatpush3.bf16.msra.mxu0 %v21842_v59  ;;  %v24993_v39 = vsub.f32 %v17760_v5, %v9345_v32  ;;  %v24995_v59 = vsub.f32 %v17761_v13, %v9348_v18  ;;  %v10406_v5 = vld [vmem:[#allocation17 + $0x20] sm:$0xff]  ;;  %v10407_v13 = vld [vmem:[#allocation17 + $0x28] sm:$0xff]  ;;  %v10417_v32 = vand.u32 4294901760, %v10408_v51 }
 0xf9f   :  { %21751 = vmatprep.subr.bf16.mxu1 %v24869_v52  ;;  %21847 = vmatprep.subr.bf16.mxu0 %v24871_v57 }
 0xfa0   :  { %v9444_v16 = vand.u32 4294901760, %v24993_v39  ;;  %v9451_v37 = vand.u32 4294901760, %v24995_v59 }
 0xfa1   :  { %20035 = vmatmul.mubr.f32.vlgmr.msra.gmra.mrb[16].mxu1 %v24914_v14  ;;  %20167 = vmatmul.mubr.f32.vlgmr.msra.gmra.mrb[18].mxu0 %v24914_v14 }
 0xfa2   :  { %21753 = vmatpush3.bf16.msra.mxu1 %v24869_v52  ;;  %21849 = vmatpush3.bf16.msra.mxu0 %v24871_v57  ;;  %v9445_v17 = vsub.f32 %v24993_v39, %v9444_v16  ;;  %v21810_v50 = vpack.c.bf16 %v9451_v37, %v9444_v16 }
 0xfa3   :  { %20045 = vmatprep.mubr.f32.mxu1 %v24923_v60  ;;  %20177 = vmatprep.mubr.f32.mxu0 %v24923_v60 }
 0xfa4   :  { %21755 = vmatprep.subr.bf16.mxu1 %v24889_v49  ;;  %21851 = vmatprep.subr.bf16.mxu0 %v24891_v23  ;;  %v9446_v38 = vand.u32 4294901760, %v9445_v17 }
 0xfa6   :  { %21757 = vmatpush3.bf16.msra.mxu1 %v24889_v49  ;;  %21853 = vmatpush3.bf16.msra.mxu0 %v24891_v23 }
 0xfa7   :  { %21759 = vmatprep.subr.bf16.mxu1 %v24897_v1  ;;  %21855 = vmatprep.subr.bf16.mxu0 %v24899_v46 }
 0xfa9   :  { %20046 = vmatmul.mubr.f32.vlgmr.msra.gmra.mrb[16].mxu1 %v24920_v19  ;;  %20178 = vmatmul.mubr.f32.vlgmr.msra.gmra.mrb[18].mxu0 %v24920_v19 }
 0xfaa   :  { %21761 = vmatpush3.bf16.msra.mxu1 %v24897_v1  ;;  %21857 = vmatpush3.bf16.msra.mxu0 %v24899_v46  ;;  %v24997_v1 = vsub.f32 %v10945_v15, %v10954_v3  ;;  %v24999_v46 = vsub.f32 %v10946_v34, %v10957_v9  ;;  %v10411_v15 = vand.u32 4294901760, %v10406_v5  ;;  %v10414_v34 = vand.u32 4294901760, %v10407_v13 }
 0xfab   :  { %20056 = vmatprep.mubr.f32.mxu1 %v24911_v40  ;;  %20188 = vmatprep.mubr.f32.mxu0 %v24911_v40 }
 0xfac   :  { %21763 = vmatprep.subr.bf16.mxu1 %v24901_v35  ;;  %21859 = vmatprep.subr.bf16.mxu0 %v24903_v27  ;;  %v11053_v42 = vand.u32 4294901760, %v24997_v1  ;;  %v11060_v58 = vand.u32 4294901760, %v24999_v46  ;;  %v25106_v3 = vsub.f32 %v10406_v5, %v10411_v15  ;;  %v25108_v9 = vsub.f32 %v10407_v13, %v10414_v34 }
 0xfae   :  { %21765 = vmatpush3.bf16.msra.mxu1 %v24901_v35  ;;  %21861 = vmatpush3.bf16.msra.mxu0 %v24903_v27  ;;  %v25005_v35 = vpack.c.bf16 %v9342_v43, %v9339_v53  ;;  %v25007_v27 = vpack.c.bf16 %v10951_v61, %v10948_v56  ;;  %v11061_v7 = vsub.f32 %v24999_v46, %v11060_v58 }
 0xfaf   :  { %21767 = vmatprep.subr.bf16.mxu1 %v24869_v52  ;;  %21863 = vmatprep.subr.bf16.mxu0 %v24871_v57  ;;  %v21794_v53 = vpack.c.bf16 %v24995_v59, %v24993_v39  ;;  %v21938_v43 = vpack.c.bf16 %v24999_v46, %v24997_v1  ;;  %v21806_v56 = vpack.c.bf16 %v9437_v55, %v9430_v10  ;;  %v10502_v10 = vand.u32 4294901760, %v25106_v3 }
 0xfb0   :  { %v11062_v26 = vand.u32 4294901760, %v11061_v7  ;;  %v21950_v61 = vpack.c.bf16 %v11046_v31, %v11039_v47  ;;  %v10509_v55 = vand.u32 4294901760, %v25108_v9  ;;  %v21870_v39 = vpack.c.bf16 %v10414_v34, %v10411_v15  ;;  %v22976_v7 = vld [vmem:[#allocation6] sm:$0xff] }
 0xfb1   :  { %20057 = vmatmul.mubr.f32.vlgmr.msra.gmra.mrb[16].mxu1 %v24908_v44  ;;  %20189 = vmatmul.mubr.f32.vlgmr.msra.gmra.mrb[18].mxu0 %v24908_v44 }
 0xfb2   :  { %21769 = vmatpush3.bf16.msra.mxu1 %v24869_v52  ;;  %21865 = vmatpush3.bf16.msra.mxu0 %v24871_v57  ;;  %v11040_v52 = vsub.f32 %v24979_v0, %v11039_v47  ;;  %v11047_v57 = vsub.f32 %v24981_v2, %v11046_v31  ;;  %v10409_v0 = vld [vmem:[#allocation17 + $0x38] sm:$0xff]  ;;  %v21954_v2 = vpack.c.bf16 %v11060_v58, %v11053_v42 }
 0xfb3   :  { %20067 = vmatprep.mubr.f32.mxu1 %v24911_v40  ;;  %20199 = vmatprep.mubr.f32.mxu0 %v24911_v40  ;;  %v10420_v18 = vand.u32 4294901760, %v10409_v0  ;;  %v10515_v47 = vsub.f32 %v10408_v51, %v10417_v32 }
 0xfb4   :  { %21771 = vmatprep.subr.bf16.mxu1 %v24889_v49  ;;  %21867 = vmatprep.subr.bf16.mxu0 %v24891_v23  ;;  %v11041_v21 = vand.u32 4294901760, %v11040_v52  ;;  %v11048_v20 = vand.u32 4294901760, %v11047_v57 }
 0xfb5   :  { %v10522_v31 = vsub.f32 %v10409_v0, %v10420_v18  ;;  %v10516_v46 = vand.u32 4294901760, %v10515_v47 }
 0xfb6   :  { %21773 = vmatpush3.bf16.msra.mxu1 %v24889_v49  ;;  %21869 = vmatpush3.bf16.msra.mxu0 %v24891_v23  ;;  %v9452_v49 = vsub.f32 %v24995_v59, %v9451_v37  ;;  %v11054_v23 = vsub.f32 %v24997_v1, %v11053_v42  ;;  %v21926_v29 = vpack.c.bf16 %v11048_v20, %v11041_v21  ;;  %v22975_v20 = vld [vmem:[#allocation8 + $0x8] sm:$0xff] }
 0xfb7   :  { %21775 = vmatprep.subr.bf16.mxu1 %v25005_v35  ;;  %21919 = vmatprep.subr.bf16.mxu0 %v25007_v27  ;;  %v10503_v59 = vsub.f32 %v25106_v3, %v10502_v10  ;;  %v10510_v1 = vsub.f32 %v25108_v9, %v10509_v55  ;;  %v10523_v54 = vand.u32 4294901760, %v10522_v31  ;;  %v10517_v52 = vsub.f32 %v10515_v47, %v10516_v46 }
 0xfb8   :  { %v9453_v41 = vand.u32 4294901760, %v9452_v49  ;;  %v11055_v24 = vand.u32 4294901760, %v11054_v23 }
 0xfb9   :  { %20068 = vmatmul.mubr.f32.vlgmr.msra.gmra.mrb[16].mxu1 %v24908_v44  ;;  %20200 = vmatmul.mubr.f32.vlgmr.msra.gmra.mrb[18].mxu0 %v24908_v44  ;;  %v10504_v30 = vand.u32 4294901760, %v10503_v59  ;;  %v10524_v57 = vsub.f32 %v10522_v31, %v10523_v54  ;;  %v10518_v37 = vand.u32 4294901760, %v10517_v52 }
 0xfba   :  { %21777 = vmatpush3.bf16.msra.mxu1 %v25005_v35  ;;  %21921 = vmatpush3.bf16.msra.mxu0 %v25007_v27  ;;  %v21786_v8 = vpack.c.bf16 %v9453_v41, %v9446_v38  ;;  %v21930_v6 = vpack.c.bf16 %v11062_v26, %v11055_v24 }
 0xfbb   :  { %20078 = vmatprep.mubr.f32.mxu1 %v24929_v12  ;;  %20276 = vmatprep.mubr.f32.mxu0 %v24929_v12  ;;  %v10525_v42 = vand.u32 4294901760, %v10524_v57 }
 0xfbc   :  { %21779 = vmatprep.subr.bf16.mxu1 %v25031_v62  ;;  %21923 = vmatprep.subr.bf16.mxu0 %v25033_v11 }
 0xfbd   :  { %v21882_v58 = vpack.c.bf16 %v10525_v42, %v10518_v37 }
 0xfbe   :  { %21781 = vmatpush3.bf16.msra.mxu1 %v25031_v62  ;;  %21925 = vmatpush3.bf16.msra.mxu0 %v25033_v11 }
 0xfbf   :  { %21783 = vmatprep.subr.bf16.mxu1 %v21782_v36  ;;  %21927 = vmatprep.subr.bf16.mxu0 %v21926_v29 }
 0xfc1   :  { %20079 = vmatmul.mubr.f32.vlgmr.msra.gmra.mrb[18].mxu1 %v24931_v25  ;;  %20277 = vmatmul.mubr.f32.vlgmr.msra.gmra.mrb[20].mxu0 %v24931_v25 }
 0xfc2   :  { %21785 = vmatpush3.bf16.msra.mxu1 %v21782_v36  ;;  %20089 = vmatprep.mubr.f32.mxu1 %v24911_v40 }
 0xfc3   :  { %21929 = vmatpush3.bf16.msra.mxu0 %v21926_v29  ;;  %20287 = vmatprep.mubr.f32.mxu0 %v24911_v40 }
 0xfc4   :  { %21787 = vmatprep.subr.bf16.mxu1 %v21786_v8  ;;  %21931 = vmatprep.subr.bf16.mxu0 %v21930_v6 }
 0xfc6   :  { %21789 = vmatpush3.bf16.msra.mxu1 %v21786_v8 }
 0xfc7   :  { %21933 = vmatpush3.bf16.msra.mxu0 %v21930_v6  ;;  %21791 = vmatprep.subr.bf16.mxu1 %v21790_v33 }
 0xfc8   :  { %21935 = vmatprep.subr.bf16.mxu0 %v21934_v48 }
 0xfc9   :  { %20090 = vmatmul.mubr.f32.vlgmr.msra.gmra.mrb[18].mxu1 %v24908_v44 }
 0xfca   :  { %20288 = vmatmul.mubr.f32.vlgmr.msra.gmra.mrb[20].mxu0 %v24908_v44  ;;  %21793 = vmatpush3.bf16.msra.mxu1 %v21790_v33 }
 0xfcb   :  { %20100 = vmatprep.mubr.f32.mxu1 %v24917_v4  ;;  %21937 = vmatpush3.bf16.msra.mxu0 %v21934_v48 }
 0xfcc   :  { %20298 = vmatprep.mubr.f32.mxu0 %v24917_v4  ;;  %21795 = vmatprep.subr.bf16.mxu1 %v21794_v53 }
 0xfcd   :  { %21939 = vmatprep.subr.bf16.mxu0 %v21938_v43 }
 0xfce   :  { %21797 = vmatpush3.bf16.msra.mxu1 %v21794_v53 }
 0xfcf   :  { %21941 = vmatpush3.bf16.msra.mxu0 %v21938_v43  ;;  %21799 = vmatprep.subr.bf16.mxu1 %v25005_v35 }
 0xfd0   :  { %21943 = vmatprep.subr.bf16.mxu0 %v25007_v27 }
 0xfd1   :  { %20101 = vmatmul.mubr.f32.vlgmr.msra.gmra.mrb[18].mxu1 %v24914_v14 }
 0xfd2   :  { %20299 = vmatmul.mubr.f32.vlgmr.msra.gmra.mrb[20].mxu0 %v24914_v14  ;;  %21801 = vmatpush3.bf16.msra.mxu1 %v25005_v35 }
 0xfd3   :  { %20111 = vmatprep.mubr.f32.mxu1 %v24923_v60  ;;  %21945 = vmatpush3.bf16.msra.mxu0 %v25007_v27 }
 0xfd4   :  { %20309 = vmatprep.mubr.f32.mxu0 %v24923_v60  ;;  %21803 = vmatprep.subr.bf16.mxu1 %v25031_v62 }
 0xfd5   :  { %21947 = vmatprep.subr.bf16.mxu0 %v25033_v11 }
 0xfd6   :  { %21805 = vmatpush3.bf16.msra.mxu1 %v25031_v62 }
 0xfd7   :  { %21949 = vmatpush3.bf16.msra.mxu0 %v25033_v11  ;;  %21807 = vmatprep.subr.bf16.mxu1 %v21806_v56 }
 0xfd8   :  { %21951 = vmatprep.subr.bf16.mxu0 %v21950_v61 }
 0xfd9   :  { %20112 = vmatmul.mubr.f32.vlgmr.msra.gmra.mrb[18].mxu1 %v24920_v19 }
 0xfda   :  { %20310 = vmatmul.mubr.f32.vlgmr.msra.gmra.mrb[20].mxu0 %v24920_v19  ;;  %21809 = vmatpush3.bf16.msra.mxu1 %v21806_v56 }
 0xfdb   :  { %20122 = vmatprep.mubr.f32.mxu1 %v24911_v40  ;;  %21953 = vmatpush3.bf16.msra.mxu0 %v21950_v61 }
 0xfdc   :  { %20320 = vmatprep.mubr.f32.mxu0 %v24911_v40  ;;  %21811 = vmatprep.subr.bf16.mxu1 %v21810_v50 }
 0xfdd   :  { %21955 = vmatprep.subr.bf16.mxu0 %v21954_v2 }
 0xfde   :  { %21813 = vmatpush3.bf16.msra.mxu1 %v21810_v50 }
 0xfdf   :  { %21957 = vmatpush3.bf16.msra.mxu0 %v21954_v2  ;;  %21815 = vmatprep.subr.bf16.mxu1 %v25005_v35 }
 0xfe0   :  { %21959 = vmatprep.subr.bf16.mxu0 %v25007_v27 }
 0xfe1   :  { %20123 = vmatmul.mubr.f32.vlgmr.msra.gmra.mrb[18].mxu1 %v24908_v44 }
 0xfe2   :  { %20321 = vmatmul.mubr.f32.vlgmr.msra.gmra.mrb[20].mxu0 %v24908_v44  ;;  %21817 = vmatpush3.bf16.msra.mxu1 %v25005_v35  ;;  %v21874_v35 = vpack.c.bf16 %v10420_v18, %v10417_v32 }
 0xfe3   :  { %20133 = vmatprep.mubr.f32.mxu1 %v24911_v40  ;;  %21961 = vmatpush3.bf16.msra.mxu0 %v25007_v27  ;;  %v10511_v27 = vand.u32 4294901760, %v10510_v1 }
 0xfe4   :  { %20331 = vmatprep.mubr.f32.mxu0 %v24911_v40  ;;  %21819 = vmatprep.subr.bf16.mxu1 %v25031_v62 }
 0xfe5   :  { %21963 = vmatprep.subr.bf16.mxu0 %v25033_v11  ;;  %v21878_v16 = vpack.c.bf16 %v10511_v27, %v10504_v30 }
 0xfe6   :  { %21821 = vmatpush3.bf16.msra.mxu1 %v25031_v62  ;;  %v21886_v62 = vpack.c.bf16 %v25108_v9, %v25106_v3 }
 0xfe7   :  { %21965 = vmatpush3.bf16.msra.mxu0 %v25033_v11  ;;  %21871 = vmatprep.subr.bf16.mxu1 %v21870_v39  ;;  %v21890_v11 = vpack.c.bf16 %v10522_v31, %v10515_v47 }
 0xfe9   :  { %20134 = vmatmul.mubr.f32.vlgmr.msra.gmra.mrb[18].mxu1 %v24908_v44 }
 0xfea   :  { %20332 = vmatmul.mubr.f32.vlgmr.msra.gmra.mrb[20].mxu0 %v24908_v44  ;;  %21873 = vmatpush3.bf16.msra.mxu1 %v21870_v39 }
 0xfeb   :  { %20210 = vmatprep.mubr.f32.mxu1 %v24929_v12  ;;  %21875 = vmatprep.subr.bf16.mxu1 %v21874_v35  ;;  %v21902_v12 = vpack.c.bf16 %v10509_v55, %v10502_v10 }
 0xfee   :  { %21877 = vmatpush3.bf16.msra.mxu1 %v21874_v35 }
 0xfef   :  { %21879 = vmatprep.subr.bf16.mxu1 %v21878_v16 }
 0xff1   :  { %20211 = vmatmul.mubr.f32.vlgmr.msra.gmra.mrb[20].mxu1 %v24931_v25  ;;  %v21906_v25 = vpack.c.bf16 %v10523_v54, %v10516_v46 }
 0xff2   :  { %21881 = vmatpush3.bf16.msra.mxu1 %v21878_v16  ;;  %20221 = vmatprep.mubr.f32.mxu1 %v24911_v40 }
 0xff3   :  { %21883 = vmatprep.subr.bf16.mxu1 %v21882_v58 }
 0xff6   :  { %21885 = vmatpush3.bf16.msra.mxu1 %v21882_v58 }
 0xff7   :  { %21887 = vmatprep.subr.bf16.mxu1 %v21886_v62 }
 0xff9   :  { %20222 = vmatmul.mubr.f32.vlgmr.msra.gmra.mrb[20].mxu1 %v24908_v44 }
 0xffa   :  { %21889 = vmatpush3.bf16.msra.mxu1 %v21886_v62  ;;  %20232 = vmatprep.mubr.f32.mxu1 %v24917_v4 }
 0xffb   :  { %21891 = vmatprep.subr.bf16.mxu1 %v21890_v11 }
 0xffe   :  { %21893 = vmatpush3.bf16.msra.mxu1 %v21890_v11 }
 0xfff   :  { %21895 = vmatprep.subr.bf16.mxu1 %v21870_v39 }
0x1001   :  { %20233 = vmatmul.mubr.f32.vlgmr.msra.gmra.mrb[20].mxu1 %v24914_v14 }
0x1002   :  { %21897 = vmatpush3.bf16.msra.mxu1 %v21870_v39  ;;  %20243 = vmatprep.mubr.f32.mxu1 %v24923_v60 }
0x1003   :  { %21899 = vmatprep.subr.bf16.mxu1 %v21874_v35 }
0x1006   :  { %21901 = vmatpush3.bf16.msra.mxu1 %v21874_v35 }
0x1007   :  { %21903 = vmatprep.subr.bf16.mxu1 %v21902_v12 }
0x1009   :  { %20244 = vmatmul.mubr.f32.vlgmr.msra.gmra.mrb[20].mxu1 %v24920_v19 }
0x100a   :  { %21905 = vmatpush3.bf16.msra.mxu1 %v21902_v12  ;;  %20254 = vmatprep.mubr.f32.mxu1 %v24911_v40 }
0x100b   :  { %21907 = vmatprep.subr.bf16.mxu1 %v21906_v25 }
0x100e   :  { %21909 = vmatpush3.bf16.msra.mxu1 %v21906_v25 }
0x100f   :  { %21911 = vmatprep.subr.bf16.mxu1 %v21870_v39 }
0x1011   :  { %20255 = vmatmul.mubr.f32.vlgmr.msra.gmra.mrb[20].mxu1 %v24908_v44 }
0x1012   :  { %21913 = vmatpush3.bf16.msra.mxu1 %v21870_v39  ;;  %20265 = vmatprep.mubr.f32.mxu1 %v24911_v40  ;;  %v22977_v40 = vld [vmem:[#allocation8] sm:$0xff] }
0x1013   :  { %21915 = vmatprep.subr.bf16.mxu1 %v21874_v35 }
0x1016   :  { %21917 = vmatpush3.bf16.msra.mxu1 %v21874_v35 }
0x1019   :  { %20266 = vmatmul.mubr.f32.vlgmr.msra.gmra.mrb[20].mxu1 %v24908_v44 }
0x108c   :  { %v20069_v14 = vpop.f32.mrb[16].mxu1  ;;  %v20201_v4 = vpop.f32.mrb[18].mxu0 }
0x108d   :  { %v9321_v60 = vpop.f32.mrb[17].mxu1  ;;  %v10393_v22 = vpop.f32.mrb[19].mxu0  ;;  %v9332_v21 = vmul.f32 %v22974_v63, %v20069_v14  ;;  %v10404_v47 = vmul.f32 %v22974_v63, %v20201_v4 }
0x108e   :  { %v9331_v36 = vmul.f32 %v22976_v7, %v9321_v60  ;;  %v10403_v59 = vmul.f32 %v22976_v7, %v10393_v22 }
0x10bc   :  { %v20135_v19 = vpop.f32.mrb[18].mxu1 }
0x10bd   :  { %v9867_v17 = vmul.f32 %v22975_v20, %v20135_v19  ;;  %v25143_v49 = vpop.f32.mrb[20].mxu0  ;;  %v9856_v23 = vpop.f32.mrb[19].mxu1 }
0x10be   :  { %11480 = vst.msk [vmem:[#allocation4 + $0x8] sm:$0xff] %vm3049_vm1, %v25143_v49  ;;  %v9866_v29 = vmul.f32 %v22977_v40, %v9856_v23  ;;  %v25147_v44 = vpop.f32.mrb[21].mxu0 }
0x10bf   :  { %v25149_v38 = vadd.f32 %v9867_v17, %v9332_v21  ;;  %11479 = vst.msk [vmem:[#allocation4] sm:$0xff] %vm3049_vm1, %v25147_v44 }
0x10c0   :  { %v9868_v41 = vadd.f32 %v9866_v29, %v9331_v36 }
0x10c1   :  { %11476 = vst.msk [vmem:[#allocation2 + $0x8] sm:$0xff] %vm3049_vm1, %v25149_v38 }
0x10c2   :  { %11475 = vst.msk [vmem:[#allocation2] sm:$0xff] %vm3049_vm1, %v9868_v41 }
0x10c5   :  { %v11576_v24 = vld [vmem:[#allocation4 + $0x8] sm:$0xff] }
0x10c6   :  { %v11575_v26 = vld [vmem:[#allocation4] sm:$0xff]  ;;  %v12585_v8 = vand.u32 4294901760, %v11576_v24 }
0x10c7   :  { %v12582_v6 = vand.u32 4294901760, %v11575_v26 }
0x10c8   :  { %v12743_v33 = vsub.f32 %v11576_v24, %v12585_v8 }
0x10c9   :  { %v25156_v48 = vpack.c.bf16 %v12585_v8, %v12582_v6  ;;  %v11559_v53 = vld [vmem:[#allocation2] sm:$0xff]  ;;  %v12736_v43 = vsub.f32 %v11575_v26, %v12582_v6 }
0x10ca   :  { %v11584_v56 = vsel %vm3049_vm1, %v11559_v53, 0  ;;  %v12744_v61 = vand.u32 4294901760, %v12743_v33 }
0x10cb   :  { %22063 = vmatprep.subr.bf16.mxu0 %v25156_v48  ;;  %v25160_v5 = vand.u32 4294901760, %v11584_v56  ;;  %v12737_v13 = vand.u32 4294901760, %v12736_v43  ;;  %v25162_v15 = vpack.c.bf16 %v12743_v33, %v12736_v43 }
0x10cc   :  { %22065 = vmatpush3.bf16.msra.mxu0 %v25156_v48  ;;  %v12745_v34 = vsub.f32 %v12743_v33, %v12744_v61 }
0x10cd   :  { %v25166_v50 = vsub.f32 %v11584_v56, %v25160_v5  ;;  %v12738_v51 = vsub.f32 %v12736_v43, %v12737_v13  ;;  %v25168_v0 = vpack.c.bf16 %v12744_v61, %v12737_v13 }
0x10ce   :  { %v12746_v2 = vand.u32 4294901760, %v12745_v34  ;;  %v11560_v34 = vld [vmem:[#allocation2 + $0x8] sm:$0xff] }
0x10cf   :  { %v11706_v32 = vand.u32 4294901760, %v25166_v50  ;;  %v12739_v18 = vand.u32 4294901760, %v12738_v51 }
0x10d1   :  { %v11707_v3 = vsub.f32 %v25166_v50, %v11706_v32  ;;  %v25174_v9 = vpack.c.bf16 %v12746_v2, %v12739_v18 }
0x10d3   :  { %v11708_v10 = vand.u32 4294901760, %v11707_v3 }
0x10d5   :  { %20350 = vmatprep.mubr.f32.mxu1 %v11708_v10 }
0x10ec   :  { %v20267_v55 = vpop.f32.mrb[20].mxu1 }
0x10ed   :  { %v10939_v31 = vmul.f32 %v22975_v20, %v20267_v55  ;;  %v10928_v39 = vpop.f32.mrb[21].mxu1 }
0x10ee   :  { %v10938_v1 = vmul.f32 %v22977_v40, %v10928_v39 }
0x10ef   :  { %v10941_v46 = vadd.f32 %v10939_v31, %v10404_v47 }
0x10f0   :  { %v10940_v54 = vadd.f32 %v10938_v1, %v10403_v59  ;;  %v11587_v59 = vsel %vm3049_vm1, %v11560_v34, 0 }
0x10f1   :  { %11478 = vst.msk [vmem:[#allocation3 + $0x8] sm:$0xff] %vm3049_vm1, %v10941_v46  ;;  %11495 = vrot.lane.b32.xlu0 %v10941_v46, %s23352_s3 }
0x10f2   :  { %11477 = vst.msk [vmem:[#allocation3] sm:$0xff] %vm3049_vm1, %v10940_v54  ;;  %11493 = vrot.lane.b32.xlu1 %v10940_v54, %s23352_s3 }
0x10f5   :  { %11543 = vrot.lane.b32.xlu0 %v10940_v54, %s23353_s2 }
0x10f6   :  { %11519 = vrot.lane.b32.xlu1 %v10940_v54, %s23354_s4 }
0x10f8   :  { %v11568_v35 = vld [vmem:[#allocation3 + $0x8] sm:$0xff] }
0x10f9   :  { %11483 = vrot.lane.b32.xlu0 %v9868_v41, %s23352_s3  ;;  %v11567_v30 = vld [vmem:[#allocation3] sm:$0xff]  ;;  %v11611_v27 = vsel %vm3049_vm1, %v11568_v35, 0 }
0x10fa   :  { %11521 = vrot.lane.b32.xlu1 %v10941_v46, %s23354_s4  ;;  %v11608_v52 = vsel %vm3049_vm1, %v11567_v30, 0  ;;  %v11635_v57 = vand.u32 4294901760, %v11611_v27 }
0x10fb   :  { %v11632_v16 = vand.u32 4294901760, %v11608_v52 }
0x10fc   :  { %v11793_v37 = vsub.f32 %v11611_v27, %v11635_v57 }
0x10fd   :  { %11511 = vrot.lane.b32.xlu0 %v9868_v41, %s23354_s4  ;;  %v25187_v42 = vpack.c.bf16 %v11635_v57, %v11632_v16  ;;  %v11786_v58 = vsub.f32 %v11608_v52, %v11632_v16  ;;  %v25236_v57 = vand.u32 4294901760, %v11587_v59 }
0x10fe   :  { %11545 = vrot.lane.b32.xlu1 %v10941_v46, %s23353_s2  ;;  %v11794_v62 = vand.u32 4294901760, %v11793_v37 }
0x10ff   :  { %21967 = vmatprep.subr.bf16.mxu1 %v25187_v42  ;;  %v11787_v11 = vand.u32 4294901760, %v11786_v58  ;;  %v25191_v12 = vpack.c.bf16 %v11793_v37, %v11786_v58 }
0x1100   :  { %21969 = vmatpush3.bf16.xpose.msra.mxu1 %v25187_v42  ;;  %v11795_v25 = vsub.f32 %v11793_v37, %v11794_v62 }
0x1101   :  { %11535 = vrot.lane.b32.xlu0 %v9868_v41, %s23353_s2  ;;  %v11788_v14 = vsub.f32 %v11786_v58, %v11787_v11  ;;  %v25195_v4 = vpack.c.bf16 %v11794_v62, %v11787_v11 }
0x1102   :  { %11485 = vrot.lane.b32.xlu1 %v25149_v38, %s23352_s3  ;;  %v11796_v60 = vand.u32 4294901760, %v11795_v25 }
0x1103   :  { %v11789_v22 = vand.u32 4294901760, %v11788_v14 }
0x1105   :  { %v25199_v19 = vpack.c.bf16 %v11796_v60, %v11789_v22 }
0x1106   :  { %11513 = vrot.lane.b32.xlu1 %v25149_v38, %s23354_s4 }
0x110a   :  { %11537 = vrot.lane.b32.xlu1 %v25149_v38, %s23353_s2 }
0x1163   :  { %v11496_v63 = vpop.permute.xlu0 %11495 }
0x1164   :  { %11500 = vst.msk [vmem:[#allocation3 + $0x18] sm:$0xff] %vm3049_vm1, %v11496_v63  ;;  %v11494_v21 = vpop.permute.xlu1 %11493 }
0x1165   :  { %11499 = vst.msk [vmem:[#allocation3 + $0x10] sm:$0xff] %vm3049_vm1, %v11494_v21 }
0x1167   :  { %v11544_v20 = vpop.permute.xlu0 %11543 }
0x1168   :  { %11549 = vst.msk [vmem:[#allocation3 + $0x30] sm:$0xff] %vm3049_vm1, %v11544_v20  ;;  %v11520_v17 = vpop.permute.xlu1 %11519  ;;  %v25255_v20 = vsub.f32 %v11587_v59, %v25236_v57 }
0x1169   :  { %11525 = vst.msk [vmem:[#allocation3 + $0x20] sm:$0xff] %vm3049_vm1, %v11520_v17 }
0x116b   :  { %v11484_v23 = vpop.permute.xlu0 %11483  ;;  %v11570_v7 = vld [vmem:[#allocation3 + $0x18] sm:$0xff] }
0x116c   :  { %11489 = vst.msk [vmem:[#allocation2 + $0x10] sm:$0xff] %vm3049_vm1, %v11484_v23  ;;  %v11522_v36 = vpop.permute.xlu1 %11521  ;;  %v11569_v40 = vld [vmem:[#allocation3 + $0x10] sm:$0xff]  ;;  %v11617_v29 = vsel %vm3049_vm1, %v11570_v7, 0 }
0x116d   :  { %11526 = vst.msk [vmem:[#allocation3 + $0x28] sm:$0xff] %vm3049_vm1, %v11522_v36  ;;  %v11614_v38 = vsel %vm3049_vm1, %v11569_v40, 0  ;;  %v11641_v41 = vand.u32 4294901760, %v11617_v29 }
0x116e   :  { %v11638_v24 = vand.u32 4294901760, %v11614_v38 }
0x116f   :  { %v11512_v26 = vpop.permute.xlu0 %11511  ;;  %v25213_v8 = vsub.f32 %v11617_v29, %v11641_v41  ;;  %v11573_v43 = vld [vmem:[#allocation3 + $0x30] sm:$0xff] }
0x1170   :  { %11517 = vst.msk [vmem:[#allocation2 + $0x20] sm:$0xff] %vm3049_vm1, %v11512_v26  ;;  %v11546_v6 = vpop.permute.xlu1 %11545  ;;  %v25216_v33 = vpack.c.bf16 %v11641_v41, %v11638_v24  ;;  %v11571_v53 = vld [vmem:[#allocation3 + $0x20] sm:$0xff]  ;;  %v25218_v56 = vsub.f32 %v11614_v38, %v11638_v24  ;;  %v11626_v18 = vsel %vm3049_vm1, %v11573_v43, 0 }
0x1171   :  { %11550 = vst.msk [vmem:[#allocation3 + $0x38] sm:$0xff] %vm3049_vm1, %v11546_v6  ;;  %v11808_v61 = vand.u32 4294901760, %v25213_v8  ;;  %v11620_v13 = vsel %vm3049_vm1, %v11571_v53, 0  ;;  %v11650_v46 = vand.u32 4294901760, %v11626_v18  ;;  %v11716_v53 = vand.u32 4294901760, %v25255_v20 }
0x1172   :  { %21971 = vmatprep.subr.bf16.mxu1 %v25216_v33  ;;  %v11801_v51 = vand.u32 4294901760, %v25218_v56  ;;  %v11644_v39 = vand.u32 4294901760, %v11620_v13 }
0x1173   :  { %21973 = vmatpush3.bf16.xpose.msra.mxu1 %v25216_v33  ;;  %v11536_v2 = vpop.permute.xlu0 %11535  ;;  %v11561_v3 = vld [vmem:[#allocation2 + $0x10] sm:$0xff]  ;;  %v25248_v14 = vsub.f32 %v11626_v18, %v11650_v46  ;;  %v11717_v59 = vsub.f32 %v25255_v20, %v11716_v53 }
0x1174   :  { %11541 = vst.msk [vmem:[#allocation2 + $0x30] sm:$0xff] %vm3049_vm1, %v11536_v2  ;;  %v11486_v10 = vpop.permute.xlu1 %11485  ;;  %v11572_v55 = vld [vmem:[#allocation3 + $0x28] sm:$0xff]  ;;  %v25228_v47 = vpack.c.bf16 %v11808_v61, %v11801_v51  ;;  %v11590_v54 = vsel %vm3049_vm1, %v11561_v3, 0  ;;  %v25242_v58 = vsub.f32 %v11620_v13, %v11644_v39 }
0x1175   :  { %11490 = vst.msk [vmem:[#allocation2 + $0x18] sm:$0xff] %vm3049_vm1, %v11486_v10  ;;  %v11623_v31 = vsel %vm3049_vm1, %v11572_v55, 0  ;;  %v25240_v37 = vand.u32 4294901760, %v11590_v54  ;;  %v11829_v24 = vand.u32 4294901760, %v25248_v14  ;;  %v11802_v55 = vsub.f32 %v25218_v56, %v11801_v51 }
0x1176   :  { %v11647_v1 = vand.u32 4294901760, %v11623_v31  ;;  %v11815_v29 = vand.u32 4294901760, %v25242_v58 }
0x1177   :  { %v11563_v35 = vld [vmem:[#allocation2 + $0x20] sm:$0xff]  ;;  %v25261_v7 = vsub.f32 %v11590_v54, %v25240_v37 }
0x1178   :  { %v11514_v30 = vpop.permute.xlu1 %11513  ;;  %v25234_v27 = vpack.c.bf16 %v11647_v1, %v11644_v39  ;;  %v11574_v52 = vld [vmem:[#allocation3 + $0x38] sm:$0xff]  ;;  %v25244_v62 = vsub.f32 %v11623_v31, %v11647_v1  ;;  %v11596_v25 = vsel %vm3049_vm1, %v11563_v35, 0  ;;  %v11809_v31 = vsub.f32 %v25213_v8, %v11808_v61 }
0x1179   :  { %11518 = vst.msk [vmem:[#allocation2 + $0x28] sm:$0xff] %vm3049_vm1, %v11514_v30  ;;  %v11629_v16 = vsel %vm3049_vm1, %v11574_v52, 0  ;;  %v25264_v40 = vand.u32 4294901760, %v11596_v25  ;;  %v11726_v2 = vand.u32 4294901760, %v25261_v7  ;;  %v11803_v52 = vand.u32 4294901760, %v11802_v55 }
0x117a   :  { %21975 = vmatprep.subr.bf16.mxu1 %v25234_v27  ;;  %v11653_v11 = vand.u32 4294901760, %v11629_v16  ;;  %v11822_v22 = vand.u32 4294901760, %v25244_v62 }
0x117b   :  { %21977 = vmatpush3.bf16.xpose.msra.mxu1 %v25234_v27  ;;  %v11565_v60 = vld [vmem:[#allocation2 + $0x30] sm:$0xff]  ;;  %v25283_v18 = vsub.f32 %v11596_v25, %v25264_v40  ;;  %v11727_v61 = vsub.f32 %v25261_v7, %v11726_v2  ;;  %v11718_v25 = vand.u32 4294901760, %v11717_v59 }
0x117c   :  { %v11538_v63 = vpop.permute.xlu1 %11537  ;;  %v25252_v21 = vpack.c.bf16 %v11653_v11, %v11650_v46  ;;  %v11562_v17 = vld [vmem:[#allocation2 + $0x18] sm:$0xff]  ;;  %v25257_v23 = vsub.f32 %v11629_v16, %v11653_v11  ;;  %v11602_v41 = vsel %vm3049_vm1, %v11565_v60, 0  ;;  %v25273_v6 = vpack.c.bf16 %v11822_v22, %v11815_v29 }
0x117d   :  { %11542 = vst.msk [vmem:[#allocation2 + $0x38] sm:$0xff] %vm3049_vm1, %v11538_v63  ;;  %v11593_v36 = vsel %vm3049_vm1, %v11562_v17, 0  ;;  %v25286_v10 = vand.u32 4294901760, %v11602_v41  ;;  %v11746_v51 = vand.u32 4294901760, %v25283_v18  ;;  %v11810_v16 = vand.u32 4294901760, %v11809_v31 }
0x117e   :  { %21979 = vmatprep.subr.bf16.mxu1 %v25252_v21  ;;  %v25268_v38 = vand.u32 4294901760, %v11593_v36  ;;  %v11836_v26 = vand.u32 4294901760, %v25257_v23  ;;  %v11823_v55 = vsub.f32 %v25244_v62, %v11822_v22 }
0x117f   :  { %v25306_v35 = vsub.f32 %v11602_v41, %v25286_v10  ;;  %v11747_v41 = vsub.f32 %v25283_v18, %v11746_v51 }
0x1180   :  { %v25277_v43 = vsub.f32 %v11593_v36, %v25268_v38  ;;  %v11564_v13 = vld [vmem:[#allocation2 + $0x28] sm:$0xff]  ;;  %v25279_v34 = vpack.c.bf16 %v11836_v26, %v11829_v24  ;;  %v11728_v36 = vand.u32 4294901760, %v11727_v61  ;;  %v11824_v22 = vand.u32 4294901760, %v11823_v55 }
0x1181   :  { %v11599_v3 = vsel %vm3049_vm1, %v11564_v13, 0  ;;  %v26017_v13 = vand.u32 4294901760, %v25306_v35 }
0x1182   :  { %v25290_v39 = vand.u32 4294901760, %v11599_v3  ;;  %v11736_v1 = vand.u32 4294901760, %v25277_v43 }
0x1183   :  { %21981 = vmatpush3.bf16.xpose.msra.mxu1 %v25252_v21 }
0x1184   :  { %21983 = vmatprep.subr.bf16.mxu1 %v25199_v19  ;;  %v25299_v46 = vsub.f32 %v11599_v3, %v25290_v39  ;;  %v11566_v54 = vld [vmem:[#allocation2 + $0x38] sm:$0xff]  ;;  %v11737_v60 = vsub.f32 %v25277_v43, %v11736_v1  ;;  %v21986_v3 = vpack.c.bf16 %v11810_v16, %v11803_v52  ;;  %v11767_v52 = vsub.f32 %v25306_v35, %v26017_v13 }
0x1185   :  { %v11605_v30 = vsel %vm3049_vm1, %v11566_v54, 0  ;;  %v11816_v54 = vsub.f32 %v25242_v58, %v11815_v29  ;;  %v11837_v29 = vsub.f32 %v25257_v23, %v11836_v26  ;;  %v11830_v13 = vsub.f32 %v25248_v14, %v11829_v24 }
0x1186   :  { %v25309_v11 = vand.u32 4294901760, %v11605_v30  ;;  %v11756_v63 = vand.u32 4294901760, %v25299_v46  ;;  %v11738_v31 = vand.u32 4294901760, %v11737_v60  ;;  %v11768_v60 = vand.u32 4294901760, %v11767_v52 }
0x1187   :  { %v11838_v55 = vand.u32 4294901760, %v11837_v29  ;;  %v22002_v26 = vpack.c.bf16 %v25213_v8, %v25218_v56  ;;  %v22006_v24 = vpack.c.bf16 %v25244_v62, %v25242_v58  ;;  %v22979_v8 = vld [vmem:[%s26041_s25] sm:$0xff]  ;;  %v22981_v62 = vld [vmem:[%s26041_s25 + $0x18] sm:$0xff] }
0x1188   :  { %v25316_v17 = vsub.f32 %v11605_v30, %v25309_v11  ;;  %v11757_v59 = vsub.f32 %v25299_v46, %v11756_v63  ;;  %v11748_v30 = vand.u32 4294901760, %v11747_v41 }
0x118a   :  { %20351 = vmatmul.mubr.f32.vlgmr.msra.gmra.mrb[22].mxu1 %v11718_v25  ;;  %v11776_v61 = vand.u32 4294901760, %v25316_v17  ;;  %v11758_v16 = vand.u32 4294901760, %v11757_v59 }
0x118b   :  { %20353 = vmatprep.mubr.f32.mxu1 %v11728_v36  ;;  %21985 = vmatpush3.bf16.xpose.msra.mxu1 %v25199_v19  ;;  %v11817_v19 = vand.u32 4294901760, %v11816_v54 }
0x118c   :  { %21987 = vmatprep.subr.bf16.mxu1 %v21986_v3  ;;  %v11777_v25 = vsub.f32 %v25316_v17, %v11776_v61 }
0x118d   :  { %v21990_v36 = vpack.c.bf16 %v11824_v22, %v11817_v19 }
0x118e   :  { %20354 = vmatmul.mubr.f32.gmra.mrb[24].mxu1 %v11738_v31  ;;  %v11778_v41 = vand.u32 4294901760, %v11777_v25  ;;  %v11831_v31 = vand.u32 4294901760, %v11830_v13 }
0x118f   :  { %20356 = vmatprep.mubr.f32.mxu1 %v11748_v30 }
0x1190   :  { %v21994_v59 = vpack.c.bf16 %v11838_v55, %v11831_v31 }
0x1192   :  { %20357 = vmatmul.mubr.f32.gmra.mrb[26].mxu1 %v11758_v16 }
0x1193   :  { %20359 = vmatprep.mubr.f32.mxu1 %v11768_v60  ;;  %21989 = vmatpush3.bf16.xpose.msra.mxu1 %v21986_v3 }
0x1194   :  { %21991 = vmatprep.subr.bf16.mxu1 %v21990_v36 }
0x1196   :  { %20360 = vmatmul.mubr.f32.gmra.mrb[28].mxu1 %v11778_v41 }
0x1197   :  { %20378 = vmatprep.mubr.f32.mxu1 %v25160_v5 }
0x119b   :  { %21993 = vmatpush3.bf16.xpose.msra.mxu1 %v21990_v36 }
0x119c   :  { %21995 = vmatprep.subr.bf16.mxu1 %v21994_v59 }
0x11a3   :  { %21997 = vmatpush3.bf16.xpose.msra.mxu1 %v21994_v59 }
0x11a4   :  { %21999 = vmatprep.subr.bf16.mxu1 %v25191_v12 }
0x11aa   :  { %20379 = vmatmul.mubr.f32.vlgmr.msra.gmra.mrb[22].mxu1 %v25236_v57 }
0x11ab   :  { %20381 = vmatprep.mubr.f32.mxu1 %v25240_v37  ;;  %22001 = vmatpush3.bf16.xpose.msra.mxu1 %v25191_v12  ;;  %v22010_v12 = vpack.c.bf16 %v25257_v23, %v25248_v14 }
0x11ac   :  { %22003 = vmatprep.subr.bf16.mxu1 %v22002_v26 }
0x11ae   :  { %20382 = vmatmul.mubr.f32.gmra.mrb[24].mxu1 %v25268_v38 }
0x11af   :  { %20384 = vmatprep.mubr.f32.mxu1 %v25264_v40 }
0x11b2   :  { %20385 = vmatmul.mubr.f32.gmra.mrb[26].mxu1 %v25290_v39 }
0x11b3   :  { %20387 = vmatprep.mubr.f32.mxu1 %v25286_v10  ;;  %22005 = vmatpush3.bf16.xpose.msra.mxu1 %v22002_v26 }
0x11b4   :  { %22007 = vmatprep.subr.bf16.mxu1 %v22006_v24 }
0x11b6   :  { %20388 = vmatmul.mubr.f32.gmra.mrb[28].mxu1 %v25309_v11 }
0x11b7   :  { %20406 = vmatprep.mubr.f32.mxu1 %v25166_v50  ;;  %v26042_v50 = vand.u32 4294901760, %v25306_v35 }
0x11bb   :  { %22009 = vmatpush3.bf16.xpose.msra.mxu1 %v22006_v24 }
0x11bc   :  { %22011 = vmatprep.subr.bf16.mxu1 %v22010_v12 }
0x11c3   :  { %22013 = vmatpush3.bf16.xpose.msra.mxu1 %v22010_v12 }
0x11c4   :  { %22015 = vmatprep.subr.bf16.mxu1 %v25187_v42 }
0x11ca   :  { %20407 = vmatmul.mubr.f32.vlgmr.msra.gmra.mrb[22].mxu1 %v25255_v20 }
0x11cb   :  { %20409 = vmatprep.mubr.f32.mxu1 %v25261_v7  ;;  %22017 = vmatpush3.bf16.xpose.msra.mxu1 %v25187_v42  ;;  %v22982_v7 = vld [vmem:[%s26041_s25 + $0x20] sm:$0xff] }
0x11cc   :  { %22019 = vmatprep.subr.bf16.mxu1 %v25216_v33 }
0x11ce   :  { %20410 = vmatmul.mubr.f32.gmra.mrb[24].mxu1 %v25277_v43 }
0x11cf   :  { %20412 = vmatprep.mubr.f32.mxu1 %v25283_v18  ;;  %v22984_v18 = vld [vmem:[%s26041_s25 + $0x38] sm:$0xff] }
0x11d2   :  { %20413 = vmatmul.mubr.f32.gmra.mrb[26].mxu1 %v25299_v46  ;;  %v22985_v46 = vld [vmem:[%s26041_s25 + $0x30] sm:$0xff] }
0x11d3   :  { %20415 = vmatprep.mubr.f32.mxu1 %v25306_v35  ;;  %22021 = vmatpush3.bf16.xpose.msra.mxu1 %v25216_v33 }
0x11d4   :  { %22023 = vmatprep.subr.bf16.mxu1 %v25234_v27 }
0x11d6   :  { %20416 = vmatmul.mubr.f32.gmra.mrb[28].mxu1 %v25316_v17 }
0x11d7   :  { %20434 = vmatprep.mubr.f32.mxu1 %v11706_v32  ;;  %v22978_v32 = vld [vmem:[%s26041_s25 + $0x8] sm:$0xff] }
0x11db   :  { %22025 = vmatpush3.bf16.xpose.msra.mxu1 %v25234_v27 }
0x11dc   :  { %22027 = vmatprep.subr.bf16.mxu1 %v25252_v21 }
0x11e3   :  { %22029 = vmatpush3.bf16.xpose.msra.mxu1 %v25252_v21 }
0x11e4   :  { %22031 = vmatprep.subr.bf16.mxu1 %v25195_v4 }
0x11ea   :  { %20435 = vmatmul.mubr.f32.vlgmr.msra.gmra.mrb[22].mxu1 %v11716_v53 }
0x11eb   :  { %20437 = vmatprep.mubr.f32.mxu1 %v11726_v2  ;;  %22033 = vmatpush3.bf16.xpose.msra.mxu1 %v25195_v4 }
0x11ec   :  { %22035 = vmatprep.subr.bf16.mxu1 %v25228_v47 }
0x11ee   :  { %20438 = vmatmul.mubr.f32.gmra.mrb[24].mxu1 %v11736_v1 }
0x11ef   :  { %20440 = vmatprep.mubr.f32.mxu1 %v11746_v51 }
0x11f2   :  { %20441 = vmatmul.mubr.f32.gmra.mrb[26].mxu1 %v11756_v63 }
0x11f3   :  { %20443 = vmatprep.mubr.f32.mxu1 %v26042_v50  ;;  %22037 = vmatpush3.bf16.xpose.msra.mxu1 %v25228_v47 }
0x11f4   :  { %22039 = vmatprep.subr.bf16.mxu1 %v25273_v6 }
0x11f6   :  { %20444 = vmatmul.mubr.f32.gmra.mrb[28].mxu1 %v11776_v61 }
0x11f7   :  { %20462 = vmatprep.mubr.f32.mxu1 %v25160_v5 }
0x11fb   :  { %22041 = vmatpush3.bf16.xpose.msra.mxu1 %v25273_v6 }
0x11fc   :  { %22043 = vmatprep.subr.bf16.mxu1 %v25279_v34 }
0x1203   :  { %22045 = vmatpush3.bf16.xpose.msra.mxu1 %v25279_v34 }
0x1204   :  { %22047 = vmatprep.subr.bf16.mxu1 %v25187_v42 }
0x120a   :  { %20463 = vmatmul.mubr.f32.vlgmr.msra.gmra.mrb[22].mxu1 %v25236_v57 }
0x120b   :  { %20465 = vmatprep.mubr.f32.mxu1 %v25240_v37  ;;  %22049 = vmatpush3.bf16.xpose.msra.mxu1 %v25187_v42 }
0x120c   :  { %22051 = vmatprep.subr.bf16.mxu1 %v25216_v33 }
0x120e   :  { %20466 = vmatmul.mubr.f32.gmra.mrb[24].mxu1 %v25268_v38 }
0x120f   :  { %20468 = vmatprep.mubr.f32.mxu1 %v25264_v40 }
0x1212   :  { %20469 = vmatmul.mubr.f32.gmra.mrb[26].mxu1 %v25290_v39 }
0x1213   :  { %20471 = vmatprep.mubr.f32.mxu1 %v25286_v10  ;;  %22053 = vmatpush3.bf16.xpose.msra.mxu1 %v25216_v33 }
0x1214   :  { %22055 = vmatprep.subr.bf16.mxu1 %v25234_v27 }
0x1216   :  { %20472 = vmatmul.mubr.f32.gmra.mrb[28].mxu1 %v25309_v11 }
0x1217   :  { %20490 = vmatprep.mubr.f32.mxu1 %v25160_v5 }
0x121b   :  { %22057 = vmatpush3.bf16.xpose.msra.mxu1 %v25234_v27 }
0x121c   :  { %22059 = vmatprep.subr.bf16.mxu1 %v25252_v21 }
0x1223   :  { %22061 = vmatpush3.bf16.xpose.msra.mxu1 %v25252_v21 }
0x122a   :  { %20491 = vmatmul.mubr.f32.vlgmr.msra.gmra.mrb[22].mxu1 %v25236_v57 }
0x122b   :  { %20493 = vmatprep.mubr.f32.mxu1 %v25240_v37  ;;  %v22980_v37 = vld [vmem:[%s26041_s25 + $0x10] sm:$0xff] }
0x122e   :  { %20494 = vmatmul.mubr.f32.gmra.mrb[24].mxu1 %v25268_v38  ;;  %v22983_v38 = vld [vmem:[%s26041_s25 + $0x28] sm:$0xff] }
0x122f   :  { %20496 = vmatprep.mubr.f32.mxu1 %v25264_v40 }
0x1232   :  { %20497 = vmatmul.mubr.f32.gmra.mrb[26].mxu1 %v25290_v39 }
0x1233   :  { %20499 = vmatprep.mubr.f32.mxu1 %v25286_v10 }
0x1236   :  { %20500 = vmatmul.mubr.f32.gmra.mrb[28].mxu1 %v25309_v11 }
0x12fd   :  { %v20492_v5 = vpop.f32.mrb[22].mxu1 }
0x12fe   :  { %v22414_v42 = vadd.f32 %v22978_v32, %v20492_v5  ;;  %v12423_v4 = vpop.f32.mrb[23].mxu1 }
0x12ff   :  { %v22415_v33 = vadd.f32 %v22979_v8, %v12423_v4 }
0x1300   :  { %v12472_v56 = vsel %vm4044_vm2, %v22414_v42, -inf }
0x1301   :  { %12473 = vmax.xlane.f32.xlu1 %v12472_v56  ;;  %v20495_v47 = vpop.f32.mrb[24].mxu1  ;;  %v12469_v27 = vsel %vm4044_vm2, %v22415_v33, -inf }
0x1302   :  { %v12435_v57 = vpop.f32.mrb[25].mxu1  ;;  %12470 = vmax.xlane.f32.xlu0 %v12469_v27  ;;  %v22416_v14 = vadd.f32 %v22981_v62, %v20495_v47 }
0x1303   :  { %v22417_v58 = vadd.f32 %v22980_v37, %v12435_v57 }
0x1304   :  { %v12478_v34 = vsel %vm4044_vm2, %v22416_v14, -inf }
0x1305   :  { %v20498_v21 = vpop.f32.mrb[26].mxu1  ;;  %v12475_v20 = vsel %vm4044_vm2, %v22417_v58, -inf }
0x1306   :  { %v12447_v23 = vpop.f32.mrb[27].mxu1  ;;  %12476 = vmax.xlane.f32.xlu0 %v12475_v20  ;;  %v22418_v6 = vadd.f32 %v22983_v38, %v20498_v21 }
0x1307   :  { %v22419_v40 = vadd.f32 %v22982_v7, %v12447_v23 }
0x1308   :  { %v12484_v39 = vsel %vm4044_vm2, %v22418_v6, -inf }
0x1309   :  { %v20501_v53 = vpop.f32.mrb[28].mxu1  ;;  %v12481_v43 = vsel %vm4044_vm2, %v22419_v40, -inf }
0x130a   :  { %v12459_v2 = vpop.f32.mrb[29].mxu1  ;;  %12482 = vmax.xlane.f32.xlu1 %v12481_v43  ;;  %12479 = vmax.xlane.f32.xlu0 %v12478_v34  ;;  %v22420_v10 = vadd.f32 %v22984_v18, %v20501_v53 }
0x130b   :  { %v25454_v51 = vadd.f32 %v22985_v46, %v12459_v2 }
0x130c   :  { %v12490_v1 = vsel %vm4044_vm2, %v22420_v10, -inf }
0x130d   :  { %v12487_v35 = vsel %vm4044_vm2, %v25454_v51, -inf }
0x130e   :  { %12485 = vmax.xlane.f32.xlu0 %v12484_v39 }
0x1312   :  { %12491 = vmax.xlane.f32.xlu0 %v12490_v1 }
0x131b   :  { %11503 = vrot.lane.b32.xlu1 %v25147_v44, %s23352_s3 }
0x131f   :  { %11527 = vrot.lane.b32.xlu1 %v25147_v44, %s23354_s4 }
0x1328   :  { %11505 = vrot.lane.b32.xlu0 %v25143_v49, %s23352_s3 }
0x1343   :  { %12488 = vmax.xlane.f32.xlu1 %v12487_v35 }
0x1354   :  { %11529 = vrot.lane.b32.xlu1 %v25143_v49, %s23354_s4 }
0x138e   :  { %v12474_v11 = vpop.xlane.xlu1 %12473 }
0x138f   :  { %v12494_v63 = vsub.f32 %v22414_v42, %v12474_v11  ;;  %v12471_v17 = vpop.xlane.xlu0 %12470 }
0x1390   :  { %v12493_v13 = vsub.f32 %v22415_v33, %v12471_v17 }
0x1391   :  { %v12503_v3 = vmul.f32 1.442695, %v12494_v63 }
0x1392   :  { %v12501_v54 = vmul.f32 1.442695, %v12493_v13 }
0x1393   :  { %22930 = vpow2.f32 %v12503_v3  ;;  %v12477_v61 = vpop.xlane.xlu0 %12476 }
0x1394   :  { %22932 = vpow2.f32 %v12501_v54  ;;  %v12495_v30 = vsub.f32 %v22417_v58, %v12477_v61 }
0x1396   :  { %v12505_v52 = vmul.f32 1.442695, %v12495_v30 }
0x1397   :  { %v12483_v22 = vpop.xlane.xlu1 %12482  ;;  %v12480_v16 = vpop.xlane.xlu0 %12479 }
0x1398   :  { %22934 = vpow2.f32 %v12505_v52  ;;  %v12497_v19 = vsub.f32 %v22419_v40, %v12483_v22  ;;  %v12496_v25 = vsub.f32 %v22416_v14, %v12480_v16 }
0x139a   :  { %v12509_v60 = vmul.f32 1.442695, %v12497_v19  ;;  %v12507_v36 = vmul.f32 1.442695, %v12496_v25 }
0x139b   :  { %v11504_v29 = vpop.permute.xlu1 %11503  ;;  %v12486_v41 = vpop.xlane.xlu0 %12485 }
0x139c   :  { %22936 = vpow2.f32 %v12509_v60  ;;  %11509 = vst.msk [vmem:[#allocation4 + $0x10] sm:$0xff] %vm3049_vm1, %v11504_v29  ;;  %v12498_v55 = vsub.f32 %v22418_v6, %v12486_v41 }
0x139d   :  { %v25461_v31 = vpop.eup %22930  ;;  %22938 = vpow2.f32 %v12507_v36 }
0x139e   :  { %v25463_v59 = vpop.eup %22932  ;;  %v12511_v26 = vmul.f32 1.442695, %v12498_v55  ;;  %v12520_v24 = vsel %vm4044_vm2, %v25461_v31, 0.0 }
0x139f   :  { %v11528_v12 = vpop.permute.xlu1 %11527  ;;  %12521 = vadd.xlane.f32.xlu0 %v12520_v24  ;;  %v12492_v50 = vpop.xlane.xlu0 %12491  ;;  %v12517_v5 = vsel %vm4044_vm2, %v25463_v59, 0.0 }
0x13a0   :  { %22940 = vpow2.f32 %v12511_v26  ;;  %11533 = vst.msk [vmem:[#allocation4 + $0x20] sm:$0xff] %vm3049_vm1, %v11528_v12  ;;  %v12500_v32 = vsub.f32 %v22420_v10, %v12492_v50  ;;  %12518 = vadd.xlane.f32.xlu1 %v12517_v5 }
0x13a2   :  { %v25470_v42 = vpop.eup %22934  ;;  %v12515_v4 = vmul.f32 1.442695, %v12500_v32 }
0x13a3   :  { %v11506_v8 = vpop.permute.xlu0 %11505  ;;  %v12523_v33 = vsel %vm4044_vm2, %v25470_v42, 0.0  ;;  %v11577_v56 = vld [vmem:[#allocation4 + $0x10] sm:$0xff] }
0x13a4   :  { %22942 = vpow2.f32 %v12515_v4  ;;  %11510 = vst.msk [vmem:[#allocation4 + $0x18] sm:$0xff] %vm3049_vm1, %v11506_v8  ;;  %12524 = vadd.xlane.f32.xlu1 %v12523_v33  ;;  %v12588_v47 = vand.u32 4294901760, %v11577_v56 }
0x13a6   :  { %v25475_v27 = vpop.eup %22936  ;;  %v12750_v57 = vsub.f32 %v11577_v56, %v12588_v47 }
0x13a7   :  { %v25477_v37 = vpop.eup %22938  ;;  %v12529_v58 = vsel %vm4044_vm2, %v25475_v27, 0.0  ;;  %v11579_v62 = vld [vmem:[#allocation4 + $0x20] sm:$0xff] }
0x13a8   :  { %12530 = vadd.xlane.f32.xlu1 %v12529_v58  ;;  %v12526_v14 = vsel %vm4044_vm2, %v25477_v37, 0.0  ;;  %v12594_v21 = vand.u32 4294901760, %v11579_v62  ;;  %v12751_v6 = vand.u32 4294901760, %v12750_v57 }
0x13a9   :  { %12527 = vadd.xlane.f32.xlu0 %v12526_v14 }
0x13aa   :  { %v25483_v20 = vpop.eup %22940  ;;  %v12764_v23 = vsub.f32 %v11579_v62, %v12594_v21  ;;  %v12752_v18 = vsub.f32 %v12750_v57, %v12751_v6 }
0x13ab   :  { %v12532_v7 = vsel %vm4044_vm2, %v25483_v20, 0.0  ;;  %v11578_v40 = vld [vmem:[#allocation4 + $0x18] sm:$0xff] }
0x13ac   :  { %v12591_v38 = vand.u32 4294901760, %v11578_v40  ;;  %v12753_v35 = vand.u32 4294901760, %v12752_v18  ;;  %v12765_v52 = vand.u32 4294901760, %v12764_v23 }
0x13ad   :  { %12533 = vadd.xlane.f32.xlu0 %v12532_v7 }
0x13ae   :  { %v25487_v53 = vpop.eup %22942  ;;  %v25489_v43 = vpack.c.bf16 %v12591_v38, %v12588_v47  ;;  %v12757_v34 = vsub.f32 %v11578_v40, %v12591_v38 }
0x13af   :  { %v12538_v2 = vsel %vm4044_vm2, %v25487_v53, 0.0 }
0x13b0   :  { %22067 = vmatprep.subr.bf16.mxu0 %v25489_v43  ;;  %v12758_v10 = vand.u32 4294901760, %v12757_v34  ;;  %v25494_v39 = vpack.c.bf16 %v12757_v34, %v12750_v57 }
0x13b1   :  { %12539 = vadd.xlane.f32.xlu0 %v12538_v2  ;;  %22069 = vmatpush3.bf16.msra.mxu0 %v25489_v43 }
0x13b2   :  { %v12759_v1 = vsub.f32 %v12757_v34, %v12758_v10  ;;  %v25497_v46 = vpack.c.bf16 %v12758_v10, %v12751_v6 }
0x13b4   :  { %v12760_v11 = vand.u32 4294901760, %v12759_v1 }
0x13b6   :  { %v25499_v63 = vpack.c.bf16 %v12760_v11, %v12753_v35 }
0x13c7   :  { %11551 = vrot.lane.b32.xlu0 %v25147_v44, %s23353_s2  ;;  %v12766_v44 = vsub.f32 %v12764_v23, %v12765_v52 }
0x13c9   :  { %v12767_v41 = vand.u32 4294901760, %v12766_v44 }
0x13d0   :  { %v12489_v17 = vpop.xlane.xlu1 %12488 }
0x13d1   :  { %v12499_v13 = vsub.f32 %v25454_v51, %v12489_v17 }
0x13d3   :  { %v12513_v3 = vmul.f32 1.442695, %v12499_v13 }
0x13d4   :  { %v11530_v54 = vpop.permute.xlu1 %11529 }
0x13d5   :  { %22944 = vpow2.f32 %v12513_v3  ;;  %11534 = vst.msk [vmem:[#allocation4 + $0x28] sm:$0xff] %vm3049_vm1, %v11530_v54 }
0x13dc   :  { %v11580_v61 = vld [vmem:[#allocation4 + $0x28] sm:$0xff] }
0x13dd   :  { %v12597_v30 = vand.u32 4294901760, %v11580_v61 }
0x13df   :  { %v25505_v22 = vpop.eup %22944  ;;  %v25507_v16 = vpack.c.bf16 %v12597_v30, %v12594_v21  ;;  %v12771_v19 = vsub.f32 %v11580_v61, %v12597_v30 }
0x13e0   :  { %v12535_v25 = vsel %vm4044_vm2, %v25505_v22, 0.0 }
0x13e1   :  { %12536 = vadd.xlane.f32.xlu1 %v12535_v25  ;;  %22071 = vmatprep.subr.bf16.mxu0 %v25507_v16  ;;  %v12772_v51 = vand.u32 4294901760, %v12771_v19  ;;  %v25512_v60 = vpack.c.bf16 %v12771_v19, %v12764_v23 }
0x13e2   :  { %22073 = vmatpush3.bf16.msra.mxu0 %v25507_v16 }
0x13e3   :  { %v12773_v36 = vsub.f32 %v12771_v19, %v12772_v51  ;;  %v25515_v29 = vpack.c.bf16 %v12772_v51, %v12765_v52 }
0x13e5   :  { %v12774_v55 = vand.u32 4294901760, %v12773_v36 }
0x13e7   :  { %v25517_v26 = vpack.c.bf16 %v12774_v55, %v12767_v41 }
0x13f2   :  { %11553 = vrot.lane.b32.xlu1 %v25143_v49, %s23353_s2 }
0x142c   :  { %v12522_v12 = vpop.xlane.xlu0 %12521 }
0x142d   :  { %v12519_v24 = vpop.xlane.xlu1 %12518 }
0x142e   :  { %22946 = vrcp.f32 %v12519_v24 }
0x142f   :  { %22948 = vrcp.f32 %v12522_v12 }
0x1436   :  { %v12528_v50 = vpop.xlane.xlu0 %12527 }
0x1438   :  { %v22947_v5 = vpop.eup %22946 }
0x1439   :  { %v12549_v32 = vmul.f32 %v22947_v5, %v25463_v59  ;;  %v12525_v59 = vpop.xlane.xlu1 %12524  ;;  %v22949_v21 = vpop.eup %22948 }
0x143a   :  { %v12534_v4 = vpop.xlane.xlu0 %12533  ;;  %22950 = vrcp.f32 %v12525_v59  ;;  %v12550_v7 = vmul.f32 %v22949_v21, %v25461_v31 }
0x143b   :  { %v12558_v8 = vsel %vm4044_vm2, %v12549_v32, 0  ;;  %22952 = vrcp.f32 %v12528_v50 }
0x143c   :  { %v25523_v33 = vand.u32 4294901760, %v12558_v8  ;;  %v12561_v34 = vsel %vm4044_vm2, %v12550_v7, 0 }
0x143d   :  { %v12531_v14 = vpop.xlane.xlu1 %12530  ;;  %v25538_v35 = vand.u32 4294901760, %v12561_v34 }
0x143e   :  { %v12540_v56 = vpop.xlane.xlu0 %12539  ;;  %v25526_v47 = vsub.f32 %v12558_v8, %v25523_v33  ;;  %22954 = vrcp.f32 %v12531_v14 }
0x143f   :  { %22956 = vrcp.f32 %v12534_v4 }
0x1440   :  { %v12656_v57 = vand.u32 4294901760, %v25526_v47  ;;  %22958 = vrcp.f32 %v12540_v56 }
0x1442   :  { %v11552_v58 = vpop.permute.xlu0 %11551  ;;  %v12657_v49 = vsub.f32 %v25526_v47, %v12656_v57 }
0x1443   :  { %11557 = vst.msk [vmem:[#allocation4 + $0x30] sm:$0xff] %vm3049_vm1, %v11552_v58 }
0x1444   :  { %v12658_v62 = vand.u32 4294901760, %v12657_v49  ;;  %v22951_v23 = vpop.eup %22950 }
0x1445   :  { %v22953_v40 = vpop.eup %22952  ;;  %v12551_v38 = vmul.f32 %v22951_v23, %v25470_v42 }
0x1446   :  { %20518 = vmatprep.mubr.f32.mxu0 %v12658_v62  ;;  %v12552_v2 = vmul.f32 %v22953_v40, %v25477_v37  ;;  %v25547_v37 = vsub.f32 %v12561_v34, %v25538_v35 }
0x1447   :  { %v12564_v11 = vsel %vm4044_vm2, %v12551_v38, 0 }
0x1448   :  { %v22955_v6 = vpop.eup %22954  ;;  %v12567_v17 = vsel %vm4044_vm2, %v12552_v2, 0  ;;  %v25543_v42 = vand.u32 4294901760, %v12564_v11  ;;  %v12666_v25 = vand.u32 4294901760, %v25547_v37 }
0x1449   :  { %v22957_v18 = vpop.eup %22956  ;;  %v12553_v1 = vmul.f32 %v22955_v6, %v25475_v27  ;;  %v25550_v54 = vand.u32 4294901760, %v12567_v17 }
0x144a   :  { %v12554_v31 = vmul.f32 %v22957_v18, %v25483_v20  ;;  %v22959_v3 = vpop.eup %22958  ;;  %v11581_v61 = vld [vmem:[#allocation4 + $0x30] sm:$0xff]  ;;  %v25555_v52 = vsub.f32 %v12564_v11, %v25543_v42  ;;  %v12667_v32 = vsub.f32 %v25547_v37, %v12666_v25 }
0x144b   :  { %v12570_v27 = vsel %vm4044_vm2, %v12553_v1, 0  ;;  %v12556_v20 = vmul.f32 %v22959_v3, %v25487_v53  ;;  %v12600_v44 = vand.u32 4294901760, %v11581_v61  ;;  %v25561_v51 = vsub.f32 %v12567_v17, %v25550_v54 }
0x144c   :  { %v12573_v30 = vsel %vm4044_vm2, %v12554_v31, 0  ;;  %v25557_v19 = vand.u32 4294901760, %v12570_v27  ;;  %v12676_v12 = vand.u32 4294901760, %v25555_v52  ;;  %v12668_v40 = vand.u32 4294901760, %v12667_v32 }
0x144d   :  { %v25563_v36 = vand.u32 4294901760, %v12573_v30  ;;  %v12579_v50 = vsel %vm4044_vm2, %v12556_v20, 0  ;;  %v12686_v4 = vand.u32 4294901760, %v25561_v51  ;;  %v25579_v56 = vsub.f32 %v11581_v61, %v12600_v44 }
0x144e   :  { %v25568_v53 = vsub.f32 %v12570_v27, %v25557_v19  ;;  %v25587_v59 = vand.u32 4294901760, %v12579_v50  ;;  %v12677_v14 = vsub.f32 %v25555_v52, %v12676_v12 }
0x144f   :  { %v25576_v8 = vsub.f32 %v12573_v30, %v25563_v36  ;;  %v12687_v38 = vsub.f32 %v25561_v51, %v12686_v4  ;;  %v12779_v34 = vand.u32 4294901760, %v25579_v56 }
0x1450   :  { %v12696_v21 = vand.u32 4294901760, %v25568_v53  ;;  %v25606_v2 = vsub.f32 %v12579_v50, %v25587_v59  ;;  %v12678_v18 = vand.u32 4294901760, %v12677_v14 }
0x1451   :  { %v12706_v6 = vand.u32 4294901760, %v25576_v8  ;;  %v12688_v31 = vand.u32 4294901760, %v12687_v38 }
0x1452   :  { %v12726_v3 = vand.u32 4294901760, %v25606_v2 }
0x1453   :  { %v12707_v17 = vsub.f32 %v25576_v8, %v12706_v6 }
0x1455   :  { %v12708_v30 = vand.u32 4294901760, %v12707_v17 }
0x146e   :  { %v12537_v10 = vpop.xlane.xlu1 %12536 }
0x146f   :  { %22960 = vrcp.f32 %v12537_v10  ;;  %v12697_v10 = vsub.f32 %v25568_v53, %v12696_v21 }
0x1471   :  { %v12698_v27 = vand.u32 4294901760, %v12697_v10  ;;  %v14426_v10 = vld [vmem:[#allocation20 + $0x30] sm:$0xff] }
0x1472   :  { %v11554_v13 = vpop.permute.xlu1 %11553 }
0x1473   :  { %11558 = vst.msk [vmem:[#allocation4 + $0x38] sm:$0xff] %vm3049_vm1, %v11554_v13  ;;  %v12780_v13 = vsub.f32 %v25579_v56, %v12779_v34 }
0x1475   :  { %v12781_v20 = vand.u32 4294901760, %v12780_v13 }
0x1479   :  { %v22961_v41 = vpop.eup %22960 }
0x147a   :  { %v12555_v55 = vmul.f32 %v22961_v41, %v25505_v22  ;;  %v11582_v24 = vld [vmem:[#allocation4 + $0x38] sm:$0xff] }
0x147b   :  { %v12603_v5 = vand.u32 4294901760, %v11582_v24 }
0x147c   :  { %v12576_v22 = vsel %vm4044_vm2, %v12555_v55, 0 }
0x147d   :  { %v25581_v58 = vpack.c.bf16 %v12603_v5, %v12600_v44  ;;  %v25583_v49 = vand.u32 4294901760, %v12576_v22  ;;  %v25585_v62 = vsub.f32 %v11582_v24, %v12603_v5  ;;  %v12727_v44 = vsub.f32 %v25606_v2, %v12726_v3 }
0x147f   :  { %22075 = vmatprep.subr.bf16.mxu0 %v25581_v58  ;;  %v25595_v23 = vsub.f32 %v12576_v22, %v25583_v49  ;;  %v12786_v7 = vand.u32 4294901760, %v25585_v62  ;;  %v12728_v24 = vand.u32 4294901760, %v12727_v44 }
0x1480   :  { %22077 = vmatpush3.bf16.msra.mxu0 %v25581_v58 }
0x1481   :  { %22079 = vmatprep.subr.bf16.mxu0 %v25174_v9  ;;  %v12716_v1 = vand.u32 4294901760, %v25595_v23  ;;  %v12787_v11 = vsub.f32 %v25585_v62, %v12786_v7 }
0x1483   :  { %20519 = vmatmul.mubr.f32.vlgmr.msra.gmra.mrb[22].mxu0 %v12668_v40  ;;  %v12717_v61 = vsub.f32 %v25595_v23, %v12716_v1 }
0x1484   :  { %20521 = vmatprep.mubr.f32.mxu0 %v12678_v18  ;;  %22081 = vmatpush3.bf16.msra.mxu0 %v25174_v9  ;;  %v12788_v9 = vand.u32 4294901760, %v12787_v11  ;;  %v14434_v11 = vand.u32 4294901760, %v14426_v10 }
0x1485   :  { %22083 = vmatprep.subr.bf16.mxu0 %v25499_v63  ;;  %v12718_v41 = vand.u32 4294901760, %v12717_v61 }
0x1486   :  { %v22090_v55 = vpack.c.bf16 %v12788_v9, %v12781_v20  ;;  %v14521_v17 = vsub.f32 %v14426_v10, %v14434_v11 }
0x1487   :  { %20522 = vmatmul.mubr.f32.gmra.mrb[24].mxu0 %v12688_v31 }
0x1488   :  { %20524 = vmatprep.mubr.f32.mxu0 %v12698_v27  ;;  %22085 = vmatpush3.bf16.msra.mxu0 %v25499_v63  ;;  %v22106_v63 = vpack.c.bf16 %v25585_v62, %v25579_v56  ;;  %v14522_v61 = vand.u32 4294901760, %v14521_v17 }
0x1489   :  { %22087 = vmatprep.subr.bf16.mxu0 %v25517_v26 }
0x148a   :  { %v14523_v20 = vsub.f32 %v14521_v17, %v14522_v61 }
0x148b   :  { %20525 = vmatmul.mubr.f32.gmra.mrb[26].mxu0 %v12708_v30 }
0x148c   :  { %20527 = vmatprep.mubr.f32.mxu0 %v12718_v41  ;;  %22089 = vmatpush3.bf16.msra.mxu0 %v25517_v26 }
0x148d   :  { %22091 = vmatprep.subr.bf16.mxu0 %v22090_v55 }
0x148f   :  { %20528 = vmatmul.mubr.f32.gmra.mrb[28].mxu0 %v12728_v24 }
0x1490   :  { %22093 = vmatpush3.bf16.msra.mxu0 %v22090_v55  ;;  %20546 = vmatprep.mubr.f32.mxu0 %v25523_v33  ;;  %v14524_v55 = vand.u32 4294901760, %v14523_v20 }
0x1491   :  { %22095 = vmatprep.subr.bf16.mxu0 %v25162_v15 }
0x1493   :  { %20547 = vmatmul.mubr.f32.vlgmr.msra.gmra.mrb[22].mxu0 %v25538_v35 }
0x1494   :  { %20549 = vmatprep.mubr.f32.mxu0 %v25543_v42  ;;  %22097 = vmatpush3.bf16.msra.mxu0 %v25162_v15  ;;  %v22138_v15 = vpack.c.bf16 %v12786_v7, %v12779_v34 }
0x1495   :  { %22099 = vmatprep.subr.bf16.mxu0 %v25494_v39 }
0x1497   :  { %20550 = vmatmul.mubr.f32.gmra.mrb[24].mxu0 %v25550_v54 }
0x1498   :  { %20552 = vmatprep.mubr.f32.mxu0 %v25557_v19  ;;  %22101 = vmatpush3.bf16.msra.mxu0 %v25494_v39 }
0x1499   :  { %22103 = vmatprep.subr.bf16.mxu0 %v25512_v60 }
0x149b   :  { %20553 = vmatmul.mubr.f32.gmra.mrb[26].mxu0 %v25563_v36 }
0x149c   :  { %20555 = vmatprep.mubr.f32.mxu0 %v25583_v49  ;;  %22105 = vmatpush3.bf16.msra.mxu0 %v25512_v60 }
0x149d   :  { %22107 = vmatprep.subr.bf16.mxu0 %v22106_v63 }
0x149f   :  { %20556 = vmatmul.mubr.f32.gmra.mrb[28].mxu0 %v25587_v59 }
0x14a0   :  { %22109 = vmatpush3.bf16.msra.mxu0 %v22106_v63  ;;  %20574 = vmatprep.mubr.f32.mxu0 %v25526_v47 }
0x14a1   :  { %22111 = vmatprep.subr.bf16.mxu0 %v25156_v48 }
0x14a3   :  { %20575 = vmatmul.mubr.f32.vlgmr.msra.gmra.mrb[22].mxu0 %v25547_v37 }
0x14a4   :  { %20577 = vmatprep.mubr.f32.mxu0 %v25555_v52  ;;  %22113 = vmatpush3.bf16.msra.mxu0 %v25156_v48 }
0x14a5   :  { %22115 = vmatprep.subr.bf16.mxu0 %v25489_v43 }
0x14a7   :  { %20578 = vmatmul.mubr.f32.gmra.mrb[24].mxu0 %v25561_v51 }
0x14a8   :  { %20580 = vmatprep.mubr.f32.mxu0 %v25568_v53  ;;  %22117 = vmatpush3.bf16.msra.mxu0 %v25489_v43 }
0x14a9   :  { %22119 = vmatprep.subr.bf16.mxu0 %v25507_v16 }
0x14ab   :  { %20581 = vmatmul.mubr.f32.gmra.mrb[26].mxu0 %v25576_v8 }
0x14ac   :  { %20583 = vmatprep.mubr.f32.mxu0 %v25595_v23  ;;  %22121 = vmatpush3.bf16.msra.mxu0 %v25507_v16 }
0x14ad   :  { %22123 = vmatprep.subr.bf16.mxu0 %v25581_v58 }
0x14af   :  { %20584 = vmatmul.mubr.f32.gmra.mrb[28].mxu0 %v25606_v2 }
0x14b0   :  { %22125 = vmatpush3.bf16.msra.mxu0 %v25581_v58  ;;  %20602 = vmatprep.mubr.f32.mxu0 %v12656_v57 }
0x14b1   :  { %22127 = vmatprep.subr.bf16.mxu0 %v25168_v0 }
0x14b3   :  { %20603 = vmatmul.mubr.f32.vlgmr.msra.gmra.mrb[22].mxu0 %v12666_v25 }
0x14b4   :  { %20605 = vmatprep.mubr.f32.mxu0 %v12676_v12  ;;  %22129 = vmatpush3.bf16.msra.mxu0 %v25168_v0  ;;  %v13422_v0 = vld [vmem:[#allocation20 + $0x20] sm:$0xff] }
0x14b5   :  { %22131 = vmatprep.subr.bf16.mxu0 %v25497_v46 }
0x14b7   :  { %20606 = vmatmul.mubr.f32.gmra.mrb[24].mxu0 %v12686_v4  ;;  %v13927_v4 = vld [vmem:[#allocation20 + $0x28] sm:$0xff] }
0x14b8   :  { %20608 = vmatprep.mubr.f32.mxu0 %v12696_v21  ;;  %22133 = vmatpush3.bf16.msra.mxu0 %v25497_v46  ;;  %v13935_v22 = vand.u32 4294901760, %v13927_v4 }
0x14b9   :  { %22135 = vmatprep.subr.bf16.mxu0 %v25515_v29 }
0x14bb   :  { %20609 = vmatmul.mubr.f32.gmra.mrb[26].mxu0 %v12706_v6 }
0x14bc   :  { %20611 = vmatprep.mubr.f32.mxu0 %v12716_v1  ;;  %22137 = vmatpush3.bf16.msra.mxu0 %v25515_v29 }
0x14bd   :  { %22139 = vmatprep.subr.bf16.mxu0 %v22138_v15 }
0x14bf   :  { %20612 = vmatmul.mubr.f32.gmra.mrb[28].mxu0 %v12726_v3 }
0x14c0   :  { %22141 = vmatpush3.bf16.msra.mxu0 %v22138_v15  ;;  %20630 = vmatprep.mubr.f32.mxu0 %v25523_v33 }
0x14c1   :  { %22143 = vmatprep.subr.bf16.mxu0 %v25156_v48 }
0x14c3   :  { %20631 = vmatmul.mubr.f32.vlgmr.msra.gmra.mrb[22].mxu0 %v25538_v35 }
0x14c4   :  { %20633 = vmatprep.mubr.f32.mxu0 %v25543_v42  ;;  %22145 = vmatpush3.bf16.msra.mxu0 %v25156_v48  ;;  %v25705_v48 = vand.u32 4294901760, %v13422_v0 }
0x14c5   :  { %22147 = vmatprep.subr.bf16.mxu0 %v25489_v43 }
0x14c7   :  { %20634 = vmatmul.mubr.f32.gmra.mrb[24].mxu0 %v25550_v54 }
0x14c8   :  { %20636 = vmatprep.mubr.f32.mxu0 %v25557_v19  ;;  %22149 = vmatpush3.bf16.msra.mxu0 %v25489_v43  ;;  %v13517_v43 = vsub.f32 %v13422_v0, %v25705_v48  ;;  %v14925_v0 = vld [vmem:[#allocation20 + $0x38] sm:$0xff] }
0x14c9   :  { %22151 = vmatprep.subr.bf16.mxu0 %v25507_v16 }
0x14ca   :  { %v13518_v39 = vand.u32 4294901760, %v13517_v43 }
0x14cb   :  { %20637 = vmatmul.mubr.f32.gmra.mrb[26].mxu0 %v25563_v36 }
0x14cc   :  { %20639 = vmatprep.mubr.f32.mxu0 %v25583_v49  ;;  %22153 = vmatpush3.bf16.msra.mxu0 %v25507_v16  ;;  %v13519_v46 = vsub.f32 %v13517_v43, %v13518_v39 }
0x14cd   :  { %22155 = vmatprep.subr.bf16.mxu0 %v25581_v58 }
0x14ce   :  { %v13520_v16 = vand.u32 4294901760, %v13519_v46 }
0x14cf   :  { %20640 = vmatmul.mubr.f32.gmra.mrb[28].mxu0 %v25587_v59 }
0x14d0   :  { %22157 = vmatpush3.bf16.msra.mxu0 %v25581_v58  ;;  %20658 = vmatprep.mubr.f32.mxu0 %v25523_v33  ;;  %v14022_v58 = vsub.f32 %v13927_v4, %v13935_v22 }
0x14d1   :  { %20670 = vmatprep.subr.mxu0 %v25705_v48 }
0x14d2   :  { %v14023_v14 = vand.u32 4294901760, %v14022_v58 }
0x14d3   :  { %20659 = vmatmul.mubr.f32.vlgmr.msra.gmra.mrb[22].mxu0 %v25538_v35 }
0x14d4   :  { %20661 = vmatprep.mubr.f32.mxu0 %v25543_v42  ;;  %20671 = vmatpush3.msra.mxu0 %v25705_v48  ;;  %v14024_v7 = vsub.f32 %v14022_v58, %v14023_v14 }
0x14d5   :  { %20675 = vmatprep.subr.mxu0 %v13520_v16 }
0x14d6   :  { %v14025_v6 = vand.u32 4294901760, %v14024_v7  ;;  %v16031_v7 = vld [vmem:[#allocation26 + $0x20] sm:$0xff] }
0x14d7   :  { %20662 = vmatmul.mubr.f32.gmra.mrb[24].mxu0 %v25550_v54 }
0x14d8   :  { %20664 = vmatprep.mubr.f32.mxu0 %v25557_v19 }
0x14db   :  { %20665 = vmatmul.mubr.f32.gmra.mrb[26].mxu0 %v25563_v36 }
0x14dc   :  { %20667 = vmatprep.mubr.f32.mxu0 %v25583_v49 }
0x14df   :  { %20668 = vmatmul.mubr.f32.gmra.mrb[28].mxu0 %v25587_v59 }
0x15a6   :  { %v20660_v60 = vpop.f32.mrb[22].mxu0 }
0x15a7   :  { %v13427_v29 = vsel %vm3049_vm1, %v20660_v60, 0  ;;  %v13373_v26 = vpop.f32.mrb[23].mxu0 }
0x15a8   :  { %v13505_v33 = vand.u32 4294901760, %v13427_v29  ;;  %v13424_v47 = vsel %vm3049_vm1, %v13373_v26, 0 }
0x15a9   :  { %v13495_v57 = vand.u32 4294901760, %v13424_v47 }
0x15aa   :  { %v13506_v35 = vsub.f32 %v13427_v29, %v13505_v33  ;;  %v20663_v42 = vpop.f32.mrb[24].mxu0 }
0x15ab   :  { %v13496_v37 = vsub.f32 %v13424_v47, %v13495_v57  ;;  %v13385_v54 = vpop.f32.mrb[25].mxu0  ;;  %v13932_v49 = vsel %vm3049_vm1, %v20663_v42, 0 }
0x15ac   :  { %v13507_v52 = vand.u32 4294901760, %v13506_v35  ;;  %v13929_v8 = vsel %vm3049_vm1, %v13385_v54, 0  ;;  %v14010_v59 = vand.u32 4294901760, %v13932_v49 }
0x15ad   :  { %v13497_v19 = vand.u32 4294901760, %v13496_v37  ;;  %v14000_v56 = vand.u32 4294901760, %v13929_v8 }
0x15ae   :  { %v13508_v25 = vsub.f32 %v13506_v35, %v13507_v52  ;;  %v25722_v51 = vpop.f32.mrb[26].mxu0  ;;  %v14011_v23 = vsub.f32 %v13932_v49, %v14010_v59 }
0x15af   :  { %v13397_v36 = vpop.f32.mrb[27].mxu0  ;;  %v13498_v12 = vsub.f32 %v13496_v37, %v13497_v19  ;;  %v14001_v62 = vsub.f32 %v13929_v8, %v14000_v56  ;;  %v14431_v13 = vsel %vm3049_vm1, %v25722_v51, 0 }
0x15b0   :  { %v13509_v50 = vand.u32 4294901760, %v13508_v25  ;;  %v14012_v38 = vand.u32 4294901760, %v14011_v23  ;;  %v14428_v1 = vsel %vm3049_vm1, %v13397_v36, 0  ;;  %v14509_v27 = vand.u32 4294901760, %v14431_v13  ;;  %v17766_v25 = vld [vmem:[#allocation22 + $0x1] ss:$0 sm:$0xff] }
0x15b1   :  { %v13499_v53 = vand.u32 4294901760, %v13498_v12  ;;  %v14002_v21 = vand.u32 4294901760, %v14001_v62  ;;  %v14499_v31 = vand.u32 4294901760, %v14428_v1 }
0x15b2   :  { %v25724_v5 = vpop.f32.mrb[28].mxu0  ;;  %v14013_v2 = vsub.f32 %v14011_v23, %v14012_v38  ;;  %v14510_v30 = vsub.f32 %v14431_v13, %v14509_v27 }
0x15b3   :  { %v25726_v32 = vpop.f32.mrb[29].mxu0  ;;  %20672 = vmatprep.mubr.f32.mxu0 %v13499_v53  ;;  %v14003_v40 = vsub.f32 %v14001_v62, %v14002_v21  ;;  %v14500_v3 = vsub.f32 %v14428_v1, %v14499_v31 }
0x15b4   :  { %20673 = vmatmul.mubr.f32.vlgmr.msra.gmra.mrb[30].mxu0 %v13509_v50  ;;  %v14014_v18 = vand.u32 4294901760, %v14013_v2  ;;  %v14511_v41 = vand.u32 4294901760, %v14510_v30  ;;  %v15474_v2 = vld [vmem:[#allocation23 + $0x30] sm:$0xff] }
0x15b5   :  { %20676 = vmatpush3.msra.mxu0 %v13520_v16  ;;  %20677 = vmatprep.mubr.f32.mxu0 %v13495_v57  ;;  %v14004_v34 = vand.u32 4294901760, %v14003_v40  ;;  %v14501_v9 = vand.u32 4294901760, %v14500_v3  ;;  %v14930_v16 = vsel %vm3049_vm1, %v25724_v5, 0 }
0x15b6   :  { %20680 = vmatprep.subr.mxu0 %v13517_v43  ;;  %v14512_v63 = vsub.f32 %v14510_v30, %v14511_v41  ;;  %v15008_v29 = vand.u32 4294901760, %v14930_v16 }
0x15b7   :  { %v14502_v44 = vsub.f32 %v14500_v3, %v14501_v9 }
0x15b8   :  { %v14513_v15 = vand.u32 4294901760, %v14512_v63  ;;  %v15009_v47 = vsub.f32 %v14930_v16, %v15008_v29 }
0x15b9   :  { %v14503_v24 = vand.u32 4294901760, %v14502_v44 }
0x15ba   :  { %v15010_v42 = vand.u32 4294901760, %v15009_v47 }
0x15bc   :  { %20678 = vmatmul.mubr.f32.vlgmr.msra.gmra.mrb[30].mxu0 %v13505_v33 }
0x15bd   :  { %20681 = vmatpush3.msra.mxu0 %v13517_v43  ;;  %20682 = vmatprep.mubr.f32.mxu0 %v13496_v37  ;;  %v14933_v43 = vand.u32 4294901760, %v14925_v0 }
0x15be   :  { %20685 = vmatprep.subr.mxu0 %v25705_v48 }
0x15bf   :  { %v15020_v46 = vsub.f32 %v14925_v0, %v14933_v43 }
0x15c1   :  { %v15021_v26 = vand.u32 4294901760, %v15020_v46 }
0x15c4   :  { %20683 = vmatmul.mubr.f32.vlgmr.msra.gmra.mrb[30].mxu0 %v13506_v35 }
0x15c5   :  { %20686 = vmatpush3.msra.mxu0 %v25705_v48  ;;  %20687 = vmatprep.mubr.f32.mxu0 %v13497_v19 }
0x15c6   :  { %20690 = vmatprep.subr.mxu0 %v13518_v39 }
0x15cc   :  { %20688 = vmatmul.mubr.f32.vlgmr.msra.gmra.mrb[30].mxu0 %v13507_v52  ;;  %v15011_v52 = vsub.f32 %v15009_v47, %v15010_v42 }
0x15cd   :  { %20691 = vmatpush3.msra.mxu0 %v13518_v39  ;;  %20692 = vmatprep.mubr.f32.mxu0 %v13495_v57 }
0x15ce   :  { %20695 = vmatprep.subr.mxu0 %v25705_v48  ;;  %v15012_v19 = vand.u32 4294901760, %v15011_v52 }
0x15d4   :  { %20693 = vmatmul.mubr.f32.vlgmr.msra.gmra.mrb[30].mxu0 %v13505_v33 }
0x15d5   :  { %20696 = vmatpush3.msra.mxu0 %v25705_v48  ;;  %20697 = vmatprep.mubr.f32.mxu0 %v13495_v57  ;;  %v14927_v48 = vsel %vm3049_vm1, %v25726_v32, 0  ;;  %v15022_v57 = vsub.f32 %v15020_v46, %v15021_v26 }
0x15d6   :  { %20700 = vmatprep.subr.mxu0 %v13935_v22  ;;  %v14998_v39 = vand.u32 4294901760, %v14927_v48 }
0x15d7   :  { %v15023_v37 = vand.u32 4294901760, %v15022_v57 }
0x15d8   :  { %v14999_v60 = vsub.f32 %v14927_v48, %v14998_v39 }
0x15dc   :  { %20698 = vmatmul.mubr.f32.vlgmr.msra.gmra.mrb[30].mxu0 %v13505_v33  ;;  %v15000_v33 = vand.u32 4294901760, %v14999_v60 }
0x15dd   :  { %20701 = vmatpush3.msra.mxu0 %v13935_v22  ;;  %20702 = vmatprep.mubr.f32.mxu0 %v14004_v34  ;;  %v16044_v34 = vand.u32 4294901760, %v16031_v7 }
0x15de   :  { %20705 = vmatprep.subr.mxu0 %v14025_v6  ;;  %v15001_v35 = vsub.f32 %v14999_v60, %v15000_v33 }
0x15e0   :  { %v15002_v54 = vand.u32 4294901760, %v15001_v35 }
0x15e4   :  { %20703 = vmatmul.mubr.f32.vlgmr.msra.gmra.mrb[30].mxu0 %v14014_v18  ;;  %v15475_v18 = vld [vmem:[#allocation23 + $0x38] sm:$0xff] }
0x15e5   :  { %20706 = vmatpush3.msra.mxu0 %v14025_v6  ;;  %20707 = vmatprep.mubr.f32.mxu0 %v14000_v56  ;;  %v16032_v6 = vld [vmem:[#allocation26 + $0x28] sm:$0xff] }
0x15e6   :  { %20710 = vmatprep.subr.mxu0 %v14022_v58  ;;  %v16047_v10 = vand.u32 4294901760, %v16032_v6 }
0x15e8   :  { %v25765_v13 = vpack.c.bf16 %v16047_v10, %v16044_v34 }
0x15ec   :  { %20708 = vmatmul.mubr.f32.vlgmr.msra.gmra.mrb[30].mxu0 %v14010_v59 }
0x15ed   :  { %20711 = vmatpush3.msra.mxu0 %v14022_v58  ;;  %20712 = vmatprep.mubr.f32.mxu0 %v14001_v62 }
0x15ee   :  { %20715 = vmatprep.subr.mxu0 %v13935_v22 }
0x15f4   :  { %20713 = vmatmul.mubr.f32.vlgmr.msra.gmra.mrb[30].mxu0 %v14011_v23  ;;  %v15473_v23 = vld [vmem:[#allocation23 + $0x28] sm:$0xff] }
0x15f5   :  { %20716 = vmatpush3.msra.mxu0 %v13935_v22  ;;  %20717 = vmatprep.mubr.f32.mxu0 %v14002_v21  ;;  %v15472_v21 = vld [vmem:[#allocation23 + $0x20] sm:$0xff] }
0x15f6   :  { %20720 = vmatprep.subr.mxu0 %v14023_v14  ;;  %v15491_v40 = vand.u32 4294901760, %v15472_v21 }
0x15fc   :  { %20718 = vmatmul.mubr.f32.vlgmr.msra.gmra.mrb[30].mxu0 %v14012_v38  ;;  %v15494_v38 = vand.u32 4294901760, %v15473_v23 }
0x15fd   :  { %20721 = vmatpush3.msra.mxu0 %v14023_v14  ;;  %20722 = vmatprep.mubr.f32.mxu0 %v14000_v56 }
0x15fe   :  { %20725 = vmatprep.subr.mxu0 %v13935_v22  ;;  %v25763_v1 = vpack.c.bf16 %v15494_v38, %v15491_v40 }
0x1600   :  { %22159 = vmatprep.subr.bf16.mxu1 %v25763_v1 }
0x1601   :  { %22161 = vmatpush3.bf16.msra.mxu1 %v25763_v1 }
0x1604   :  { %20723 = vmatmul.mubr.f32.vlgmr.msra.gmra.mrb[30].mxu0 %v14010_v59 }
0x1605   :  { %20726 = vmatpush3.msra.mxu0 %v13935_v22  ;;  %20727 = vmatprep.mubr.f32.mxu0 %v14000_v56 }
0x1606   :  { %20730 = vmatprep.subr.mxu0 %v14434_v11 }
0x160c   :  { %20728 = vmatmul.mubr.f32.vlgmr.msra.gmra.mrb[30].mxu0 %v14010_v59 }
0x160d   :  { %20731 = vmatpush3.msra.mxu0 %v14434_v11  ;;  %20732 = vmatprep.mubr.f32.mxu0 %v14503_v24 }
0x160e   :  { %20735 = vmatprep.subr.mxu0 %v14524_v55 }
0x1614   :  { %20733 = vmatmul.mubr.f32.vlgmr.msra.gmra.mrb[30].mxu0 %v14513_v15 }
0x1615   :  { %20736 = vmatpush3.msra.mxu0 %v14524_v55  ;;  %20737 = vmatprep.mubr.f32.mxu0 %v14499_v31 }
0x1616   :  { %20740 = vmatprep.subr.mxu0 %v14521_v17 }
0x161c   :  { %20738 = vmatmul.mubr.f32.vlgmr.msra.gmra.mrb[30].mxu0 %v14509_v27 }
0x161d   :  { %20741 = vmatpush3.msra.mxu0 %v14521_v17  ;;  %20742 = vmatprep.mubr.f32.mxu0 %v14500_v3  ;;  %v15581_v17 = vsub.f32 %v15472_v21, %v15491_v40  ;;  %v16033_v3 = vld [vmem:[#allocation26 + $0x30] sm:$0xff] }
0x161e   :  { %20745 = vmatprep.subr.mxu0 %v14434_v11  ;;  %v16050_v44 = vand.u32 4294901760, %v16033_v3 }
0x161f   :  { %v15582_v55 = vand.u32 4294901760, %v15581_v17 }
0x1621   :  { %v15583_v48 = vsub.f32 %v15581_v17, %v15582_v55 }
0x1624   :  { %20743 = vmatmul.mubr.f32.vlgmr.msra.gmra.mrb[30].mxu0 %v14510_v30  ;;  %v16141_v30 = vsub.f32 %v16032_v6, %v16047_v10 }
0x1625   :  { %20746 = vmatpush3.msra.mxu0 %v14434_v11  ;;  %20747 = vmatprep.mubr.f32.mxu0 %v14501_v9  ;;  %v16134_v9 = vsub.f32 %v16031_v7, %v16044_v34 }
0x1626   :  { %20750 = vmatprep.subr.mxu0 %v14522_v61  ;;  %v16142_v15 = vand.u32 4294901760, %v16141_v30 }
0x1627   :  { %v16135_v63 = vand.u32 4294901760, %v16134_v9 }
0x1628   :  { %v16143_v16 = vsub.f32 %v16141_v30, %v16142_v15 }
0x162c   :  { %20748 = vmatmul.mubr.f32.vlgmr.msra.gmra.mrb[30].mxu0 %v14511_v41 }
0x162d   :  { %20751 = vmatpush3.msra.mxu0 %v14522_v61  ;;  %20752 = vmatprep.mubr.f32.mxu0 %v14499_v31  ;;  %v15588_v61 = vsub.f32 %v15473_v23, %v15494_v38  ;;  %v25781_v23 = vpack.c.bf16 %v16142_v15, %v16135_v63 }
0x162e   :  { %20755 = vmatprep.subr.mxu0 %v14434_v11 }
0x162f   :  { %v15589_v24 = vand.u32 4294901760, %v15588_v61 }
0x1631   :  { %v25779_v21 = vpack.c.bf16 %v15589_v24, %v15582_v55 }
0x1634   :  { %20753 = vmatmul.mubr.f32.vlgmr.msra.gmra.mrb[30].mxu0 %v14509_v27 }
0x1635   :  { %20756 = vmatpush3.msra.mxu0 %v14434_v11  ;;  %20757 = vmatprep.mubr.f32.mxu0 %v14499_v31  ;;  %v15497_v11 = vand.u32 4294901760, %v15474_v2  ;;  %v15500_v31 = vand.u32 4294901760, %v15475_v18 }
0x1636   :  { %20760 = vmatprep.subr.mxu0 %v14933_v43 }
0x1637   :  { %v25768_v20 = vpack.c.bf16 %v15500_v31, %v15497_v11 }
0x1639   :  { %22163 = vmatprep.subr.bf16.mxu1 %v25768_v20 }
0x163a   :  { %22165 = vmatpush3.bf16.msra.mxu1 %v25768_v20 }
0x163c   :  { %20758 = vmatmul.mubr.f32.vlgmr.msra.gmra.mrb[30].mxu0 %v14509_v27  ;;  %v16034_v27 = vld [vmem:[#allocation26 + $0x38] sm:$0xff] }
0x163d   :  { %20761 = vmatpush3.msra.mxu0 %v14933_v43  ;;  %20762 = vmatprep.mubr.f32.mxu0 %v15002_v54  ;;  %v16053_v41 = vand.u32 4294901760, %v16034_v27 }
0x163e   :  { %20765 = vmatprep.subr.mxu0 %v15023_v37 }
0x163f   :  { %v25774_v0 = vpack.c.bf16 %v16053_v41, %v16050_v44 }
0x1644   :  { %20763 = vmatmul.mubr.f32.vlgmr.msra.gmra.mrb[30].mxu0 %v15012_v19 }
0x1645   :  { %20766 = vmatpush3.msra.mxu0 %v15023_v37  ;;  %20767 = vmatprep.mubr.f32.mxu0 %v14998_v39 }
0x1646   :  { %20770 = vmatprep.subr.mxu0 %v15020_v46 }
0x164c   :  { %20768 = vmatmul.mubr.f32.vlgmr.msra.gmra.mrb[30].mxu0 %v15008_v29 }
0x164d   :  { %20771 = vmatpush3.msra.mxu0 %v15020_v46  ;;  %20772 = vmatprep.mubr.f32.mxu0 %v14999_v60  ;;  %v16136_v46 = vsub.f32 %v16134_v9, %v16135_v63  ;;  %v15602_v60 = vsub.f32 %v15475_v18, %v15500_v31  ;;  %v17767_v31 = vld [vmem:[#allocation14 + $0x1] ss:$0 sm:$0xff] }
0x164e   :  { %20775 = vmatprep.subr.mxu0 %v14933_v43 }
0x164f   :  { %v16137_v35 = vand.u32 4294901760, %v16136_v46  ;;  %v15603_v37 = vand.u32 4294901760, %v15602_v60 }
0x1654   :  { %20773 = vmatmul.mubr.f32.vlgmr.msra.gmra.mrb[30].mxu0 %v15009_v47  ;;  %v16155_v47 = vsub.f32 %v16034_v27, %v16053_v41 }
0x1655   :  { %20776 = vmatpush3.msra.mxu0 %v14933_v43  ;;  %20777 = vmatprep.mubr.f32.mxu0 %v15000_v33  ;;  %v16148_v33 = vsub.f32 %v16033_v3, %v16050_v44  ;;  %v17768_v3 = vld [vmem:[#allocation16 + $0x1] ss:$0 sm:$0xff] }
0x1656   :  { %20780 = vmatprep.subr.mxu0 %v15021_v26  ;;  %v16156_v19 = vand.u32 4294901760, %v16155_v47 }
0x1657   :  { %v16149_v52 = vand.u32 4294901760, %v16148_v33 }
0x1659   :  { %v25785_v40 = vpack.c.bf16 %v16156_v19, %v16149_v52 }
0x165c   :  { %20778 = vmatmul.mubr.f32.vlgmr.msra.gmra.mrb[30].mxu0 %v15010_v42  ;;  %v16144_v42 = vand.u32 4294901760, %v16143_v16 }
0x165d   :  { %20781 = vmatpush3.msra.mxu0 %v15021_v26  ;;  %20782 = vmatprep.mubr.f32.mxu0 %v14998_v39 }
0x165e   :  { %20785 = vmatprep.subr.mxu0 %v14933_v43 }
0x1664   :  { %20783 = vmatmul.mubr.f32.vlgmr.msra.gmra.mrb[30].mxu0 %v15008_v29 }
0x1665   :  { %20786 = vmatpush3.msra.mxu0 %v14933_v43  ;;  %20787 = vmatprep.mubr.f32.mxu0 %v14998_v39  ;;  %v15595_v43 = vsub.f32 %v15474_v2, %v15497_v11  ;;  %v15590_v39 = vsub.f32 %v15588_v61, %v15589_v24 }
0x1666   :  { %22207 = vmatprep.subr.bf16.mxu0 %v25765_v13 }
0x1667   :  { %v15596_v26 = vand.u32 4294901760, %v15595_v43  ;;  %v15591_v57 = vand.u32 4294901760, %v15590_v39 }
0x1669   :  { %v15597_v54 = vsub.f32 %v15595_v43, %v15596_v26  ;;  %v25783_v7 = vpack.c.bf16 %v15603_v37, %v15596_v26 }
0x166c   :  { %20788 = vmatmul.mubr.f32.vlgmr.msra.gmra.mrb[30].mxu0 %v15008_v29  ;;  %v15584_v29 = vand.u32 4294901760, %v15583_v48 }
0x166d   :  { %22209 = vmatpush3.bf16.msra.mxu0 %v25765_v13 }
0x166e   :  { %22211 = vmatprep.subr.bf16.mxu0 %v25774_v0 }
0x1671   :  { %22213 = vmatpush3.bf16.msra.mxu0 %v25774_v0 }
0x173f   :  { %v20789_v51 = vpop.f32.mrb[30].mxu0 }
0x1740   :  { %v22422_v36 = vadd.f32 %v20789_v51, %v17766_v25  ;;  %v15411_v12 = vpop.f32.mrb[31].mxu0  ;;  %v22214_v51 = vpack.c.bf16 %v16144_v42, %v16137_v35 }
0x1741   :  { %v22423_v53 = vadd.f32 %v17766_v25, %v15411_v12  ;;  %v22166_v25 = vpack.c.bf16 %v15591_v57, %v15584_v29  ;;  %v15598_v12 = vand.u32 4294901760, %v15597_v54 }
0x1742   :  { %v25742_v50 = vadd.f32 %v22422_v36, %v24836_v28  ;;  %v15604_v36 = vsub.f32 %v15602_v60, %v15603_v37  ;;  %22215 = vmatprep.subr.bf16.mxu0 %v22214_v51 }
0x1743   :  { %v25745_v5 = vadd.f32 %v22423_v53, %v24839_v45  ;;  %v16150_v53 = vsub.f32 %v16148_v33, %v16149_v52  ;;  %22167 = vmatprep.subr.bf16.mxu1 %v22166_v25 }
0x1744   :  { %v15432_v32 = vsel %vm327_vm0, %v25742_v50, 0.0 }
0x1745   :  { %15433 = vadd.xlane.f32.xlu1 %v15432_v32  ;;  %v15429_v4 = vsel %vm327_vm0, %v25745_v5, 0.0  ;;  %v16157_v32 = vsub.f32 %v16155_v47, %v16156_v19 }
0x1746   :  { %15430 = vadd.xlane.f32.xlu0 %v15429_v4  ;;  %v15605_v4 = vand.u32 4294901760, %v15604_v36  ;;  %v17778_v36 = vld [vmem:[%s25997_s21 + $0x68] sm:$0xff] }
0x17d2   :  { %v15434_v8 = vpop.xlane.xlu1 %15433 }
0x17d3   :  { %v15436_v22 = vmul.f32 0.03125, %v15434_v8  ;;  %v15431_v56 = vpop.xlane.xlu0 %15430  ;;  %v16151_v8 = vand.u32 4294901760, %v16150_v53 }
0x17d4   :  { %v15435_v58 = vmul.f32 0.03125, %v15431_v56  ;;  %v22170_v56 = vpack.c.bf16 %v15605_v4, %v15598_v12 }
0x17d5   :  { %v25752_v49 = vsub.f32 %v25742_v50, %v15436_v22  ;;  %v16158_v22 = vand.u32 4294901760, %v16157_v32 }
0x17d6   :  { %v25755_v28 = vsub.f32 %v25745_v5, %v15435_v58 }
0x17d7   :  { %v15440_v59 = vmul.f32 %v25752_v49, %v25752_v49  ;;  %v22218_v58 = vpack.c.bf16 %v16158_v22, %v16151_v8  ;;  %v16614_v22 = vand.u32 4294901760, %v17778_v36 }
0x17d8   :  { %v15439_v45 = vmul.f32 %v25755_v28, %v25755_v28 }
0x17d9   :  { %v15444_v14 = vsel %vm327_vm0, %v15440_v59, 0.0  ;;  %v22178_v59 = vpack.c.bf16 %v15602_v60, %v15595_v43 }
0x17da   :  { %v15441_v62 = vsel %vm327_vm0, %v15439_v45, 0.0  ;;  %v22174_v45 = vpack.c.bf16 %v15588_v61, %v15581_v17 }
0x17db   :  { %15442 = vadd.xlane.f32.xlu0 %v15441_v62  ;;  %v22222_v62 = vpack.c.bf16 %v16141_v30, %v16134_v9 }
0x17df   :  { %15445 = vadd.xlane.f32.xlu0 %v15444_v14  ;;  %v22226_v14 = vpack.c.bf16 %v16155_v47, %v16148_v33 }
0x1868   :  { %v15443_v38 = vpop.xlane.xlu0 %15442 }
0x1869   :  { %v15447_v6 = vmul.f32 0.03125, %v15443_v38 }
0x186b   :  { %v15449_v34 = vadd.f32 1e-05, %v15447_v6 }
0x186c   :  { %v15446_v2 = vpop.xlane.xlu0 %15445 }
0x186d   :  { %22962 = vrsqrt.f32 %v15449_v34  ;;  %v15448_v18 = vmul.f32 0.03125, %v15446_v2 }
0x186f   :  { %v15450_v10 = vadd.f32 1e-05, %v15448_v18 }
0x1871   :  { %22964 = vrsqrt.f32 %v15450_v10 }
0x1877   :  { %v22963_v11 = vpop.eup %22962 }
0x1878   :  { %v15453_v17 = vmul.f32 %v22963_v11, %v25755_v28 }
0x187a   :  { %v15461_v27 = vmul.f32 %v17767_v31, %v15453_v17 }
0x187b   :  { %v22965_v61 = vpop.eup %22964 }
0x187c   :  { %v15454_v9 = vmul.f32 %v22965_v61, %v25752_v49  ;;  %v15469_v30 = vadd.f32 %v17768_v3, %v15461_v27 }
0x187e   :  { %v15462_v44 = vmul.f32 %v17767_v31, %v15454_v9  ;;  %v15485_v41 = vsel %vm327_vm0, %v15469_v30, 0 }
0x187f   :  { %v25790_v55 = vand.u32 4294901760, %v15485_v41 }
0x1880   :  { %v15470_v24 = vadd.f32 %v17768_v3, %v15462_v44 }
0x1881   :  { %v15560_v63 = vsub.f32 %v15485_v41, %v25790_v55 }
0x1882   :  { %v15488_v15 = vsel %vm327_vm0, %v15470_v24, 0 }
0x1883   :  { %v25794_v48 = vand.u32 4294901760, %v15488_v15  ;;  %v15561_v43 = vand.u32 4294901760, %v15560_v63 }
0x1885   :  { %v15570_v28 = vsub.f32 %v15488_v15, %v25794_v48  ;;  %v15562_v39 = vsub.f32 %v15560_v63, %v15561_v43 }
0x1887   :  { %v15563_v46 = vand.u32 4294901760, %v15562_v39  ;;  %v15571_v16 = vand.u32 4294901760, %v15570_v28 }
0x1889   :  { %20798 = vmatprep.mubr.f32.mxu1 %v15563_v46  ;;  %20864 = vmatprep.mubr.f32.mxu0 %v15563_v46  ;;  %v15572_v49 = vsub.f32 %v15570_v28, %v15571_v16 }
0x188b   :  { %v15573_v60 = vand.u32 4294901760, %v15572_v49 }
0x188d   :  { %20799 = vmatmul.mubr.f32.vlgmr.msra.gmra.mrb[30].mxu1 %v15573_v60  ;;  %20865 = vmatmul.mubr.f32.vlgmr.msra.gmra.mrb[32].mxu0 %v15573_v60 }
0x188e   :  { %22169 = vmatpush3.bf16.msra.mxu1 %v22166_v25  ;;  %20809 = vmatprep.mubr.f32.mxu1 %v25790_v55 }
0x188f   :  { %22217 = vmatpush3.bf16.msra.mxu0 %v22214_v51  ;;  %20875 = vmatprep.mubr.f32.mxu0 %v25790_v55  ;;  %v17777_v51 = vld [vmem:[%s25997_s21 + $0x60] sm:$0xff] }
0x1890   :  { %22171 = vmatprep.subr.bf16.mxu1 %v22170_v56  ;;  %22219 = vmatprep.subr.bf16.mxu0 %v22218_v58  ;;  %v16611_v8 = vand.u32 4294901760, %v17777_v51 }
0x1892   :  { %22173 = vmatpush3.bf16.msra.mxu1 %v22170_v56 }
0x1893   :  { %22221 = vmatpush3.bf16.msra.mxu0 %v22218_v58  ;;  %22175 = vmatprep.subr.bf16.mxu1 %v22174_v45 }
0x1894   :  { %22223 = vmatprep.subr.bf16.mxu0 %v22222_v62 }
0x1895   :  { %20810 = vmatmul.mubr.f32.vlgmr.msra.gmra.mrb[30].mxu1 %v25794_v48 }
0x1896   :  { %20876 = vmatmul.mubr.f32.vlgmr.msra.gmra.mrb[32].mxu0 %v25794_v48  ;;  %22177 = vmatpush3.bf16.msra.mxu1 %v22174_v45 }
0x1897   :  { %20820 = vmatprep.mubr.f32.mxu1 %v15560_v63  ;;  %22225 = vmatpush3.bf16.msra.mxu0 %v22222_v62  ;;  %v16721_v62 = vsub.f32 %v17777_v51, %v16611_v8 }
0x1898   :  { %20886 = vmatprep.mubr.f32.mxu0 %v15560_v63  ;;  %22179 = vmatprep.subr.bf16.mxu1 %v22178_v59 }
0x1899   :  { %22227 = vmatprep.subr.bf16.mxu0 %v22226_v14  ;;  %v16722_v6 = vand.u32 4294901760, %v16721_v62 }
0x189a   :  { %22181 = vmatpush3.bf16.msra.mxu1 %v22178_v59  ;;  %v16728_v59 = vsub.f32 %v17778_v36, %v16614_v22 }
0x189b   :  { %22229 = vmatpush3.bf16.msra.mxu0 %v22226_v14  ;;  %22183 = vmatprep.subr.bf16.mxu1 %v25763_v1  ;;  %v17779_v14 = vld [vmem:[%s25997_s21 + $0x70] sm:$0xff]  ;;  %v16723_v11 = vsub.f32 %v16721_v62, %v16722_v6 }
0x189c   :  { %22231 = vmatprep.subr.bf16.mxu0 %v25765_v13  ;;  %v16729_v34 = vand.u32 4294901760, %v16728_v59  ;;  %v22294_v46 = vpack.c.bf16 %v16728_v59, %v16721_v62 }
0x189d   :  { %20821 = vmatmul.mubr.f32.vlgmr.msra.gmra.mrb[30].mxu1 %v15570_v28  ;;  %v16724_v27 = vand.u32 4294901760, %v16723_v11  ;;  %v17182_v11 = vld [vmem:[%s26043_s15 + $0x10] sm:$0xff] }
0x189e   :  { %20887 = vmatmul.mubr.f32.vlgmr.msra.gmra.mrb[32].mxu0 %v15570_v28  ;;  %22185 = vmatpush3.bf16.msra.mxu1 %v25763_v1  ;;  %v16730_v31 = vsub.f32 %v16728_v59, %v16729_v34 }
0x189f   :  { %20831 = vmatprep.mubr.f32.mxu1 %v15561_v43  ;;  %22233 = vmatpush3.bf16.msra.mxu0 %v25765_v13 }
0x18a0   :  { %20897 = vmatprep.mubr.f32.mxu0 %v15561_v43  ;;  %22187 = vmatprep.subr.bf16.mxu1 %v25768_v20  ;;  %v16731_v61 = vand.u32 4294901760, %v16730_v31  ;;  %v17183_v31 = vld [vmem:[%s26043_s15 + $0x18] sm:$0xff] }
0x18a1   :  { %22235 = vmatprep.subr.bf16.mxu0 %v25774_v0 }
0x18a2   :  { %22189 = vmatpush3.bf16.msra.mxu1 %v25768_v20  ;;  %v22278_v41 = vpack.c.bf16 %v16731_v61, %v16724_v27  ;;  %v17207_v27 = vand.u32 4294901760, %v17183_v31 }
0x18a3   :  { %22237 = vmatpush3.bf16.msra.mxu0 %v25774_v0  ;;  %22191 = vmatprep.subr.bf16.mxu1 %v25779_v21 }
0x18a4   :  { %22239 = vmatprep.subr.bf16.mxu0 %v25781_v23 }
0x18a5   :  { %20832 = vmatmul.mubr.f32.vlgmr.msra.gmra.mrb[30].mxu1 %v15571_v16 }
0x18a6   :  { %20898 = vmatmul.mubr.f32.vlgmr.msra.gmra.mrb[32].mxu0 %v15571_v16  ;;  %22193 = vmatpush3.bf16.msra.mxu1 %v25779_v21  ;;  %v17780_v21 = vld [vmem:[%s25997_s21 + $0x78] sm:$0xff] }
0x18a7   :  { %20842 = vmatprep.mubr.f32.mxu1 %v25790_v55  ;;  %22241 = vmatpush3.bf16.msra.mxu0 %v25781_v23  ;;  %v16620_v38 = vand.u32 4294901760, %v17780_v21 }
0x18a8   :  { %20908 = vmatprep.mubr.f32.mxu0 %v25790_v55  ;;  %22195 = vmatprep.subr.bf16.mxu1 %v25783_v7 }
0x18a9   :  { %22243 = vmatprep.subr.bf16.mxu0 %v25785_v40  ;;  %v16742_v10 = vsub.f32 %v17780_v21, %v16620_v38 }
0x18aa   :  { %22197 = vmatpush3.bf16.msra.mxu1 %v25783_v7 }
0x18ab   :  { %22245 = vmatpush3.bf16.msra.mxu0 %v25785_v40  ;;  %22199 = vmatprep.subr.bf16.mxu1 %v25763_v1  ;;  %v16617_v40 = vand.u32 4294901760, %v17779_v14  ;;  %v16743_v3 = vand.u32 4294901760, %v16742_v10 }
0x18ac   :  { %22247 = vmatprep.subr.bf16.mxu0 %v25765_v13 }
0x18ad   :  { %20843 = vmatmul.mubr.f32.vlgmr.msra.gmra.mrb[30].mxu1 %v25794_v48  ;;  %v16735_v18 = vsub.f32 %v17779_v14, %v16617_v40  ;;  %v16744_v30 = vsub.f32 %v16742_v10, %v16743_v3  ;;  %v25889_v28 = vpack.c.bf16 %v16620_v38, %v16617_v40 }
0x18ae   :  { %20909 = vmatmul.mubr.f32.vlgmr.msra.gmra.mrb[32].mxu0 %v25794_v48  ;;  %22201 = vmatpush3.bf16.msra.mxu1 %v25763_v1  ;;  %v17773_v1 = vld [vmem:[%s25997_s21 + $0x40] sm:$0xff] }
0x18af   :  { %20853 = vmatprep.mubr.f32.mxu1 %v25790_v55  ;;  %22249 = vmatpush3.bf16.msra.mxu0 %v25765_v13  ;;  %v17774_v13 = vld [vmem:[%s25997_s21 + $0x48] sm:$0xff]  ;;  %v16599_v29 = vand.u32 4294901760, %v17773_v1  ;;  %v16736_v17 = vand.u32 4294901760, %v16735_v18  ;;  %v16745_v24 = vand.u32 4294901760, %v16744_v30  ;;  %v22298_v16 = vpack.c.bf16 %v16742_v10, %v16735_v18 }
0x18b0   :  { %20919 = vmatprep.mubr.f32.mxu0 %v25790_v55  ;;  %22203 = vmatprep.subr.bf16.mxu1 %v25768_v20  ;;  %v16602_v26 = vand.u32 4294901760, %v17774_v13 }
0x18b1   :  { %22251 = vmatprep.subr.bf16.mxu0 %v25774_v0  ;;  %v25839_v33 = vsub.f32 %v17773_v1, %v16599_v29  ;;  %v16737_v9 = vsub.f32 %v16735_v18, %v16736_v17  ;;  %v25905_v1 = vpack.c.bf16 %v16729_v34, %v16722_v6  ;;  %v17180_v34 = vld [vmem:[%s26043_s15] sm:$0xff] }
0x18b2   :  { %22205 = vmatpush3.bf16.msra.mxu1 %v25768_v20  ;;  %v25841_v47 = vsub.f32 %v17774_v13, %v16602_v26  ;;  %v17775_v20 = vld [vmem:[%s25997_s21 + $0x50] sm:$0xff]  ;;  %v25877_v44 = vpack.c.bf16 %v16602_v26, %v16599_v29  ;;  %v25907_v13 = vpack.c.bf16 %v16743_v3, %v16736_v17  ;;  %v17769_v29 = vld [vmem:[#allocation25 + $0x1] ss:$0 sm:$0xff]  ;;  %v17198_v18 = vand.u32 4294901760, %v17180_v34 }
0x18b3   :  { %22253 = vmatpush3.bf16.msra.mxu0 %v25774_v0  ;;  %v17776_v0 = vld [vmem:[%s25997_s21 + $0x58] sm:$0xff]  ;;  %v16694_v57 = vand.u32 4294901760, %v25839_v33  ;;  %v16605_v42 = vand.u32 4294901760, %v17775_v20  ;;  %v16738_v55 = vand.u32 4294901760, %v16737_v9  ;;  %v17204_v3 = vand.u32 4294901760, %v17182_v11 }
0x18b4   :  { %v16701_v35 = vand.u32 4294901760, %v25841_v47  ;;  %v16608_v37 = vand.u32 4294901760, %v17776_v0  ;;  %22255 = vmatprep.subr.bf16.mxu0 %v25877_v44  ;;  %v22286_v43 = vpack.c.bf16 %v25841_v47, %v25839_v33  ;;  %v17288_v61 = vsub.f32 %v17180_v34, %v17198_v18 }
0x18b5   :  { %20854 = vmatmul.mubr.f32.vlgmr.msra.gmra.mrb[30].mxu1 %v25794_v48  ;;  %v16695_v54 = vsub.f32 %v25839_v33, %v16694_v57  ;;  %v25857_v19 = vsub.f32 %v17775_v20, %v16605_v42  ;;  %v22282_v63 = vpack.c.bf16 %v16745_v24, %v16738_v55  ;;  %v25950_v30 = vpack.c.bf16 %v17207_v27, %v17204_v3 }
0x18b6   :  { %20920 = vmatmul.mubr.f32.vlgmr.msra.gmra.mrb[32].mxu0 %v25794_v48  ;;  %v16702_v52 = vsub.f32 %v25841_v47, %v16701_v35  ;;  %v25859_v25 = vsub.f32 %v17776_v0, %v16608_v37  ;;  %v25881_v15 = vpack.c.bf16 %v16608_v37, %v16605_v42  ;;  %v25883_v48 = vpack.c.bf16 %v16614_v22, %v16611_v8 }
0x18b7   :  { %v16696_v12 = vand.u32 4294901760, %v16695_v54  ;;  %v16708_v32 = vand.u32 4294901760, %v25857_v19  ;;  %22257 = vmatpush3.bf16.msra.mxu0 %v25877_v44  ;;  %v25901_v49 = vpack.c.bf16 %v16701_v35, %v16694_v57  ;;  %v17302_v24 = vsub.f32 %v17182_v11, %v17204_v3 }
0x18b8   :  { %v16703_v53 = vand.u32 4294901760, %v16702_v52  ;;  %v16715_v4 = vand.u32 4294901760, %v25859_v25  ;;  %22259 = vmatprep.subr.bf16.mxu0 %v25881_v15  ;;  %v22290_v39 = vpack.c.bf16 %v25859_v25, %v25857_v19 }
0x18b9   :  { %v16709_v58 = vsub.f32 %v25857_v19, %v16708_v32 }
0x18ba   :  { %v22270_v56 = vpack.c.bf16 %v16703_v53, %v16696_v12  ;;  %v16716_v45 = vsub.f32 %v25859_v25, %v16715_v4  ;;  %v25903_v60 = vpack.c.bf16 %v16715_v4, %v16708_v32  ;;  %v17772_v25 = vld [vmem:[#allocation28 + $0x1] ss:$0 sm:$0xff] }
0x18bb   :  { %v16710_v23 = vand.u32 4294901760, %v16709_v58  ;;  %22261 = vmatpush3.bf16.msra.mxu0 %v25881_v15 }
0x18bc   :  { %22271 = vmatprep.subr.bf16.mxu1 %v22270_v56  ;;  %v16717_v7 = vand.u32 4294901760, %v16716_v45  ;;  %22263 = vmatprep.subr.bf16.mxu0 %v25883_v48 }
0x18bd   :  { %22273 = vmatpush3.bf16.msra.mxu1 %v22270_v56 }
0x18be   :  { %v22274_v2 = vpack.c.bf16 %v16717_v7, %v16710_v23 }
0x18bf   :  { %22265 = vmatpush3.bf16.msra.mxu0 %v25883_v48 }
0x18c0   :  { %22275 = vmatprep.subr.bf16.mxu1 %v22274_v2  ;;  %22267 = vmatprep.subr.bf16.mxu0 %v25889_v28 }
0x18c1   :  { %22277 = vmatpush3.bf16.msra.mxu1 %v22274_v2  ;;  %v17181_v2 = vld [vmem:[%s26043_s15 + $0x8] sm:$0xff] }
0x18c2   :  { %22279 = vmatprep.subr.bf16.mxu1 %v22278_v41  ;;  %v17201_v10 = vand.u32 4294901760, %v17181_v2 }
0x18c3   :  { %22269 = vmatpush3.bf16.msra.mxu0 %v25889_v28 }
0x18c4   :  { %v25947_v17 = vpack.c.bf16 %v17201_v10, %v17198_v18  ;;  %v17295_v9 = vsub.f32 %v17181_v2, %v17201_v10 }
0x18c5   :  { %22281 = vmatpush3.bf16.msra.mxu1 %v22278_v41 }
0x18c6   :  { %22283 = vmatprep.subr.bf16.mxu1 %v22282_v63  ;;  %22351 = vmatprep.subr.bf16.mxu0 %v25947_v17  ;;  %v17296_v41 = vand.u32 4294901760, %v17295_v9 }
0x18c9   :  { %22285 = vmatpush3.bf16.msra.mxu1 %v22282_v63  ;;  %v17309_v63 = vsub.f32 %v17183_v31, %v17207_v27 }
0x18ca   :  { %22287 = vmatprep.subr.bf16.mxu1 %v22286_v43 }
0x1988   :  { %v20855_v26 = vpop.f32.mrb[30].mxu1 }
0x1989   :  { %v22424_v20 = vadd.f32 %v20855_v26, %v17769_v29  ;;  %v20921_v0 = vpop.f32.mrb[32].mxu0  ;;  %v16008_v42 = vpop.f32.mrb[31].mxu1  ;;  %v22370_v26 = vpack.c.bf16 %v17309_v63, %v17302_v24 }
0x198a   :  { %v22425_v37 = vadd.f32 %v17769_v29, %v16008_v42  ;;  %v16561_v54 = vpop.f32.mrb[33].mxu0  ;;  %v22426_v51 = vadd.f32 %v20921_v0, %v17772_v25  ;;  %v22366_v29 = vpack.c.bf16 %v17295_v9, %v17288_v61 }
0x198b   :  { %v17771_v52 = vmul.f32 -1.442695, %v22424_v20  ;;  %v22427_v36 = vadd.f32 %v17772_v25, %v16561_v54  ;;  %v17782_v54 = vld [vmem:[%s25998_s22 + $0x1] ss:$0 sm:$0xff] }
0x198c   :  { %v17770_v19 = vmul.f32 -1.442695, %v22425_v37  ;;  %v16572_v12 = vmax.f32 %v22426_v51, 0.0 }
0x198d   :  { %22966 = vpow2.f32 %v17771_v52  ;;  %v16571_v32 = vmax.f32 %v22427_v36, 0.0 }
0x198e   :  { %22968 = vpow2.f32 %v17770_v19 }
0x1997   :  { %v22967_v33 = vpop.eup %22966 }
0x1998   :  { %v22969_v47 = vpop.eup %22968  ;;  %v16025_v57 = vadd.f32 1.0, %v22967_v33 }
0x1999   :  { %v16024_v35 = vadd.f32 1.0, %v22969_v47 }
0x199a   :  { %22970 = vrcp.f32 %v16025_v57 }
0x199b   :  { %22972 = vrcp.f32 %v16024_v35 }
0x19a4   :  { %v22971_v53 = vpop.eup %22970 }
0x19a5   :  { %v22973_v4 = vpop.eup %22972  ;;  %v16574_v8 = vmul.f32 %v22971_v53, %v16572_v12 }
0x19a6   :  { %v16573_v22 = vmul.f32 %v22973_v4, %v16571_v32 }
0x19a7   :  { %v16596_v56 = vsel %vm4044_vm2, %v16574_v8, 0 }
0x19a8   :  { %v16681_v58 = vand.u32 4294901760, %v16596_v56  ;;  %v16593_v45 = vsel %vm4044_vm2, %v16573_v22, 0 }
0x19a9   :  { %v16671_v62 = vand.u32 4294901760, %v16593_v45 }
0x19aa   :  { %v16682_v59 = vsub.f32 %v16596_v56, %v16681_v58 }
0x19ab   :  { %20957 = vmatprep.mubr.f32.mxu1 %v16671_v62  ;;  %v16672_v14 = vsub.f32 %v16593_v45, %v16671_v62 }
0x19ac   :  { %20958 = vmatmul.mubr.f32.vlgmr.msra.gmra.mrb[32].mxu1 %v16681_v58  ;;  %v16683_v21 = vand.u32 4294901760, %v16682_v59 }
0x19ad   :  { %22289 = vmatpush3.bf16.msra.mxu1 %v22286_v43  ;;  %20976 = vmatprep.mubr.f32.mxu1 %v16672_v14  ;;  %v16673_v23 = vand.u32 4294901760, %v16672_v14  ;;  %v17303_v43 = vand.u32 4294901760, %v17302_v24 }
0x19ae   :  { %22291 = vmatprep.subr.bf16.mxu1 %v22290_v39  ;;  %v16684_v7 = vsub.f32 %v16682_v59, %v16683_v21 }
0x19af   :  { %v16674_v40 = vsub.f32 %v16672_v14, %v16673_v23 }
0x19b0   :  { %v16685_v6 = vand.u32 4294901760, %v16684_v7 }
0x19b1   :  { %22293 = vmatpush3.bf16.msra.mxu1 %v22290_v39  ;;  %v16675_v38 = vand.u32 4294901760, %v16674_v40 }
0x19b2   :  { %22295 = vmatprep.subr.bf16.mxu1 %v22294_v46 }
0x19b3   :  { %20938 = vmatprep.mubr.f32.mxu0 %v16675_v38 }
0x19b4   :  { %20939 = vmatmul.mubr.f32.vlgmr.msra.gmra.mrb[34].mxu0 %v16685_v6 }
0x19b5   :  { %22297 = vmatpush3.bf16.msra.mxu1 %v22294_v46  ;;  %22353 = vmatpush3.bf16.msra.mxu0 %v25947_v17  ;;  %v17304_v46 = vsub.f32 %v17302_v24, %v17303_v43 }
0x19b6   :  { %22299 = vmatprep.subr.bf16.mxu1 %v22298_v16  ;;  %22355 = vmatprep.subr.bf16.mxu0 %v25950_v30 }
0x19b9   :  { %22301 = vmatpush3.bf16.msra.mxu1 %v22298_v16  ;;  %22357 = vmatpush3.bf16.msra.mxu0 %v25950_v30 }
0x19ba   :  { %22303 = vmatprep.subr.bf16.mxu1 %v25877_v44 }
0x19bc   :  { %20977 = vmatmul.mubr.f32.vlgmr.msra.gmra.mrb[32].mxu1 %v16682_v59 }
0x19bd   :  { %22305 = vmatpush3.bf16.msra.mxu1 %v25877_v44  ;;  %20995 = vmatprep.mubr.f32.mxu1 %v16673_v23 }
0x19be   :  { %22307 = vmatprep.subr.bf16.mxu1 %v25881_v15 }
0x19c1   :  { %22309 = vmatpush3.bf16.msra.mxu1 %v25881_v15 }
0x19c2   :  { %22311 = vmatprep.subr.bf16.mxu1 %v25883_v48 }
0x19c5   :  { %22313 = vmatpush3.bf16.msra.mxu1 %v25883_v48 }
0x19c6   :  { %22315 = vmatprep.subr.bf16.mxu1 %v25889_v28 }
0x19c9   :  { %22317 = vmatpush3.bf16.msra.mxu1 %v25889_v28 }
0x19ca   :  { %22319 = vmatprep.subr.bf16.mxu1 %v25901_v49 }
0x19cc   :  { %20996 = vmatmul.mubr.f32.vlgmr.msra.gmra.mrb[32].mxu1 %v16683_v21 }
0x19cd   :  { %22321 = vmatpush3.bf16.msra.mxu1 %v25901_v49  ;;  %21014 = vmatprep.mubr.f32.mxu1 %v16671_v62 }
0x19ce   :  { %22323 = vmatprep.subr.bf16.mxu1 %v25903_v60 }
0x19d1   :  { %22325 = vmatpush3.bf16.msra.mxu1 %v25903_v60  ;;  %v17305_v60 = vand.u32 4294901760, %v17304_v46 }
0x19d2   :  { %22327 = vmatprep.subr.bf16.mxu1 %v25905_v1 }
0x19d5   :  { %22329 = vmatpush3.bf16.msra.mxu1 %v25905_v1 }
0x19d6   :  { %22331 = vmatprep.subr.bf16.mxu1 %v25907_v13 }
0x19d9   :  { %22333 = vmatpush3.bf16.msra.mxu1 %v25907_v13 }
0x19da   :  { %22335 = vmatprep.subr.bf16.mxu1 %v25877_v44 }
0x19dc   :  { %21015 = vmatmul.mubr.f32.vlgmr.msra.gmra.mrb[32].mxu1 %v16681_v58 }
0x19dd   :  { %22337 = vmatpush3.bf16.msra.mxu1 %v25877_v44  ;;  %21033 = vmatprep.mubr.f32.mxu1 %v16671_v62  ;;  %v17289_v44 = vand.u32 4294901760, %v17288_v61 }
0x19de   :  { %22339 = vmatprep.subr.bf16.mxu1 %v25881_v15 }
0x19df   :  { %v17290_v55 = vsub.f32 %v17288_v61, %v17289_v44  ;;  %v22382_v20 = vpack.c.bf16 %v17296_v41, %v17289_v44 }
0x19e1   :  { %22341 = vmatpush3.bf16.msra.mxu1 %v25881_v15  ;;  %v17297_v15 = vsub.f32 %v17295_v9, %v17296_v41 }
0x19e2   :  { %22343 = vmatprep.subr.bf16.mxu1 %v25883_v48 }
0x19e3   :  { %v17298_v39 = vand.u32 4294901760, %v17297_v15 }
0x19e5   :  { %22345 = vmatpush3.bf16.msra.mxu1 %v25883_v48  ;;  %v17291_v48 = vand.u32 4294901760, %v17290_v55 }
0x19e6   :  { %22347 = vmatprep.subr.bf16.mxu1 %v25889_v28 }
0x19e7   :  { %v22358_v49 = vpack.c.bf16 %v17298_v39, %v17291_v48 }
0x19e9   :  { %22349 = vmatpush3.bf16.msra.mxu1 %v25889_v28  ;;  %v17310_v28 = vand.u32 4294901760, %v17309_v63  ;;  %22359 = vmatprep.subr.bf16.mxu0 %v22358_v49 }
0x19eb   :  { %v17311_v16 = vsub.f32 %v17309_v63, %v17310_v28  ;;  %v22386_v0 = vpack.c.bf16 %v17310_v28, %v17303_v43 }
0x19ec   :  { %21034 = vmatmul.mubr.f32.vlgmr.msra.gmra.mrb[32].mxu1 %v16681_v58 }
0x19ed   :  { %v17312_v1 = vand.u32 4294901760, %v17311_v16 }
0x19ef   :  { %v22362_v13 = vpack.c.bf16 %v17312_v1, %v17305_v60 }
0x1a87   :  { %v20940_v42 = vpop.f32.mrb[34].mxu0 }
0x1a88   :  { %v16677_v37 = vpop.f32.mrb[35].mxu0  ;;  %v16688_v52 = vadd.f32 %v20940_v42, %v17782_v54 }
0x1a89   :  { %v16678_v19 = vadd.f32 %v17782_v54, %v16677_v37 }
0x1abf   :  { %v21035_v33 = vpop.f32.mrb[32].mxu1 }
0x1ac0   :  { %v22429_v47 = vadd.f32 %v21035_v33, %v16688_v52  ;;  %v17168_v57 = vpop.f32.mrb[33].mxu1 }
0x1ac1   :  { %v22431_v35 = vadd.f32 %v17168_v57, %v16678_v19 }
0x1ac2   :  { %v17179_v25 = vadd.f32 %v22429_v47, %v25742_v50  ;;  %v17783_v50 = vld [vmem:[#allocation5] ss:$0 sm:$0xff] }
0x1ac3   :  { %v17178_v51 = vadd.f32 %v22431_v35, %v25745_v5 }
0x1ac4   :  { %v17195_v36 = vsel %vm327_vm0, %v17179_v25, 0 }
0x1ac5   :  { %v17276_v12 = vand.u32 4294901760, %v17195_v36  ;;  %v17192_v53 = vsel %vm327_vm0, %v17178_v51, 0 }
0x1ac6   :  { %v17266_v32 = vand.u32 4294901760, %v17192_v53 }
0x1ac7   :  { %v17277_v4 = vsub.f32 %v17195_v36, %v17276_v12 }
0x1ac8   :  { %v17267_v8 = vsub.f32 %v17192_v53, %v17266_v32 }
0x1ac9   :  { %v17278_v22 = vand.u32 4294901760, %v17277_v4 }
0x1aca   :  { %v17268_v56 = vand.u32 4294901760, %v17267_v8 }
0x1acb   :  { %v17279_v58 = vsub.f32 %v17277_v4, %v17278_v22 }
0x1acc   :  { %v17269_v45 = vsub.f32 %v17267_v8, %v17268_v56 }
0x1acd   :  { %v17280_v59 = vand.u32 4294901760, %v17279_v58 }
0x1ace   :  { %v17270_v62 = vand.u32 4294901760, %v17269_v45 }
0x1ad0   :  { %21044 = vmatprep.mubr.f32.mxu0 %v17270_v62 }
0x1ad1   :  { %21045 = vmatmul.mubr.f32.vlgmr.msra.gmra.mrb[36].mxu0 %v17280_v59 }
0x1ad2   :  { %22361 = vmatpush3.bf16.msra.mxu0 %v22358_v49  ;;  %21055 = vmatprep.mubr.f32.mxu0 %v17266_v32 }
0x1ad3   :  { %22363 = vmatprep.subr.bf16.mxu0 %v22362_v13 }
0x1ad6   :  { %22365 = vmatpush3.bf16.msra.mxu0 %v22362_v13 }
0x1ad7   :  { %22367 = vmatprep.subr.bf16.mxu0 %v22366_v29 }
0x1ad9   :  { %21056 = vmatmul.mubr.f32.vlgmr.msra.gmra.mrb[36].mxu0 %v17276_v12 }
0x1ada   :  { %22369 = vmatpush3.bf16.msra.mxu0 %v22366_v29  ;;  %21066 = vmatprep.mubr.f32.mxu0 %v17267_v8 }
0x1adb   :  { %22371 = vmatprep.subr.bf16.mxu0 %v22370_v26 }
0x1ade   :  { %22373 = vmatpush3.bf16.msra.mxu0 %v22370_v26 }
0x1adf   :  { %22375 = vmatprep.subr.bf16.mxu0 %v25947_v17 }
0x1ae1   :  { %21067 = vmatmul.mubr.f32.vlgmr.msra.gmra.mrb[36].mxu0 %v17277_v4 }
0x1ae2   :  { %22377 = vmatpush3.bf16.msra.mxu0 %v25947_v17  ;;  %21077 = vmatprep.mubr.f32.mxu0 %v17268_v56 }
0x1ae3   :  { %22379 = vmatprep.subr.bf16.mxu0 %v25950_v30 }
0x1ae6   :  { %22381 = vmatpush3.bf16.msra.mxu0 %v25950_v30 }
0x1ae7   :  { %22383 = vmatprep.subr.bf16.mxu0 %v22382_v20 }
0x1ae9   :  { %21078 = vmatmul.mubr.f32.vlgmr.msra.gmra.mrb[36].mxu0 %v17278_v22 }
0x1aea   :  { %22385 = vmatpush3.bf16.msra.mxu0 %v22382_v20  ;;  %21088 = vmatprep.mubr.f32.mxu0 %v17266_v32 }
0x1aeb   :  { %22387 = vmatprep.subr.bf16.mxu0 %v22386_v0 }
0x1aee   :  { %22389 = vmatpush3.bf16.msra.mxu0 %v22386_v0 }
0x1aef   :  { %22391 = vmatprep.subr.bf16.mxu0 %v25947_v17 }
0x1af1   :  { %21089 = vmatmul.mubr.f32.vlgmr.msra.gmra.mrb[36].mxu0 %v17276_v12 }
0x1af2   :  { %22393 = vmatpush3.bf16.msra.mxu0 %v25947_v17  ;;  %21099 = vmatprep.mubr.f32.mxu0 %v17266_v32 }
0x1af3   :  { %22395 = vmatprep.subr.bf16.mxu0 %v25950_v30 }
0x1af6   :  { %22397 = vmatpush3.bf16.msra.mxu0 %v25950_v30 }
0x1af9   :  { %21100 = vmatmul.mubr.f32.vlgmr.msra.gmra.mrb[36].mxu0 %v17276_v12 }
0x1bcc   :  { %v21101_v5 = vpop.f32.mrb[36].mxu0 }
0x1bcd   :  { %v22432_v14 = vadd.f32 %v21101_v5, %v17783_v50  ;;  %v17715_v21 = vpop.f32.mrb[37].mxu0 }
0x1bce   :  { %v22433_v23 = vadd.f32 %v17783_v50, %v17715_v21 }
0x1bcf   :  { %17727 = vst.msk [vmem:[%s26044_s0 + $0x8] sm:$0xff] %vm17725_vm3, %v22432_v14 }
0x1bd0   :  { %17726 = vst.msk [vmem:[%s26044_s0] sm:$0xff] %vm17725_vm3, %v22433_v23 }
0x1bd1   :  { %17732 = vsyncpa [#allocation7], 1 }
0x1bd2   :  { %17733 = vsyncpa [#allocation9], 1 }
0x1bd3   :  { %17734 = vsyncpa [#allocation12], 1 }
0x1bd4   :  { %17735 = vsyncpa [#allocation15], 1 }
0x1bd5   :  { %17736 = vsyncpa [#allocation18], 1 }
0x1bd6   :  { %17737 = vsyncpa [#allocation21], 1 }
0x1bd7   :  { %17738 = vsyncpa [#allocation24], 1 }
0x1bd8   :  { %17739 = vsyncpa [#allocation27], 1 }

</bundles_post_ra>
